<compile_context>
chip_gen: v5e
topology: v5e:2x2
jax: 0.10.0
libtpu: 0.0.40
codegen_flags: <defaults>
</compile_context>

<pallas_src>
import jax
import jax.numpy as jnp
from jax.experimental import pallas as pl
from jax.experimental.pallas import tpu as pltpu

_LANES = 1024            # lane-dense slab width (multiple of 128)
_TILE_ROWS = 1024        # 1024 x 1024 f32 = 4 MiB per tile
_SMALL_N = 64 * 1024     # below this, fused XLA elementwise beats pallas launch overhead


def _fma_kernel(x_ref, w_ref, b_ref, o_ref):
    # Pure VPU elementwise FMA; w/b are SMEM scalars (free operands, no vreg broadcast DMA).
    o_ref[...] = x_ref[...] * w_ref[0] + b_ref[0]


def _fma_slab(slab, w_s, b_s):
    """Apply y = x*w + b over a lane-dense (rows, _LANES) f32 slab with Pallas."""
    rows, lanes = slab.shape
    # Full-array block when everything fits in one tile (always a legal block shape);
    # otherwise a fixed (8,128)-aligned 4 MiB tile — Pallas masks the partial final
    # row block on its own, so no pre-padding is needed.
    tile_rows = min(_TILE_ROWS, rows)
    grid = (pl.cdiv(rows, tile_rows),)
    return pl.pallas_call(
        _fma_kernel,
        out_shape=jax.ShapeDtypeStruct((rows, lanes), jnp.float32),
        grid=grid,
        in_specs=[
            pl.BlockSpec((tile_rows, lanes), lambda i: (i, 0)),
            pl.BlockSpec(memory_space=pltpu.MemorySpace.SMEM),
            pl.BlockSpec(memory_space=pltpu.MemorySpace.SMEM),
        ],
        out_specs=pl.BlockSpec((tile_rows, lanes), lambda i: (i, 0)),
        compiler_params=pltpu.CompilerParams(
            # Shards row-tiles across both TensorCores on v7x; harmless on v5e/v6e.
            dimension_semantics=("parallel",),
            # 4 MiB tiles x (in + out) x double buffering = 16 MiB: raise above v5e's
            # 16 MiB scoped-VMEM default; well inside v6e / v7x limits.
            vmem_limit_bytes=32 * 1024 * 1024,
        ),
    )(slab, w_s, b_s)


def linear_forward(x, weight, bias):
    """y = x @ weight.T + bias for nn.Linear(1, 1) (PyTorch semantics).

    x:      (N, 1) float32
    weight: (1, 1) float32   (PyTorch (out_features, in_features) layout)
    bias:   (1,)   float32
    returns (N, 1) float32
    """
    n, in_f = x.shape
    out_f, in_f2 = weight.shape
    assert in_f == 1 and in_f2 == 1 and out_f == 1, "specialized for Linear(1, 1)"

    w = weight.reshape(()).astype(jnp.float32)
    b = bias.reshape(()).astype(jnp.float32)
    flat = x.reshape(-1).astype(jnp.float32)       # (N, 1) -> (N,): zero-copy

    # Small-N fast path: pallas_call launch overhead dominates below ~64K elements.
    if n < _SMALL_N:
        return (flat * w + b).reshape(n, out_f)

    w_s = w.reshape(1)   # SMEM scalar
    b_s = b.reshape(1)   # SMEM scalar

    rows = n // _LANES
    aligned = rows * _LANES
    if aligned == n:
        # Zero-copy reshape to a lane-dense slab; no pad, no slice, no concat.
        out = _fma_slab(flat.reshape(rows, _LANES), w_s, b_s).reshape(-1)
    else:
        # Kernel handles the lane-aligned prefix; the < _LANES ragged tail goes to XLA.
        head = _fma_slab(flat[:aligned].reshape(rows, _LANES), w_s, b_s).reshape(-1)
        tail = flat[aligned:] * w + b
        out = jnp.concatenate([head, tail])
    return out.reshape(n, out_f)


if __name__ == "__main__":
    input_size = 1
    output_size = 1

    key = jax.random.PRNGKey(0)
    k_w, k_b, k_x0, k_x1, k_x2 = jax.random.split(key, 5)

    # Deterministic params mimicking PyTorch's U(-1/sqrt(fan_in), 1/sqrt(fan_in)).
    bound = 1.0 / (input_size ** 0.5)
    weight = jax.random.uniform(
        k_w, (output_size, input_size), jnp.float32, minval=-bound, maxval=bound
    )
    bias = jax.random.uniform(
        k_b, (output_size,), jnp.float32, minval=-bound, maxval=bound
    )

    def reference(x):
        return x @ weight.T + bias

    # 1) Small shape matching the module's intended toy use (fast path, no pallas launch).
    x_small = jax.random.normal(k_x0, (8, input_size), jnp.float32)
    y_small = linear_forward(x_small, weight, bias)
    jax.block_until_ready(y_small)
    assert y_small.shape == (8, output_size)
    assert jnp.allclose(y_small, reference(x_small), atol=1e-5, rtol=1e-5)

    # 2) Lane-aligned batch: exercises the Pallas kernel with a 2-tile "parallel" grid,
    #    zero-copy slab reshape, no pad / slice / concat.
    n_aligned = 2 * _TILE_ROWS * _LANES            # 2 Mi elements, 8 MiB
    x_aligned = jax.random.normal(k_x1, (n_aligned, input_size), jnp.float32)
    y_aligned = linear_forward(x_aligned, weight, bias)
    jax.block_until_ready(y_aligned)
    assert y_aligned.shape == (n_aligned, output_size)
    assert jnp.allclose(y_aligned, reference(x_aligned), atol=1e-5, rtol=1e-5)

    # 3) Ragged batch: partial final row block inside the kernel + <1024-element jnp tail.
    n_ragged = _TILE_ROWS * _LANES + 513 * _LANES + 37
    x_ragged = jax.random.normal(k_x2, (n_ragged, input_size), jnp.float32)
    y_ragged = linear_forward(x_ragged, weight, bias)
    jax.block_until_ready(y_ragged)
    assert y_ragged.shape == (n_ragged, output_size)
    assert jnp.allclose(y_ragged, reference(x_ragged), atol=1e-5, rtol=1e-5)

    print("KERNEL_OK")
</pallas_src>

<mosaic_0001>
module attributes {stable_mosaic.version = 11 : i64} {
  func.func @_fma_kernel(%arg0: i32, %arg1: memref<1024x1024xf32, #tpu.memory_space<vmem>>, %arg2: memref<1xf32, #tpu.memory_space<smem>>, %arg3: memref<1xf32, #tpu.memory_space<smem>>, %arg4: memref<1024x1024xf32, #tpu.memory_space<vmem>>) attributes {dimension_semantics = [#tpu.dimension_semantics<parallel>], iteration_bounds = array<i64: 2>, scalar_prefetch = 0 : i64, scratch_operands = 0 : i64, tpu.core_type = #tpu.core_type<tc>, window_params = [{transform_indices = @transform_0, window_bounds = array<i64: 1024, 1024>}, {transform_indices = @transform_1, window_bounds = array<i64: 1>}, {transform_indices = @transform_2, window_bounds = array<i64: 1>}, {transform_indices = @transform_3, window_bounds = array<i64: 1024, 1024>}]} {
    %c0 = arith.constant 0 : index
    %c0_0 = arith.constant 0 : index
    %0 = vector.load %arg1[%c0, %c0_0] : memref<1024x1024xf32, #tpu.memory_space<vmem>>, vector<1024x1024xf32>
    %c0_1 = arith.constant 0 : index
    %1 = memref.load %arg2[%c0_1] : memref<1xf32, #tpu.memory_space<smem>>
    %2 = vector.broadcast %1 : f32 to vector<1024x1024xf32>
    %3 = arith.mulf %0, %2 : vector<1024x1024xf32>
    %c0_2 = arith.constant 0 : index
    %4 = memref.load %arg3[%c0_2] : memref<1xf32, #tpu.memory_space<smem>>
    %5 = vector.broadcast %4 : f32 to vector<1024x1024xf32>
    %6 = arith.addf %3, %5 : vector<1024x1024xf32>
    %c0_3 = arith.constant 0 : index
    %c0_4 = arith.constant 0 : index
    %7 = vector.load %arg4[%c0_3, %c0_4] : memref<1024x1024xf32, #tpu.memory_space<vmem>>, vector<1024x1024xf32>
    tpu.vector_store %arg4[%c0_3, %c0_4], %6 {strides = array<i32>} : memref<1024x1024xf32, #tpu.memory_space<vmem>>, vector<1024x1024xf32>,
    return
  }
  func.func @transform_0(%arg0: i32) -> (i32, i32) {
    %c0_i32 = arith.constant 0 : i32
    %c0_i32_0 = arith.constant 0 : i32
    return %arg0, %c0_i32 : i32, i32
  }
  func.func @transform_1(%arg0: i32) -> i32 {
    %c0_i32 = arith.constant 0 : i32
    %c0_i32_0 = arith.constant 0 : i32
    return %c0_i32 : i32
  }
  func.func @transform_2(%arg0: i32) -> i32 {
    %c0_i32 = arith.constant 0 : i32
    %c0_i32_0 = arith.constant 0 : i32
    return %c0_i32 : i32
  }
  func.func @transform_3(%arg0: i32) -> (i32, i32) {
    %c0_i32 = arith.constant 0 : i32
    %c0_i32_0 = arith.constant 0 : i32
    return %arg0, %c0_i32 : i32, i32
  }
}

</mosaic_0001>

<bundles_post_ra>
// kernel: tpu_custom_call.1
= control target key start
LH: loop header
LB: loop body
LE: loop exit
PB: predicated region body
PF: predicated region fallthrough
CT: control target
= control target key end

     0   :  { %s8820_s0 = inlined_call_operand.hbm [shape: f32[2048,1024], index: 0, kind: input, shape index: {}]   ;;  %s8821_s1 = inlined_call_operand.<no memory space> [shape: f32[1], index: 1, kind: input, shape index: {}]   ;;  %s8822_s2 = inlined_call_operand.<no memory space> [shape: f32[1], index: 2, kind: input, shape index: {}]   ;;  %s8823_s3 = inlined_call_operand.hbm [shape: f32[2048,1024], index: 3, kind: output, shape index: {}]  }
   0x1   :  { %8 = sst [smem:[#allocation2]] %s8821_s1 }
   0x2   :  { %9 = sst [smem:[#allocation3]] %s8822_s2 }
   0x3   :  { %10 = vsyncpa [#allocation5], 0 }
   0x4   :  { %12 = vsyncpa [#allocation5 + $0x1], 0 }
   0x5   :  { %13 = vsyncpa [#allocation6], 0 }
   0x6   :  { %15 = vsyncpa [#allocation6 + $0x1], 0  ;;  %s4584_s16 = smov 0   ;;  %s4586_s17 = smov 0  }
   0x7   :  { %s4588_s18 = smov 0   ;;  %s4590_s19 = smov 0  }
   0x8 LB: > { %s4605_s1 = sadd.s32 4294967295, %s4552_s19   ;;  %s4386_s2 = sadd.s32 4294967294, %s4552_s19   ;;  %s4552_s19 = sphi %s4590_s19, %s8833_s19   ;;  %s4548_s18 = sphi %s4588_s18, %s8832_s18   ;;  %s4544_s17 = sphi %s4586_s17, %s8831_s17   ;;  %s4540_s16 = sphi %s4584_s16, %s8830_s16  }
   0x9   : > { %s4609_s20 = sadd.s32 1, %s4552_s19   ;;  %s28_s21 = sadd.s32 1, %s4548_s18 }
   0xa   : > { %s25_s22 = ssub.s32 %s4552_s19, %s4609_s20  ;;  %p35_p0 = scmp.ne.s32.totalorder %s4548_s18, %s4544_s17 }
   0xb   : > { %p26_p1 = scmp.eq.s32.totalorder %s25_s22, 0  ;;  %p36_p2 = scmp.eq.s32.totalorder %s4552_s19, 0 }
   0xc   : > { %p41_p3 = scmp.ne.s32.totalorder %s4544_s17, %s4540_s16  ;;  %p42_p4 = scmp.eq.s32.totalorder %s4605_s1, 0 }
   0xd   : > { %s4621_s23 = scalar_select %p26_p1, %s4548_s18, %s28_s21  }
   0xe   : > { %p4623_p5 = por %p36_p2, %p35_p0  ;;  %p4627_p6 = por %p42_p4, %p41_p3 }
   0xf   : > { %p107_p7 = scmp.eq.s32.totalorder %s4605_s1, 1  ;;  %p113_p8 = scmp.eq.s32.totalorder %s4386_s2, 1 }
  0x10   : > { %p4418_p10 = scmp.lt.s32.totalorder %s4552_s19, 2  ;;  %s139_s28 = sand.u32 1, %s4548_s18  }
  0x11   : > { %p4634_p11 = por %p107_p7, %p35_p0  ;;  %p4638_p12 = por %p113_p8, %p41_p3 }
  0x12   : > { %s4403_s29 = sshll.u32 %s4552_s19, 13  ;;  %s4389_s30 = sshll.u32 %s139_s28, 13 }
  0x13   : > { %s149_s6 = scalar_lea.hbm %s8820_s0, %s4403_s29  ;;  %s143_s8 = scalar_lea.vmem [#allocation4], %s4389_s30 }
  0x14   : > { %s150_s7 = sshll.u32 %s149_s6, 4  ;;  %s152_s9 = sshll.u32 %s143_s8, 4  ;;  %s151_s7 = int_to_ptr.hbm [resolvable:$true] %s150_s7  ;;  %s153_s9 = int_to_ptr.vmem [resolvable:$true] %s152_s9 }
  0x15   : > { %p4649_p13 = pnand %p4418_p10, %p4623_p5  ;;  %p4393_p0 = scmp.ge.s32.totalorder %s4552_s19, 1 }
  0x16   : > { %p160_p1 = scmp.lt.s32.totalorder %s4552_s19, 3  ;;  %s140_s11 = scalar_lea.sflag [#allocation5], %s139_s28 }
  0x17   : > { %s4456_s12 = sshra.s32 %s151_s7, 4  ;;  %p4460_p3 = pneg %p4649_p13  ;;  %s4457_s12 = int_to_ptr.hbm [resolvable:$true] %s4456_s12 }
  0x18   : > { %s4458_s13 = scalar_lea.hbm %s4457_s12, 8192  ;;  %s4463_s2 = scalar_lea.hbm %s8820_s0, 16384 }
  0x19   : > { %p4459_p2 = scmp.ne.s32.totalorder %s4457_s12, %s4458_s13  ;;  %p4464_p5 = scmp.lt.s32.totalorder %s4457_s12, %s8820_s0 }
  0x1a   : > { %p4465_p8 = scmp.lt.s32.totalorder %s4463_s2, %s4458_s13 }
  0x1b   : > { %p4461_p4 = pnand %p4460_p3, %p4459_p2 }
  0x1c   : > { %p4466_p10 = por %p4465_p8, %p4464_p5 }
  0x1d   : > { %p4462_p7 = pneg %p4461_p4 }
  0x1f   : > { %p4467_p9 = pnand %p4466_p10, %p4462_p7 }
  0x21   : > { %4470 = shalt.err (!%p4467_p9)
}
  0x22   : > { %s4554_s24 = smov 1024   ;;  %s4555_s28 = smov 64  }
  0x23   : > { %4413 = dma.hbm_to_vmem [thread:$0]  (!%p4649_p13), %s151_s7, 131072, %s153_s9, %s140_s11, %s4554_s24, %s4554_s24, %s4555_s28  }
  0x24   : > { %p161_p2 = pnand %p4393_p0, %p160_p1 }
  0x25   : > { %s4670_s29 = sand.u32 (!%p161_p2), 1, %s4544_s17  }
  0x26   : > { %164 = sbr.rel (%p161_p2) target bundleno = 1082 (0x43a), region = 32  ;;  %s4394_s30 = sshll.u32 (!%p161_p2), %s4670_s29, 13 }
  0x27   : > { %s167_s4 = scalar_lea.sflag (!%p161_p2), [#allocation5], %s4670_s29  ;;  %s4676_s5 = scalar_lea.vmem (!%p161_p2), [#allocation4], %s4394_s30 }
  0x2b   : > { %4531 = dma.done.wait (%p4627_p6), %s167_s4, 131072  }
  0x2c   : > { %4533 = vsyncadd (%p4627_p6), %s167_s4, 4294836224  ;;  %s1220_s6 = sld [smem:[#allocation2]]  ;;  %v196_v0 = vld [vmem:[%s4676_s5] sm:$0xff]  ;;  %v197_v2 = vld [vmem:[%s4676_s5 + $0x8] sm:$0xff]  ;;  %s4711_s25 = scalar_lea.vmem [#allocation7], %s4394_s30 }
  0x2d   : > { %s2246_s7 = sld [smem:[#allocation3]]  ;;  %v198_v3 = vld [vmem:[%s4676_s5 + $0x10] sm:$0xff]  ;;  %v199_v8 = vld [vmem:[%s4676_s5 + $0x18] sm:$0xff]  ;;  %v200_v9 = vld [vmem:[%s4676_s5 + $0x20] sm:$0xff]  ;;  %s4405_s8 = sshll.u32 %s4605_s1, 13 }
  0x2e   : > { %v201_v10 = vld [vmem:[%s4676_s5 + $0x28] sm:$0xff]  ;;  %v202_v14 = vld [vmem:[%s4676_s5 + $0x30] sm:$0xff]  ;;  %v203_v15 = vld [vmem:[%s4676_s5 + $0x38] sm:$0xff]  ;;  %s4309_s10 = scalar_lea.hbm %s8823_s3, %s4405_s8  ;;  %s4310_s11 = sshll.u32 %s4711_s25, 4  ;;  %s4311_s11 = int_to_ptr.vmem [resolvable:$true] %s4310_s11 }
  0x2f   : > { %v204_v16 = vld [vmem:[%s4676_s5 + $0x40] sm:$0xff]  ;;  %v205_v21 = vld [vmem:[%s4676_s5 + $0x48] sm:$0xff]  ;;  %v206_v24 = vld [vmem:[%s4676_s5 + $0x50] sm:$0xff]  ;;  %s4312_s12 = sshll.u32 %s4309_s10, 4  ;;  %s4297_s13 = scalar_lea.sflag [#allocation6], %s4670_s29  ;;  %s4313_s12 = int_to_ptr.hbm [resolvable:$true] %s4312_s12 }
  0x30   : > { %v207_v27 = vld [vmem:[%s4676_s5 + $0x58] sm:$0xff]  ;;  %v208_v30 = vld [vmem:[%s4676_s5 + $0x60] sm:$0xff]  ;;  %v209_v33 = vld [vmem:[%s4676_s5 + $0x68] sm:$0xff]  ;;  %s4500_s14 = sshra.s32 %s4313_s12, 4  ;;  %s4506_s22 = scalar_lea.hbm %s8823_s3, 16384  ;;  %s4501_s14 = int_to_ptr.hbm [resolvable:$true] %s4500_s14 }
  0x31   : > { %v210_v36 = vld [vmem:[%s4676_s5 + $0x70] sm:$0xff]  ;;  %v211_v39 = vld [vmem:[%s4676_s5 + $0x78] sm:$0xff]  ;;  %v212_v42 = vld [vmem:[%s4676_s5 + $0x80] sm:$0xff]  ;;  %s4502_s15 = scalar_lea.hbm %s4501_s14, 8192  ;;  %p4507_p0 = scmp.lt.s32.totalorder %s4501_s14, %s8823_s3 }
  0x32   : > { %v4683_v1 = vstv %s1220_s6  ;;  %v213_v45 = vld [vmem:[%s4676_s5 + $0x88] sm:$0xff]  ;;  %v214_v48 = vld [vmem:[%s4676_s5 + $0x90] sm:$0xff]  ;;  %v215_v51 = vld [vmem:[%s4676_s5 + $0x98] sm:$0xff]  ;;  %p4503_p6 = scmp.ne.s32.totalorder %s4501_s14, %s4502_s15  ;;  %p4508_p1 = scmp.lt.s32.totalorder %s4506_s22, %s4502_s15 }
  0x33   : > { %v1222_v4 = vmul.f32 %v4683_v1, %v196_v0  ;;  %v4688_v5 = vstv %s2246_s7  ;;  %v1223_v6 = vmul.f32 %v4683_v1, %v197_v2  ;;  %v1224_v7 = vmul.f32 %v4683_v1, %v198_v3  ;;  %v216_v54 = vld [vmem:[%s4676_s5 + $0xa0] sm:$0xff]  ;;  %v217_v57 = vld [vmem:[%s4676_s5 + $0xa8] sm:$0xff]  ;;  %v218_v60 = vld [vmem:[%s4676_s5 + $0xb0] sm:$0xff] }
  0x34   : > { %v1225_v11 = vmul.f32 %v4683_v1, %v199_v8  ;;  %v1226_v12 = vmul.f32 %v4683_v1, %v200_v9  ;;  %v1227_v13 = vmul.f32 %v4683_v1, %v201_v10  ;;  %v1228_v20 = vmul.f32 %v4683_v1, %v202_v14  ;;  %v219_v63 = vld [vmem:[%s4676_s5 + $0xb8] sm:$0xff]  ;;  %v220_v3 = vld [vmem:[%s4676_s5 + $0xc0] sm:$0xff]  ;;  %v222_v10 = vld [vmem:[%s4676_s5 + $0xd0] sm:$0xff]  ;;  %p4504_p9 = pnand %p4503_p6, %p4634_p11  ;;  %p4509_p3 = por %p4508_p1, %p4507_p0 }
  0x35   : > { %v2248_v17 = vadd.f32 %v4688_v5, %v1222_v4  ;;  %v2249_v18 = vadd.f32 %v4688_v5, %v1223_v6  ;;  %v2250_v19 = vadd.f32 %v4688_v5, %v1224_v7  ;;  %v1229_v23 = vmul.f32 %v4683_v1, %v203_v15  ;;  %v221_v7 = vld [vmem:[%s4676_s5 + $0xc8] sm:$0xff] }
  0x36   : > { %v2251_v22 = vadd.f32 %v4688_v5, %v1225_v11  ;;  %v2252_v25 = vadd.f32 %v4688_v5, %v1226_v12  ;;  %v1230_v26 = vmul.f32 %v4683_v1, %v204_v16  ;;  %v2253_v28 = vadd.f32 %v4688_v5, %v1227_v13  ;;  %v223_v13 = vld [vmem:[%s4676_s5 + $0xd8] sm:$0xff]  ;;  %v224_v16 = vld [vmem:[%s4676_s5 + $0xe0] sm:$0xff]  ;;  %p4505_p13 = pneg %p4504_p9 }
  0x37   : > { %3272 = vst [vmem:[%s4711_s25] sm:$0xff] %v2248_v17  ;;  %v1231_v29 = vmul.f32 %v4683_v1, %v205_v21  ;;  %v2254_v31 = vadd.f32 %v4688_v5, %v1228_v20  ;;  %v1232_v32 = vmul.f32 %v4683_v1, %v206_v24  ;;  %v2255_v34 = vadd.f32 %v4688_v5, %v1229_v23 }
  0x38   : > { %3273 = vst [vmem:[%s4711_s25 + $0x8] sm:$0xff] %v2249_v18  ;;  %v1233_v35 = vmul.f32 %v4683_v1, %v207_v27  ;;  %v2256_v37 = vadd.f32 %v4688_v5, %v1230_v26  ;;  %v1234_v38 = vmul.f32 %v4683_v1, %v208_v30  ;;  %v1235_v41 = vmul.f32 %v4683_v1, %v209_v33  ;;  %p4510_p4 = pnand %p4509_p3, %p4505_p13 }
  0x39   : > { %3274 = vst [vmem:[%s4711_s25 + $0x10] sm:$0xff] %v2250_v19  ;;  %v2257_v40 = vadd.f32 %v4688_v5, %v1231_v29  ;;  %v2258_v43 = vadd.f32 %v4688_v5, %v1232_v32  ;;  %v1236_v44 = vmul.f32 %v4683_v1, %v210_v36  ;;  %v1237_v47 = vmul.f32 %v4683_v1, %v211_v39  ;;  %v225_v19 = vld [vmem:[%s4676_s5 + $0xe8] sm:$0xff] }
  0x3a   : > { %3275 = vst [vmem:[%s4711_s25 + $0x18] sm:$0xff] %v2251_v22  ;;  %v2259_v46 = vadd.f32 %v4688_v5, %v1233_v35  ;;  %v2260_v49 = vadd.f32 %v4688_v5, %v1234_v38  ;;  %v1238_v50 = vmul.f32 %v4683_v1, %v212_v42  ;;  %v2261_v52 = vadd.f32 %v4688_v5, %v1235_v41  ;;  %v226_v22 = vld [vmem:[%s4676_s5 + $0xf0] sm:$0xff] }
  0x3b   : > { %3276 = vst [vmem:[%s4711_s25 + $0x20] sm:$0xff] %v2252_v25  ;;  %v1239_v53 = vmul.f32 %v4683_v1, %v213_v45  ;;  %v2262_v55 = vadd.f32 %v4688_v5, %v1236_v44  ;;  %v1240_v56 = vmul.f32 %v4683_v1, %v214_v48  ;;  %v2263_v58 = vadd.f32 %v4688_v5, %v1237_v47  ;;  %v227_v25 = vld [vmem:[%s4676_s5 + $0xf8] sm:$0xff] }
  0x3c   : > { %3277 = vst [vmem:[%s4711_s25 + $0x28] sm:$0xff] %v2253_v28  ;;  %v1241_v59 = vmul.f32 %v4683_v1, %v215_v51  ;;  %v2264_v61 = vadd.f32 %v4688_v5, %v1238_v50  ;;  %v1242_v62 = vmul.f32 %v4683_v1, %v216_v54  ;;  %v1243_v2 = vmul.f32 %v4683_v1, %v217_v57  ;;  %v228_v28 = vld [vmem:[%s4676_s5 + $0x100] sm:$0xff] }
  0x3d   : > { %3278 = vst [vmem:[%s4711_s25 + $0x30] sm:$0xff] %v2254_v31  ;;  %v2265_v0 = vadd.f32 %v4688_v5, %v1239_v53  ;;  %v2266_v4 = vadd.f32 %v4688_v5, %v1240_v56  ;;  %v1244_v6 = vmul.f32 %v4683_v1, %v218_v60  ;;  %v1245_v9 = vmul.f32 %v4683_v1, %v219_v63  ;;  %v229_v31 = vld [vmem:[%s4676_s5 + $0x108] sm:$0xff] }
  0x3e   : > { %3279 = vst [vmem:[%s4711_s25 + $0x38] sm:$0xff] %v2255_v34  ;;  %v2267_v8 = vadd.f32 %v4688_v5, %v1241_v59  ;;  %v2268_v11 = vadd.f32 %v4688_v5, %v1242_v62  ;;  %v1246_v12 = vmul.f32 %v4683_v1, %v220_v3  ;;  %v2269_v14 = vadd.f32 %v4688_v5, %v1243_v2  ;;  %v230_v34 = vld [vmem:[%s4676_s5 + $0x110] sm:$0xff] }
  0x3f   : > { %3280 = vst [vmem:[%s4711_s25 + $0x40] sm:$0xff] %v2256_v37  ;;  %v1247_v15 = vmul.f32 %v4683_v1, %v221_v7  ;;  %v2270_v17 = vadd.f32 %v4688_v5, %v1244_v6  ;;  %v1248_v18 = vmul.f32 %v4683_v1, %v222_v10  ;;  %v2271_v20 = vadd.f32 %v4688_v5, %v1245_v9  ;;  %v231_v37 = vld [vmem:[%s4676_s5 + $0x118] sm:$0xff] }
  0x40   : > { %3281 = vst [vmem:[%s4711_s25 + $0x48] sm:$0xff] %v2257_v40  ;;  %v1249_v21 = vmul.f32 %v4683_v1, %v223_v13  ;;  %v2272_v23 = vadd.f32 %v4688_v5, %v1246_v12  ;;  %v1250_v24 = vmul.f32 %v4683_v1, %v224_v16  ;;  %v1251_v27 = vmul.f32 %v4683_v1, %v225_v19  ;;  %v232_v40 = vld [vmem:[%s4676_s5 + $0x120] sm:$0xff] }
  0x41   : > { %3282 = vst [vmem:[%s4711_s25 + $0x50] sm:$0xff] %v2258_v43  ;;  %v2273_v26 = vadd.f32 %v4688_v5, %v1247_v15  ;;  %v2274_v29 = vadd.f32 %v4688_v5, %v1248_v18  ;;  %v1252_v30 = vmul.f32 %v4683_v1, %v226_v22  ;;  %v1253_v33 = vmul.f32 %v4683_v1, %v227_v25  ;;  %v233_v43 = vld [vmem:[%s4676_s5 + $0x128] sm:$0xff] }
  0x42   : > { %3283 = vst [vmem:[%s4711_s25 + $0x58] sm:$0xff] %v2259_v46  ;;  %v2275_v32 = vadd.f32 %v4688_v5, %v1249_v21  ;;  %v2276_v35 = vadd.f32 %v4688_v5, %v1250_v24  ;;  %v1254_v36 = vmul.f32 %v4683_v1, %v228_v28  ;;  %v2277_v38 = vadd.f32 %v4688_v5, %v1251_v27  ;;  %v234_v46 = vld [vmem:[%s4676_s5 + $0x130] sm:$0xff] }
  0x43   : > { %3284 = vst [vmem:[%s4711_s25 + $0x60] sm:$0xff] %v2260_v49  ;;  %v1255_v39 = vmul.f32 %v4683_v1, %v229_v31  ;;  %v2278_v41 = vadd.f32 %v4688_v5, %v1252_v30  ;;  %v1256_v42 = vmul.f32 %v4683_v1, %v230_v34  ;;  %v2279_v44 = vadd.f32 %v4688_v5, %v1253_v33  ;;  %v235_v49 = vld [vmem:[%s4676_s5 + $0x138] sm:$0xff] }
  0x44   : > { %3285 = vst [vmem:[%s4711_s25 + $0x68] sm:$0xff] %v2261_v52  ;;  %v1257_v45 = vmul.f32 %v4683_v1, %v231_v37  ;;  %v2280_v47 = vadd.f32 %v4688_v5, %v1254_v36  ;;  %v1258_v48 = vmul.f32 %v4683_v1, %v232_v40  ;;  %v1259_v51 = vmul.f32 %v4683_v1, %v233_v43  ;;  %v236_v52 = vld [vmem:[%s4676_s5 + $0x140] sm:$0xff] }
  0x45   : > { %3286 = vst [vmem:[%s4711_s25 + $0x70] sm:$0xff] %v2262_v55  ;;  %v2281_v50 = vadd.f32 %v4688_v5, %v1255_v39  ;;  %v2282_v53 = vadd.f32 %v4688_v5, %v1256_v42  ;;  %v1260_v54 = vmul.f32 %v4683_v1, %v234_v46  ;;  %v237_v55 = vld [vmem:[%s4676_s5 + $0x148] sm:$0xff]  ;;  %v1261_v57 = vmul.f32 %v4683_v1, %v235_v49 }
  0x46   : > { %3287 = vst [vmem:[%s4711_s25 + $0x78] sm:$0xff] %v2263_v58  ;;  %v2283_v56 = vadd.f32 %v4688_v5, %v1257_v45  ;;  %v238_v58 = vld [vmem:[%s4676_s5 + $0x150] sm:$0xff]  ;;  %v2284_v59 = vadd.f32 %v4688_v5, %v1258_v48  ;;  %v1262_v60 = vmul.f32 %v4683_v1, %v236_v52  ;;  %v2285_v62 = vadd.f32 %v4688_v5, %v1259_v51 }
  0x47   : > { %3288 = vst [vmem:[%s4711_s25 + $0x80] sm:$0xff] %v2264_v61  ;;  %v239_v61 = vld [vmem:[%s4676_s5 + $0x158] sm:$0xff]  ;;  %v1263_v63 = vmul.f32 %v4683_v1, %v237_v55  ;;  %v2286_v2 = vadd.f32 %v4688_v5, %v1260_v54  ;;  %v1264_v3 = vmul.f32 %v4683_v1, %v238_v58  ;;  %v2287_v6 = vadd.f32 %v4688_v5, %v1261_v57 }
  0x48   : > { %3289 = vst [vmem:[%s4711_s25 + $0x88] sm:$0xff] %v2265_v0  ;;  %v240_v0 = vld [vmem:[%s4676_s5 + $0x160] sm:$0xff]  ;;  %v1265_v7 = vmul.f32 %v4683_v1, %v239_v61  ;;  %v2288_v9 = vadd.f32 %v4688_v5, %v1262_v60 }
  0x49   : > { %3290 = vst [vmem:[%s4711_s25 + $0x90] sm:$0xff] %v2266_v4  ;;  %v241_v4 = vld [vmem:[%s4676_s5 + $0x168] sm:$0xff]  ;;  %v1266_v10 = vmul.f32 %v4683_v1, %v240_v0  ;;  %v2289_v12 = vadd.f32 %v4688_v5, %v1263_v63  ;;  %v2290_v15 = vadd.f32 %v4688_v5, %v1264_v3 }
  0x4a   : > { %3291 = vst [vmem:[%s4711_s25 + $0x98] sm:$0xff] %v2267_v8  ;;  %v242_v8 = vld [vmem:[%s4676_s5 + $0x170] sm:$0xff]  ;;  %v1267_v13 = vmul.f32 %v4683_v1, %v241_v4  ;;  %v2291_v18 = vadd.f32 %v4688_v5, %v1265_v7 }
  0x4b   : > { %3292 = vst [vmem:[%s4711_s25 + $0xa0] sm:$0xff] %v2268_v11  ;;  %v243_v11 = vld [vmem:[%s4676_s5 + $0x178] sm:$0xff]  ;;  %v1268_v16 = vmul.f32 %v4683_v1, %v242_v8  ;;  %v2292_v21 = vadd.f32 %v4688_v5, %v1266_v10 }
  0x4c   : > { %3293 = vst [vmem:[%s4711_s25 + $0xa8] sm:$0xff] %v2269_v14  ;;  %v244_v14 = vld [vmem:[%s4676_s5 + $0x180] sm:$0xff]  ;;  %v1269_v19 = vmul.f32 %v4683_v1, %v243_v11  ;;  %v2293_v24 = vadd.f32 %v4688_v5, %v1267_v13 }
  0x4d   : > { %3294 = vst [vmem:[%s4711_s25 + $0xb0] sm:$0xff] %v2270_v17  ;;  %v245_v17 = vld [vmem:[%s4676_s5 + $0x188] sm:$0xff]  ;;  %v1270_v22 = vmul.f32 %v4683_v1, %v244_v14  ;;  %v2294_v27 = vadd.f32 %v4688_v5, %v1268_v16 }
  0x4e   : > { %3295 = vst [vmem:[%s4711_s25 + $0xb8] sm:$0xff] %v2271_v20  ;;  %v246_v20 = vld [vmem:[%s4676_s5 + $0x190] sm:$0xff]  ;;  %v1271_v25 = vmul.f32 %v4683_v1, %v245_v17  ;;  %v2295_v30 = vadd.f32 %v4688_v5, %v1269_v19 }
  0x4f   : > { %3296 = vst [vmem:[%s4711_s25 + $0xc0] sm:$0xff] %v2272_v23  ;;  %v247_v23 = vld [vmem:[%s4676_s5 + $0x198] sm:$0xff]  ;;  %v1272_v28 = vmul.f32 %v4683_v1, %v246_v20  ;;  %v2296_v33 = vadd.f32 %v4688_v5, %v1270_v22 }
  0x50   : > { %3297 = vst [vmem:[%s4711_s25 + $0xc8] sm:$0xff] %v2273_v26  ;;  %v248_v26 = vld [vmem:[%s4676_s5 + $0x1a0] sm:$0xff]  ;;  %v1273_v31 = vmul.f32 %v4683_v1, %v247_v23  ;;  %v2297_v36 = vadd.f32 %v4688_v5, %v1271_v25 }
  0x51   : > { %3298 = vst [vmem:[%s4711_s25 + $0xd0] sm:$0xff] %v2274_v29  ;;  %v249_v29 = vld [vmem:[%s4676_s5 + $0x1a8] sm:$0xff]  ;;  %v1274_v34 = vmul.f32 %v4683_v1, %v248_v26  ;;  %v2298_v39 = vadd.f32 %v4688_v5, %v1272_v28 }
  0x52   : > { %3299 = vst [vmem:[%s4711_s25 + $0xd8] sm:$0xff] %v2275_v32  ;;  %v250_v32 = vld [vmem:[%s4676_s5 + $0x1b0] sm:$0xff]  ;;  %v1275_v37 = vmul.f32 %v4683_v1, %v249_v29  ;;  %v2299_v42 = vadd.f32 %v4688_v5, %v1273_v31 }
  0x53   : > { %3300 = vst [vmem:[%s4711_s25 + $0xe0] sm:$0xff] %v2276_v35  ;;  %v251_v35 = vld [vmem:[%s4676_s5 + $0x1b8] sm:$0xff]  ;;  %v1276_v40 = vmul.f32 %v4683_v1, %v250_v32  ;;  %v2300_v45 = vadd.f32 %v4688_v5, %v1274_v34 }
  0x54   : > { %3301 = vst [vmem:[%s4711_s25 + $0xe8] sm:$0xff] %v2277_v38  ;;  %v252_v38 = vld [vmem:[%s4676_s5 + $0x1c0] sm:$0xff]  ;;  %v1277_v43 = vmul.f32 %v4683_v1, %v251_v35  ;;  %v2301_v48 = vadd.f32 %v4688_v5, %v1275_v37 }
  0x55   : > { %3302 = vst [vmem:[%s4711_s25 + $0xf0] sm:$0xff] %v2278_v41  ;;  %v253_v41 = vld [vmem:[%s4676_s5 + $0x1c8] sm:$0xff]  ;;  %v1278_v46 = vmul.f32 %v4683_v1, %v252_v38  ;;  %v2302_v51 = vadd.f32 %v4688_v5, %v1276_v40 }
  0x56   : > { %3303 = vst [vmem:[%s4711_s25 + $0xf8] sm:$0xff] %v2279_v44  ;;  %v254_v44 = vld [vmem:[%s4676_s5 + $0x1d0] sm:$0xff]  ;;  %v1279_v49 = vmul.f32 %v4683_v1, %v253_v41  ;;  %v2303_v54 = vadd.f32 %v4688_v5, %v1277_v43 }
  0x57   : > { %3304 = vst [vmem:[%s4711_s25 + $0x100] sm:$0xff] %v2280_v47  ;;  %v255_v47 = vld [vmem:[%s4676_s5 + $0x1d8] sm:$0xff]  ;;  %v1280_v52 = vmul.f32 %v4683_v1, %v254_v44  ;;  %v2304_v57 = vadd.f32 %v4688_v5, %v1278_v46 }
  0x58   : > { %3305 = vst [vmem:[%s4711_s25 + $0x108] sm:$0xff] %v2281_v50  ;;  %v256_v50 = vld [vmem:[%s4676_s5 + $0x1e0] sm:$0xff]  ;;  %v1281_v55 = vmul.f32 %v4683_v1, %v255_v47  ;;  %v2305_v60 = vadd.f32 %v4688_v5, %v1279_v49 }
  0x59   : > { %3306 = vst [vmem:[%s4711_s25 + $0x110] sm:$0xff] %v2282_v53  ;;  %v257_v53 = vld [vmem:[%s4676_s5 + $0x1e8] sm:$0xff]  ;;  %v1282_v58 = vmul.f32 %v4683_v1, %v256_v50  ;;  %v2306_v63 = vadd.f32 %v4688_v5, %v1280_v52 }
  0x5a   : > { %3307 = vst [vmem:[%s4711_s25 + $0x118] sm:$0xff] %v2283_v56  ;;  %v258_v56 = vld [vmem:[%s4676_s5 + $0x1f0] sm:$0xff]  ;;  %v1283_v61 = vmul.f32 %v4683_v1, %v257_v53  ;;  %v2307_v3 = vadd.f32 %v4688_v5, %v1281_v55 }
  0x5b   : > { %3308 = vst [vmem:[%s4711_s25 + $0x120] sm:$0xff] %v2284_v59  ;;  %v259_v59 = vld [vmem:[%s4676_s5 + $0x1f8] sm:$0xff]  ;;  %v1284_v0 = vmul.f32 %v4683_v1, %v258_v56  ;;  %v2308_v7 = vadd.f32 %v4688_v5, %v1282_v58 }
  0x5c   : > { %3309 = vst [vmem:[%s4711_s25 + $0x128] sm:$0xff] %v2285_v62  ;;  %v260_v62 = vld [vmem:[%s4676_s5 + $0x200] sm:$0xff]  ;;  %v1285_v4 = vmul.f32 %v4683_v1, %v259_v59  ;;  %v2309_v10 = vadd.f32 %v4688_v5, %v1283_v61 }
  0x5d   : > { %3310 = vst [vmem:[%s4711_s25 + $0x130] sm:$0xff] %v2286_v2  ;;  %v261_v2 = vld [vmem:[%s4676_s5 + $0x208] sm:$0xff]  ;;  %v1286_v8 = vmul.f32 %v4683_v1, %v260_v62  ;;  %v2310_v13 = vadd.f32 %v4688_v5, %v1284_v0 }
  0x5e   : > { %3311 = vst [vmem:[%s4711_s25 + $0x138] sm:$0xff] %v2287_v6  ;;  %v262_v6 = vld [vmem:[%s4676_s5 + $0x210] sm:$0xff]  ;;  %v1287_v11 = vmul.f32 %v4683_v1, %v261_v2  ;;  %v2311_v16 = vadd.f32 %v4688_v5, %v1285_v4 }
  0x5f   : > { %3312 = vst [vmem:[%s4711_s25 + $0x140] sm:$0xff] %v2288_v9  ;;  %v263_v9 = vld [vmem:[%s4676_s5 + $0x218] sm:$0xff]  ;;  %v1288_v14 = vmul.f32 %v4683_v1, %v262_v6  ;;  %v2312_v19 = vadd.f32 %v4688_v5, %v1286_v8 }
  0x60   : > { %3313 = vst [vmem:[%s4711_s25 + $0x148] sm:$0xff] %v2289_v12  ;;  %v264_v12 = vld [vmem:[%s4676_s5 + $0x220] sm:$0xff]  ;;  %v1289_v17 = vmul.f32 %v4683_v1, %v263_v9  ;;  %v2313_v22 = vadd.f32 %v4688_v5, %v1287_v11 }
  0x61   : > { %3314 = vst [vmem:[%s4711_s25 + $0x150] sm:$0xff] %v2290_v15  ;;  %v265_v15 = vld [vmem:[%s4676_s5 + $0x228] sm:$0xff]  ;;  %v1290_v20 = vmul.f32 %v4683_v1, %v264_v12  ;;  %v2314_v25 = vadd.f32 %v4688_v5, %v1288_v14 }
  0x62   : > { %3315 = vst [vmem:[%s4711_s25 + $0x158] sm:$0xff] %v2291_v18  ;;  %v266_v18 = vld [vmem:[%s4676_s5 + $0x230] sm:$0xff]  ;;  %v1291_v23 = vmul.f32 %v4683_v1, %v265_v15  ;;  %v2315_v28 = vadd.f32 %v4688_v5, %v1289_v17 }
  0x63   : > { %3316 = vst [vmem:[%s4711_s25 + $0x160] sm:$0xff] %v2292_v21  ;;  %v267_v21 = vld [vmem:[%s4676_s5 + $0x238] sm:$0xff]  ;;  %v1292_v26 = vmul.f32 %v4683_v1, %v266_v18  ;;  %v2316_v31 = vadd.f32 %v4688_v5, %v1290_v20 }
  0x64   : > { %3317 = vst [vmem:[%s4711_s25 + $0x168] sm:$0xff] %v2293_v24  ;;  %v268_v24 = vld [vmem:[%s4676_s5 + $0x240] sm:$0xff]  ;;  %v1293_v29 = vmul.f32 %v4683_v1, %v267_v21  ;;  %v2317_v34 = vadd.f32 %v4688_v5, %v1291_v23 }
  0x65   : > { %3318 = vst [vmem:[%s4711_s25 + $0x170] sm:$0xff] %v2294_v27  ;;  %v269_v27 = vld [vmem:[%s4676_s5 + $0x248] sm:$0xff]  ;;  %v1294_v32 = vmul.f32 %v4683_v1, %v268_v24  ;;  %v2318_v37 = vadd.f32 %v4688_v5, %v1292_v26 }
  0x66   : > { %3319 = vst [vmem:[%s4711_s25 + $0x178] sm:$0xff] %v2295_v30  ;;  %v270_v30 = vld [vmem:[%s4676_s5 + $0x250] sm:$0xff]  ;;  %v1295_v35 = vmul.f32 %v4683_v1, %v269_v27  ;;  %v2319_v40 = vadd.f32 %v4688_v5, %v1293_v29 }
  0x67   : > { %3320 = vst [vmem:[%s4711_s25 + $0x180] sm:$0xff] %v2296_v33  ;;  %v271_v33 = vld [vmem:[%s4676_s5 + $0x258] sm:$0xff]  ;;  %v1296_v38 = vmul.f32 %v4683_v1, %v270_v30  ;;  %v2320_v43 = vadd.f32 %v4688_v5, %v1294_v32 }
  0x68   : > { %3321 = vst [vmem:[%s4711_s25 + $0x188] sm:$0xff] %v2297_v36  ;;  %v272_v36 = vld [vmem:[%s4676_s5 + $0x260] sm:$0xff]  ;;  %v1297_v41 = vmul.f32 %v4683_v1, %v271_v33  ;;  %v2321_v46 = vadd.f32 %v4688_v5, %v1295_v35 }
  0x69   : > { %3322 = vst [vmem:[%s4711_s25 + $0x190] sm:$0xff] %v2298_v39  ;;  %v273_v39 = vld [vmem:[%s4676_s5 + $0x268] sm:$0xff]  ;;  %v1298_v44 = vmul.f32 %v4683_v1, %v272_v36  ;;  %v2322_v49 = vadd.f32 %v4688_v5, %v1296_v38 }
  0x6a   : > { %3323 = vst [vmem:[%s4711_s25 + $0x198] sm:$0xff] %v2299_v42  ;;  %v274_v42 = vld [vmem:[%s4676_s5 + $0x270] sm:$0xff]  ;;  %v1299_v47 = vmul.f32 %v4683_v1, %v273_v39  ;;  %v2323_v52 = vadd.f32 %v4688_v5, %v1297_v41 }
  0x6b   : > { %3324 = vst [vmem:[%s4711_s25 + $0x1a0] sm:$0xff] %v2300_v45  ;;  %v275_v45 = vld [vmem:[%s4676_s5 + $0x278] sm:$0xff]  ;;  %v1300_v50 = vmul.f32 %v4683_v1, %v274_v42  ;;  %v2324_v55 = vadd.f32 %v4688_v5, %v1298_v44 }
  0x6c   : > { %3325 = vst [vmem:[%s4711_s25 + $0x1a8] sm:$0xff] %v2301_v48  ;;  %v276_v48 = vld [vmem:[%s4676_s5 + $0x280] sm:$0xff]  ;;  %v1301_v53 = vmul.f32 %v4683_v1, %v275_v45  ;;  %v2325_v58 = vadd.f32 %v4688_v5, %v1299_v47 }
  0x6d   : > { %3326 = vst [vmem:[%s4711_s25 + $0x1b0] sm:$0xff] %v2302_v51  ;;  %v277_v51 = vld [vmem:[%s4676_s5 + $0x288] sm:$0xff]  ;;  %v1302_v56 = vmul.f32 %v4683_v1, %v276_v48  ;;  %v2326_v61 = vadd.f32 %v4688_v5, %v1300_v50 }
  0x6e   : > { %3327 = vst [vmem:[%s4711_s25 + $0x1b8] sm:$0xff] %v2303_v54  ;;  %v278_v54 = vld [vmem:[%s4676_s5 + $0x290] sm:$0xff]  ;;  %v1303_v59 = vmul.f32 %v4683_v1, %v277_v51  ;;  %v2327_v0 = vadd.f32 %v4688_v5, %v1301_v53 }
  0x6f   : > { %3328 = vst [vmem:[%s4711_s25 + $0x1c0] sm:$0xff] %v2304_v57  ;;  %v279_v57 = vld [vmem:[%s4676_s5 + $0x298] sm:$0xff]  ;;  %v1304_v62 = vmul.f32 %v4683_v1, %v278_v54  ;;  %v2328_v4 = vadd.f32 %v4688_v5, %v1302_v56 }
  0x70   : > { %3329 = vst [vmem:[%s4711_s25 + $0x1c8] sm:$0xff] %v2305_v60  ;;  %v280_v60 = vld [vmem:[%s4676_s5 + $0x2a0] sm:$0xff]  ;;  %v1305_v2 = vmul.f32 %v4683_v1, %v279_v57  ;;  %v2329_v8 = vadd.f32 %v4688_v5, %v1303_v59 }
  0x71   : > { %3330 = vst [vmem:[%s4711_s25 + $0x1d0] sm:$0xff] %v2306_v63  ;;  %v281_v63 = vld [vmem:[%s4676_s5 + $0x2a8] sm:$0xff]  ;;  %v1306_v6 = vmul.f32 %v4683_v1, %v280_v60  ;;  %v2330_v11 = vadd.f32 %v4688_v5, %v1304_v62 }
  0x72   : > { %3331 = vst [vmem:[%s4711_s25 + $0x1d8] sm:$0xff] %v2307_v3  ;;  %v282_v3 = vld [vmem:[%s4676_s5 + $0x2b0] sm:$0xff]  ;;  %v1307_v9 = vmul.f32 %v4683_v1, %v281_v63  ;;  %v2331_v14 = vadd.f32 %v4688_v5, %v1305_v2 }
  0x73   : > { %3332 = vst [vmem:[%s4711_s25 + $0x1e0] sm:$0xff] %v2308_v7  ;;  %v283_v7 = vld [vmem:[%s4676_s5 + $0x2b8] sm:$0xff]  ;;  %v1308_v12 = vmul.f32 %v4683_v1, %v282_v3  ;;  %v2332_v17 = vadd.f32 %v4688_v5, %v1306_v6 }
  0x74   : > { %3333 = vst [vmem:[%s4711_s25 + $0x1e8] sm:$0xff] %v2309_v10  ;;  %v284_v10 = vld [vmem:[%s4676_s5 + $0x2c0] sm:$0xff]  ;;  %v1309_v15 = vmul.f32 %v4683_v1, %v283_v7  ;;  %v2333_v20 = vadd.f32 %v4688_v5, %v1307_v9 }
  0x75   : > { %3334 = vst [vmem:[%s4711_s25 + $0x1f0] sm:$0xff] %v2310_v13  ;;  %v285_v13 = vld [vmem:[%s4676_s5 + $0x2c8] sm:$0xff]  ;;  %v1310_v18 = vmul.f32 %v4683_v1, %v284_v10  ;;  %v2334_v23 = vadd.f32 %v4688_v5, %v1308_v12 }
  0x76   : > { %3335 = vst [vmem:[%s4711_s25 + $0x1f8] sm:$0xff] %v2311_v16  ;;  %v286_v16 = vld [vmem:[%s4676_s5 + $0x2d0] sm:$0xff]  ;;  %v1311_v21 = vmul.f32 %v4683_v1, %v285_v13  ;;  %v2335_v26 = vadd.f32 %v4688_v5, %v1309_v15 }
  0x77   : > { %3336 = vst [vmem:[%s4711_s25 + $0x200] sm:$0xff] %v2312_v19  ;;  %v287_v19 = vld [vmem:[%s4676_s5 + $0x2d8] sm:$0xff]  ;;  %v1312_v24 = vmul.f32 %v4683_v1, %v286_v16  ;;  %v2336_v29 = vadd.f32 %v4688_v5, %v1310_v18 }
  0x78   : > { %3337 = vst [vmem:[%s4711_s25 + $0x208] sm:$0xff] %v2313_v22  ;;  %v288_v22 = vld [vmem:[%s4676_s5 + $0x2e0] sm:$0xff]  ;;  %v1313_v27 = vmul.f32 %v4683_v1, %v287_v19  ;;  %v2337_v32 = vadd.f32 %v4688_v5, %v1311_v21 }
  0x79   : > { %3338 = vst [vmem:[%s4711_s25 + $0x210] sm:$0xff] %v2314_v25  ;;  %v289_v25 = vld [vmem:[%s4676_s5 + $0x2e8] sm:$0xff]  ;;  %v1314_v30 = vmul.f32 %v4683_v1, %v288_v22  ;;  %v2338_v35 = vadd.f32 %v4688_v5, %v1312_v24 }
  0x7a   : > { %3339 = vst [vmem:[%s4711_s25 + $0x218] sm:$0xff] %v2315_v28  ;;  %v290_v28 = vld [vmem:[%s4676_s5 + $0x2f0] sm:$0xff]  ;;  %v1315_v33 = vmul.f32 %v4683_v1, %v289_v25  ;;  %v2339_v38 = vadd.f32 %v4688_v5, %v1313_v27 }
  0x7b   : > { %3340 = vst [vmem:[%s4711_s25 + $0x220] sm:$0xff] %v2316_v31  ;;  %v291_v31 = vld [vmem:[%s4676_s5 + $0x2f8] sm:$0xff]  ;;  %v1316_v36 = vmul.f32 %v4683_v1, %v290_v28  ;;  %v2340_v41 = vadd.f32 %v4688_v5, %v1314_v30 }
  0x7c   : > { %3341 = vst [vmem:[%s4711_s25 + $0x228] sm:$0xff] %v2317_v34  ;;  %v292_v34 = vld [vmem:[%s4676_s5 + $0x300] sm:$0xff]  ;;  %v1317_v39 = vmul.f32 %v4683_v1, %v291_v31  ;;  %v2341_v44 = vadd.f32 %v4688_v5, %v1315_v33 }
  0x7d   : > { %3342 = vst [vmem:[%s4711_s25 + $0x230] sm:$0xff] %v2318_v37  ;;  %v293_v37 = vld [vmem:[%s4676_s5 + $0x308] sm:$0xff]  ;;  %v1318_v42 = vmul.f32 %v4683_v1, %v292_v34  ;;  %v2342_v47 = vadd.f32 %v4688_v5, %v1316_v36 }
  0x7e   : > { %3343 = vst [vmem:[%s4711_s25 + $0x238] sm:$0xff] %v2319_v40  ;;  %v294_v40 = vld [vmem:[%s4676_s5 + $0x310] sm:$0xff]  ;;  %v1319_v45 = vmul.f32 %v4683_v1, %v293_v37  ;;  %v2343_v50 = vadd.f32 %v4688_v5, %v1317_v39 }
  0x7f   : > { %3344 = vst [vmem:[%s4711_s25 + $0x240] sm:$0xff] %v2320_v43  ;;  %v295_v43 = vld [vmem:[%s4676_s5 + $0x318] sm:$0xff]  ;;  %v1320_v48 = vmul.f32 %v4683_v1, %v294_v40  ;;  %v2344_v53 = vadd.f32 %v4688_v5, %v1318_v42 }
  0x80   : > { %3345 = vst [vmem:[%s4711_s25 + $0x248] sm:$0xff] %v2321_v46  ;;  %v296_v46 = vld [vmem:[%s4676_s5 + $0x320] sm:$0xff]  ;;  %v1321_v51 = vmul.f32 %v4683_v1, %v295_v43  ;;  %v2345_v56 = vadd.f32 %v4688_v5, %v1319_v45 }
  0x81   : > { %3346 = vst [vmem:[%s4711_s25 + $0x250] sm:$0xff] %v2322_v49  ;;  %v297_v49 = vld [vmem:[%s4676_s5 + $0x328] sm:$0xff]  ;;  %v1322_v54 = vmul.f32 %v4683_v1, %v296_v46  ;;  %v2346_v59 = vadd.f32 %v4688_v5, %v1320_v48 }
  0x82   : > { %3347 = vst [vmem:[%s4711_s25 + $0x258] sm:$0xff] %v2323_v52  ;;  %v298_v52 = vld [vmem:[%s4676_s5 + $0x330] sm:$0xff]  ;;  %v1323_v57 = vmul.f32 %v4683_v1, %v297_v49  ;;  %v2347_v62 = vadd.f32 %v4688_v5, %v1321_v51 }
  0x83   : > { %3348 = vst [vmem:[%s4711_s25 + $0x260] sm:$0xff] %v2324_v55  ;;  %v299_v55 = vld [vmem:[%s4676_s5 + $0x338] sm:$0xff]  ;;  %v1324_v60 = vmul.f32 %v4683_v1, %v298_v52  ;;  %v2348_v2 = vadd.f32 %v4688_v5, %v1322_v54 }
  0x84   : > { %3349 = vst [vmem:[%s4711_s25 + $0x268] sm:$0xff] %v2325_v58  ;;  %v300_v58 = vld [vmem:[%s4676_s5 + $0x340] sm:$0xff]  ;;  %v1325_v63 = vmul.f32 %v4683_v1, %v299_v55  ;;  %v2349_v6 = vadd.f32 %v4688_v5, %v1323_v57 }
  0x85   : > { %3350 = vst [vmem:[%s4711_s25 + $0x270] sm:$0xff] %v2326_v61  ;;  %v301_v61 = vld [vmem:[%s4676_s5 + $0x348] sm:$0xff]  ;;  %v1326_v3 = vmul.f32 %v4683_v1, %v300_v58  ;;  %v2350_v9 = vadd.f32 %v4688_v5, %v1324_v60 }
  0x86   : > { %3351 = vst [vmem:[%s4711_s25 + $0x278] sm:$0xff] %v2327_v0  ;;  %v302_v0 = vld [vmem:[%s4676_s5 + $0x350] sm:$0xff]  ;;  %v1327_v7 = vmul.f32 %v4683_v1, %v301_v61  ;;  %v2351_v12 = vadd.f32 %v4688_v5, %v1325_v63 }
  0x87   : > { %3352 = vst [vmem:[%s4711_s25 + $0x280] sm:$0xff] %v2328_v4  ;;  %v303_v4 = vld [vmem:[%s4676_s5 + $0x358] sm:$0xff]  ;;  %v1328_v10 = vmul.f32 %v4683_v1, %v302_v0  ;;  %v2352_v15 = vadd.f32 %v4688_v5, %v1326_v3 }
  0x88   : > { %3353 = vst [vmem:[%s4711_s25 + $0x288] sm:$0xff] %v2329_v8  ;;  %v304_v8 = vld [vmem:[%s4676_s5 + $0x360] sm:$0xff]  ;;  %v1329_v13 = vmul.f32 %v4683_v1, %v303_v4  ;;  %v2353_v18 = vadd.f32 %v4688_v5, %v1327_v7 }
  0x89   : > { %3354 = vst [vmem:[%s4711_s25 + $0x290] sm:$0xff] %v2330_v11  ;;  %v305_v11 = vld [vmem:[%s4676_s5 + $0x368] sm:$0xff]  ;;  %v1330_v16 = vmul.f32 %v4683_v1, %v304_v8  ;;  %v2354_v21 = vadd.f32 %v4688_v5, %v1328_v10 }
  0x8a   : > { %3355 = vst [vmem:[%s4711_s25 + $0x298] sm:$0xff] %v2331_v14  ;;  %v306_v14 = vld [vmem:[%s4676_s5 + $0x370] sm:$0xff]  ;;  %v1331_v19 = vmul.f32 %v4683_v1, %v305_v11  ;;  %v2355_v24 = vadd.f32 %v4688_v5, %v1329_v13 }
  0x8b   : > { %3356 = vst [vmem:[%s4711_s25 + $0x2a0] sm:$0xff] %v2332_v17  ;;  %v307_v17 = vld [vmem:[%s4676_s5 + $0x378] sm:$0xff]  ;;  %v1332_v22 = vmul.f32 %v4683_v1, %v306_v14  ;;  %v2356_v27 = vadd.f32 %v4688_v5, %v1330_v16 }
  0x8c   : > { %3357 = vst [vmem:[%s4711_s25 + $0x2a8] sm:$0xff] %v2333_v20  ;;  %v308_v20 = vld [vmem:[%s4676_s5 + $0x380] sm:$0xff]  ;;  %v1333_v25 = vmul.f32 %v4683_v1, %v307_v17  ;;  %v2357_v30 = vadd.f32 %v4688_v5, %v1331_v19 }
  0x8d   : > { %3358 = vst [vmem:[%s4711_s25 + $0x2b0] sm:$0xff] %v2334_v23  ;;  %v309_v23 = vld [vmem:[%s4676_s5 + $0x388] sm:$0xff]  ;;  %v1334_v28 = vmul.f32 %v4683_v1, %v308_v20  ;;  %v2358_v33 = vadd.f32 %v4688_v5, %v1332_v22 }
  0x8e   : > { %3359 = vst [vmem:[%s4711_s25 + $0x2b8] sm:$0xff] %v2335_v26  ;;  %v310_v26 = vld [vmem:[%s4676_s5 + $0x390] sm:$0xff]  ;;  %v1335_v31 = vmul.f32 %v4683_v1, %v309_v23  ;;  %v2359_v36 = vadd.f32 %v4688_v5, %v1333_v25 }
  0x8f   : > { %3360 = vst [vmem:[%s4711_s25 + $0x2c0] sm:$0xff] %v2336_v29  ;;  %v311_v29 = vld [vmem:[%s4676_s5 + $0x398] sm:$0xff]  ;;  %v1336_v34 = vmul.f32 %v4683_v1, %v310_v26  ;;  %v2360_v39 = vadd.f32 %v4688_v5, %v1334_v28 }
  0x90   : > { %3361 = vst [vmem:[%s4711_s25 + $0x2c8] sm:$0xff] %v2337_v32  ;;  %v312_v32 = vld [vmem:[%s4676_s5 + $0x3a0] sm:$0xff]  ;;  %v1337_v37 = vmul.f32 %v4683_v1, %v311_v29  ;;  %v2361_v42 = vadd.f32 %v4688_v5, %v1335_v31 }
  0x91   : > { %3362 = vst [vmem:[%s4711_s25 + $0x2d0] sm:$0xff] %v2338_v35  ;;  %v313_v35 = vld [vmem:[%s4676_s5 + $0x3a8] sm:$0xff]  ;;  %v1338_v40 = vmul.f32 %v4683_v1, %v312_v32  ;;  %v2362_v45 = vadd.f32 %v4688_v5, %v1336_v34 }
  0x92   : > { %3363 = vst [vmem:[%s4711_s25 + $0x2d8] sm:$0xff] %v2339_v38  ;;  %v314_v38 = vld [vmem:[%s4676_s5 + $0x3b0] sm:$0xff]  ;;  %v1339_v43 = vmul.f32 %v4683_v1, %v313_v35  ;;  %v2363_v48 = vadd.f32 %v4688_v5, %v1337_v37 }
  0x93   : > { %3364 = vst [vmem:[%s4711_s25 + $0x2e0] sm:$0xff] %v2340_v41  ;;  %v315_v41 = vld [vmem:[%s4676_s5 + $0x3b8] sm:$0xff]  ;;  %v1340_v46 = vmul.f32 %v4683_v1, %v314_v38  ;;  %v2364_v51 = vadd.f32 %v4688_v5, %v1338_v40 }
  0x94   : > { %3365 = vst [vmem:[%s4711_s25 + $0x2e8] sm:$0xff] %v2341_v44  ;;  %v316_v44 = vld [vmem:[%s4676_s5 + $0x3c0] sm:$0xff]  ;;  %v1341_v49 = vmul.f32 %v4683_v1, %v315_v41  ;;  %v2365_v54 = vadd.f32 %v4688_v5, %v1339_v43 }
  0x95   : > { %3366 = vst [vmem:[%s4711_s25 + $0x2f0] sm:$0xff] %v2342_v47  ;;  %v317_v47 = vld [vmem:[%s4676_s5 + $0x3c8] sm:$0xff]  ;;  %v1342_v52 = vmul.f32 %v4683_v1, %v316_v44  ;;  %v2366_v57 = vadd.f32 %v4688_v5, %v1340_v46 }
  0x96   : > { %3367 = vst [vmem:[%s4711_s25 + $0x2f8] sm:$0xff] %v2343_v50  ;;  %v318_v50 = vld [vmem:[%s4676_s5 + $0x3d0] sm:$0xff]  ;;  %v1343_v55 = vmul.f32 %v4683_v1, %v317_v47  ;;  %v2367_v60 = vadd.f32 %v4688_v5, %v1341_v49 }
  0x97   : > { %3368 = vst [vmem:[%s4711_s25 + $0x300] sm:$0xff] %v2344_v53  ;;  %v319_v53 = vld [vmem:[%s4676_s5 + $0x3d8] sm:$0xff]  ;;  %v1344_v58 = vmul.f32 %v4683_v1, %v318_v50  ;;  %v2368_v63 = vadd.f32 %v4688_v5, %v1342_v52 }
  0x98   : > { %3369 = vst [vmem:[%s4711_s25 + $0x308] sm:$0xff] %v2345_v56  ;;  %v320_v56 = vld [vmem:[%s4676_s5 + $0x3e0] sm:$0xff]  ;;  %v1345_v61 = vmul.f32 %v4683_v1, %v319_v53  ;;  %v2369_v3 = vadd.f32 %v4688_v5, %v1343_v55 }
  0x99   : > { %3370 = vst [vmem:[%s4711_s25 + $0x310] sm:$0xff] %v2346_v59  ;;  %v321_v59 = vld [vmem:[%s4676_s5 + $0x3e8] sm:$0xff]  ;;  %v1346_v0 = vmul.f32 %v4683_v1, %v320_v56  ;;  %v2370_v7 = vadd.f32 %v4688_v5, %v1344_v58 }
  0x9a   : > { %3371 = vst [vmem:[%s4711_s25 + $0x318] sm:$0xff] %v2347_v62  ;;  %v322_v62 = vld [vmem:[%s4676_s5 + $0x3f0] sm:$0xff]  ;;  %v1347_v4 = vmul.f32 %v4683_v1, %v321_v59  ;;  %v2371_v10 = vadd.f32 %v4688_v5, %v1345_v61 }
  0x9b   : > { %3372 = vst [vmem:[%s4711_s25 + $0x320] sm:$0xff] %v2348_v2  ;;  %v323_v2 = vld [vmem:[%s4676_s5 + $0x3f8] sm:$0xff]  ;;  %v1348_v8 = vmul.f32 %v4683_v1, %v322_v62  ;;  %v2372_v13 = vadd.f32 %v4688_v5, %v1346_v0 }
  0x9c   : > { %3373 = vst [vmem:[%s4711_s25 + $0x328] sm:$0xff] %v2349_v6  ;;  %v324_v6 = vld [vmem:[%s4676_s5 + $0x400] sm:$0xff]  ;;  %v1349_v11 = vmul.f32 %v4683_v1, %v323_v2  ;;  %v2373_v16 = vadd.f32 %v4688_v5, %v1347_v4 }
  0x9d   : > { %3374 = vst [vmem:[%s4711_s25 + $0x330] sm:$0xff] %v2350_v9  ;;  %v325_v9 = vld [vmem:[%s4676_s5 + $0x408] sm:$0xff]  ;;  %v1350_v14 = vmul.f32 %v4683_v1, %v324_v6  ;;  %v2374_v19 = vadd.f32 %v4688_v5, %v1348_v8 }
  0x9e   : > { %3375 = vst [vmem:[%s4711_s25 + $0x338] sm:$0xff] %v2351_v12  ;;  %v326_v12 = vld [vmem:[%s4676_s5 + $0x410] sm:$0xff]  ;;  %v1351_v17 = vmul.f32 %v4683_v1, %v325_v9  ;;  %v2375_v22 = vadd.f32 %v4688_v5, %v1349_v11 }
  0x9f   : > { %3376 = vst [vmem:[%s4711_s25 + $0x340] sm:$0xff] %v2352_v15  ;;  %v327_v15 = vld [vmem:[%s4676_s5 + $0x418] sm:$0xff]  ;;  %v1352_v20 = vmul.f32 %v4683_v1, %v326_v12  ;;  %v2376_v25 = vadd.f32 %v4688_v5, %v1350_v14 }
  0xa0   : > { %3377 = vst [vmem:[%s4711_s25 + $0x348] sm:$0xff] %v2353_v18  ;;  %v328_v18 = vld [vmem:[%s4676_s5 + $0x420] sm:$0xff]  ;;  %v1353_v23 = vmul.f32 %v4683_v1, %v327_v15  ;;  %v2377_v28 = vadd.f32 %v4688_v5, %v1351_v17 }
  0xa1   : > { %3378 = vst [vmem:[%s4711_s25 + $0x350] sm:$0xff] %v2354_v21  ;;  %v329_v21 = vld [vmem:[%s4676_s5 + $0x428] sm:$0xff]  ;;  %v1354_v26 = vmul.f32 %v4683_v1, %v328_v18  ;;  %v2378_v31 = vadd.f32 %v4688_v5, %v1352_v20 }
  0xa2   : > { %3379 = vst [vmem:[%s4711_s25 + $0x358] sm:$0xff] %v2355_v24  ;;  %v330_v24 = vld [vmem:[%s4676_s5 + $0x430] sm:$0xff]  ;;  %v1355_v29 = vmul.f32 %v4683_v1, %v329_v21  ;;  %v2379_v34 = vadd.f32 %v4688_v5, %v1353_v23 }
  0xa3   : > { %3380 = vst [vmem:[%s4711_s25 + $0x360] sm:$0xff] %v2356_v27  ;;  %v331_v27 = vld [vmem:[%s4676_s5 + $0x438] sm:$0xff]  ;;  %v1356_v32 = vmul.f32 %v4683_v1, %v330_v24  ;;  %v2380_v37 = vadd.f32 %v4688_v5, %v1354_v26 }
  0xa4   : > { %3381 = vst [vmem:[%s4711_s25 + $0x368] sm:$0xff] %v2357_v30  ;;  %v332_v30 = vld [vmem:[%s4676_s5 + $0x440] sm:$0xff]  ;;  %v1357_v35 = vmul.f32 %v4683_v1, %v331_v27  ;;  %v2381_v40 = vadd.f32 %v4688_v5, %v1355_v29 }
  0xa5   : > { %3382 = vst [vmem:[%s4711_s25 + $0x370] sm:$0xff] %v2358_v33  ;;  %v333_v33 = vld [vmem:[%s4676_s5 + $0x448] sm:$0xff]  ;;  %v1358_v38 = vmul.f32 %v4683_v1, %v332_v30  ;;  %v2382_v43 = vadd.f32 %v4688_v5, %v1356_v32 }
  0xa6   : > { %3383 = vst [vmem:[%s4711_s25 + $0x378] sm:$0xff] %v2359_v36  ;;  %v334_v36 = vld [vmem:[%s4676_s5 + $0x450] sm:$0xff]  ;;  %v1359_v41 = vmul.f32 %v4683_v1, %v333_v33  ;;  %v2383_v46 = vadd.f32 %v4688_v5, %v1357_v35 }
  0xa7   : > { %3384 = vst [vmem:[%s4711_s25 + $0x380] sm:$0xff] %v2360_v39  ;;  %v335_v39 = vld [vmem:[%s4676_s5 + $0x458] sm:$0xff]  ;;  %v1360_v44 = vmul.f32 %v4683_v1, %v334_v36  ;;  %v2384_v49 = vadd.f32 %v4688_v5, %v1358_v38 }
  0xa8   : > { %3385 = vst [vmem:[%s4711_s25 + $0x388] sm:$0xff] %v2361_v42  ;;  %v336_v42 = vld [vmem:[%s4676_s5 + $0x460] sm:$0xff]  ;;  %v1361_v47 = vmul.f32 %v4683_v1, %v335_v39  ;;  %v2385_v52 = vadd.f32 %v4688_v5, %v1359_v41 }
  0xa9   : > { %3386 = vst [vmem:[%s4711_s25 + $0x390] sm:$0xff] %v2362_v45  ;;  %v337_v45 = vld [vmem:[%s4676_s5 + $0x468] sm:$0xff]  ;;  %v1362_v50 = vmul.f32 %v4683_v1, %v336_v42  ;;  %v2386_v55 = vadd.f32 %v4688_v5, %v1360_v44 }
  0xaa   : > { %3387 = vst [vmem:[%s4711_s25 + $0x398] sm:$0xff] %v2363_v48  ;;  %v338_v48 = vld [vmem:[%s4676_s5 + $0x470] sm:$0xff]  ;;  %v1363_v53 = vmul.f32 %v4683_v1, %v337_v45  ;;  %v2387_v58 = vadd.f32 %v4688_v5, %v1361_v47 }
  0xab   : > { %3388 = vst [vmem:[%s4711_s25 + $0x3a0] sm:$0xff] %v2364_v51  ;;  %v339_v51 = vld [vmem:[%s4676_s5 + $0x478] sm:$0xff]  ;;  %v1364_v56 = vmul.f32 %v4683_v1, %v338_v48  ;;  %v2388_v61 = vadd.f32 %v4688_v5, %v1362_v50 }
  0xac   : > { %3389 = vst [vmem:[%s4711_s25 + $0x3a8] sm:$0xff] %v2365_v54  ;;  %v340_v54 = vld [vmem:[%s4676_s5 + $0x480] sm:$0xff]  ;;  %v1365_v59 = vmul.f32 %v4683_v1, %v339_v51  ;;  %v2389_v0 = vadd.f32 %v4688_v5, %v1363_v53 }
  0xad   : > { %3390 = vst [vmem:[%s4711_s25 + $0x3b0] sm:$0xff] %v2366_v57  ;;  %v341_v57 = vld [vmem:[%s4676_s5 + $0x488] sm:$0xff]  ;;  %v1366_v62 = vmul.f32 %v4683_v1, %v340_v54  ;;  %v2390_v4 = vadd.f32 %v4688_v5, %v1364_v56 }
  0xae   : > { %3391 = vst [vmem:[%s4711_s25 + $0x3b8] sm:$0xff] %v2367_v60  ;;  %v342_v60 = vld [vmem:[%s4676_s5 + $0x490] sm:$0xff]  ;;  %v1367_v2 = vmul.f32 %v4683_v1, %v341_v57  ;;  %v2391_v8 = vadd.f32 %v4688_v5, %v1365_v59 }
  0xaf   : > { %3392 = vst [vmem:[%s4711_s25 + $0x3c0] sm:$0xff] %v2368_v63  ;;  %v343_v63 = vld [vmem:[%s4676_s5 + $0x498] sm:$0xff]  ;;  %v1368_v6 = vmul.f32 %v4683_v1, %v342_v60  ;;  %v2392_v11 = vadd.f32 %v4688_v5, %v1366_v62 }
  0xb0   : > { %3393 = vst [vmem:[%s4711_s25 + $0x3c8] sm:$0xff] %v2369_v3  ;;  %v344_v3 = vld [vmem:[%s4676_s5 + $0x4a0] sm:$0xff]  ;;  %v1369_v9 = vmul.f32 %v4683_v1, %v343_v63  ;;  %v2393_v14 = vadd.f32 %v4688_v5, %v1367_v2 }
  0xb1   : > { %3394 = vst [vmem:[%s4711_s25 + $0x3d0] sm:$0xff] %v2370_v7  ;;  %v345_v7 = vld [vmem:[%s4676_s5 + $0x4a8] sm:$0xff]  ;;  %v1370_v12 = vmul.f32 %v4683_v1, %v344_v3  ;;  %v2394_v17 = vadd.f32 %v4688_v5, %v1368_v6 }
  0xb2   : > { %3395 = vst [vmem:[%s4711_s25 + $0x3d8] sm:$0xff] %v2371_v10  ;;  %v346_v10 = vld [vmem:[%s4676_s5 + $0x4b0] sm:$0xff]  ;;  %v1371_v15 = vmul.f32 %v4683_v1, %v345_v7  ;;  %v2395_v20 = vadd.f32 %v4688_v5, %v1369_v9 }
  0xb3   : > { %3396 = vst [vmem:[%s4711_s25 + $0x3e0] sm:$0xff] %v2372_v13  ;;  %v347_v13 = vld [vmem:[%s4676_s5 + $0x4b8] sm:$0xff]  ;;  %v1372_v18 = vmul.f32 %v4683_v1, %v346_v10  ;;  %v2396_v23 = vadd.f32 %v4688_v5, %v1370_v12 }
  0xb4   : > { %3397 = vst [vmem:[%s4711_s25 + $0x3e8] sm:$0xff] %v2373_v16  ;;  %v348_v16 = vld [vmem:[%s4676_s5 + $0x4c0] sm:$0xff]  ;;  %v1373_v21 = vmul.f32 %v4683_v1, %v347_v13  ;;  %v2397_v26 = vadd.f32 %v4688_v5, %v1371_v15 }
  0xb5   : > { %3398 = vst [vmem:[%s4711_s25 + $0x3f0] sm:$0xff] %v2374_v19  ;;  %v349_v19 = vld [vmem:[%s4676_s5 + $0x4c8] sm:$0xff]  ;;  %v1374_v24 = vmul.f32 %v4683_v1, %v348_v16  ;;  %v2398_v29 = vadd.f32 %v4688_v5, %v1372_v18 }
  0xb6   : > { %3399 = vst [vmem:[%s4711_s25 + $0x3f8] sm:$0xff] %v2375_v22  ;;  %v350_v22 = vld [vmem:[%s4676_s5 + $0x4d0] sm:$0xff]  ;;  %v1375_v27 = vmul.f32 %v4683_v1, %v349_v19  ;;  %v2399_v32 = vadd.f32 %v4688_v5, %v1373_v21 }
  0xb7   : > { %3400 = vst [vmem:[%s4711_s25 + $0x400] sm:$0xff] %v2376_v25  ;;  %v351_v25 = vld [vmem:[%s4676_s5 + $0x4d8] sm:$0xff]  ;;  %v1376_v30 = vmul.f32 %v4683_v1, %v350_v22  ;;  %v2400_v35 = vadd.f32 %v4688_v5, %v1374_v24 }
  0xb8   : > { %3401 = vst [vmem:[%s4711_s25 + $0x408] sm:$0xff] %v2377_v28  ;;  %v352_v28 = vld [vmem:[%s4676_s5 + $0x4e0] sm:$0xff]  ;;  %v1377_v33 = vmul.f32 %v4683_v1, %v351_v25  ;;  %v2401_v38 = vadd.f32 %v4688_v5, %v1375_v27 }
  0xb9   : > { %3402 = vst [vmem:[%s4711_s25 + $0x410] sm:$0xff] %v2378_v31  ;;  %v353_v31 = vld [vmem:[%s4676_s5 + $0x4e8] sm:$0xff]  ;;  %v1378_v36 = vmul.f32 %v4683_v1, %v352_v28  ;;  %v2402_v41 = vadd.f32 %v4688_v5, %v1376_v30 }
  0xba   : > { %3403 = vst [vmem:[%s4711_s25 + $0x418] sm:$0xff] %v2379_v34  ;;  %v354_v34 = vld [vmem:[%s4676_s5 + $0x4f0] sm:$0xff]  ;;  %v1379_v39 = vmul.f32 %v4683_v1, %v353_v31  ;;  %v2403_v44 = vadd.f32 %v4688_v5, %v1377_v33 }
  0xbb   : > { %3404 = vst [vmem:[%s4711_s25 + $0x420] sm:$0xff] %v2380_v37  ;;  %v355_v37 = vld [vmem:[%s4676_s5 + $0x4f8] sm:$0xff]  ;;  %v1380_v42 = vmul.f32 %v4683_v1, %v354_v34  ;;  %v2404_v47 = vadd.f32 %v4688_v5, %v1378_v36 }
  0xbc   : > { %3405 = vst [vmem:[%s4711_s25 + $0x428] sm:$0xff] %v2381_v40  ;;  %v356_v40 = vld [vmem:[%s4676_s5 + $0x500] sm:$0xff]  ;;  %v1381_v45 = vmul.f32 %v4683_v1, %v355_v37  ;;  %v2405_v50 = vadd.f32 %v4688_v5, %v1379_v39 }
  0xbd   : > { %3406 = vst [vmem:[%s4711_s25 + $0x430] sm:$0xff] %v2382_v43  ;;  %v357_v43 = vld [vmem:[%s4676_s5 + $0x508] sm:$0xff]  ;;  %v1382_v48 = vmul.f32 %v4683_v1, %v356_v40  ;;  %v2406_v53 = vadd.f32 %v4688_v5, %v1380_v42 }
  0xbe   : > { %3407 = vst [vmem:[%s4711_s25 + $0x438] sm:$0xff] %v2383_v46  ;;  %v358_v46 = vld [vmem:[%s4676_s5 + $0x510] sm:$0xff]  ;;  %v1383_v51 = vmul.f32 %v4683_v1, %v357_v43  ;;  %v2407_v56 = vadd.f32 %v4688_v5, %v1381_v45 }
  0xbf   : > { %3408 = vst [vmem:[%s4711_s25 + $0x440] sm:$0xff] %v2384_v49  ;;  %v359_v49 = vld [vmem:[%s4676_s5 + $0x518] sm:$0xff]  ;;  %v1384_v54 = vmul.f32 %v4683_v1, %v358_v46  ;;  %v2408_v59 = vadd.f32 %v4688_v5, %v1382_v48 }
  0xc0   : > { %3409 = vst [vmem:[%s4711_s25 + $0x448] sm:$0xff] %v2385_v52  ;;  %v360_v52 = vld [vmem:[%s4676_s5 + $0x520] sm:$0xff]  ;;  %v1385_v57 = vmul.f32 %v4683_v1, %v359_v49  ;;  %v2409_v62 = vadd.f32 %v4688_v5, %v1383_v51 }
  0xc1   : > { %3410 = vst [vmem:[%s4711_s25 + $0x450] sm:$0xff] %v2386_v55  ;;  %v361_v55 = vld [vmem:[%s4676_s5 + $0x528] sm:$0xff]  ;;  %v1386_v60 = vmul.f32 %v4683_v1, %v360_v52  ;;  %v2410_v2 = vadd.f32 %v4688_v5, %v1384_v54 }
  0xc2   : > { %3411 = vst [vmem:[%s4711_s25 + $0x458] sm:$0xff] %v2387_v58  ;;  %v362_v58 = vld [vmem:[%s4676_s5 + $0x530] sm:$0xff]  ;;  %v1387_v63 = vmul.f32 %v4683_v1, %v361_v55  ;;  %v2411_v6 = vadd.f32 %v4688_v5, %v1385_v57 }
  0xc3   : > { %3412 = vst [vmem:[%s4711_s25 + $0x460] sm:$0xff] %v2388_v61  ;;  %v363_v61 = vld [vmem:[%s4676_s5 + $0x538] sm:$0xff]  ;;  %v1388_v3 = vmul.f32 %v4683_v1, %v362_v58  ;;  %v2412_v9 = vadd.f32 %v4688_v5, %v1386_v60 }
  0xc4   : > { %3413 = vst [vmem:[%s4711_s25 + $0x468] sm:$0xff] %v2389_v0  ;;  %v364_v0 = vld [vmem:[%s4676_s5 + $0x540] sm:$0xff]  ;;  %v1389_v7 = vmul.f32 %v4683_v1, %v363_v61  ;;  %v2413_v12 = vadd.f32 %v4688_v5, %v1387_v63 }
  0xc5   : > { %3414 = vst [vmem:[%s4711_s25 + $0x470] sm:$0xff] %v2390_v4  ;;  %v365_v4 = vld [vmem:[%s4676_s5 + $0x548] sm:$0xff]  ;;  %v1390_v10 = vmul.f32 %v4683_v1, %v364_v0  ;;  %v2414_v15 = vadd.f32 %v4688_v5, %v1388_v3 }
  0xc6   : > { %3415 = vst [vmem:[%s4711_s25 + $0x478] sm:$0xff] %v2391_v8  ;;  %v366_v8 = vld [vmem:[%s4676_s5 + $0x550] sm:$0xff]  ;;  %v1391_v13 = vmul.f32 %v4683_v1, %v365_v4  ;;  %v2415_v18 = vadd.f32 %v4688_v5, %v1389_v7 }
  0xc7   : > { %3416 = vst [vmem:[%s4711_s25 + $0x480] sm:$0xff] %v2392_v11  ;;  %v367_v11 = vld [vmem:[%s4676_s5 + $0x558] sm:$0xff]  ;;  %v1392_v16 = vmul.f32 %v4683_v1, %v366_v8  ;;  %v2416_v21 = vadd.f32 %v4688_v5, %v1390_v10 }
  0xc8   : > { %3417 = vst [vmem:[%s4711_s25 + $0x488] sm:$0xff] %v2393_v14  ;;  %v368_v14 = vld [vmem:[%s4676_s5 + $0x560] sm:$0xff]  ;;  %v1393_v19 = vmul.f32 %v4683_v1, %v367_v11  ;;  %v2417_v24 = vadd.f32 %v4688_v5, %v1391_v13 }
  0xc9   : > { %3418 = vst [vmem:[%s4711_s25 + $0x490] sm:$0xff] %v2394_v17  ;;  %v369_v17 = vld [vmem:[%s4676_s5 + $0x568] sm:$0xff]  ;;  %v1394_v22 = vmul.f32 %v4683_v1, %v368_v14  ;;  %v2418_v27 = vadd.f32 %v4688_v5, %v1392_v16 }
  0xca   : > { %3419 = vst [vmem:[%s4711_s25 + $0x498] sm:$0xff] %v2395_v20  ;;  %v370_v20 = vld [vmem:[%s4676_s5 + $0x570] sm:$0xff]  ;;  %v1395_v25 = vmul.f32 %v4683_v1, %v369_v17  ;;  %v2419_v30 = vadd.f32 %v4688_v5, %v1393_v19 }
  0xcb   : > { %3420 = vst [vmem:[%s4711_s25 + $0x4a0] sm:$0xff] %v2396_v23  ;;  %v371_v23 = vld [vmem:[%s4676_s5 + $0x578] sm:$0xff]  ;;  %v1396_v28 = vmul.f32 %v4683_v1, %v370_v20  ;;  %v2420_v33 = vadd.f32 %v4688_v5, %v1394_v22 }
  0xcc   : > { %3421 = vst [vmem:[%s4711_s25 + $0x4a8] sm:$0xff] %v2397_v26  ;;  %v372_v26 = vld [vmem:[%s4676_s5 + $0x580] sm:$0xff]  ;;  %v1397_v31 = vmul.f32 %v4683_v1, %v371_v23  ;;  %v2421_v36 = vadd.f32 %v4688_v5, %v1395_v25 }
  0xcd   : > { %3422 = vst [vmem:[%s4711_s25 + $0x4b0] sm:$0xff] %v2398_v29  ;;  %v373_v29 = vld [vmem:[%s4676_s5 + $0x588] sm:$0xff]  ;;  %v1398_v34 = vmul.f32 %v4683_v1, %v372_v26  ;;  %v2422_v39 = vadd.f32 %v4688_v5, %v1396_v28 }
  0xce   : > { %3423 = vst [vmem:[%s4711_s25 + $0x4b8] sm:$0xff] %v2399_v32  ;;  %v374_v32 = vld [vmem:[%s4676_s5 + $0x590] sm:$0xff]  ;;  %v1399_v37 = vmul.f32 %v4683_v1, %v373_v29  ;;  %v2423_v42 = vadd.f32 %v4688_v5, %v1397_v31 }
  0xcf   : > { %3424 = vst [vmem:[%s4711_s25 + $0x4c0] sm:$0xff] %v2400_v35  ;;  %v375_v35 = vld [vmem:[%s4676_s5 + $0x598] sm:$0xff]  ;;  %v1400_v40 = vmul.f32 %v4683_v1, %v374_v32  ;;  %v2424_v45 = vadd.f32 %v4688_v5, %v1398_v34 }
  0xd0   : > { %3425 = vst [vmem:[%s4711_s25 + $0x4c8] sm:$0xff] %v2401_v38  ;;  %v376_v38 = vld [vmem:[%s4676_s5 + $0x5a0] sm:$0xff]  ;;  %v1401_v43 = vmul.f32 %v4683_v1, %v375_v35  ;;  %v2425_v48 = vadd.f32 %v4688_v5, %v1399_v37 }
  0xd1   : > { %3426 = vst [vmem:[%s4711_s25 + $0x4d0] sm:$0xff] %v2402_v41  ;;  %v377_v41 = vld [vmem:[%s4676_s5 + $0x5a8] sm:$0xff]  ;;  %v1402_v46 = vmul.f32 %v4683_v1, %v376_v38  ;;  %v2426_v51 = vadd.f32 %v4688_v5, %v1400_v40 }
  0xd2   : > { %3427 = vst [vmem:[%s4711_s25 + $0x4d8] sm:$0xff] %v2403_v44  ;;  %v378_v44 = vld [vmem:[%s4676_s5 + $0x5b0] sm:$0xff]  ;;  %v1403_v49 = vmul.f32 %v4683_v1, %v377_v41  ;;  %v2427_v54 = vadd.f32 %v4688_v5, %v1401_v43 }
  0xd3   : > { %3428 = vst [vmem:[%s4711_s25 + $0x4e0] sm:$0xff] %v2404_v47  ;;  %v379_v47 = vld [vmem:[%s4676_s5 + $0x5b8] sm:$0xff]  ;;  %v1404_v52 = vmul.f32 %v4683_v1, %v378_v44  ;;  %v2428_v57 = vadd.f32 %v4688_v5, %v1402_v46 }
  0xd4   : > { %3429 = vst [vmem:[%s4711_s25 + $0x4e8] sm:$0xff] %v2405_v50  ;;  %v380_v50 = vld [vmem:[%s4676_s5 + $0x5c0] sm:$0xff]  ;;  %v1405_v55 = vmul.f32 %v4683_v1, %v379_v47  ;;  %v2429_v60 = vadd.f32 %v4688_v5, %v1403_v49 }
  0xd5   : > { %3430 = vst [vmem:[%s4711_s25 + $0x4f0] sm:$0xff] %v2406_v53  ;;  %v381_v53 = vld [vmem:[%s4676_s5 + $0x5c8] sm:$0xff]  ;;  %v1406_v58 = vmul.f32 %v4683_v1, %v380_v50  ;;  %v2430_v63 = vadd.f32 %v4688_v5, %v1404_v52 }
  0xd6   : > { %3431 = vst [vmem:[%s4711_s25 + $0x4f8] sm:$0xff] %v2407_v56  ;;  %v382_v56 = vld [vmem:[%s4676_s5 + $0x5d0] sm:$0xff]  ;;  %v1407_v61 = vmul.f32 %v4683_v1, %v381_v53  ;;  %v2431_v3 = vadd.f32 %v4688_v5, %v1405_v55 }
  0xd7   : > { %3432 = vst [vmem:[%s4711_s25 + $0x500] sm:$0xff] %v2408_v59  ;;  %v383_v59 = vld [vmem:[%s4676_s5 + $0x5d8] sm:$0xff]  ;;  %v1408_v0 = vmul.f32 %v4683_v1, %v382_v56  ;;  %v2432_v7 = vadd.f32 %v4688_v5, %v1406_v58 }
  0xd8   : > { %3433 = vst [vmem:[%s4711_s25 + $0x508] sm:$0xff] %v2409_v62  ;;  %v384_v62 = vld [vmem:[%s4676_s5 + $0x5e0] sm:$0xff]  ;;  %v1409_v4 = vmul.f32 %v4683_v1, %v383_v59  ;;  %v2433_v10 = vadd.f32 %v4688_v5, %v1407_v61 }
  0xd9   : > { %3434 = vst [vmem:[%s4711_s25 + $0x510] sm:$0xff] %v2410_v2  ;;  %v385_v2 = vld [vmem:[%s4676_s5 + $0x5e8] sm:$0xff]  ;;  %v1410_v8 = vmul.f32 %v4683_v1, %v384_v62  ;;  %v2434_v13 = vadd.f32 %v4688_v5, %v1408_v0 }
  0xda   : > { %3435 = vst [vmem:[%s4711_s25 + $0x518] sm:$0xff] %v2411_v6  ;;  %v386_v6 = vld [vmem:[%s4676_s5 + $0x5f0] sm:$0xff]  ;;  %v1411_v11 = vmul.f32 %v4683_v1, %v385_v2  ;;  %v2435_v16 = vadd.f32 %v4688_v5, %v1409_v4 }
  0xdb   : > { %3436 = vst [vmem:[%s4711_s25 + $0x520] sm:$0xff] %v2412_v9  ;;  %v387_v9 = vld [vmem:[%s4676_s5 + $0x5f8] sm:$0xff]  ;;  %v1412_v14 = vmul.f32 %v4683_v1, %v386_v6  ;;  %v2436_v19 = vadd.f32 %v4688_v5, %v1410_v8 }
  0xdc   : > { %3437 = vst [vmem:[%s4711_s25 + $0x528] sm:$0xff] %v2413_v12  ;;  %v388_v12 = vld [vmem:[%s4676_s5 + $0x600] sm:$0xff]  ;;  %v1413_v17 = vmul.f32 %v4683_v1, %v387_v9  ;;  %v2437_v22 = vadd.f32 %v4688_v5, %v1411_v11 }
  0xdd   : > { %3438 = vst [vmem:[%s4711_s25 + $0x530] sm:$0xff] %v2414_v15  ;;  %v389_v15 = vld [vmem:[%s4676_s5 + $0x608] sm:$0xff]  ;;  %v1414_v20 = vmul.f32 %v4683_v1, %v388_v12  ;;  %v2438_v25 = vadd.f32 %v4688_v5, %v1412_v14 }
  0xde   : > { %3439 = vst [vmem:[%s4711_s25 + $0x538] sm:$0xff] %v2415_v18  ;;  %v390_v18 = vld [vmem:[%s4676_s5 + $0x610] sm:$0xff]  ;;  %v1415_v23 = vmul.f32 %v4683_v1, %v389_v15  ;;  %v2439_v28 = vadd.f32 %v4688_v5, %v1413_v17 }
  0xdf   : > { %3440 = vst [vmem:[%s4711_s25 + $0x540] sm:$0xff] %v2416_v21  ;;  %v391_v21 = vld [vmem:[%s4676_s5 + $0x618] sm:$0xff]  ;;  %v1416_v26 = vmul.f32 %v4683_v1, %v390_v18  ;;  %v2440_v31 = vadd.f32 %v4688_v5, %v1414_v20 }
  0xe0   : > { %3441 = vst [vmem:[%s4711_s25 + $0x548] sm:$0xff] %v2417_v24  ;;  %v392_v24 = vld [vmem:[%s4676_s5 + $0x620] sm:$0xff]  ;;  %v1417_v29 = vmul.f32 %v4683_v1, %v391_v21  ;;  %v2441_v34 = vadd.f32 %v4688_v5, %v1415_v23 }
  0xe1   : > { %3442 = vst [vmem:[%s4711_s25 + $0x550] sm:$0xff] %v2418_v27  ;;  %v393_v27 = vld [vmem:[%s4676_s5 + $0x628] sm:$0xff]  ;;  %v1418_v32 = vmul.f32 %v4683_v1, %v392_v24  ;;  %v2442_v37 = vadd.f32 %v4688_v5, %v1416_v26 }
  0xe2   : > { %3443 = vst [vmem:[%s4711_s25 + $0x558] sm:$0xff] %v2419_v30  ;;  %v394_v30 = vld [vmem:[%s4676_s5 + $0x630] sm:$0xff]  ;;  %v1419_v35 = vmul.f32 %v4683_v1, %v393_v27  ;;  %v2443_v40 = vadd.f32 %v4688_v5, %v1417_v29 }
  0xe3   : > { %3444 = vst [vmem:[%s4711_s25 + $0x560] sm:$0xff] %v2420_v33  ;;  %v395_v33 = vld [vmem:[%s4676_s5 + $0x638] sm:$0xff]  ;;  %v1420_v38 = vmul.f32 %v4683_v1, %v394_v30  ;;  %v2444_v43 = vadd.f32 %v4688_v5, %v1418_v32 }
  0xe4   : > { %3445 = vst [vmem:[%s4711_s25 + $0x568] sm:$0xff] %v2421_v36  ;;  %v396_v36 = vld [vmem:[%s4676_s5 + $0x640] sm:$0xff]  ;;  %v1421_v41 = vmul.f32 %v4683_v1, %v395_v33  ;;  %v2445_v46 = vadd.f32 %v4688_v5, %v1419_v35 }
  0xe5   : > { %3446 = vst [vmem:[%s4711_s25 + $0x570] sm:$0xff] %v2422_v39  ;;  %v397_v39 = vld [vmem:[%s4676_s5 + $0x648] sm:$0xff]  ;;  %v1422_v44 = vmul.f32 %v4683_v1, %v396_v36  ;;  %v2446_v49 = vadd.f32 %v4688_v5, %v1420_v38 }
  0xe6   : > { %3447 = vst [vmem:[%s4711_s25 + $0x578] sm:$0xff] %v2423_v42  ;;  %v398_v42 = vld [vmem:[%s4676_s5 + $0x650] sm:$0xff]  ;;  %v1423_v47 = vmul.f32 %v4683_v1, %v397_v39  ;;  %v2447_v52 = vadd.f32 %v4688_v5, %v1421_v41 }
  0xe7   : > { %3448 = vst [vmem:[%s4711_s25 + $0x580] sm:$0xff] %v2424_v45  ;;  %v399_v45 = vld [vmem:[%s4676_s5 + $0x658] sm:$0xff]  ;;  %v1424_v50 = vmul.f32 %v4683_v1, %v398_v42  ;;  %v2448_v55 = vadd.f32 %v4688_v5, %v1422_v44 }
  0xe8   : > { %3449 = vst [vmem:[%s4711_s25 + $0x588] sm:$0xff] %v2425_v48  ;;  %v400_v48 = vld [vmem:[%s4676_s5 + $0x660] sm:$0xff]  ;;  %v1425_v53 = vmul.f32 %v4683_v1, %v399_v45  ;;  %v2449_v58 = vadd.f32 %v4688_v5, %v1423_v47 }
  0xe9   : > { %3450 = vst [vmem:[%s4711_s25 + $0x590] sm:$0xff] %v2426_v51  ;;  %v401_v51 = vld [vmem:[%s4676_s5 + $0x668] sm:$0xff]  ;;  %v1426_v56 = vmul.f32 %v4683_v1, %v400_v48  ;;  %v2450_v61 = vadd.f32 %v4688_v5, %v1424_v50 }
  0xea   : > { %3451 = vst [vmem:[%s4711_s25 + $0x598] sm:$0xff] %v2427_v54  ;;  %v402_v54 = vld [vmem:[%s4676_s5 + $0x670] sm:$0xff]  ;;  %v1427_v59 = vmul.f32 %v4683_v1, %v401_v51  ;;  %v2451_v0 = vadd.f32 %v4688_v5, %v1425_v53 }
  0xeb   : > { %3452 = vst [vmem:[%s4711_s25 + $0x5a0] sm:$0xff] %v2428_v57  ;;  %v403_v57 = vld [vmem:[%s4676_s5 + $0x678] sm:$0xff]  ;;  %v1428_v62 = vmul.f32 %v4683_v1, %v402_v54  ;;  %v2452_v4 = vadd.f32 %v4688_v5, %v1426_v56 }
  0xec   : > { %3453 = vst [vmem:[%s4711_s25 + $0x5a8] sm:$0xff] %v2429_v60  ;;  %v404_v60 = vld [vmem:[%s4676_s5 + $0x680] sm:$0xff]  ;;  %v1429_v2 = vmul.f32 %v4683_v1, %v403_v57  ;;  %v2453_v8 = vadd.f32 %v4688_v5, %v1427_v59 }
  0xed   : > { %3454 = vst [vmem:[%s4711_s25 + $0x5b0] sm:$0xff] %v2430_v63  ;;  %v405_v63 = vld [vmem:[%s4676_s5 + $0x688] sm:$0xff]  ;;  %v1430_v6 = vmul.f32 %v4683_v1, %v404_v60  ;;  %v2454_v11 = vadd.f32 %v4688_v5, %v1428_v62 }
  0xee   : > { %3455 = vst [vmem:[%s4711_s25 + $0x5b8] sm:$0xff] %v2431_v3  ;;  %v406_v3 = vld [vmem:[%s4676_s5 + $0x690] sm:$0xff]  ;;  %v1431_v9 = vmul.f32 %v4683_v1, %v405_v63  ;;  %v2455_v14 = vadd.f32 %v4688_v5, %v1429_v2 }
  0xef   : > { %3456 = vst [vmem:[%s4711_s25 + $0x5c0] sm:$0xff] %v2432_v7  ;;  %v407_v7 = vld [vmem:[%s4676_s5 + $0x698] sm:$0xff]  ;;  %v1432_v12 = vmul.f32 %v4683_v1, %v406_v3  ;;  %v2456_v17 = vadd.f32 %v4688_v5, %v1430_v6 }
  0xf0   : > { %3457 = vst [vmem:[%s4711_s25 + $0x5c8] sm:$0xff] %v2433_v10  ;;  %v408_v10 = vld [vmem:[%s4676_s5 + $0x6a0] sm:$0xff]  ;;  %v1433_v15 = vmul.f32 %v4683_v1, %v407_v7  ;;  %v2457_v20 = vadd.f32 %v4688_v5, %v1431_v9 }
  0xf1   : > { %3458 = vst [vmem:[%s4711_s25 + $0x5d0] sm:$0xff] %v2434_v13  ;;  %v409_v13 = vld [vmem:[%s4676_s5 + $0x6a8] sm:$0xff]  ;;  %v1434_v18 = vmul.f32 %v4683_v1, %v408_v10  ;;  %v2458_v23 = vadd.f32 %v4688_v5, %v1432_v12 }
  0xf2   : > { %3459 = vst [vmem:[%s4711_s25 + $0x5d8] sm:$0xff] %v2435_v16  ;;  %v410_v16 = vld [vmem:[%s4676_s5 + $0x6b0] sm:$0xff]  ;;  %v1435_v21 = vmul.f32 %v4683_v1, %v409_v13  ;;  %v2459_v26 = vadd.f32 %v4688_v5, %v1433_v15 }
  0xf3   : > { %3460 = vst [vmem:[%s4711_s25 + $0x5e0] sm:$0xff] %v2436_v19  ;;  %v411_v19 = vld [vmem:[%s4676_s5 + $0x6b8] sm:$0xff]  ;;  %v1436_v24 = vmul.f32 %v4683_v1, %v410_v16  ;;  %v2460_v29 = vadd.f32 %v4688_v5, %v1434_v18 }
  0xf4   : > { %3461 = vst [vmem:[%s4711_s25 + $0x5e8] sm:$0xff] %v2437_v22  ;;  %v412_v22 = vld [vmem:[%s4676_s5 + $0x6c0] sm:$0xff]  ;;  %v1437_v27 = vmul.f32 %v4683_v1, %v411_v19  ;;  %v2461_v32 = vadd.f32 %v4688_v5, %v1435_v21 }
  0xf5   : > { %3462 = vst [vmem:[%s4711_s25 + $0x5f0] sm:$0xff] %v2438_v25  ;;  %v413_v25 = vld [vmem:[%s4676_s5 + $0x6c8] sm:$0xff]  ;;  %v1438_v30 = vmul.f32 %v4683_v1, %v412_v22  ;;  %v2462_v35 = vadd.f32 %v4688_v5, %v1436_v24 }
  0xf6   : > { %3463 = vst [vmem:[%s4711_s25 + $0x5f8] sm:$0xff] %v2439_v28  ;;  %v414_v28 = vld [vmem:[%s4676_s5 + $0x6d0] sm:$0xff]  ;;  %v1439_v33 = vmul.f32 %v4683_v1, %v413_v25  ;;  %v2463_v38 = vadd.f32 %v4688_v5, %v1437_v27 }
  0xf7   : > { %3464 = vst [vmem:[%s4711_s25 + $0x600] sm:$0xff] %v2440_v31  ;;  %v415_v31 = vld [vmem:[%s4676_s5 + $0x6d8] sm:$0xff]  ;;  %v1440_v36 = vmul.f32 %v4683_v1, %v414_v28  ;;  %v2464_v41 = vadd.f32 %v4688_v5, %v1438_v30 }
  0xf8   : > { %3465 = vst [vmem:[%s4711_s25 + $0x608] sm:$0xff] %v2441_v34  ;;  %v416_v34 = vld [vmem:[%s4676_s5 + $0x6e0] sm:$0xff]  ;;  %v1441_v39 = vmul.f32 %v4683_v1, %v415_v31  ;;  %v2465_v44 = vadd.f32 %v4688_v5, %v1439_v33 }
  0xf9   : > { %3466 = vst [vmem:[%s4711_s25 + $0x610] sm:$0xff] %v2442_v37  ;;  %v417_v37 = vld [vmem:[%s4676_s5 + $0x6e8] sm:$0xff]  ;;  %v1442_v42 = vmul.f32 %v4683_v1, %v416_v34  ;;  %v2466_v47 = vadd.f32 %v4688_v5, %v1440_v36 }
  0xfa   : > { %3467 = vst [vmem:[%s4711_s25 + $0x618] sm:$0xff] %v2443_v40  ;;  %v418_v40 = vld [vmem:[%s4676_s5 + $0x6f0] sm:$0xff]  ;;  %v1443_v45 = vmul.f32 %v4683_v1, %v417_v37  ;;  %v2467_v50 = vadd.f32 %v4688_v5, %v1441_v39 }
  0xfb   : > { %3468 = vst [vmem:[%s4711_s25 + $0x620] sm:$0xff] %v2444_v43  ;;  %v419_v43 = vld [vmem:[%s4676_s5 + $0x6f8] sm:$0xff]  ;;  %v1444_v48 = vmul.f32 %v4683_v1, %v418_v40  ;;  %v2468_v53 = vadd.f32 %v4688_v5, %v1442_v42 }
  0xfc   : > { %3469 = vst [vmem:[%s4711_s25 + $0x628] sm:$0xff] %v2445_v46  ;;  %v420_v46 = vld [vmem:[%s4676_s5 + $0x700] sm:$0xff]  ;;  %v1445_v51 = vmul.f32 %v4683_v1, %v419_v43  ;;  %v2469_v56 = vadd.f32 %v4688_v5, %v1443_v45 }
  0xfd   : > { %3470 = vst [vmem:[%s4711_s25 + $0x630] sm:$0xff] %v2446_v49  ;;  %v421_v49 = vld [vmem:[%s4676_s5 + $0x708] sm:$0xff]  ;;  %v1446_v54 = vmul.f32 %v4683_v1, %v420_v46  ;;  %v2470_v59 = vadd.f32 %v4688_v5, %v1444_v48 }
  0xfe   : > { %3471 = vst [vmem:[%s4711_s25 + $0x638] sm:$0xff] %v2447_v52  ;;  %v422_v52 = vld [vmem:[%s4676_s5 + $0x710] sm:$0xff]  ;;  %v1447_v57 = vmul.f32 %v4683_v1, %v421_v49  ;;  %v2471_v62 = vadd.f32 %v4688_v5, %v1445_v51 }
  0xff   : > { %3472 = vst [vmem:[%s4711_s25 + $0x640] sm:$0xff] %v2448_v55  ;;  %v423_v55 = vld [vmem:[%s4676_s5 + $0x718] sm:$0xff]  ;;  %v1448_v60 = vmul.f32 %v4683_v1, %v422_v52  ;;  %v2472_v2 = vadd.f32 %v4688_v5, %v1446_v54 }
 0x100   : > { %3473 = vst [vmem:[%s4711_s25 + $0x648] sm:$0xff] %v2449_v58  ;;  %v424_v58 = vld [vmem:[%s4676_s5 + $0x720] sm:$0xff]  ;;  %v1449_v63 = vmul.f32 %v4683_v1, %v423_v55  ;;  %v2473_v6 = vadd.f32 %v4688_v5, %v1447_v57 }
 0x101   : > { %3474 = vst [vmem:[%s4711_s25 + $0x650] sm:$0xff] %v2450_v61  ;;  %v425_v61 = vld [vmem:[%s4676_s5 + $0x728] sm:$0xff]  ;;  %v1450_v3 = vmul.f32 %v4683_v1, %v424_v58  ;;  %v2474_v9 = vadd.f32 %v4688_v5, %v1448_v60 }
 0x102   : > { %3475 = vst [vmem:[%s4711_s25 + $0x658] sm:$0xff] %v2451_v0  ;;  %v426_v0 = vld [vmem:[%s4676_s5 + $0x730] sm:$0xff]  ;;  %v1451_v7 = vmul.f32 %v4683_v1, %v425_v61  ;;  %v2475_v12 = vadd.f32 %v4688_v5, %v1449_v63 }
 0x103   : > { %3476 = vst [vmem:[%s4711_s25 + $0x660] sm:$0xff] %v2452_v4  ;;  %v427_v4 = vld [vmem:[%s4676_s5 + $0x738] sm:$0xff]  ;;  %v1452_v10 = vmul.f32 %v4683_v1, %v426_v0  ;;  %v2476_v15 = vadd.f32 %v4688_v5, %v1450_v3 }
 0x104   : > { %3477 = vst [vmem:[%s4711_s25 + $0x668] sm:$0xff] %v2453_v8  ;;  %v428_v8 = vld [vmem:[%s4676_s5 + $0x740] sm:$0xff]  ;;  %v1453_v13 = vmul.f32 %v4683_v1, %v427_v4  ;;  %v2477_v18 = vadd.f32 %v4688_v5, %v1451_v7 }
 0x105   : > { %3478 = vst [vmem:[%s4711_s25 + $0x670] sm:$0xff] %v2454_v11  ;;  %v429_v11 = vld [vmem:[%s4676_s5 + $0x748] sm:$0xff]  ;;  %v1454_v16 = vmul.f32 %v4683_v1, %v428_v8  ;;  %v2478_v21 = vadd.f32 %v4688_v5, %v1452_v10 }
 0x106   : > { %3479 = vst [vmem:[%s4711_s25 + $0x678] sm:$0xff] %v2455_v14  ;;  %v430_v14 = vld [vmem:[%s4676_s5 + $0x750] sm:$0xff]  ;;  %v1455_v19 = vmul.f32 %v4683_v1, %v429_v11  ;;  %v2479_v24 = vadd.f32 %v4688_v5, %v1453_v13 }
 0x107   : > { %3480 = vst [vmem:[%s4711_s25 + $0x680] sm:$0xff] %v2456_v17  ;;  %v431_v17 = vld [vmem:[%s4676_s5 + $0x758] sm:$0xff]  ;;  %v1456_v22 = vmul.f32 %v4683_v1, %v430_v14  ;;  %v2480_v27 = vadd.f32 %v4688_v5, %v1454_v16 }
 0x108   : > { %3481 = vst [vmem:[%s4711_s25 + $0x688] sm:$0xff] %v2457_v20  ;;  %v432_v20 = vld [vmem:[%s4676_s5 + $0x760] sm:$0xff]  ;;  %v1457_v25 = vmul.f32 %v4683_v1, %v431_v17  ;;  %v2481_v30 = vadd.f32 %v4688_v5, %v1455_v19 }
 0x109   : > { %3482 = vst [vmem:[%s4711_s25 + $0x690] sm:$0xff] %v2458_v23  ;;  %v433_v23 = vld [vmem:[%s4676_s5 + $0x768] sm:$0xff]  ;;  %v1458_v28 = vmul.f32 %v4683_v1, %v432_v20  ;;  %v2482_v33 = vadd.f32 %v4688_v5, %v1456_v22 }
 0x10a   : > { %3483 = vst [vmem:[%s4711_s25 + $0x698] sm:$0xff] %v2459_v26  ;;  %v434_v26 = vld [vmem:[%s4676_s5 + $0x770] sm:$0xff]  ;;  %v1459_v31 = vmul.f32 %v4683_v1, %v433_v23  ;;  %v2483_v36 = vadd.f32 %v4688_v5, %v1457_v25 }
 0x10b   : > { %3484 = vst [vmem:[%s4711_s25 + $0x6a0] sm:$0xff] %v2460_v29  ;;  %v435_v29 = vld [vmem:[%s4676_s5 + $0x778] sm:$0xff]  ;;  %v1460_v34 = vmul.f32 %v4683_v1, %v434_v26  ;;  %v2484_v39 = vadd.f32 %v4688_v5, %v1458_v28 }
 0x10c   : > { %3485 = vst [vmem:[%s4711_s25 + $0x6a8] sm:$0xff] %v2461_v32  ;;  %v436_v32 = vld [vmem:[%s4676_s5 + $0x780] sm:$0xff]  ;;  %v1461_v37 = vmul.f32 %v4683_v1, %v435_v29  ;;  %v2485_v42 = vadd.f32 %v4688_v5, %v1459_v31 }
 0x10d   : > { %3486 = vst [vmem:[%s4711_s25 + $0x6b0] sm:$0xff] %v2462_v35  ;;  %v437_v35 = vld [vmem:[%s4676_s5 + $0x788] sm:$0xff]  ;;  %v1462_v40 = vmul.f32 %v4683_v1, %v436_v32  ;;  %v2486_v45 = vadd.f32 %v4688_v5, %v1460_v34 }
 0x10e   : > { %3487 = vst [vmem:[%s4711_s25 + $0x6b8] sm:$0xff] %v2463_v38  ;;  %v438_v38 = vld [vmem:[%s4676_s5 + $0x790] sm:$0xff]  ;;  %v1463_v43 = vmul.f32 %v4683_v1, %v437_v35  ;;  %v2487_v48 = vadd.f32 %v4688_v5, %v1461_v37 }
 0x10f   : > { %3488 = vst [vmem:[%s4711_s25 + $0x6c0] sm:$0xff] %v2464_v41  ;;  %v439_v41 = vld [vmem:[%s4676_s5 + $0x798] sm:$0xff]  ;;  %v1464_v46 = vmul.f32 %v4683_v1, %v438_v38  ;;  %v2488_v51 = vadd.f32 %v4688_v5, %v1462_v40 }
 0x110   : > { %3489 = vst [vmem:[%s4711_s25 + $0x6c8] sm:$0xff] %v2465_v44  ;;  %v440_v44 = vld [vmem:[%s4676_s5 + $0x7a0] sm:$0xff]  ;;  %v1465_v49 = vmul.f32 %v4683_v1, %v439_v41  ;;  %v2489_v54 = vadd.f32 %v4688_v5, %v1463_v43 }
 0x111   : > { %3490 = vst [vmem:[%s4711_s25 + $0x6d0] sm:$0xff] %v2466_v47  ;;  %v441_v47 = vld [vmem:[%s4676_s5 + $0x7a8] sm:$0xff]  ;;  %v1466_v52 = vmul.f32 %v4683_v1, %v440_v44  ;;  %v2490_v57 = vadd.f32 %v4688_v5, %v1464_v46 }
 0x112   : > { %3491 = vst [vmem:[%s4711_s25 + $0x6d8] sm:$0xff] %v2467_v50  ;;  %v442_v50 = vld [vmem:[%s4676_s5 + $0x7b0] sm:$0xff]  ;;  %v1467_v55 = vmul.f32 %v4683_v1, %v441_v47  ;;  %v2491_v60 = vadd.f32 %v4688_v5, %v1465_v49 }
 0x113   : > { %3492 = vst [vmem:[%s4711_s25 + $0x6e0] sm:$0xff] %v2468_v53  ;;  %v443_v53 = vld [vmem:[%s4676_s5 + $0x7b8] sm:$0xff]  ;;  %v1468_v58 = vmul.f32 %v4683_v1, %v442_v50  ;;  %v2492_v63 = vadd.f32 %v4688_v5, %v1466_v52 }
 0x114   : > { %3493 = vst [vmem:[%s4711_s25 + $0x6e8] sm:$0xff] %v2469_v56  ;;  %v444_v56 = vld [vmem:[%s4676_s5 + $0x7c0] sm:$0xff]  ;;  %v1469_v61 = vmul.f32 %v4683_v1, %v443_v53  ;;  %v2493_v3 = vadd.f32 %v4688_v5, %v1467_v55 }
 0x115   : > { %3494 = vst [vmem:[%s4711_s25 + $0x6f0] sm:$0xff] %v2470_v59  ;;  %v445_v59 = vld [vmem:[%s4676_s5 + $0x7c8] sm:$0xff]  ;;  %v1470_v0 = vmul.f32 %v4683_v1, %v444_v56  ;;  %v2494_v7 = vadd.f32 %v4688_v5, %v1468_v58 }
 0x116   : > { %3495 = vst [vmem:[%s4711_s25 + $0x6f8] sm:$0xff] %v2471_v62  ;;  %v446_v62 = vld [vmem:[%s4676_s5 + $0x7d0] sm:$0xff]  ;;  %v1471_v4 = vmul.f32 %v4683_v1, %v445_v59  ;;  %v2495_v10 = vadd.f32 %v4688_v5, %v1469_v61 }
 0x117   : > { %3496 = vst [vmem:[%s4711_s25 + $0x700] sm:$0xff] %v2472_v2  ;;  %v447_v2 = vld [vmem:[%s4676_s5 + $0x7d8] sm:$0xff]  ;;  %v1472_v8 = vmul.f32 %v4683_v1, %v446_v62  ;;  %v2496_v13 = vadd.f32 %v4688_v5, %v1470_v0 }
 0x118   : > { %3497 = vst [vmem:[%s4711_s25 + $0x708] sm:$0xff] %v2473_v6  ;;  %v448_v6 = vld [vmem:[%s4676_s5 + $0x7e0] sm:$0xff]  ;;  %v1473_v11 = vmul.f32 %v4683_v1, %v447_v2  ;;  %v2497_v16 = vadd.f32 %v4688_v5, %v1471_v4 }
 0x119   : > { %3498 = vst [vmem:[%s4711_s25 + $0x710] sm:$0xff] %v2474_v9  ;;  %v449_v9 = vld [vmem:[%s4676_s5 + $0x7e8] sm:$0xff]  ;;  %v1474_v14 = vmul.f32 %v4683_v1, %v448_v6  ;;  %v2498_v19 = vadd.f32 %v4688_v5, %v1472_v8 }
 0x11a   : > { %3499 = vst [vmem:[%s4711_s25 + $0x718] sm:$0xff] %v2475_v12  ;;  %v450_v12 = vld [vmem:[%s4676_s5 + $0x7f0] sm:$0xff]  ;;  %v1475_v17 = vmul.f32 %v4683_v1, %v449_v9  ;;  %v2499_v22 = vadd.f32 %v4688_v5, %v1473_v11 }
 0x11b   : > { %3500 = vst [vmem:[%s4711_s25 + $0x720] sm:$0xff] %v2476_v15  ;;  %v451_v15 = vld [vmem:[%s4676_s5 + $0x7f8] sm:$0xff]  ;;  %v1476_v20 = vmul.f32 %v4683_v1, %v450_v12  ;;  %v2500_v25 = vadd.f32 %v4688_v5, %v1474_v14 }
 0x11c   : > { %3501 = vst [vmem:[%s4711_s25 + $0x728] sm:$0xff] %v2477_v18  ;;  %v452_v18 = vld [vmem:[%s4676_s5 + $0x800] sm:$0xff]  ;;  %v1477_v23 = vmul.f32 %v4683_v1, %v451_v15  ;;  %v2501_v28 = vadd.f32 %v4688_v5, %v1475_v17 }
 0x11d   : > { %3502 = vst [vmem:[%s4711_s25 + $0x730] sm:$0xff] %v2478_v21  ;;  %v453_v21 = vld [vmem:[%s4676_s5 + $0x808] sm:$0xff]  ;;  %v1478_v26 = vmul.f32 %v4683_v1, %v452_v18  ;;  %v2502_v31 = vadd.f32 %v4688_v5, %v1476_v20 }
 0x11e   : > { %3503 = vst [vmem:[%s4711_s25 + $0x738] sm:$0xff] %v2479_v24  ;;  %v454_v24 = vld [vmem:[%s4676_s5 + $0x810] sm:$0xff]  ;;  %v1479_v29 = vmul.f32 %v4683_v1, %v453_v21  ;;  %v2503_v34 = vadd.f32 %v4688_v5, %v1477_v23 }
 0x11f   : > { %3504 = vst [vmem:[%s4711_s25 + $0x740] sm:$0xff] %v2480_v27  ;;  %v455_v27 = vld [vmem:[%s4676_s5 + $0x818] sm:$0xff]  ;;  %v1480_v32 = vmul.f32 %v4683_v1, %v454_v24  ;;  %v2504_v37 = vadd.f32 %v4688_v5, %v1478_v26 }
 0x120   : > { %3505 = vst [vmem:[%s4711_s25 + $0x748] sm:$0xff] %v2481_v30  ;;  %v456_v30 = vld [vmem:[%s4676_s5 + $0x820] sm:$0xff]  ;;  %v1481_v35 = vmul.f32 %v4683_v1, %v455_v27  ;;  %v2505_v40 = vadd.f32 %v4688_v5, %v1479_v29 }
 0x121   : > { %3506 = vst [vmem:[%s4711_s25 + $0x750] sm:$0xff] %v2482_v33  ;;  %v457_v33 = vld [vmem:[%s4676_s5 + $0x828] sm:$0xff]  ;;  %v1482_v38 = vmul.f32 %v4683_v1, %v456_v30  ;;  %v2506_v43 = vadd.f32 %v4688_v5, %v1480_v32 }
 0x122   : > { %3507 = vst [vmem:[%s4711_s25 + $0x758] sm:$0xff] %v2483_v36  ;;  %v458_v36 = vld [vmem:[%s4676_s5 + $0x830] sm:$0xff]  ;;  %v1483_v41 = vmul.f32 %v4683_v1, %v457_v33  ;;  %v2507_v46 = vadd.f32 %v4688_v5, %v1481_v35 }
 0x123   : > { %3508 = vst [vmem:[%s4711_s25 + $0x760] sm:$0xff] %v2484_v39  ;;  %v459_v39 = vld [vmem:[%s4676_s5 + $0x838] sm:$0xff]  ;;  %v1484_v44 = vmul.f32 %v4683_v1, %v458_v36  ;;  %v2508_v49 = vadd.f32 %v4688_v5, %v1482_v38 }
 0x124   : > { %3509 = vst [vmem:[%s4711_s25 + $0x768] sm:$0xff] %v2485_v42  ;;  %v460_v42 = vld [vmem:[%s4676_s5 + $0x840] sm:$0xff]  ;;  %v1485_v47 = vmul.f32 %v4683_v1, %v459_v39  ;;  %v2509_v52 = vadd.f32 %v4688_v5, %v1483_v41 }
 0x125   : > { %3510 = vst [vmem:[%s4711_s25 + $0x770] sm:$0xff] %v2486_v45  ;;  %v461_v45 = vld [vmem:[%s4676_s5 + $0x848] sm:$0xff]  ;;  %v1486_v50 = vmul.f32 %v4683_v1, %v460_v42  ;;  %v2510_v55 = vadd.f32 %v4688_v5, %v1484_v44 }
 0x126   : > { %3511 = vst [vmem:[%s4711_s25 + $0x778] sm:$0xff] %v2487_v48  ;;  %v462_v48 = vld [vmem:[%s4676_s5 + $0x850] sm:$0xff]  ;;  %v1487_v53 = vmul.f32 %v4683_v1, %v461_v45  ;;  %v2511_v58 = vadd.f32 %v4688_v5, %v1485_v47 }
 0x127   : > { %3512 = vst [vmem:[%s4711_s25 + $0x780] sm:$0xff] %v2488_v51  ;;  %v463_v51 = vld [vmem:[%s4676_s5 + $0x858] sm:$0xff]  ;;  %v1488_v56 = vmul.f32 %v4683_v1, %v462_v48  ;;  %v2512_v61 = vadd.f32 %v4688_v5, %v1486_v50 }
 0x128   : > { %3513 = vst [vmem:[%s4711_s25 + $0x788] sm:$0xff] %v2489_v54  ;;  %v464_v54 = vld [vmem:[%s4676_s5 + $0x860] sm:$0xff]  ;;  %v1489_v59 = vmul.f32 %v4683_v1, %v463_v51  ;;  %v2513_v0 = vadd.f32 %v4688_v5, %v1487_v53 }
 0x129   : > { %3514 = vst [vmem:[%s4711_s25 + $0x790] sm:$0xff] %v2490_v57  ;;  %v465_v57 = vld [vmem:[%s4676_s5 + $0x868] sm:$0xff]  ;;  %v1490_v62 = vmul.f32 %v4683_v1, %v464_v54  ;;  %v2514_v4 = vadd.f32 %v4688_v5, %v1488_v56 }
 0x12a   : > { %3515 = vst [vmem:[%s4711_s25 + $0x798] sm:$0xff] %v2491_v60  ;;  %v466_v60 = vld [vmem:[%s4676_s5 + $0x870] sm:$0xff]  ;;  %v1491_v2 = vmul.f32 %v4683_v1, %v465_v57  ;;  %v2515_v8 = vadd.f32 %v4688_v5, %v1489_v59 }
 0x12b   : > { %3516 = vst [vmem:[%s4711_s25 + $0x7a0] sm:$0xff] %v2492_v63  ;;  %v467_v63 = vld [vmem:[%s4676_s5 + $0x878] sm:$0xff]  ;;  %v1492_v6 = vmul.f32 %v4683_v1, %v466_v60  ;;  %v2516_v11 = vadd.f32 %v4688_v5, %v1490_v62 }
 0x12c   : > { %3517 = vst [vmem:[%s4711_s25 + $0x7a8] sm:$0xff] %v2493_v3  ;;  %v468_v3 = vld [vmem:[%s4676_s5 + $0x880] sm:$0xff]  ;;  %v1493_v9 = vmul.f32 %v4683_v1, %v467_v63  ;;  %v2517_v14 = vadd.f32 %v4688_v5, %v1491_v2 }
 0x12d   : > { %3518 = vst [vmem:[%s4711_s25 + $0x7b0] sm:$0xff] %v2494_v7  ;;  %v469_v7 = vld [vmem:[%s4676_s5 + $0x888] sm:$0xff]  ;;  %v1494_v12 = vmul.f32 %v4683_v1, %v468_v3  ;;  %v2518_v17 = vadd.f32 %v4688_v5, %v1492_v6 }
 0x12e   : > { %3519 = vst [vmem:[%s4711_s25 + $0x7b8] sm:$0xff] %v2495_v10  ;;  %v470_v10 = vld [vmem:[%s4676_s5 + $0x890] sm:$0xff]  ;;  %v1495_v15 = vmul.f32 %v4683_v1, %v469_v7  ;;  %v2519_v20 = vadd.f32 %v4688_v5, %v1493_v9 }
 0x12f   : > { %3520 = vst [vmem:[%s4711_s25 + $0x7c0] sm:$0xff] %v2496_v13  ;;  %v471_v13 = vld [vmem:[%s4676_s5 + $0x898] sm:$0xff]  ;;  %v1496_v18 = vmul.f32 %v4683_v1, %v470_v10  ;;  %v2520_v23 = vadd.f32 %v4688_v5, %v1494_v12 }
 0x130   : > { %3521 = vst [vmem:[%s4711_s25 + $0x7c8] sm:$0xff] %v2497_v16  ;;  %v472_v16 = vld [vmem:[%s4676_s5 + $0x8a0] sm:$0xff]  ;;  %v1497_v21 = vmul.f32 %v4683_v1, %v471_v13  ;;  %v2521_v26 = vadd.f32 %v4688_v5, %v1495_v15 }
 0x131   : > { %3522 = vst [vmem:[%s4711_s25 + $0x7d0] sm:$0xff] %v2498_v19  ;;  %v473_v19 = vld [vmem:[%s4676_s5 + $0x8a8] sm:$0xff]  ;;  %v1498_v24 = vmul.f32 %v4683_v1, %v472_v16  ;;  %v2522_v29 = vadd.f32 %v4688_v5, %v1496_v18 }
 0x132   : > { %3523 = vst [vmem:[%s4711_s25 + $0x7d8] sm:$0xff] %v2499_v22  ;;  %v474_v22 = vld [vmem:[%s4676_s5 + $0x8b0] sm:$0xff]  ;;  %v1499_v27 = vmul.f32 %v4683_v1, %v473_v19  ;;  %v2523_v32 = vadd.f32 %v4688_v5, %v1497_v21 }
 0x133   : > { %3524 = vst [vmem:[%s4711_s25 + $0x7e0] sm:$0xff] %v2500_v25  ;;  %v475_v25 = vld [vmem:[%s4676_s5 + $0x8b8] sm:$0xff]  ;;  %v1500_v30 = vmul.f32 %v4683_v1, %v474_v22  ;;  %v2524_v35 = vadd.f32 %v4688_v5, %v1498_v24 }
 0x134   : > { %3525 = vst [vmem:[%s4711_s25 + $0x7e8] sm:$0xff] %v2501_v28  ;;  %v476_v28 = vld [vmem:[%s4676_s5 + $0x8c0] sm:$0xff]  ;;  %v1501_v33 = vmul.f32 %v4683_v1, %v475_v25  ;;  %v2525_v38 = vadd.f32 %v4688_v5, %v1499_v27 }
 0x135   : > { %3526 = vst [vmem:[%s4711_s25 + $0x7f0] sm:$0xff] %v2502_v31  ;;  %v477_v31 = vld [vmem:[%s4676_s5 + $0x8c8] sm:$0xff]  ;;  %v1502_v36 = vmul.f32 %v4683_v1, %v476_v28  ;;  %v2526_v41 = vadd.f32 %v4688_v5, %v1500_v30 }
 0x136   : > { %3527 = vst [vmem:[%s4711_s25 + $0x7f8] sm:$0xff] %v2503_v34  ;;  %v478_v34 = vld [vmem:[%s4676_s5 + $0x8d0] sm:$0xff]  ;;  %v1503_v39 = vmul.f32 %v4683_v1, %v477_v31  ;;  %v2527_v44 = vadd.f32 %v4688_v5, %v1501_v33 }
 0x137   : > { %3528 = vst [vmem:[%s4711_s25 + $0x800] sm:$0xff] %v2504_v37  ;;  %v479_v37 = vld [vmem:[%s4676_s5 + $0x8d8] sm:$0xff]  ;;  %v1504_v42 = vmul.f32 %v4683_v1, %v478_v34  ;;  %v2528_v47 = vadd.f32 %v4688_v5, %v1502_v36 }
 0x138   : > { %3529 = vst [vmem:[%s4711_s25 + $0x808] sm:$0xff] %v2505_v40  ;;  %v480_v40 = vld [vmem:[%s4676_s5 + $0x8e0] sm:$0xff]  ;;  %v1505_v45 = vmul.f32 %v4683_v1, %v479_v37  ;;  %v2529_v50 = vadd.f32 %v4688_v5, %v1503_v39 }
 0x139   : > { %3530 = vst [vmem:[%s4711_s25 + $0x810] sm:$0xff] %v2506_v43  ;;  %v481_v43 = vld [vmem:[%s4676_s5 + $0x8e8] sm:$0xff]  ;;  %v1506_v48 = vmul.f32 %v4683_v1, %v480_v40  ;;  %v2530_v53 = vadd.f32 %v4688_v5, %v1504_v42 }
 0x13a   : > { %3531 = vst [vmem:[%s4711_s25 + $0x818] sm:$0xff] %v2507_v46  ;;  %v482_v46 = vld [vmem:[%s4676_s5 + $0x8f0] sm:$0xff]  ;;  %v1507_v51 = vmul.f32 %v4683_v1, %v481_v43  ;;  %v2531_v56 = vadd.f32 %v4688_v5, %v1505_v45 }
 0x13b   : > { %3532 = vst [vmem:[%s4711_s25 + $0x820] sm:$0xff] %v2508_v49  ;;  %v483_v49 = vld [vmem:[%s4676_s5 + $0x8f8] sm:$0xff]  ;;  %v1508_v54 = vmul.f32 %v4683_v1, %v482_v46  ;;  %v2532_v59 = vadd.f32 %v4688_v5, %v1506_v48 }
 0x13c   : > { %3533 = vst [vmem:[%s4711_s25 + $0x828] sm:$0xff] %v2509_v52  ;;  %v484_v52 = vld [vmem:[%s4676_s5 + $0x900] sm:$0xff]  ;;  %v1509_v57 = vmul.f32 %v4683_v1, %v483_v49  ;;  %v2533_v62 = vadd.f32 %v4688_v5, %v1507_v51 }
 0x13d   : > { %3534 = vst [vmem:[%s4711_s25 + $0x830] sm:$0xff] %v2510_v55  ;;  %v485_v55 = vld [vmem:[%s4676_s5 + $0x908] sm:$0xff]  ;;  %v1510_v60 = vmul.f32 %v4683_v1, %v484_v52  ;;  %v2534_v2 = vadd.f32 %v4688_v5, %v1508_v54 }
 0x13e   : > { %3535 = vst [vmem:[%s4711_s25 + $0x838] sm:$0xff] %v2511_v58  ;;  %v486_v58 = vld [vmem:[%s4676_s5 + $0x910] sm:$0xff]  ;;  %v1511_v63 = vmul.f32 %v4683_v1, %v485_v55  ;;  %v2535_v6 = vadd.f32 %v4688_v5, %v1509_v57 }
 0x13f   : > { %3536 = vst [vmem:[%s4711_s25 + $0x840] sm:$0xff] %v2512_v61  ;;  %v487_v61 = vld [vmem:[%s4676_s5 + $0x918] sm:$0xff]  ;;  %v1512_v3 = vmul.f32 %v4683_v1, %v486_v58  ;;  %v2536_v9 = vadd.f32 %v4688_v5, %v1510_v60 }
 0x140   : > { %3537 = vst [vmem:[%s4711_s25 + $0x848] sm:$0xff] %v2513_v0  ;;  %v488_v0 = vld [vmem:[%s4676_s5 + $0x920] sm:$0xff]  ;;  %v1513_v7 = vmul.f32 %v4683_v1, %v487_v61  ;;  %v2537_v12 = vadd.f32 %v4688_v5, %v1511_v63 }
 0x141   : > { %3538 = vst [vmem:[%s4711_s25 + $0x850] sm:$0xff] %v2514_v4  ;;  %v489_v4 = vld [vmem:[%s4676_s5 + $0x928] sm:$0xff]  ;;  %v1514_v10 = vmul.f32 %v4683_v1, %v488_v0  ;;  %v2538_v15 = vadd.f32 %v4688_v5, %v1512_v3 }
 0x142   : > { %3539 = vst [vmem:[%s4711_s25 + $0x858] sm:$0xff] %v2515_v8  ;;  %v490_v8 = vld [vmem:[%s4676_s5 + $0x930] sm:$0xff]  ;;  %v1515_v13 = vmul.f32 %v4683_v1, %v489_v4  ;;  %v2539_v18 = vadd.f32 %v4688_v5, %v1513_v7 }
 0x143   : > { %3540 = vst [vmem:[%s4711_s25 + $0x860] sm:$0xff] %v2516_v11  ;;  %v491_v11 = vld [vmem:[%s4676_s5 + $0x938] sm:$0xff]  ;;  %v1516_v16 = vmul.f32 %v4683_v1, %v490_v8  ;;  %v2540_v21 = vadd.f32 %v4688_v5, %v1514_v10 }
 0x144   : > { %3541 = vst [vmem:[%s4711_s25 + $0x868] sm:$0xff] %v2517_v14  ;;  %v492_v14 = vld [vmem:[%s4676_s5 + $0x940] sm:$0xff]  ;;  %v1517_v19 = vmul.f32 %v4683_v1, %v491_v11  ;;  %v2541_v24 = vadd.f32 %v4688_v5, %v1515_v13 }
 0x145   : > { %3542 = vst [vmem:[%s4711_s25 + $0x870] sm:$0xff] %v2518_v17  ;;  %v493_v17 = vld [vmem:[%s4676_s5 + $0x948] sm:$0xff]  ;;  %v1518_v22 = vmul.f32 %v4683_v1, %v492_v14  ;;  %v2542_v27 = vadd.f32 %v4688_v5, %v1516_v16 }
 0x146   : > { %3543 = vst [vmem:[%s4711_s25 + $0x878] sm:$0xff] %v2519_v20  ;;  %v494_v20 = vld [vmem:[%s4676_s5 + $0x950] sm:$0xff]  ;;  %v1519_v25 = vmul.f32 %v4683_v1, %v493_v17  ;;  %v2543_v30 = vadd.f32 %v4688_v5, %v1517_v19 }
 0x147   : > { %3544 = vst [vmem:[%s4711_s25 + $0x880] sm:$0xff] %v2520_v23  ;;  %v495_v23 = vld [vmem:[%s4676_s5 + $0x958] sm:$0xff]  ;;  %v1520_v28 = vmul.f32 %v4683_v1, %v494_v20  ;;  %v2544_v33 = vadd.f32 %v4688_v5, %v1518_v22 }
 0x148   : > { %3545 = vst [vmem:[%s4711_s25 + $0x888] sm:$0xff] %v2521_v26  ;;  %v496_v26 = vld [vmem:[%s4676_s5 + $0x960] sm:$0xff]  ;;  %v1521_v31 = vmul.f32 %v4683_v1, %v495_v23  ;;  %v2545_v36 = vadd.f32 %v4688_v5, %v1519_v25 }
 0x149   : > { %3546 = vst [vmem:[%s4711_s25 + $0x890] sm:$0xff] %v2522_v29  ;;  %v497_v29 = vld [vmem:[%s4676_s5 + $0x968] sm:$0xff]  ;;  %v1522_v34 = vmul.f32 %v4683_v1, %v496_v26  ;;  %v2546_v39 = vadd.f32 %v4688_v5, %v1520_v28 }
 0x14a   : > { %3547 = vst [vmem:[%s4711_s25 + $0x898] sm:$0xff] %v2523_v32  ;;  %v498_v32 = vld [vmem:[%s4676_s5 + $0x970] sm:$0xff]  ;;  %v1523_v37 = vmul.f32 %v4683_v1, %v497_v29  ;;  %v2547_v42 = vadd.f32 %v4688_v5, %v1521_v31 }
 0x14b   : > { %3548 = vst [vmem:[%s4711_s25 + $0x8a0] sm:$0xff] %v2524_v35  ;;  %v499_v35 = vld [vmem:[%s4676_s5 + $0x978] sm:$0xff]  ;;  %v1524_v40 = vmul.f32 %v4683_v1, %v498_v32  ;;  %v2548_v45 = vadd.f32 %v4688_v5, %v1522_v34 }
 0x14c   : > { %3549 = vst [vmem:[%s4711_s25 + $0x8a8] sm:$0xff] %v2525_v38  ;;  %v500_v38 = vld [vmem:[%s4676_s5 + $0x980] sm:$0xff]  ;;  %v1525_v43 = vmul.f32 %v4683_v1, %v499_v35  ;;  %v2549_v48 = vadd.f32 %v4688_v5, %v1523_v37 }
 0x14d   : > { %3550 = vst [vmem:[%s4711_s25 + $0x8b0] sm:$0xff] %v2526_v41  ;;  %v501_v41 = vld [vmem:[%s4676_s5 + $0x988] sm:$0xff]  ;;  %v1526_v46 = vmul.f32 %v4683_v1, %v500_v38  ;;  %v2550_v51 = vadd.f32 %v4688_v5, %v1524_v40 }
 0x14e   : > { %3551 = vst [vmem:[%s4711_s25 + $0x8b8] sm:$0xff] %v2527_v44  ;;  %v502_v44 = vld [vmem:[%s4676_s5 + $0x990] sm:$0xff]  ;;  %v1527_v49 = vmul.f32 %v4683_v1, %v501_v41  ;;  %v2551_v54 = vadd.f32 %v4688_v5, %v1525_v43 }
 0x14f   : > { %3552 = vst [vmem:[%s4711_s25 + $0x8c0] sm:$0xff] %v2528_v47  ;;  %v503_v47 = vld [vmem:[%s4676_s5 + $0x998] sm:$0xff]  ;;  %v1528_v52 = vmul.f32 %v4683_v1, %v502_v44  ;;  %v2552_v57 = vadd.f32 %v4688_v5, %v1526_v46 }
 0x150   : > { %3553 = vst [vmem:[%s4711_s25 + $0x8c8] sm:$0xff] %v2529_v50  ;;  %v504_v50 = vld [vmem:[%s4676_s5 + $0x9a0] sm:$0xff]  ;;  %v1529_v55 = vmul.f32 %v4683_v1, %v503_v47  ;;  %v2553_v60 = vadd.f32 %v4688_v5, %v1527_v49 }
 0x151   : > { %3554 = vst [vmem:[%s4711_s25 + $0x8d0] sm:$0xff] %v2530_v53  ;;  %v505_v53 = vld [vmem:[%s4676_s5 + $0x9a8] sm:$0xff]  ;;  %v1530_v58 = vmul.f32 %v4683_v1, %v504_v50  ;;  %v2554_v63 = vadd.f32 %v4688_v5, %v1528_v52 }
 0x152   : > { %3555 = vst [vmem:[%s4711_s25 + $0x8d8] sm:$0xff] %v2531_v56  ;;  %v506_v56 = vld [vmem:[%s4676_s5 + $0x9b0] sm:$0xff]  ;;  %v1531_v61 = vmul.f32 %v4683_v1, %v505_v53  ;;  %v2555_v3 = vadd.f32 %v4688_v5, %v1529_v55 }
 0x153   : > { %3556 = vst [vmem:[%s4711_s25 + $0x8e0] sm:$0xff] %v2532_v59  ;;  %v507_v59 = vld [vmem:[%s4676_s5 + $0x9b8] sm:$0xff]  ;;  %v1532_v0 = vmul.f32 %v4683_v1, %v506_v56  ;;  %v2556_v7 = vadd.f32 %v4688_v5, %v1530_v58 }
 0x154   : > { %3557 = vst [vmem:[%s4711_s25 + $0x8e8] sm:$0xff] %v2533_v62  ;;  %v508_v62 = vld [vmem:[%s4676_s5 + $0x9c0] sm:$0xff]  ;;  %v1533_v4 = vmul.f32 %v4683_v1, %v507_v59  ;;  %v2557_v10 = vadd.f32 %v4688_v5, %v1531_v61 }
 0x155   : > { %3558 = vst [vmem:[%s4711_s25 + $0x8f0] sm:$0xff] %v2534_v2  ;;  %v509_v2 = vld [vmem:[%s4676_s5 + $0x9c8] sm:$0xff]  ;;  %v1534_v8 = vmul.f32 %v4683_v1, %v508_v62  ;;  %v2558_v13 = vadd.f32 %v4688_v5, %v1532_v0 }
 0x156   : > { %3559 = vst [vmem:[%s4711_s25 + $0x8f8] sm:$0xff] %v2535_v6  ;;  %v510_v6 = vld [vmem:[%s4676_s5 + $0x9d0] sm:$0xff]  ;;  %v1535_v11 = vmul.f32 %v4683_v1, %v509_v2  ;;  %v2559_v16 = vadd.f32 %v4688_v5, %v1533_v4 }
 0x157   : > { %3560 = vst [vmem:[%s4711_s25 + $0x900] sm:$0xff] %v2536_v9  ;;  %v511_v9 = vld [vmem:[%s4676_s5 + $0x9d8] sm:$0xff]  ;;  %v1536_v14 = vmul.f32 %v4683_v1, %v510_v6  ;;  %v2560_v19 = vadd.f32 %v4688_v5, %v1534_v8 }
 0x158   : > { %3561 = vst [vmem:[%s4711_s25 + $0x908] sm:$0xff] %v2537_v12  ;;  %v512_v12 = vld [vmem:[%s4676_s5 + $0x9e0] sm:$0xff]  ;;  %v1537_v17 = vmul.f32 %v4683_v1, %v511_v9  ;;  %v2561_v22 = vadd.f32 %v4688_v5, %v1535_v11 }
 0x159   : > { %3562 = vst [vmem:[%s4711_s25 + $0x910] sm:$0xff] %v2538_v15  ;;  %v513_v15 = vld [vmem:[%s4676_s5 + $0x9e8] sm:$0xff]  ;;  %v1538_v20 = vmul.f32 %v4683_v1, %v512_v12  ;;  %v2562_v25 = vadd.f32 %v4688_v5, %v1536_v14 }
 0x15a   : > { %3563 = vst [vmem:[%s4711_s25 + $0x918] sm:$0xff] %v2539_v18  ;;  %v514_v18 = vld [vmem:[%s4676_s5 + $0x9f0] sm:$0xff]  ;;  %v1539_v23 = vmul.f32 %v4683_v1, %v513_v15  ;;  %v2563_v28 = vadd.f32 %v4688_v5, %v1537_v17 }
 0x15b   : > { %3564 = vst [vmem:[%s4711_s25 + $0x920] sm:$0xff] %v2540_v21  ;;  %v515_v21 = vld [vmem:[%s4676_s5 + $0x9f8] sm:$0xff]  ;;  %v1540_v26 = vmul.f32 %v4683_v1, %v514_v18  ;;  %v2564_v31 = vadd.f32 %v4688_v5, %v1538_v20 }
 0x15c   : > { %3565 = vst [vmem:[%s4711_s25 + $0x928] sm:$0xff] %v2541_v24  ;;  %v516_v24 = vld [vmem:[%s4676_s5 + $0xa00] sm:$0xff]  ;;  %v1541_v29 = vmul.f32 %v4683_v1, %v515_v21  ;;  %v2565_v34 = vadd.f32 %v4688_v5, %v1539_v23 }
 0x15d   : > { %3566 = vst [vmem:[%s4711_s25 + $0x930] sm:$0xff] %v2542_v27  ;;  %v517_v27 = vld [vmem:[%s4676_s5 + $0xa08] sm:$0xff]  ;;  %v1542_v32 = vmul.f32 %v4683_v1, %v516_v24  ;;  %v2566_v37 = vadd.f32 %v4688_v5, %v1540_v26 }
 0x15e   : > { %3567 = vst [vmem:[%s4711_s25 + $0x938] sm:$0xff] %v2543_v30  ;;  %v518_v30 = vld [vmem:[%s4676_s5 + $0xa10] sm:$0xff]  ;;  %v1543_v35 = vmul.f32 %v4683_v1, %v517_v27  ;;  %v2567_v40 = vadd.f32 %v4688_v5, %v1541_v29 }
 0x15f   : > { %3568 = vst [vmem:[%s4711_s25 + $0x940] sm:$0xff] %v2544_v33  ;;  %v519_v33 = vld [vmem:[%s4676_s5 + $0xa18] sm:$0xff]  ;;  %v1544_v38 = vmul.f32 %v4683_v1, %v518_v30  ;;  %v2568_v43 = vadd.f32 %v4688_v5, %v1542_v32 }
 0x160   : > { %3569 = vst [vmem:[%s4711_s25 + $0x948] sm:$0xff] %v2545_v36  ;;  %v520_v36 = vld [vmem:[%s4676_s5 + $0xa20] sm:$0xff]  ;;  %v1545_v41 = vmul.f32 %v4683_v1, %v519_v33  ;;  %v2569_v46 = vadd.f32 %v4688_v5, %v1543_v35 }
 0x161   : > { %3570 = vst [vmem:[%s4711_s25 + $0x950] sm:$0xff] %v2546_v39  ;;  %v521_v39 = vld [vmem:[%s4676_s5 + $0xa28] sm:$0xff]  ;;  %v1546_v44 = vmul.f32 %v4683_v1, %v520_v36  ;;  %v2570_v49 = vadd.f32 %v4688_v5, %v1544_v38 }
 0x162   : > { %3571 = vst [vmem:[%s4711_s25 + $0x958] sm:$0xff] %v2547_v42  ;;  %v522_v42 = vld [vmem:[%s4676_s5 + $0xa30] sm:$0xff]  ;;  %v1547_v47 = vmul.f32 %v4683_v1, %v521_v39  ;;  %v2571_v52 = vadd.f32 %v4688_v5, %v1545_v41 }
 0x163   : > { %3572 = vst [vmem:[%s4711_s25 + $0x960] sm:$0xff] %v2548_v45  ;;  %v523_v45 = vld [vmem:[%s4676_s5 + $0xa38] sm:$0xff]  ;;  %v1548_v50 = vmul.f32 %v4683_v1, %v522_v42  ;;  %v2572_v55 = vadd.f32 %v4688_v5, %v1546_v44 }
 0x164   : > { %3573 = vst [vmem:[%s4711_s25 + $0x968] sm:$0xff] %v2549_v48  ;;  %v524_v48 = vld [vmem:[%s4676_s5 + $0xa40] sm:$0xff]  ;;  %v1549_v53 = vmul.f32 %v4683_v1, %v523_v45  ;;  %v2573_v58 = vadd.f32 %v4688_v5, %v1547_v47 }
 0x165   : > { %3574 = vst [vmem:[%s4711_s25 + $0x970] sm:$0xff] %v2550_v51  ;;  %v525_v51 = vld [vmem:[%s4676_s5 + $0xa48] sm:$0xff]  ;;  %v1550_v56 = vmul.f32 %v4683_v1, %v524_v48  ;;  %v2574_v61 = vadd.f32 %v4688_v5, %v1548_v50 }
 0x166   : > { %3575 = vst [vmem:[%s4711_s25 + $0x978] sm:$0xff] %v2551_v54  ;;  %v526_v54 = vld [vmem:[%s4676_s5 + $0xa50] sm:$0xff]  ;;  %v1551_v59 = vmul.f32 %v4683_v1, %v525_v51  ;;  %v2575_v0 = vadd.f32 %v4688_v5, %v1549_v53 }
 0x167   : > { %3576 = vst [vmem:[%s4711_s25 + $0x980] sm:$0xff] %v2552_v57  ;;  %v527_v57 = vld [vmem:[%s4676_s5 + $0xa58] sm:$0xff]  ;;  %v1552_v62 = vmul.f32 %v4683_v1, %v526_v54  ;;  %v2576_v4 = vadd.f32 %v4688_v5, %v1550_v56 }
 0x168   : > { %3577 = vst [vmem:[%s4711_s25 + $0x988] sm:$0xff] %v2553_v60  ;;  %v528_v60 = vld [vmem:[%s4676_s5 + $0xa60] sm:$0xff]  ;;  %v1553_v2 = vmul.f32 %v4683_v1, %v527_v57  ;;  %v2577_v8 = vadd.f32 %v4688_v5, %v1551_v59 }
 0x169   : > { %3578 = vst [vmem:[%s4711_s25 + $0x990] sm:$0xff] %v2554_v63  ;;  %v529_v63 = vld [vmem:[%s4676_s5 + $0xa68] sm:$0xff]  ;;  %v1554_v6 = vmul.f32 %v4683_v1, %v528_v60  ;;  %v2578_v11 = vadd.f32 %v4688_v5, %v1552_v62 }
 0x16a   : > { %3579 = vst [vmem:[%s4711_s25 + $0x998] sm:$0xff] %v2555_v3  ;;  %v530_v3 = vld [vmem:[%s4676_s5 + $0xa70] sm:$0xff]  ;;  %v1555_v9 = vmul.f32 %v4683_v1, %v529_v63  ;;  %v2579_v14 = vadd.f32 %v4688_v5, %v1553_v2 }
 0x16b   : > { %3580 = vst [vmem:[%s4711_s25 + $0x9a0] sm:$0xff] %v2556_v7  ;;  %v531_v7 = vld [vmem:[%s4676_s5 + $0xa78] sm:$0xff]  ;;  %v1556_v12 = vmul.f32 %v4683_v1, %v530_v3  ;;  %v2580_v17 = vadd.f32 %v4688_v5, %v1554_v6 }
 0x16c   : > { %3581 = vst [vmem:[%s4711_s25 + $0x9a8] sm:$0xff] %v2557_v10  ;;  %v532_v10 = vld [vmem:[%s4676_s5 + $0xa80] sm:$0xff]  ;;  %v1557_v15 = vmul.f32 %v4683_v1, %v531_v7  ;;  %v2581_v20 = vadd.f32 %v4688_v5, %v1555_v9 }
 0x16d   : > { %3582 = vst [vmem:[%s4711_s25 + $0x9b0] sm:$0xff] %v2558_v13  ;;  %v533_v13 = vld [vmem:[%s4676_s5 + $0xa88] sm:$0xff]  ;;  %v1558_v18 = vmul.f32 %v4683_v1, %v532_v10  ;;  %v2582_v23 = vadd.f32 %v4688_v5, %v1556_v12 }
 0x16e   : > { %3583 = vst [vmem:[%s4711_s25 + $0x9b8] sm:$0xff] %v2559_v16  ;;  %v534_v16 = vld [vmem:[%s4676_s5 + $0xa90] sm:$0xff]  ;;  %v1559_v21 = vmul.f32 %v4683_v1, %v533_v13  ;;  %v2583_v26 = vadd.f32 %v4688_v5, %v1557_v15 }
 0x16f   : > { %3584 = vst [vmem:[%s4711_s25 + $0x9c0] sm:$0xff] %v2560_v19  ;;  %v535_v19 = vld [vmem:[%s4676_s5 + $0xa98] sm:$0xff]  ;;  %v1560_v24 = vmul.f32 %v4683_v1, %v534_v16  ;;  %v2584_v29 = vadd.f32 %v4688_v5, %v1558_v18 }
 0x170   : > { %3585 = vst [vmem:[%s4711_s25 + $0x9c8] sm:$0xff] %v2561_v22  ;;  %v536_v22 = vld [vmem:[%s4676_s5 + $0xaa0] sm:$0xff]  ;;  %v1561_v27 = vmul.f32 %v4683_v1, %v535_v19  ;;  %v2585_v32 = vadd.f32 %v4688_v5, %v1559_v21 }
 0x171   : > { %3586 = vst [vmem:[%s4711_s25 + $0x9d0] sm:$0xff] %v2562_v25  ;;  %v537_v25 = vld [vmem:[%s4676_s5 + $0xaa8] sm:$0xff]  ;;  %v1562_v30 = vmul.f32 %v4683_v1, %v536_v22  ;;  %v2586_v35 = vadd.f32 %v4688_v5, %v1560_v24 }
 0x172   : > { %3587 = vst [vmem:[%s4711_s25 + $0x9d8] sm:$0xff] %v2563_v28  ;;  %v538_v28 = vld [vmem:[%s4676_s5 + $0xab0] sm:$0xff]  ;;  %v1563_v33 = vmul.f32 %v4683_v1, %v537_v25  ;;  %v2587_v38 = vadd.f32 %v4688_v5, %v1561_v27 }
 0x173   : > { %3588 = vst [vmem:[%s4711_s25 + $0x9e0] sm:$0xff] %v2564_v31  ;;  %v539_v31 = vld [vmem:[%s4676_s5 + $0xab8] sm:$0xff]  ;;  %v1564_v36 = vmul.f32 %v4683_v1, %v538_v28  ;;  %v2588_v41 = vadd.f32 %v4688_v5, %v1562_v30 }
 0x174   : > { %3589 = vst [vmem:[%s4711_s25 + $0x9e8] sm:$0xff] %v2565_v34  ;;  %v540_v34 = vld [vmem:[%s4676_s5 + $0xac0] sm:$0xff]  ;;  %v1565_v39 = vmul.f32 %v4683_v1, %v539_v31  ;;  %v2589_v44 = vadd.f32 %v4688_v5, %v1563_v33 }
 0x175   : > { %3590 = vst [vmem:[%s4711_s25 + $0x9f0] sm:$0xff] %v2566_v37  ;;  %v541_v37 = vld [vmem:[%s4676_s5 + $0xac8] sm:$0xff]  ;;  %v1566_v42 = vmul.f32 %v4683_v1, %v540_v34  ;;  %v2590_v47 = vadd.f32 %v4688_v5, %v1564_v36 }
 0x176   : > { %3591 = vst [vmem:[%s4711_s25 + $0x9f8] sm:$0xff] %v2567_v40  ;;  %v542_v40 = vld [vmem:[%s4676_s5 + $0xad0] sm:$0xff]  ;;  %v1567_v45 = vmul.f32 %v4683_v1, %v541_v37  ;;  %v2591_v50 = vadd.f32 %v4688_v5, %v1565_v39 }
 0x177   : > { %3592 = vst [vmem:[%s4711_s25 + $0xa00] sm:$0xff] %v2568_v43  ;;  %v543_v43 = vld [vmem:[%s4676_s5 + $0xad8] sm:$0xff]  ;;  %v1568_v48 = vmul.f32 %v4683_v1, %v542_v40  ;;  %v2592_v53 = vadd.f32 %v4688_v5, %v1566_v42 }
 0x178   : > { %3593 = vst [vmem:[%s4711_s25 + $0xa08] sm:$0xff] %v2569_v46  ;;  %v544_v46 = vld [vmem:[%s4676_s5 + $0xae0] sm:$0xff]  ;;  %v1569_v51 = vmul.f32 %v4683_v1, %v543_v43  ;;  %v2593_v56 = vadd.f32 %v4688_v5, %v1567_v45 }
 0x179   : > { %3594 = vst [vmem:[%s4711_s25 + $0xa10] sm:$0xff] %v2570_v49  ;;  %v545_v49 = vld [vmem:[%s4676_s5 + $0xae8] sm:$0xff]  ;;  %v1570_v54 = vmul.f32 %v4683_v1, %v544_v46  ;;  %v2594_v59 = vadd.f32 %v4688_v5, %v1568_v48 }
 0x17a   : > { %3595 = vst [vmem:[%s4711_s25 + $0xa18] sm:$0xff] %v2571_v52  ;;  %v546_v52 = vld [vmem:[%s4676_s5 + $0xaf0] sm:$0xff]  ;;  %v1571_v57 = vmul.f32 %v4683_v1, %v545_v49  ;;  %v2595_v62 = vadd.f32 %v4688_v5, %v1569_v51 }
 0x17b   : > { %3596 = vst [vmem:[%s4711_s25 + $0xa20] sm:$0xff] %v2572_v55  ;;  %v547_v55 = vld [vmem:[%s4676_s5 + $0xaf8] sm:$0xff]  ;;  %v1572_v60 = vmul.f32 %v4683_v1, %v546_v52  ;;  %v2596_v2 = vadd.f32 %v4688_v5, %v1570_v54 }
 0x17c   : > { %3597 = vst [vmem:[%s4711_s25 + $0xa28] sm:$0xff] %v2573_v58  ;;  %v548_v58 = vld [vmem:[%s4676_s5 + $0xb00] sm:$0xff]  ;;  %v1573_v63 = vmul.f32 %v4683_v1, %v547_v55  ;;  %v2597_v6 = vadd.f32 %v4688_v5, %v1571_v57 }
 0x17d   : > { %3598 = vst [vmem:[%s4711_s25 + $0xa30] sm:$0xff] %v2574_v61  ;;  %v549_v61 = vld [vmem:[%s4676_s5 + $0xb08] sm:$0xff]  ;;  %v1574_v3 = vmul.f32 %v4683_v1, %v548_v58  ;;  %v2598_v9 = vadd.f32 %v4688_v5, %v1572_v60 }
 0x17e   : > { %3599 = vst [vmem:[%s4711_s25 + $0xa38] sm:$0xff] %v2575_v0  ;;  %v550_v0 = vld [vmem:[%s4676_s5 + $0xb10] sm:$0xff]  ;;  %v1575_v7 = vmul.f32 %v4683_v1, %v549_v61  ;;  %v2599_v12 = vadd.f32 %v4688_v5, %v1573_v63 }
 0x17f   : > { %3600 = vst [vmem:[%s4711_s25 + $0xa40] sm:$0xff] %v2576_v4  ;;  %v551_v4 = vld [vmem:[%s4676_s5 + $0xb18] sm:$0xff]  ;;  %v1576_v10 = vmul.f32 %v4683_v1, %v550_v0  ;;  %v2600_v15 = vadd.f32 %v4688_v5, %v1574_v3 }
 0x180   : > { %3601 = vst [vmem:[%s4711_s25 + $0xa48] sm:$0xff] %v2577_v8  ;;  %v552_v8 = vld [vmem:[%s4676_s5 + $0xb20] sm:$0xff]  ;;  %v1577_v13 = vmul.f32 %v4683_v1, %v551_v4  ;;  %v2601_v18 = vadd.f32 %v4688_v5, %v1575_v7 }
 0x181   : > { %3602 = vst [vmem:[%s4711_s25 + $0xa50] sm:$0xff] %v2578_v11  ;;  %v553_v11 = vld [vmem:[%s4676_s5 + $0xb28] sm:$0xff]  ;;  %v1578_v16 = vmul.f32 %v4683_v1, %v552_v8  ;;  %v2602_v21 = vadd.f32 %v4688_v5, %v1576_v10 }
 0x182   : > { %3603 = vst [vmem:[%s4711_s25 + $0xa58] sm:$0xff] %v2579_v14  ;;  %v554_v14 = vld [vmem:[%s4676_s5 + $0xb30] sm:$0xff]  ;;  %v1579_v19 = vmul.f32 %v4683_v1, %v553_v11  ;;  %v2603_v24 = vadd.f32 %v4688_v5, %v1577_v13 }
 0x183   : > { %3604 = vst [vmem:[%s4711_s25 + $0xa60] sm:$0xff] %v2580_v17  ;;  %v555_v17 = vld [vmem:[%s4676_s5 + $0xb38] sm:$0xff]  ;;  %v1580_v22 = vmul.f32 %v4683_v1, %v554_v14  ;;  %v2604_v27 = vadd.f32 %v4688_v5, %v1578_v16 }
 0x184   : > { %3605 = vst [vmem:[%s4711_s25 + $0xa68] sm:$0xff] %v2581_v20  ;;  %v556_v20 = vld [vmem:[%s4676_s5 + $0xb40] sm:$0xff]  ;;  %v1581_v25 = vmul.f32 %v4683_v1, %v555_v17  ;;  %v2605_v30 = vadd.f32 %v4688_v5, %v1579_v19 }
 0x185   : > { %3606 = vst [vmem:[%s4711_s25 + $0xa70] sm:$0xff] %v2582_v23  ;;  %v557_v23 = vld [vmem:[%s4676_s5 + $0xb48] sm:$0xff]  ;;  %v1582_v28 = vmul.f32 %v4683_v1, %v556_v20  ;;  %v2606_v33 = vadd.f32 %v4688_v5, %v1580_v22 }
 0x186   : > { %3607 = vst [vmem:[%s4711_s25 + $0xa78] sm:$0xff] %v2583_v26  ;;  %v558_v26 = vld [vmem:[%s4676_s5 + $0xb50] sm:$0xff]  ;;  %v1583_v31 = vmul.f32 %v4683_v1, %v557_v23  ;;  %v2607_v36 = vadd.f32 %v4688_v5, %v1581_v25 }
 0x187   : > { %3608 = vst [vmem:[%s4711_s25 + $0xa80] sm:$0xff] %v2584_v29  ;;  %v559_v29 = vld [vmem:[%s4676_s5 + $0xb58] sm:$0xff]  ;;  %v1584_v34 = vmul.f32 %v4683_v1, %v558_v26  ;;  %v2608_v39 = vadd.f32 %v4688_v5, %v1582_v28 }
 0x188   : > { %3609 = vst [vmem:[%s4711_s25 + $0xa88] sm:$0xff] %v2585_v32  ;;  %v560_v32 = vld [vmem:[%s4676_s5 + $0xb60] sm:$0xff]  ;;  %v1585_v37 = vmul.f32 %v4683_v1, %v559_v29  ;;  %v2609_v42 = vadd.f32 %v4688_v5, %v1583_v31 }
 0x189   : > { %3610 = vst [vmem:[%s4711_s25 + $0xa90] sm:$0xff] %v2586_v35  ;;  %v561_v35 = vld [vmem:[%s4676_s5 + $0xb68] sm:$0xff]  ;;  %v1586_v40 = vmul.f32 %v4683_v1, %v560_v32  ;;  %v2610_v45 = vadd.f32 %v4688_v5, %v1584_v34 }
 0x18a   : > { %3611 = vst [vmem:[%s4711_s25 + $0xa98] sm:$0xff] %v2587_v38  ;;  %v562_v38 = vld [vmem:[%s4676_s5 + $0xb70] sm:$0xff]  ;;  %v1587_v43 = vmul.f32 %v4683_v1, %v561_v35  ;;  %v2611_v48 = vadd.f32 %v4688_v5, %v1585_v37 }
 0x18b   : > { %3612 = vst [vmem:[%s4711_s25 + $0xaa0] sm:$0xff] %v2588_v41  ;;  %v563_v41 = vld [vmem:[%s4676_s5 + $0xb78] sm:$0xff]  ;;  %v1588_v46 = vmul.f32 %v4683_v1, %v562_v38  ;;  %v2612_v51 = vadd.f32 %v4688_v5, %v1586_v40 }
 0x18c   : > { %3613 = vst [vmem:[%s4711_s25 + $0xaa8] sm:$0xff] %v2589_v44  ;;  %v564_v44 = vld [vmem:[%s4676_s5 + $0xb80] sm:$0xff]  ;;  %v1589_v49 = vmul.f32 %v4683_v1, %v563_v41  ;;  %v2613_v54 = vadd.f32 %v4688_v5, %v1587_v43 }
 0x18d   : > { %3614 = vst [vmem:[%s4711_s25 + $0xab0] sm:$0xff] %v2590_v47  ;;  %v565_v47 = vld [vmem:[%s4676_s5 + $0xb88] sm:$0xff]  ;;  %v1590_v52 = vmul.f32 %v4683_v1, %v564_v44  ;;  %v2614_v57 = vadd.f32 %v4688_v5, %v1588_v46 }
 0x18e   : > { %3615 = vst [vmem:[%s4711_s25 + $0xab8] sm:$0xff] %v2591_v50  ;;  %v566_v50 = vld [vmem:[%s4676_s5 + $0xb90] sm:$0xff]  ;;  %v1591_v55 = vmul.f32 %v4683_v1, %v565_v47  ;;  %v2615_v60 = vadd.f32 %v4688_v5, %v1589_v49 }
 0x18f   : > { %3616 = vst [vmem:[%s4711_s25 + $0xac0] sm:$0xff] %v2592_v53  ;;  %v567_v53 = vld [vmem:[%s4676_s5 + $0xb98] sm:$0xff]  ;;  %v1592_v58 = vmul.f32 %v4683_v1, %v566_v50  ;;  %v2616_v63 = vadd.f32 %v4688_v5, %v1590_v52 }
 0x190   : > { %3617 = vst [vmem:[%s4711_s25 + $0xac8] sm:$0xff] %v2593_v56  ;;  %v568_v56 = vld [vmem:[%s4676_s5 + $0xba0] sm:$0xff]  ;;  %v1593_v61 = vmul.f32 %v4683_v1, %v567_v53  ;;  %v2617_v3 = vadd.f32 %v4688_v5, %v1591_v55 }
 0x191   : > { %3618 = vst [vmem:[%s4711_s25 + $0xad0] sm:$0xff] %v2594_v59  ;;  %v569_v59 = vld [vmem:[%s4676_s5 + $0xba8] sm:$0xff]  ;;  %v1594_v0 = vmul.f32 %v4683_v1, %v568_v56  ;;  %v2618_v7 = vadd.f32 %v4688_v5, %v1592_v58 }
 0x192   : > { %3619 = vst [vmem:[%s4711_s25 + $0xad8] sm:$0xff] %v2595_v62  ;;  %v570_v62 = vld [vmem:[%s4676_s5 + $0xbb0] sm:$0xff]  ;;  %v1595_v4 = vmul.f32 %v4683_v1, %v569_v59  ;;  %v2619_v10 = vadd.f32 %v4688_v5, %v1593_v61 }
 0x193   : > { %3620 = vst [vmem:[%s4711_s25 + $0xae0] sm:$0xff] %v2596_v2  ;;  %v571_v2 = vld [vmem:[%s4676_s5 + $0xbb8] sm:$0xff]  ;;  %v1596_v8 = vmul.f32 %v4683_v1, %v570_v62  ;;  %v2620_v13 = vadd.f32 %v4688_v5, %v1594_v0 }
 0x194   : > { %3621 = vst [vmem:[%s4711_s25 + $0xae8] sm:$0xff] %v2597_v6  ;;  %v572_v6 = vld [vmem:[%s4676_s5 + $0xbc0] sm:$0xff]  ;;  %v1597_v11 = vmul.f32 %v4683_v1, %v571_v2  ;;  %v2621_v16 = vadd.f32 %v4688_v5, %v1595_v4 }
 0x195   : > { %3622 = vst [vmem:[%s4711_s25 + $0xaf0] sm:$0xff] %v2598_v9  ;;  %v573_v9 = vld [vmem:[%s4676_s5 + $0xbc8] sm:$0xff]  ;;  %v1598_v14 = vmul.f32 %v4683_v1, %v572_v6  ;;  %v2622_v19 = vadd.f32 %v4688_v5, %v1596_v8 }
 0x196   : > { %3623 = vst [vmem:[%s4711_s25 + $0xaf8] sm:$0xff] %v2599_v12  ;;  %v574_v12 = vld [vmem:[%s4676_s5 + $0xbd0] sm:$0xff]  ;;  %v1599_v17 = vmul.f32 %v4683_v1, %v573_v9  ;;  %v2623_v22 = vadd.f32 %v4688_v5, %v1597_v11 }
 0x197   : > { %3624 = vst [vmem:[%s4711_s25 + $0xb00] sm:$0xff] %v2600_v15  ;;  %v575_v15 = vld [vmem:[%s4676_s5 + $0xbd8] sm:$0xff]  ;;  %v1600_v20 = vmul.f32 %v4683_v1, %v574_v12  ;;  %v2624_v25 = vadd.f32 %v4688_v5, %v1598_v14 }
 0x198   : > { %3625 = vst [vmem:[%s4711_s25 + $0xb08] sm:$0xff] %v2601_v18  ;;  %v576_v18 = vld [vmem:[%s4676_s5 + $0xbe0] sm:$0xff]  ;;  %v1601_v23 = vmul.f32 %v4683_v1, %v575_v15  ;;  %v2625_v28 = vadd.f32 %v4688_v5, %v1599_v17 }
 0x199   : > { %3626 = vst [vmem:[%s4711_s25 + $0xb10] sm:$0xff] %v2602_v21  ;;  %v577_v21 = vld [vmem:[%s4676_s5 + $0xbe8] sm:$0xff]  ;;  %v1602_v26 = vmul.f32 %v4683_v1, %v576_v18  ;;  %v2626_v31 = vadd.f32 %v4688_v5, %v1600_v20 }
 0x19a   : > { %3627 = vst [vmem:[%s4711_s25 + $0xb18] sm:$0xff] %v2603_v24  ;;  %v578_v24 = vld [vmem:[%s4676_s5 + $0xbf0] sm:$0xff]  ;;  %v1603_v29 = vmul.f32 %v4683_v1, %v577_v21  ;;  %v2627_v34 = vadd.f32 %v4688_v5, %v1601_v23 }
 0x19b   : > { %3628 = vst [vmem:[%s4711_s25 + $0xb20] sm:$0xff] %v2604_v27  ;;  %v579_v27 = vld [vmem:[%s4676_s5 + $0xbf8] sm:$0xff]  ;;  %v1604_v32 = vmul.f32 %v4683_v1, %v578_v24  ;;  %v2628_v37 = vadd.f32 %v4688_v5, %v1602_v26 }
 0x19c   : > { %3629 = vst [vmem:[%s4711_s25 + $0xb28] sm:$0xff] %v2605_v30  ;;  %v580_v30 = vld [vmem:[%s4676_s5 + $0xc00] sm:$0xff]  ;;  %v1605_v35 = vmul.f32 %v4683_v1, %v579_v27  ;;  %v2629_v40 = vadd.f32 %v4688_v5, %v1603_v29 }
 0x19d   : > { %3630 = vst [vmem:[%s4711_s25 + $0xb30] sm:$0xff] %v2606_v33  ;;  %v581_v33 = vld [vmem:[%s4676_s5 + $0xc08] sm:$0xff]  ;;  %v1606_v38 = vmul.f32 %v4683_v1, %v580_v30  ;;  %v2630_v43 = vadd.f32 %v4688_v5, %v1604_v32 }
 0x19e   : > { %3631 = vst [vmem:[%s4711_s25 + $0xb38] sm:$0xff] %v2607_v36  ;;  %v582_v36 = vld [vmem:[%s4676_s5 + $0xc10] sm:$0xff]  ;;  %v1607_v41 = vmul.f32 %v4683_v1, %v581_v33  ;;  %v2631_v46 = vadd.f32 %v4688_v5, %v1605_v35 }
 0x19f   : > { %3632 = vst [vmem:[%s4711_s25 + $0xb40] sm:$0xff] %v2608_v39  ;;  %v583_v39 = vld [vmem:[%s4676_s5 + $0xc18] sm:$0xff]  ;;  %v1608_v44 = vmul.f32 %v4683_v1, %v582_v36  ;;  %v2632_v49 = vadd.f32 %v4688_v5, %v1606_v38 }
 0x1a0   : > { %3633 = vst [vmem:[%s4711_s25 + $0xb48] sm:$0xff] %v2609_v42  ;;  %v584_v42 = vld [vmem:[%s4676_s5 + $0xc20] sm:$0xff]  ;;  %v1609_v47 = vmul.f32 %v4683_v1, %v583_v39  ;;  %v2633_v52 = vadd.f32 %v4688_v5, %v1607_v41 }
 0x1a1   : > { %3634 = vst [vmem:[%s4711_s25 + $0xb50] sm:$0xff] %v2610_v45  ;;  %v585_v45 = vld [vmem:[%s4676_s5 + $0xc28] sm:$0xff]  ;;  %v1610_v50 = vmul.f32 %v4683_v1, %v584_v42  ;;  %v2634_v55 = vadd.f32 %v4688_v5, %v1608_v44 }
 0x1a2   : > { %3635 = vst [vmem:[%s4711_s25 + $0xb58] sm:$0xff] %v2611_v48  ;;  %v586_v48 = vld [vmem:[%s4676_s5 + $0xc30] sm:$0xff]  ;;  %v1611_v53 = vmul.f32 %v4683_v1, %v585_v45  ;;  %v2635_v58 = vadd.f32 %v4688_v5, %v1609_v47 }
 0x1a3   : > { %3636 = vst [vmem:[%s4711_s25 + $0xb60] sm:$0xff] %v2612_v51  ;;  %v587_v51 = vld [vmem:[%s4676_s5 + $0xc38] sm:$0xff]  ;;  %v1612_v56 = vmul.f32 %v4683_v1, %v586_v48  ;;  %v2636_v61 = vadd.f32 %v4688_v5, %v1610_v50 }
 0x1a4   : > { %3637 = vst [vmem:[%s4711_s25 + $0xb68] sm:$0xff] %v2613_v54  ;;  %v588_v54 = vld [vmem:[%s4676_s5 + $0xc40] sm:$0xff]  ;;  %v1613_v59 = vmul.f32 %v4683_v1, %v587_v51  ;;  %v2637_v0 = vadd.f32 %v4688_v5, %v1611_v53 }
 0x1a5   : > { %3638 = vst [vmem:[%s4711_s25 + $0xb70] sm:$0xff] %v2614_v57  ;;  %v589_v57 = vld [vmem:[%s4676_s5 + $0xc48] sm:$0xff]  ;;  %v1614_v62 = vmul.f32 %v4683_v1, %v588_v54  ;;  %v2638_v4 = vadd.f32 %v4688_v5, %v1612_v56 }
 0x1a6   : > { %3639 = vst [vmem:[%s4711_s25 + $0xb78] sm:$0xff] %v2615_v60  ;;  %v590_v60 = vld [vmem:[%s4676_s5 + $0xc50] sm:$0xff]  ;;  %v1615_v2 = vmul.f32 %v4683_v1, %v589_v57  ;;  %v2639_v8 = vadd.f32 %v4688_v5, %v1613_v59 }
 0x1a7   : > { %3640 = vst [vmem:[%s4711_s25 + $0xb80] sm:$0xff] %v2616_v63  ;;  %v591_v63 = vld [vmem:[%s4676_s5 + $0xc58] sm:$0xff]  ;;  %v1616_v6 = vmul.f32 %v4683_v1, %v590_v60  ;;  %v2640_v11 = vadd.f32 %v4688_v5, %v1614_v62 }
 0x1a8   : > { %3641 = vst [vmem:[%s4711_s25 + $0xb88] sm:$0xff] %v2617_v3  ;;  %v592_v3 = vld [vmem:[%s4676_s5 + $0xc60] sm:$0xff]  ;;  %v1617_v9 = vmul.f32 %v4683_v1, %v591_v63  ;;  %v2641_v14 = vadd.f32 %v4688_v5, %v1615_v2 }
 0x1a9   : > { %3642 = vst [vmem:[%s4711_s25 + $0xb90] sm:$0xff] %v2618_v7  ;;  %v593_v7 = vld [vmem:[%s4676_s5 + $0xc68] sm:$0xff]  ;;  %v1618_v12 = vmul.f32 %v4683_v1, %v592_v3  ;;  %v2642_v17 = vadd.f32 %v4688_v5, %v1616_v6 }
 0x1aa   : > { %3643 = vst [vmem:[%s4711_s25 + $0xb98] sm:$0xff] %v2619_v10  ;;  %v594_v10 = vld [vmem:[%s4676_s5 + $0xc70] sm:$0xff]  ;;  %v1619_v15 = vmul.f32 %v4683_v1, %v593_v7  ;;  %v2643_v20 = vadd.f32 %v4688_v5, %v1617_v9 }
 0x1ab   : > { %3644 = vst [vmem:[%s4711_s25 + $0xba0] sm:$0xff] %v2620_v13  ;;  %v595_v13 = vld [vmem:[%s4676_s5 + $0xc78] sm:$0xff]  ;;  %v1620_v18 = vmul.f32 %v4683_v1, %v594_v10  ;;  %v2644_v23 = vadd.f32 %v4688_v5, %v1618_v12 }
 0x1ac   : > { %3645 = vst [vmem:[%s4711_s25 + $0xba8] sm:$0xff] %v2621_v16  ;;  %v596_v16 = vld [vmem:[%s4676_s5 + $0xc80] sm:$0xff]  ;;  %v1621_v21 = vmul.f32 %v4683_v1, %v595_v13  ;;  %v2645_v26 = vadd.f32 %v4688_v5, %v1619_v15 }
 0x1ad   : > { %3646 = vst [vmem:[%s4711_s25 + $0xbb0] sm:$0xff] %v2622_v19  ;;  %v597_v19 = vld [vmem:[%s4676_s5 + $0xc88] sm:$0xff]  ;;  %v1622_v24 = vmul.f32 %v4683_v1, %v596_v16  ;;  %v2646_v29 = vadd.f32 %v4688_v5, %v1620_v18 }
 0x1ae   : > { %3647 = vst [vmem:[%s4711_s25 + $0xbb8] sm:$0xff] %v2623_v22  ;;  %v598_v22 = vld [vmem:[%s4676_s5 + $0xc90] sm:$0xff]  ;;  %v1623_v27 = vmul.f32 %v4683_v1, %v597_v19  ;;  %v2647_v32 = vadd.f32 %v4688_v5, %v1621_v21 }
 0x1af   : > { %3648 = vst [vmem:[%s4711_s25 + $0xbc0] sm:$0xff] %v2624_v25  ;;  %v599_v25 = vld [vmem:[%s4676_s5 + $0xc98] sm:$0xff]  ;;  %v1624_v30 = vmul.f32 %v4683_v1, %v598_v22  ;;  %v2648_v35 = vadd.f32 %v4688_v5, %v1622_v24 }
 0x1b0   : > { %3649 = vst [vmem:[%s4711_s25 + $0xbc8] sm:$0xff] %v2625_v28  ;;  %v600_v28 = vld [vmem:[%s4676_s5 + $0xca0] sm:$0xff]  ;;  %v1625_v33 = vmul.f32 %v4683_v1, %v599_v25  ;;  %v2649_v38 = vadd.f32 %v4688_v5, %v1623_v27 }
 0x1b1   : > { %3650 = vst [vmem:[%s4711_s25 + $0xbd0] sm:$0xff] %v2626_v31  ;;  %v601_v31 = vld [vmem:[%s4676_s5 + $0xca8] sm:$0xff]  ;;  %v1626_v36 = vmul.f32 %v4683_v1, %v600_v28  ;;  %v2650_v41 = vadd.f32 %v4688_v5, %v1624_v30 }
 0x1b2   : > { %3651 = vst [vmem:[%s4711_s25 + $0xbd8] sm:$0xff] %v2627_v34  ;;  %v602_v34 = vld [vmem:[%s4676_s5 + $0xcb0] sm:$0xff]  ;;  %v1627_v39 = vmul.f32 %v4683_v1, %v601_v31  ;;  %v2651_v44 = vadd.f32 %v4688_v5, %v1625_v33 }
 0x1b3   : > { %3652 = vst [vmem:[%s4711_s25 + $0xbe0] sm:$0xff] %v2628_v37  ;;  %v603_v37 = vld [vmem:[%s4676_s5 + $0xcb8] sm:$0xff]  ;;  %v1628_v42 = vmul.f32 %v4683_v1, %v602_v34  ;;  %v2652_v47 = vadd.f32 %v4688_v5, %v1626_v36 }
 0x1b4   : > { %3653 = vst [vmem:[%s4711_s25 + $0xbe8] sm:$0xff] %v2629_v40  ;;  %v604_v40 = vld [vmem:[%s4676_s5 + $0xcc0] sm:$0xff]  ;;  %v1629_v45 = vmul.f32 %v4683_v1, %v603_v37  ;;  %v2653_v50 = vadd.f32 %v4688_v5, %v1627_v39 }
 0x1b5   : > { %3654 = vst [vmem:[%s4711_s25 + $0xbf0] sm:$0xff] %v2630_v43  ;;  %v605_v43 = vld [vmem:[%s4676_s5 + $0xcc8] sm:$0xff]  ;;  %v1630_v48 = vmul.f32 %v4683_v1, %v604_v40  ;;  %v2654_v53 = vadd.f32 %v4688_v5, %v1628_v42 }
 0x1b6   : > { %3655 = vst [vmem:[%s4711_s25 + $0xbf8] sm:$0xff] %v2631_v46  ;;  %v606_v46 = vld [vmem:[%s4676_s5 + $0xcd0] sm:$0xff]  ;;  %v1631_v51 = vmul.f32 %v4683_v1, %v605_v43  ;;  %v2655_v56 = vadd.f32 %v4688_v5, %v1629_v45 }
 0x1b7   : > { %3656 = vst [vmem:[%s4711_s25 + $0xc00] sm:$0xff] %v2632_v49  ;;  %v607_v49 = vld [vmem:[%s4676_s5 + $0xcd8] sm:$0xff]  ;;  %v1632_v54 = vmul.f32 %v4683_v1, %v606_v46  ;;  %v2656_v59 = vadd.f32 %v4688_v5, %v1630_v48 }
 0x1b8   : > { %3657 = vst [vmem:[%s4711_s25 + $0xc08] sm:$0xff] %v2633_v52  ;;  %v608_v52 = vld [vmem:[%s4676_s5 + $0xce0] sm:$0xff]  ;;  %v1633_v57 = vmul.f32 %v4683_v1, %v607_v49  ;;  %v2657_v62 = vadd.f32 %v4688_v5, %v1631_v51 }
 0x1b9   : > { %3658 = vst [vmem:[%s4711_s25 + $0xc10] sm:$0xff] %v2634_v55  ;;  %v609_v55 = vld [vmem:[%s4676_s5 + $0xce8] sm:$0xff]  ;;  %v1634_v60 = vmul.f32 %v4683_v1, %v608_v52  ;;  %v2658_v2 = vadd.f32 %v4688_v5, %v1632_v54 }
 0x1ba   : > { %3659 = vst [vmem:[%s4711_s25 + $0xc18] sm:$0xff] %v2635_v58  ;;  %v610_v58 = vld [vmem:[%s4676_s5 + $0xcf0] sm:$0xff]  ;;  %v1635_v63 = vmul.f32 %v4683_v1, %v609_v55  ;;  %v2659_v6 = vadd.f32 %v4688_v5, %v1633_v57 }
 0x1bb   : > { %3660 = vst [vmem:[%s4711_s25 + $0xc20] sm:$0xff] %v2636_v61  ;;  %v611_v61 = vld [vmem:[%s4676_s5 + $0xcf8] sm:$0xff]  ;;  %v1636_v3 = vmul.f32 %v4683_v1, %v610_v58  ;;  %v2660_v9 = vadd.f32 %v4688_v5, %v1634_v60 }
 0x1bc   : > { %3661 = vst [vmem:[%s4711_s25 + $0xc28] sm:$0xff] %v2637_v0  ;;  %v612_v0 = vld [vmem:[%s4676_s5 + $0xd00] sm:$0xff]  ;;  %v1637_v7 = vmul.f32 %v4683_v1, %v611_v61  ;;  %v2661_v12 = vadd.f32 %v4688_v5, %v1635_v63 }
 0x1bd   : > { %3662 = vst [vmem:[%s4711_s25 + $0xc30] sm:$0xff] %v2638_v4  ;;  %v613_v4 = vld [vmem:[%s4676_s5 + $0xd08] sm:$0xff]  ;;  %v1638_v10 = vmul.f32 %v4683_v1, %v612_v0  ;;  %v2662_v15 = vadd.f32 %v4688_v5, %v1636_v3 }
 0x1be   : > { %3663 = vst [vmem:[%s4711_s25 + $0xc38] sm:$0xff] %v2639_v8  ;;  %v614_v8 = vld [vmem:[%s4676_s5 + $0xd10] sm:$0xff]  ;;  %v1639_v13 = vmul.f32 %v4683_v1, %v613_v4  ;;  %v2663_v18 = vadd.f32 %v4688_v5, %v1637_v7 }
 0x1bf   : > { %3664 = vst [vmem:[%s4711_s25 + $0xc40] sm:$0xff] %v2640_v11  ;;  %v615_v11 = vld [vmem:[%s4676_s5 + $0xd18] sm:$0xff]  ;;  %v1640_v16 = vmul.f32 %v4683_v1, %v614_v8  ;;  %v2664_v21 = vadd.f32 %v4688_v5, %v1638_v10 }
 0x1c0   : > { %3665 = vst [vmem:[%s4711_s25 + $0xc48] sm:$0xff] %v2641_v14  ;;  %v616_v14 = vld [vmem:[%s4676_s5 + $0xd20] sm:$0xff]  ;;  %v1641_v19 = vmul.f32 %v4683_v1, %v615_v11  ;;  %v2665_v24 = vadd.f32 %v4688_v5, %v1639_v13 }
 0x1c1   : > { %3666 = vst [vmem:[%s4711_s25 + $0xc50] sm:$0xff] %v2642_v17  ;;  %v617_v17 = vld [vmem:[%s4676_s5 + $0xd28] sm:$0xff]  ;;  %v1642_v22 = vmul.f32 %v4683_v1, %v616_v14  ;;  %v2666_v27 = vadd.f32 %v4688_v5, %v1640_v16 }
 0x1c2   : > { %3667 = vst [vmem:[%s4711_s25 + $0xc58] sm:$0xff] %v2643_v20  ;;  %v618_v20 = vld [vmem:[%s4676_s5 + $0xd30] sm:$0xff]  ;;  %v1643_v25 = vmul.f32 %v4683_v1, %v617_v17  ;;  %v2667_v30 = vadd.f32 %v4688_v5, %v1641_v19 }
 0x1c3   : > { %3668 = vst [vmem:[%s4711_s25 + $0xc60] sm:$0xff] %v2644_v23  ;;  %v619_v23 = vld [vmem:[%s4676_s5 + $0xd38] sm:$0xff]  ;;  %v1644_v28 = vmul.f32 %v4683_v1, %v618_v20  ;;  %v2668_v33 = vadd.f32 %v4688_v5, %v1642_v22 }
 0x1c4   : > { %3669 = vst [vmem:[%s4711_s25 + $0xc68] sm:$0xff] %v2645_v26  ;;  %v620_v26 = vld [vmem:[%s4676_s5 + $0xd40] sm:$0xff]  ;;  %v1645_v31 = vmul.f32 %v4683_v1, %v619_v23  ;;  %v2669_v36 = vadd.f32 %v4688_v5, %v1643_v25 }
 0x1c5   : > { %3670 = vst [vmem:[%s4711_s25 + $0xc70] sm:$0xff] %v2646_v29  ;;  %v621_v29 = vld [vmem:[%s4676_s5 + $0xd48] sm:$0xff]  ;;  %v1646_v34 = vmul.f32 %v4683_v1, %v620_v26  ;;  %v2670_v39 = vadd.f32 %v4688_v5, %v1644_v28 }
 0x1c6   : > { %3671 = vst [vmem:[%s4711_s25 + $0xc78] sm:$0xff] %v2647_v32  ;;  %v622_v32 = vld [vmem:[%s4676_s5 + $0xd50] sm:$0xff]  ;;  %v1647_v37 = vmul.f32 %v4683_v1, %v621_v29  ;;  %v2671_v42 = vadd.f32 %v4688_v5, %v1645_v31 }
 0x1c7   : > { %3672 = vst [vmem:[%s4711_s25 + $0xc80] sm:$0xff] %v2648_v35  ;;  %v623_v35 = vld [vmem:[%s4676_s5 + $0xd58] sm:$0xff]  ;;  %v1648_v40 = vmul.f32 %v4683_v1, %v622_v32  ;;  %v2672_v45 = vadd.f32 %v4688_v5, %v1646_v34 }
 0x1c8   : > { %3673 = vst [vmem:[%s4711_s25 + $0xc88] sm:$0xff] %v2649_v38  ;;  %v624_v38 = vld [vmem:[%s4676_s5 + $0xd60] sm:$0xff]  ;;  %v1649_v43 = vmul.f32 %v4683_v1, %v623_v35  ;;  %v2673_v48 = vadd.f32 %v4688_v5, %v1647_v37 }
 0x1c9   : > { %3674 = vst [vmem:[%s4711_s25 + $0xc90] sm:$0xff] %v2650_v41  ;;  %v625_v41 = vld [vmem:[%s4676_s5 + $0xd68] sm:$0xff]  ;;  %v1650_v46 = vmul.f32 %v4683_v1, %v624_v38  ;;  %v2674_v51 = vadd.f32 %v4688_v5, %v1648_v40 }
 0x1ca   : > { %3675 = vst [vmem:[%s4711_s25 + $0xc98] sm:$0xff] %v2651_v44  ;;  %v626_v44 = vld [vmem:[%s4676_s5 + $0xd70] sm:$0xff]  ;;  %v1651_v49 = vmul.f32 %v4683_v1, %v625_v41  ;;  %v2675_v54 = vadd.f32 %v4688_v5, %v1649_v43 }
 0x1cb   : > { %3676 = vst [vmem:[%s4711_s25 + $0xca0] sm:$0xff] %v2652_v47  ;;  %v627_v47 = vld [vmem:[%s4676_s5 + $0xd78] sm:$0xff]  ;;  %v1652_v52 = vmul.f32 %v4683_v1, %v626_v44  ;;  %v2676_v57 = vadd.f32 %v4688_v5, %v1650_v46 }
 0x1cc   : > { %3677 = vst [vmem:[%s4711_s25 + $0xca8] sm:$0xff] %v2653_v50  ;;  %v628_v50 = vld [vmem:[%s4676_s5 + $0xd80] sm:$0xff]  ;;  %v1653_v55 = vmul.f32 %v4683_v1, %v627_v47  ;;  %v2677_v60 = vadd.f32 %v4688_v5, %v1651_v49 }
 0x1cd   : > { %3678 = vst [vmem:[%s4711_s25 + $0xcb0] sm:$0xff] %v2654_v53  ;;  %v629_v53 = vld [vmem:[%s4676_s5 + $0xd88] sm:$0xff]  ;;  %v1654_v58 = vmul.f32 %v4683_v1, %v628_v50  ;;  %v2678_v63 = vadd.f32 %v4688_v5, %v1652_v52 }
 0x1ce   : > { %3679 = vst [vmem:[%s4711_s25 + $0xcb8] sm:$0xff] %v2655_v56  ;;  %v630_v56 = vld [vmem:[%s4676_s5 + $0xd90] sm:$0xff]  ;;  %v1655_v61 = vmul.f32 %v4683_v1, %v629_v53  ;;  %v2679_v3 = vadd.f32 %v4688_v5, %v1653_v55 }
 0x1cf   : > { %3680 = vst [vmem:[%s4711_s25 + $0xcc0] sm:$0xff] %v2656_v59  ;;  %v631_v59 = vld [vmem:[%s4676_s5 + $0xd98] sm:$0xff]  ;;  %v1656_v0 = vmul.f32 %v4683_v1, %v630_v56  ;;  %v2680_v7 = vadd.f32 %v4688_v5, %v1654_v58 }
 0x1d0   : > { %3681 = vst [vmem:[%s4711_s25 + $0xcc8] sm:$0xff] %v2657_v62  ;;  %v632_v62 = vld [vmem:[%s4676_s5 + $0xda0] sm:$0xff]  ;;  %v1657_v4 = vmul.f32 %v4683_v1, %v631_v59  ;;  %v2681_v10 = vadd.f32 %v4688_v5, %v1655_v61 }
 0x1d1   : > { %3682 = vst [vmem:[%s4711_s25 + $0xcd0] sm:$0xff] %v2658_v2  ;;  %v633_v2 = vld [vmem:[%s4676_s5 + $0xda8] sm:$0xff]  ;;  %v1658_v8 = vmul.f32 %v4683_v1, %v632_v62  ;;  %v2682_v13 = vadd.f32 %v4688_v5, %v1656_v0 }
 0x1d2   : > { %3683 = vst [vmem:[%s4711_s25 + $0xcd8] sm:$0xff] %v2659_v6  ;;  %v634_v6 = vld [vmem:[%s4676_s5 + $0xdb0] sm:$0xff]  ;;  %v1659_v11 = vmul.f32 %v4683_v1, %v633_v2  ;;  %v2683_v16 = vadd.f32 %v4688_v5, %v1657_v4 }
 0x1d3   : > { %3684 = vst [vmem:[%s4711_s25 + $0xce0] sm:$0xff] %v2660_v9  ;;  %v635_v9 = vld [vmem:[%s4676_s5 + $0xdb8] sm:$0xff]  ;;  %v1660_v14 = vmul.f32 %v4683_v1, %v634_v6  ;;  %v2684_v19 = vadd.f32 %v4688_v5, %v1658_v8 }
 0x1d4   : > { %3685 = vst [vmem:[%s4711_s25 + $0xce8] sm:$0xff] %v2661_v12  ;;  %v636_v12 = vld [vmem:[%s4676_s5 + $0xdc0] sm:$0xff]  ;;  %v1661_v17 = vmul.f32 %v4683_v1, %v635_v9  ;;  %v2685_v22 = vadd.f32 %v4688_v5, %v1659_v11 }
 0x1d5   : > { %3686 = vst [vmem:[%s4711_s25 + $0xcf0] sm:$0xff] %v2662_v15  ;;  %v637_v15 = vld [vmem:[%s4676_s5 + $0xdc8] sm:$0xff]  ;;  %v1662_v20 = vmul.f32 %v4683_v1, %v636_v12  ;;  %v2686_v25 = vadd.f32 %v4688_v5, %v1660_v14 }
 0x1d6   : > { %3687 = vst [vmem:[%s4711_s25 + $0xcf8] sm:$0xff] %v2663_v18  ;;  %v638_v18 = vld [vmem:[%s4676_s5 + $0xdd0] sm:$0xff]  ;;  %v1663_v23 = vmul.f32 %v4683_v1, %v637_v15  ;;  %v2687_v28 = vadd.f32 %v4688_v5, %v1661_v17 }
 0x1d7   : > { %3688 = vst [vmem:[%s4711_s25 + $0xd00] sm:$0xff] %v2664_v21  ;;  %v639_v21 = vld [vmem:[%s4676_s5 + $0xdd8] sm:$0xff]  ;;  %v1664_v26 = vmul.f32 %v4683_v1, %v638_v18  ;;  %v2688_v31 = vadd.f32 %v4688_v5, %v1662_v20 }
 0x1d8   : > { %3689 = vst [vmem:[%s4711_s25 + $0xd08] sm:$0xff] %v2665_v24  ;;  %v640_v24 = vld [vmem:[%s4676_s5 + $0xde0] sm:$0xff]  ;;  %v1665_v29 = vmul.f32 %v4683_v1, %v639_v21  ;;  %v2689_v34 = vadd.f32 %v4688_v5, %v1663_v23 }
 0x1d9   : > { %3690 = vst [vmem:[%s4711_s25 + $0xd10] sm:$0xff] %v2666_v27  ;;  %v641_v27 = vld [vmem:[%s4676_s5 + $0xde8] sm:$0xff]  ;;  %v1666_v32 = vmul.f32 %v4683_v1, %v640_v24  ;;  %v2690_v37 = vadd.f32 %v4688_v5, %v1664_v26 }
 0x1da   : > { %3691 = vst [vmem:[%s4711_s25 + $0xd18] sm:$0xff] %v2667_v30  ;;  %v642_v30 = vld [vmem:[%s4676_s5 + $0xdf0] sm:$0xff]  ;;  %v1667_v35 = vmul.f32 %v4683_v1, %v641_v27  ;;  %v2691_v40 = vadd.f32 %v4688_v5, %v1665_v29 }
 0x1db   : > { %3692 = vst [vmem:[%s4711_s25 + $0xd20] sm:$0xff] %v2668_v33  ;;  %v643_v33 = vld [vmem:[%s4676_s5 + $0xdf8] sm:$0xff]  ;;  %v1668_v38 = vmul.f32 %v4683_v1, %v642_v30  ;;  %v2692_v43 = vadd.f32 %v4688_v5, %v1666_v32 }
 0x1dc   : > { %3693 = vst [vmem:[%s4711_s25 + $0xd28] sm:$0xff] %v2669_v36  ;;  %v644_v36 = vld [vmem:[%s4676_s5 + $0xe00] sm:$0xff]  ;;  %v1669_v41 = vmul.f32 %v4683_v1, %v643_v33  ;;  %v2693_v46 = vadd.f32 %v4688_v5, %v1667_v35 }
 0x1dd   : > { %3694 = vst [vmem:[%s4711_s25 + $0xd30] sm:$0xff] %v2670_v39  ;;  %v645_v39 = vld [vmem:[%s4676_s5 + $0xe08] sm:$0xff]  ;;  %v1670_v44 = vmul.f32 %v4683_v1, %v644_v36  ;;  %v2694_v49 = vadd.f32 %v4688_v5, %v1668_v38 }
 0x1de   : > { %3695 = vst [vmem:[%s4711_s25 + $0xd38] sm:$0xff] %v2671_v42  ;;  %v646_v42 = vld [vmem:[%s4676_s5 + $0xe10] sm:$0xff]  ;;  %v1671_v47 = vmul.f32 %v4683_v1, %v645_v39  ;;  %v2695_v52 = vadd.f32 %v4688_v5, %v1669_v41 }
 0x1df   : > { %3696 = vst [vmem:[%s4711_s25 + $0xd40] sm:$0xff] %v2672_v45  ;;  %v647_v45 = vld [vmem:[%s4676_s5 + $0xe18] sm:$0xff]  ;;  %v1672_v50 = vmul.f32 %v4683_v1, %v646_v42  ;;  %v2696_v55 = vadd.f32 %v4688_v5, %v1670_v44 }
 0x1e0   : > { %3697 = vst [vmem:[%s4711_s25 + $0xd48] sm:$0xff] %v2673_v48  ;;  %v648_v48 = vld [vmem:[%s4676_s5 + $0xe20] sm:$0xff]  ;;  %v1673_v53 = vmul.f32 %v4683_v1, %v647_v45  ;;  %v2697_v58 = vadd.f32 %v4688_v5, %v1671_v47 }
 0x1e1   : > { %3698 = vst [vmem:[%s4711_s25 + $0xd50] sm:$0xff] %v2674_v51  ;;  %v649_v51 = vld [vmem:[%s4676_s5 + $0xe28] sm:$0xff]  ;;  %v1674_v56 = vmul.f32 %v4683_v1, %v648_v48  ;;  %v2698_v61 = vadd.f32 %v4688_v5, %v1672_v50 }
 0x1e2   : > { %3699 = vst [vmem:[%s4711_s25 + $0xd58] sm:$0xff] %v2675_v54  ;;  %v650_v54 = vld [vmem:[%s4676_s5 + $0xe30] sm:$0xff]  ;;  %v1675_v59 = vmul.f32 %v4683_v1, %v649_v51  ;;  %v2699_v0 = vadd.f32 %v4688_v5, %v1673_v53 }
 0x1e3   : > { %3700 = vst [vmem:[%s4711_s25 + $0xd60] sm:$0xff] %v2676_v57  ;;  %v651_v57 = vld [vmem:[%s4676_s5 + $0xe38] sm:$0xff]  ;;  %v1676_v62 = vmul.f32 %v4683_v1, %v650_v54  ;;  %v2700_v4 = vadd.f32 %v4688_v5, %v1674_v56 }
 0x1e4   : > { %3701 = vst [vmem:[%s4711_s25 + $0xd68] sm:$0xff] %v2677_v60  ;;  %v652_v60 = vld [vmem:[%s4676_s5 + $0xe40] sm:$0xff]  ;;  %v1677_v2 = vmul.f32 %v4683_v1, %v651_v57  ;;  %v2701_v8 = vadd.f32 %v4688_v5, %v1675_v59 }
 0x1e5   : > { %3702 = vst [vmem:[%s4711_s25 + $0xd70] sm:$0xff] %v2678_v63  ;;  %v653_v63 = vld [vmem:[%s4676_s5 + $0xe48] sm:$0xff]  ;;  %v1678_v6 = vmul.f32 %v4683_v1, %v652_v60  ;;  %v2702_v11 = vadd.f32 %v4688_v5, %v1676_v62 }
 0x1e6   : > { %3703 = vst [vmem:[%s4711_s25 + $0xd78] sm:$0xff] %v2679_v3  ;;  %v654_v3 = vld [vmem:[%s4676_s5 + $0xe50] sm:$0xff]  ;;  %v1679_v9 = vmul.f32 %v4683_v1, %v653_v63  ;;  %v2703_v14 = vadd.f32 %v4688_v5, %v1677_v2 }
 0x1e7   : > { %3704 = vst [vmem:[%s4711_s25 + $0xd80] sm:$0xff] %v2680_v7  ;;  %v655_v7 = vld [vmem:[%s4676_s5 + $0xe58] sm:$0xff]  ;;  %v1680_v12 = vmul.f32 %v4683_v1, %v654_v3  ;;  %v2704_v17 = vadd.f32 %v4688_v5, %v1678_v6 }
 0x1e8   : > { %3705 = vst [vmem:[%s4711_s25 + $0xd88] sm:$0xff] %v2681_v10  ;;  %v656_v10 = vld [vmem:[%s4676_s5 + $0xe60] sm:$0xff]  ;;  %v1681_v15 = vmul.f32 %v4683_v1, %v655_v7  ;;  %v2705_v20 = vadd.f32 %v4688_v5, %v1679_v9 }
 0x1e9   : > { %3706 = vst [vmem:[%s4711_s25 + $0xd90] sm:$0xff] %v2682_v13  ;;  %v657_v13 = vld [vmem:[%s4676_s5 + $0xe68] sm:$0xff]  ;;  %v1682_v18 = vmul.f32 %v4683_v1, %v656_v10  ;;  %v2706_v23 = vadd.f32 %v4688_v5, %v1680_v12 }
 0x1ea   : > { %3707 = vst [vmem:[%s4711_s25 + $0xd98] sm:$0xff] %v2683_v16  ;;  %v658_v16 = vld [vmem:[%s4676_s5 + $0xe70] sm:$0xff]  ;;  %v1683_v21 = vmul.f32 %v4683_v1, %v657_v13  ;;  %v2707_v26 = vadd.f32 %v4688_v5, %v1681_v15 }
 0x1eb   : > { %3708 = vst [vmem:[%s4711_s25 + $0xda0] sm:$0xff] %v2684_v19  ;;  %v659_v19 = vld [vmem:[%s4676_s5 + $0xe78] sm:$0xff]  ;;  %v1684_v24 = vmul.f32 %v4683_v1, %v658_v16  ;;  %v2708_v29 = vadd.f32 %v4688_v5, %v1682_v18 }
 0x1ec   : > { %3709 = vst [vmem:[%s4711_s25 + $0xda8] sm:$0xff] %v2685_v22  ;;  %v660_v22 = vld [vmem:[%s4676_s5 + $0xe80] sm:$0xff]  ;;  %v1685_v27 = vmul.f32 %v4683_v1, %v659_v19  ;;  %v2709_v32 = vadd.f32 %v4688_v5, %v1683_v21 }
 0x1ed   : > { %3710 = vst [vmem:[%s4711_s25 + $0xdb0] sm:$0xff] %v2686_v25  ;;  %v661_v25 = vld [vmem:[%s4676_s5 + $0xe88] sm:$0xff]  ;;  %v1686_v30 = vmul.f32 %v4683_v1, %v660_v22  ;;  %v2710_v35 = vadd.f32 %v4688_v5, %v1684_v24 }
 0x1ee   : > { %3711 = vst [vmem:[%s4711_s25 + $0xdb8] sm:$0xff] %v2687_v28  ;;  %v662_v28 = vld [vmem:[%s4676_s5 + $0xe90] sm:$0xff]  ;;  %v1687_v33 = vmul.f32 %v4683_v1, %v661_v25  ;;  %v2711_v38 = vadd.f32 %v4688_v5, %v1685_v27 }
 0x1ef   : > { %3712 = vst [vmem:[%s4711_s25 + $0xdc0] sm:$0xff] %v2688_v31  ;;  %v663_v31 = vld [vmem:[%s4676_s5 + $0xe98] sm:$0xff]  ;;  %v1688_v36 = vmul.f32 %v4683_v1, %v662_v28  ;;  %v2712_v41 = vadd.f32 %v4688_v5, %v1686_v30 }
 0x1f0   : > { %3713 = vst [vmem:[%s4711_s25 + $0xdc8] sm:$0xff] %v2689_v34  ;;  %v664_v34 = vld [vmem:[%s4676_s5 + $0xea0] sm:$0xff]  ;;  %v1689_v39 = vmul.f32 %v4683_v1, %v663_v31  ;;  %v2713_v44 = vadd.f32 %v4688_v5, %v1687_v33 }
 0x1f1   : > { %3714 = vst [vmem:[%s4711_s25 + $0xdd0] sm:$0xff] %v2690_v37  ;;  %v665_v37 = vld [vmem:[%s4676_s5 + $0xea8] sm:$0xff]  ;;  %v1690_v42 = vmul.f32 %v4683_v1, %v664_v34  ;;  %v2714_v47 = vadd.f32 %v4688_v5, %v1688_v36 }
 0x1f2   : > { %3715 = vst [vmem:[%s4711_s25 + $0xdd8] sm:$0xff] %v2691_v40  ;;  %v666_v40 = vld [vmem:[%s4676_s5 + $0xeb0] sm:$0xff]  ;;  %v1691_v45 = vmul.f32 %v4683_v1, %v665_v37  ;;  %v2715_v50 = vadd.f32 %v4688_v5, %v1689_v39 }
 0x1f3   : > { %3716 = vst [vmem:[%s4711_s25 + $0xde0] sm:$0xff] %v2692_v43  ;;  %v667_v43 = vld [vmem:[%s4676_s5 + $0xeb8] sm:$0xff]  ;;  %v1692_v48 = vmul.f32 %v4683_v1, %v666_v40  ;;  %v2716_v53 = vadd.f32 %v4688_v5, %v1690_v42 }
 0x1f4   : > { %3717 = vst [vmem:[%s4711_s25 + $0xde8] sm:$0xff] %v2693_v46  ;;  %v668_v46 = vld [vmem:[%s4676_s5 + $0xec0] sm:$0xff]  ;;  %v1693_v51 = vmul.f32 %v4683_v1, %v667_v43  ;;  %v2717_v56 = vadd.f32 %v4688_v5, %v1691_v45 }
 0x1f5   : > { %3718 = vst [vmem:[%s4711_s25 + $0xdf0] sm:$0xff] %v2694_v49  ;;  %v669_v49 = vld [vmem:[%s4676_s5 + $0xec8] sm:$0xff]  ;;  %v1694_v54 = vmul.f32 %v4683_v1, %v668_v46  ;;  %v2718_v59 = vadd.f32 %v4688_v5, %v1692_v48 }
 0x1f6   : > { %3719 = vst [vmem:[%s4711_s25 + $0xdf8] sm:$0xff] %v2695_v52  ;;  %v670_v52 = vld [vmem:[%s4676_s5 + $0xed0] sm:$0xff]  ;;  %v1695_v57 = vmul.f32 %v4683_v1, %v669_v49  ;;  %v2719_v62 = vadd.f32 %v4688_v5, %v1693_v51 }
 0x1f7   : > { %3720 = vst [vmem:[%s4711_s25 + $0xe00] sm:$0xff] %v2696_v55  ;;  %v671_v55 = vld [vmem:[%s4676_s5 + $0xed8] sm:$0xff]  ;;  %v1696_v60 = vmul.f32 %v4683_v1, %v670_v52  ;;  %v2720_v2 = vadd.f32 %v4688_v5, %v1694_v54 }
 0x1f8   : > { %3721 = vst [vmem:[%s4711_s25 + $0xe08] sm:$0xff] %v2697_v58  ;;  %v672_v58 = vld [vmem:[%s4676_s5 + $0xee0] sm:$0xff]  ;;  %v1697_v63 = vmul.f32 %v4683_v1, %v671_v55  ;;  %v2721_v6 = vadd.f32 %v4688_v5, %v1695_v57 }
 0x1f9   : > { %3722 = vst [vmem:[%s4711_s25 + $0xe10] sm:$0xff] %v2698_v61  ;;  %v673_v61 = vld [vmem:[%s4676_s5 + $0xee8] sm:$0xff]  ;;  %v1698_v3 = vmul.f32 %v4683_v1, %v672_v58  ;;  %v2722_v9 = vadd.f32 %v4688_v5, %v1696_v60 }
 0x1fa   : > { %3723 = vst [vmem:[%s4711_s25 + $0xe18] sm:$0xff] %v2699_v0  ;;  %v674_v0 = vld [vmem:[%s4676_s5 + $0xef0] sm:$0xff]  ;;  %v1699_v7 = vmul.f32 %v4683_v1, %v673_v61  ;;  %v2723_v12 = vadd.f32 %v4688_v5, %v1697_v63 }
 0x1fb   : > { %3724 = vst [vmem:[%s4711_s25 + $0xe20] sm:$0xff] %v2700_v4  ;;  %v675_v4 = vld [vmem:[%s4676_s5 + $0xef8] sm:$0xff]  ;;  %v1700_v10 = vmul.f32 %v4683_v1, %v674_v0  ;;  %v2724_v15 = vadd.f32 %v4688_v5, %v1698_v3 }
 0x1fc   : > { %3725 = vst [vmem:[%s4711_s25 + $0xe28] sm:$0xff] %v2701_v8  ;;  %v676_v8 = vld [vmem:[%s4676_s5 + $0xf00] sm:$0xff]  ;;  %v1701_v13 = vmul.f32 %v4683_v1, %v675_v4  ;;  %v2725_v18 = vadd.f32 %v4688_v5, %v1699_v7 }
 0x1fd   : > { %3726 = vst [vmem:[%s4711_s25 + $0xe30] sm:$0xff] %v2702_v11  ;;  %v677_v11 = vld [vmem:[%s4676_s5 + $0xf08] sm:$0xff]  ;;  %v1702_v16 = vmul.f32 %v4683_v1, %v676_v8  ;;  %v2726_v21 = vadd.f32 %v4688_v5, %v1700_v10 }
 0x1fe   : > { %3727 = vst [vmem:[%s4711_s25 + $0xe38] sm:$0xff] %v2703_v14  ;;  %v678_v14 = vld [vmem:[%s4676_s5 + $0xf10] sm:$0xff]  ;;  %v1703_v19 = vmul.f32 %v4683_v1, %v677_v11  ;;  %v2727_v24 = vadd.f32 %v4688_v5, %v1701_v13 }
 0x1ff   : > { %3728 = vst [vmem:[%s4711_s25 + $0xe40] sm:$0xff] %v2704_v17  ;;  %v679_v17 = vld [vmem:[%s4676_s5 + $0xf18] sm:$0xff]  ;;  %v1704_v22 = vmul.f32 %v4683_v1, %v678_v14  ;;  %v2728_v27 = vadd.f32 %v4688_v5, %v1702_v16 }
 0x200   : > { %3729 = vst [vmem:[%s4711_s25 + $0xe48] sm:$0xff] %v2705_v20  ;;  %v680_v20 = vld [vmem:[%s4676_s5 + $0xf20] sm:$0xff]  ;;  %v1705_v25 = vmul.f32 %v4683_v1, %v679_v17  ;;  %v2729_v30 = vadd.f32 %v4688_v5, %v1703_v19 }
 0x201   : > { %3730 = vst [vmem:[%s4711_s25 + $0xe50] sm:$0xff] %v2706_v23  ;;  %v681_v23 = vld [vmem:[%s4676_s5 + $0xf28] sm:$0xff]  ;;  %v1706_v28 = vmul.f32 %v4683_v1, %v680_v20  ;;  %v2730_v33 = vadd.f32 %v4688_v5, %v1704_v22 }
 0x202   : > { %3731 = vst [vmem:[%s4711_s25 + $0xe58] sm:$0xff] %v2707_v26  ;;  %v682_v26 = vld [vmem:[%s4676_s5 + $0xf30] sm:$0xff]  ;;  %v1707_v31 = vmul.f32 %v4683_v1, %v681_v23  ;;  %v2731_v36 = vadd.f32 %v4688_v5, %v1705_v25 }
 0x203   : > { %3732 = vst [vmem:[%s4711_s25 + $0xe60] sm:$0xff] %v2708_v29  ;;  %v683_v29 = vld [vmem:[%s4676_s5 + $0xf38] sm:$0xff]  ;;  %v1708_v34 = vmul.f32 %v4683_v1, %v682_v26  ;;  %v2732_v39 = vadd.f32 %v4688_v5, %v1706_v28 }
 0x204   : > { %3733 = vst [vmem:[%s4711_s25 + $0xe68] sm:$0xff] %v2709_v32  ;;  %v684_v32 = vld [vmem:[%s4676_s5 + $0xf40] sm:$0xff]  ;;  %v1709_v37 = vmul.f32 %v4683_v1, %v683_v29  ;;  %v2733_v42 = vadd.f32 %v4688_v5, %v1707_v31 }
 0x205   : > { %3734 = vst [vmem:[%s4711_s25 + $0xe70] sm:$0xff] %v2710_v35  ;;  %v685_v35 = vld [vmem:[%s4676_s5 + $0xf48] sm:$0xff]  ;;  %v1710_v40 = vmul.f32 %v4683_v1, %v684_v32  ;;  %v2734_v45 = vadd.f32 %v4688_v5, %v1708_v34 }
 0x206   : > { %3735 = vst [vmem:[%s4711_s25 + $0xe78] sm:$0xff] %v2711_v38  ;;  %v686_v38 = vld [vmem:[%s4676_s5 + $0xf50] sm:$0xff]  ;;  %v1711_v43 = vmul.f32 %v4683_v1, %v685_v35  ;;  %v2735_v48 = vadd.f32 %v4688_v5, %v1709_v37 }
 0x207   : > { %3736 = vst [vmem:[%s4711_s25 + $0xe80] sm:$0xff] %v2712_v41  ;;  %v687_v41 = vld [vmem:[%s4676_s5 + $0xf58] sm:$0xff]  ;;  %v1712_v46 = vmul.f32 %v4683_v1, %v686_v38  ;;  %v2736_v51 = vadd.f32 %v4688_v5, %v1710_v40 }
 0x208   : > { %3737 = vst [vmem:[%s4711_s25 + $0xe88] sm:$0xff] %v2713_v44  ;;  %v688_v44 = vld [vmem:[%s4676_s5 + $0xf60] sm:$0xff]  ;;  %v1713_v49 = vmul.f32 %v4683_v1, %v687_v41  ;;  %v2737_v54 = vadd.f32 %v4688_v5, %v1711_v43 }
 0x209   : > { %3738 = vst [vmem:[%s4711_s25 + $0xe90] sm:$0xff] %v2714_v47  ;;  %v689_v47 = vld [vmem:[%s4676_s5 + $0xf68] sm:$0xff]  ;;  %v1714_v52 = vmul.f32 %v4683_v1, %v688_v44  ;;  %v2738_v57 = vadd.f32 %v4688_v5, %v1712_v46 }
 0x20a   : > { %3739 = vst [vmem:[%s4711_s25 + $0xe98] sm:$0xff] %v2715_v50  ;;  %v690_v50 = vld [vmem:[%s4676_s5 + $0xf70] sm:$0xff]  ;;  %v1715_v55 = vmul.f32 %v4683_v1, %v689_v47  ;;  %v2739_v60 = vadd.f32 %v4688_v5, %v1713_v49 }
 0x20b   : > { %3740 = vst [vmem:[%s4711_s25 + $0xea0] sm:$0xff] %v2716_v53  ;;  %v691_v53 = vld [vmem:[%s4676_s5 + $0xf78] sm:$0xff]  ;;  %v1716_v58 = vmul.f32 %v4683_v1, %v690_v50  ;;  %v2740_v63 = vadd.f32 %v4688_v5, %v1714_v52 }
 0x20c   : > { %3741 = vst [vmem:[%s4711_s25 + $0xea8] sm:$0xff] %v2717_v56  ;;  %v692_v56 = vld [vmem:[%s4676_s5 + $0xf80] sm:$0xff]  ;;  %v1717_v61 = vmul.f32 %v4683_v1, %v691_v53  ;;  %v2741_v3 = vadd.f32 %v4688_v5, %v1715_v55 }
 0x20d   : > { %3742 = vst [vmem:[%s4711_s25 + $0xeb0] sm:$0xff] %v2718_v59  ;;  %v693_v59 = vld [vmem:[%s4676_s5 + $0xf88] sm:$0xff]  ;;  %v1718_v0 = vmul.f32 %v4683_v1, %v692_v56  ;;  %v2742_v7 = vadd.f32 %v4688_v5, %v1716_v58 }
 0x20e   : > { %3743 = vst [vmem:[%s4711_s25 + $0xeb8] sm:$0xff] %v2719_v62  ;;  %v694_v62 = vld [vmem:[%s4676_s5 + $0xf90] sm:$0xff]  ;;  %v1719_v4 = vmul.f32 %v4683_v1, %v693_v59  ;;  %v2743_v10 = vadd.f32 %v4688_v5, %v1717_v61 }
 0x20f   : > { %3744 = vst [vmem:[%s4711_s25 + $0xec0] sm:$0xff] %v2720_v2  ;;  %v695_v2 = vld [vmem:[%s4676_s5 + $0xf98] sm:$0xff]  ;;  %v1720_v8 = vmul.f32 %v4683_v1, %v694_v62  ;;  %v2744_v13 = vadd.f32 %v4688_v5, %v1718_v0 }
 0x210   : > { %3745 = vst [vmem:[%s4711_s25 + $0xec8] sm:$0xff] %v2721_v6  ;;  %v696_v6 = vld [vmem:[%s4676_s5 + $0xfa0] sm:$0xff]  ;;  %v1721_v11 = vmul.f32 %v4683_v1, %v695_v2  ;;  %v2745_v16 = vadd.f32 %v4688_v5, %v1719_v4 }
 0x211   : > { %3746 = vst [vmem:[%s4711_s25 + $0xed0] sm:$0xff] %v2722_v9  ;;  %v697_v9 = vld [vmem:[%s4676_s5 + $0xfa8] sm:$0xff]  ;;  %v1722_v14 = vmul.f32 %v4683_v1, %v696_v6  ;;  %v2746_v19 = vadd.f32 %v4688_v5, %v1720_v8 }
 0x212   : > { %3747 = vst [vmem:[%s4711_s25 + $0xed8] sm:$0xff] %v2723_v12  ;;  %v698_v12 = vld [vmem:[%s4676_s5 + $0xfb0] sm:$0xff]  ;;  %v1723_v17 = vmul.f32 %v4683_v1, %v697_v9  ;;  %v2747_v22 = vadd.f32 %v4688_v5, %v1721_v11 }
 0x213   : > { %3748 = vst [vmem:[%s4711_s25 + $0xee0] sm:$0xff] %v2724_v15  ;;  %v699_v15 = vld [vmem:[%s4676_s5 + $0xfb8] sm:$0xff]  ;;  %v1724_v20 = vmul.f32 %v4683_v1, %v698_v12  ;;  %v2748_v25 = vadd.f32 %v4688_v5, %v1722_v14 }
 0x214   : > { %3749 = vst [vmem:[%s4711_s25 + $0xee8] sm:$0xff] %v2725_v18  ;;  %v700_v18 = vld [vmem:[%s4676_s5 + $0xfc0] sm:$0xff]  ;;  %v1725_v23 = vmul.f32 %v4683_v1, %v699_v15  ;;  %v2749_v28 = vadd.f32 %v4688_v5, %v1723_v17 }
 0x215   : > { %3750 = vst [vmem:[%s4711_s25 + $0xef0] sm:$0xff] %v2726_v21  ;;  %v701_v21 = vld [vmem:[%s4676_s5 + $0xfc8] sm:$0xff]  ;;  %v1726_v26 = vmul.f32 %v4683_v1, %v700_v18  ;;  %v2750_v31 = vadd.f32 %v4688_v5, %v1724_v20 }
 0x216   : > { %3751 = vst [vmem:[%s4711_s25 + $0xef8] sm:$0xff] %v2727_v24  ;;  %v702_v24 = vld [vmem:[%s4676_s5 + $0xfd0] sm:$0xff]  ;;  %v1727_v29 = vmul.f32 %v4683_v1, %v701_v21  ;;  %v2751_v34 = vadd.f32 %v4688_v5, %v1725_v23 }
 0x217   : > { %3752 = vst [vmem:[%s4711_s25 + $0xf00] sm:$0xff] %v2728_v27  ;;  %v703_v27 = vld [vmem:[%s4676_s5 + $0xfd8] sm:$0xff]  ;;  %v1728_v32 = vmul.f32 %v4683_v1, %v702_v24  ;;  %v2752_v37 = vadd.f32 %v4688_v5, %v1726_v26 }
 0x218   : > { %3753 = vst [vmem:[%s4711_s25 + $0xf08] sm:$0xff] %v2729_v30  ;;  %v704_v30 = vld [vmem:[%s4676_s5 + $0xfe0] sm:$0xff]  ;;  %v1729_v35 = vmul.f32 %v4683_v1, %v703_v27  ;;  %v2753_v40 = vadd.f32 %v4688_v5, %v1727_v29 }
 0x219   : > { %3754 = vst [vmem:[%s4711_s25 + $0xf10] sm:$0xff] %v2730_v33  ;;  %v705_v33 = vld [vmem:[%s4676_s5 + $0xfe8] sm:$0xff]  ;;  %v1730_v38 = vmul.f32 %v4683_v1, %v704_v30  ;;  %v2754_v43 = vadd.f32 %v4688_v5, %v1728_v32 }
 0x21a   : > { %3755 = vst [vmem:[%s4711_s25 + $0xf18] sm:$0xff] %v2731_v36  ;;  %v706_v36 = vld [vmem:[%s4676_s5 + $0xff0] sm:$0xff]  ;;  %v1731_v41 = vmul.f32 %v4683_v1, %v705_v33  ;;  %v2755_v46 = vadd.f32 %v4688_v5, %v1729_v35 }
 0x21b   : > { %3756 = vst [vmem:[%s4711_s25 + $0xf20] sm:$0xff] %v2732_v39  ;;  %v707_v39 = vld [vmem:[%s4676_s5 + $0xff8] sm:$0xff]  ;;  %v1732_v44 = vmul.f32 %v4683_v1, %v706_v36  ;;  %v2756_v49 = vadd.f32 %v4688_v5, %v1730_v38 }
 0x21c   : > { %3757 = vst [vmem:[%s4711_s25 + $0xf28] sm:$0xff] %v2733_v42  ;;  %v708_v42 = vld [vmem:[%s4676_s5 + $0x1000] sm:$0xff]  ;;  %v1733_v47 = vmul.f32 %v4683_v1, %v707_v39  ;;  %v2757_v52 = vadd.f32 %v4688_v5, %v1731_v41 }
 0x21d   : > { %3758 = vst [vmem:[%s4711_s25 + $0xf30] sm:$0xff] %v2734_v45  ;;  %v709_v45 = vld [vmem:[%s4676_s5 + $0x1008] sm:$0xff]  ;;  %v1734_v50 = vmul.f32 %v4683_v1, %v708_v42  ;;  %v2758_v55 = vadd.f32 %v4688_v5, %v1732_v44 }
 0x21e   : > { %3759 = vst [vmem:[%s4711_s25 + $0xf38] sm:$0xff] %v2735_v48  ;;  %v710_v48 = vld [vmem:[%s4676_s5 + $0x1010] sm:$0xff]  ;;  %v1735_v53 = vmul.f32 %v4683_v1, %v709_v45  ;;  %v2759_v58 = vadd.f32 %v4688_v5, %v1733_v47 }
 0x21f   : > { %3760 = vst [vmem:[%s4711_s25 + $0xf40] sm:$0xff] %v2736_v51  ;;  %v711_v51 = vld [vmem:[%s4676_s5 + $0x1018] sm:$0xff]  ;;  %v1736_v56 = vmul.f32 %v4683_v1, %v710_v48  ;;  %v2760_v61 = vadd.f32 %v4688_v5, %v1734_v50 }
 0x220   : > { %3761 = vst [vmem:[%s4711_s25 + $0xf48] sm:$0xff] %v2737_v54  ;;  %v712_v54 = vld [vmem:[%s4676_s5 + $0x1020] sm:$0xff]  ;;  %v1737_v59 = vmul.f32 %v4683_v1, %v711_v51  ;;  %v2761_v0 = vadd.f32 %v4688_v5, %v1735_v53 }
 0x221   : > { %3762 = vst [vmem:[%s4711_s25 + $0xf50] sm:$0xff] %v2738_v57  ;;  %v713_v57 = vld [vmem:[%s4676_s5 + $0x1028] sm:$0xff]  ;;  %v1738_v62 = vmul.f32 %v4683_v1, %v712_v54  ;;  %v2762_v4 = vadd.f32 %v4688_v5, %v1736_v56 }
 0x222   : > { %3763 = vst [vmem:[%s4711_s25 + $0xf58] sm:$0xff] %v2739_v60  ;;  %v714_v60 = vld [vmem:[%s4676_s5 + $0x1030] sm:$0xff]  ;;  %v1739_v2 = vmul.f32 %v4683_v1, %v713_v57  ;;  %v2763_v8 = vadd.f32 %v4688_v5, %v1737_v59 }
 0x223   : > { %3764 = vst [vmem:[%s4711_s25 + $0xf60] sm:$0xff] %v2740_v63  ;;  %v715_v63 = vld [vmem:[%s4676_s5 + $0x1038] sm:$0xff]  ;;  %v1740_v6 = vmul.f32 %v4683_v1, %v714_v60  ;;  %v2764_v11 = vadd.f32 %v4688_v5, %v1738_v62 }
 0x224   : > { %3765 = vst [vmem:[%s4711_s25 + $0xf68] sm:$0xff] %v2741_v3  ;;  %v716_v3 = vld [vmem:[%s4676_s5 + $0x1040] sm:$0xff]  ;;  %v1741_v9 = vmul.f32 %v4683_v1, %v715_v63  ;;  %v2765_v14 = vadd.f32 %v4688_v5, %v1739_v2 }
 0x225   : > { %3766 = vst [vmem:[%s4711_s25 + $0xf70] sm:$0xff] %v2742_v7  ;;  %v717_v7 = vld [vmem:[%s4676_s5 + $0x1048] sm:$0xff]  ;;  %v1742_v12 = vmul.f32 %v4683_v1, %v716_v3  ;;  %v2766_v17 = vadd.f32 %v4688_v5, %v1740_v6 }
 0x226   : > { %3767 = vst [vmem:[%s4711_s25 + $0xf78] sm:$0xff] %v2743_v10  ;;  %v718_v10 = vld [vmem:[%s4676_s5 + $0x1050] sm:$0xff]  ;;  %v1743_v15 = vmul.f32 %v4683_v1, %v717_v7  ;;  %v2767_v20 = vadd.f32 %v4688_v5, %v1741_v9 }
 0x227   : > { %3768 = vst [vmem:[%s4711_s25 + $0xf80] sm:$0xff] %v2744_v13  ;;  %v719_v13 = vld [vmem:[%s4676_s5 + $0x1058] sm:$0xff]  ;;  %v1744_v18 = vmul.f32 %v4683_v1, %v718_v10  ;;  %v2768_v23 = vadd.f32 %v4688_v5, %v1742_v12 }
 0x228   : > { %3769 = vst [vmem:[%s4711_s25 + $0xf88] sm:$0xff] %v2745_v16  ;;  %v720_v16 = vld [vmem:[%s4676_s5 + $0x1060] sm:$0xff]  ;;  %v1745_v21 = vmul.f32 %v4683_v1, %v719_v13  ;;  %v2769_v26 = vadd.f32 %v4688_v5, %v1743_v15 }
 0x229   : > { %3770 = vst [vmem:[%s4711_s25 + $0xf90] sm:$0xff] %v2746_v19  ;;  %v721_v19 = vld [vmem:[%s4676_s5 + $0x1068] sm:$0xff]  ;;  %v1746_v24 = vmul.f32 %v4683_v1, %v720_v16  ;;  %v2770_v29 = vadd.f32 %v4688_v5, %v1744_v18 }
 0x22a   : > { %3771 = vst [vmem:[%s4711_s25 + $0xf98] sm:$0xff] %v2747_v22  ;;  %v722_v22 = vld [vmem:[%s4676_s5 + $0x1070] sm:$0xff]  ;;  %v1747_v27 = vmul.f32 %v4683_v1, %v721_v19  ;;  %v2771_v32 = vadd.f32 %v4688_v5, %v1745_v21 }
 0x22b   : > { %3772 = vst [vmem:[%s4711_s25 + $0xfa0] sm:$0xff] %v2748_v25  ;;  %v723_v25 = vld [vmem:[%s4676_s5 + $0x1078] sm:$0xff]  ;;  %v1748_v30 = vmul.f32 %v4683_v1, %v722_v22  ;;  %v2772_v35 = vadd.f32 %v4688_v5, %v1746_v24 }
 0x22c   : > { %3773 = vst [vmem:[%s4711_s25 + $0xfa8] sm:$0xff] %v2749_v28  ;;  %v724_v28 = vld [vmem:[%s4676_s5 + $0x1080] sm:$0xff]  ;;  %v1749_v33 = vmul.f32 %v4683_v1, %v723_v25  ;;  %v2773_v38 = vadd.f32 %v4688_v5, %v1747_v27 }
 0x22d   : > { %3774 = vst [vmem:[%s4711_s25 + $0xfb0] sm:$0xff] %v2750_v31  ;;  %v725_v31 = vld [vmem:[%s4676_s5 + $0x1088] sm:$0xff]  ;;  %v1750_v36 = vmul.f32 %v4683_v1, %v724_v28  ;;  %v2774_v41 = vadd.f32 %v4688_v5, %v1748_v30 }
 0x22e   : > { %3775 = vst [vmem:[%s4711_s25 + $0xfb8] sm:$0xff] %v2751_v34  ;;  %v726_v34 = vld [vmem:[%s4676_s5 + $0x1090] sm:$0xff]  ;;  %v1751_v39 = vmul.f32 %v4683_v1, %v725_v31  ;;  %v2775_v44 = vadd.f32 %v4688_v5, %v1749_v33 }
 0x22f   : > { %3776 = vst [vmem:[%s4711_s25 + $0xfc0] sm:$0xff] %v2752_v37  ;;  %v727_v37 = vld [vmem:[%s4676_s5 + $0x1098] sm:$0xff]  ;;  %v1752_v42 = vmul.f32 %v4683_v1, %v726_v34  ;;  %v2776_v47 = vadd.f32 %v4688_v5, %v1750_v36 }
 0x230   : > { %3777 = vst [vmem:[%s4711_s25 + $0xfc8] sm:$0xff] %v2753_v40  ;;  %v728_v40 = vld [vmem:[%s4676_s5 + $0x10a0] sm:$0xff]  ;;  %v1753_v45 = vmul.f32 %v4683_v1, %v727_v37  ;;  %v2777_v50 = vadd.f32 %v4688_v5, %v1751_v39 }
 0x231   : > { %3778 = vst [vmem:[%s4711_s25 + $0xfd0] sm:$0xff] %v2754_v43  ;;  %v729_v43 = vld [vmem:[%s4676_s5 + $0x10a8] sm:$0xff]  ;;  %v1754_v48 = vmul.f32 %v4683_v1, %v728_v40  ;;  %v2778_v53 = vadd.f32 %v4688_v5, %v1752_v42 }
 0x232   : > { %3779 = vst [vmem:[%s4711_s25 + $0xfd8] sm:$0xff] %v2755_v46  ;;  %v730_v46 = vld [vmem:[%s4676_s5 + $0x10b0] sm:$0xff]  ;;  %v1755_v51 = vmul.f32 %v4683_v1, %v729_v43  ;;  %v2779_v56 = vadd.f32 %v4688_v5, %v1753_v45 }
 0x233   : > { %3780 = vst [vmem:[%s4711_s25 + $0xfe0] sm:$0xff] %v2756_v49  ;;  %v731_v49 = vld [vmem:[%s4676_s5 + $0x10b8] sm:$0xff]  ;;  %v1756_v54 = vmul.f32 %v4683_v1, %v730_v46  ;;  %v2780_v59 = vadd.f32 %v4688_v5, %v1754_v48 }
 0x234   : > { %3781 = vst [vmem:[%s4711_s25 + $0xfe8] sm:$0xff] %v2757_v52  ;;  %v732_v52 = vld [vmem:[%s4676_s5 + $0x10c0] sm:$0xff]  ;;  %v1757_v57 = vmul.f32 %v4683_v1, %v731_v49  ;;  %v2781_v62 = vadd.f32 %v4688_v5, %v1755_v51 }
 0x235   : > { %3782 = vst [vmem:[%s4711_s25 + $0xff0] sm:$0xff] %v2758_v55  ;;  %v733_v55 = vld [vmem:[%s4676_s5 + $0x10c8] sm:$0xff]  ;;  %v1758_v60 = vmul.f32 %v4683_v1, %v732_v52  ;;  %v2782_v2 = vadd.f32 %v4688_v5, %v1756_v54 }
 0x236   : > { %3783 = vst [vmem:[%s4711_s25 + $0xff8] sm:$0xff] %v2759_v58  ;;  %v734_v58 = vld [vmem:[%s4676_s5 + $0x10d0] sm:$0xff]  ;;  %v1759_v63 = vmul.f32 %v4683_v1, %v733_v55  ;;  %v2783_v6 = vadd.f32 %v4688_v5, %v1757_v57 }
 0x237   : > { %3784 = vst [vmem:[%s4711_s25 + $0x1000] sm:$0xff] %v2760_v61  ;;  %v735_v61 = vld [vmem:[%s4676_s5 + $0x10d8] sm:$0xff]  ;;  %v1760_v3 = vmul.f32 %v4683_v1, %v734_v58  ;;  %v2784_v9 = vadd.f32 %v4688_v5, %v1758_v60 }
 0x238   : > { %3785 = vst [vmem:[%s4711_s25 + $0x1008] sm:$0xff] %v2761_v0  ;;  %v736_v0 = vld [vmem:[%s4676_s5 + $0x10e0] sm:$0xff]  ;;  %v1761_v7 = vmul.f32 %v4683_v1, %v735_v61  ;;  %v2785_v12 = vadd.f32 %v4688_v5, %v1759_v63 }
 0x239   : > { %3786 = vst [vmem:[%s4711_s25 + $0x1010] sm:$0xff] %v2762_v4  ;;  %v737_v4 = vld [vmem:[%s4676_s5 + $0x10e8] sm:$0xff]  ;;  %v1762_v10 = vmul.f32 %v4683_v1, %v736_v0  ;;  %v2786_v15 = vadd.f32 %v4688_v5, %v1760_v3 }
 0x23a   : > { %3787 = vst [vmem:[%s4711_s25 + $0x1018] sm:$0xff] %v2763_v8  ;;  %v738_v8 = vld [vmem:[%s4676_s5 + $0x10f0] sm:$0xff]  ;;  %v1763_v13 = vmul.f32 %v4683_v1, %v737_v4  ;;  %v2787_v18 = vadd.f32 %v4688_v5, %v1761_v7 }
 0x23b   : > { %3788 = vst [vmem:[%s4711_s25 + $0x1020] sm:$0xff] %v2764_v11  ;;  %v739_v11 = vld [vmem:[%s4676_s5 + $0x10f8] sm:$0xff]  ;;  %v1764_v16 = vmul.f32 %v4683_v1, %v738_v8  ;;  %v2788_v21 = vadd.f32 %v4688_v5, %v1762_v10 }
 0x23c   : > { %3789 = vst [vmem:[%s4711_s25 + $0x1028] sm:$0xff] %v2765_v14  ;;  %v740_v14 = vld [vmem:[%s4676_s5 + $0x1100] sm:$0xff]  ;;  %v1765_v19 = vmul.f32 %v4683_v1, %v739_v11  ;;  %v2789_v24 = vadd.f32 %v4688_v5, %v1763_v13 }
 0x23d   : > { %3790 = vst [vmem:[%s4711_s25 + $0x1030] sm:$0xff] %v2766_v17  ;;  %v741_v17 = vld [vmem:[%s4676_s5 + $0x1108] sm:$0xff]  ;;  %v1766_v22 = vmul.f32 %v4683_v1, %v740_v14  ;;  %v2790_v27 = vadd.f32 %v4688_v5, %v1764_v16 }
 0x23e   : > { %3791 = vst [vmem:[%s4711_s25 + $0x1038] sm:$0xff] %v2767_v20  ;;  %v742_v20 = vld [vmem:[%s4676_s5 + $0x1110] sm:$0xff]  ;;  %v1767_v25 = vmul.f32 %v4683_v1, %v741_v17  ;;  %v2791_v30 = vadd.f32 %v4688_v5, %v1765_v19 }
 0x23f   : > { %3792 = vst [vmem:[%s4711_s25 + $0x1040] sm:$0xff] %v2768_v23  ;;  %v743_v23 = vld [vmem:[%s4676_s5 + $0x1118] sm:$0xff]  ;;  %v1768_v28 = vmul.f32 %v4683_v1, %v742_v20  ;;  %v2792_v33 = vadd.f32 %v4688_v5, %v1766_v22 }
 0x240   : > { %3793 = vst [vmem:[%s4711_s25 + $0x1048] sm:$0xff] %v2769_v26  ;;  %v744_v26 = vld [vmem:[%s4676_s5 + $0x1120] sm:$0xff]  ;;  %v1769_v31 = vmul.f32 %v4683_v1, %v743_v23  ;;  %v2793_v36 = vadd.f32 %v4688_v5, %v1767_v25 }
 0x241   : > { %3794 = vst [vmem:[%s4711_s25 + $0x1050] sm:$0xff] %v2770_v29  ;;  %v745_v29 = vld [vmem:[%s4676_s5 + $0x1128] sm:$0xff]  ;;  %v1770_v34 = vmul.f32 %v4683_v1, %v744_v26  ;;  %v2794_v39 = vadd.f32 %v4688_v5, %v1768_v28 }
 0x242   : > { %3795 = vst [vmem:[%s4711_s25 + $0x1058] sm:$0xff] %v2771_v32  ;;  %v746_v32 = vld [vmem:[%s4676_s5 + $0x1130] sm:$0xff]  ;;  %v1771_v37 = vmul.f32 %v4683_v1, %v745_v29  ;;  %v2795_v42 = vadd.f32 %v4688_v5, %v1769_v31 }
 0x243   : > { %3796 = vst [vmem:[%s4711_s25 + $0x1060] sm:$0xff] %v2772_v35  ;;  %v747_v35 = vld [vmem:[%s4676_s5 + $0x1138] sm:$0xff]  ;;  %v1772_v40 = vmul.f32 %v4683_v1, %v746_v32  ;;  %v2796_v45 = vadd.f32 %v4688_v5, %v1770_v34 }
 0x244   : > { %3797 = vst [vmem:[%s4711_s25 + $0x1068] sm:$0xff] %v2773_v38  ;;  %v748_v38 = vld [vmem:[%s4676_s5 + $0x1140] sm:$0xff]  ;;  %v1773_v43 = vmul.f32 %v4683_v1, %v747_v35  ;;  %v2797_v48 = vadd.f32 %v4688_v5, %v1771_v37 }
 0x245   : > { %3798 = vst [vmem:[%s4711_s25 + $0x1070] sm:$0xff] %v2774_v41  ;;  %v749_v41 = vld [vmem:[%s4676_s5 + $0x1148] sm:$0xff]  ;;  %v1774_v46 = vmul.f32 %v4683_v1, %v748_v38  ;;  %v2798_v51 = vadd.f32 %v4688_v5, %v1772_v40 }
 0x246   : > { %3799 = vst [vmem:[%s4711_s25 + $0x1078] sm:$0xff] %v2775_v44  ;;  %v750_v44 = vld [vmem:[%s4676_s5 + $0x1150] sm:$0xff]  ;;  %v1775_v49 = vmul.f32 %v4683_v1, %v749_v41  ;;  %v2799_v54 = vadd.f32 %v4688_v5, %v1773_v43 }
 0x247   : > { %3800 = vst [vmem:[%s4711_s25 + $0x1080] sm:$0xff] %v2776_v47  ;;  %v751_v47 = vld [vmem:[%s4676_s5 + $0x1158] sm:$0xff]  ;;  %v1776_v52 = vmul.f32 %v4683_v1, %v750_v44  ;;  %v2800_v57 = vadd.f32 %v4688_v5, %v1774_v46 }
 0x248   : > { %3801 = vst [vmem:[%s4711_s25 + $0x1088] sm:$0xff] %v2777_v50  ;;  %v752_v50 = vld [vmem:[%s4676_s5 + $0x1160] sm:$0xff]  ;;  %v1777_v55 = vmul.f32 %v4683_v1, %v751_v47  ;;  %v2801_v60 = vadd.f32 %v4688_v5, %v1775_v49 }
 0x249   : > { %3802 = vst [vmem:[%s4711_s25 + $0x1090] sm:$0xff] %v2778_v53  ;;  %v753_v53 = vld [vmem:[%s4676_s5 + $0x1168] sm:$0xff]  ;;  %v1778_v58 = vmul.f32 %v4683_v1, %v752_v50  ;;  %v2802_v63 = vadd.f32 %v4688_v5, %v1776_v52 }
 0x24a   : > { %3803 = vst [vmem:[%s4711_s25 + $0x1098] sm:$0xff] %v2779_v56  ;;  %v754_v56 = vld [vmem:[%s4676_s5 + $0x1170] sm:$0xff]  ;;  %v1779_v61 = vmul.f32 %v4683_v1, %v753_v53  ;;  %v2803_v3 = vadd.f32 %v4688_v5, %v1777_v55 }
 0x24b   : > { %3804 = vst [vmem:[%s4711_s25 + $0x10a0] sm:$0xff] %v2780_v59  ;;  %v755_v59 = vld [vmem:[%s4676_s5 + $0x1178] sm:$0xff]  ;;  %v1780_v0 = vmul.f32 %v4683_v1, %v754_v56  ;;  %v2804_v7 = vadd.f32 %v4688_v5, %v1778_v58 }
 0x24c   : > { %3805 = vst [vmem:[%s4711_s25 + $0x10a8] sm:$0xff] %v2781_v62  ;;  %v756_v62 = vld [vmem:[%s4676_s5 + $0x1180] sm:$0xff]  ;;  %v1781_v4 = vmul.f32 %v4683_v1, %v755_v59  ;;  %v2805_v10 = vadd.f32 %v4688_v5, %v1779_v61 }
 0x24d   : > { %3806 = vst [vmem:[%s4711_s25 + $0x10b0] sm:$0xff] %v2782_v2  ;;  %v757_v2 = vld [vmem:[%s4676_s5 + $0x1188] sm:$0xff]  ;;  %v1782_v8 = vmul.f32 %v4683_v1, %v756_v62  ;;  %v2806_v13 = vadd.f32 %v4688_v5, %v1780_v0 }
 0x24e   : > { %3807 = vst [vmem:[%s4711_s25 + $0x10b8] sm:$0xff] %v2783_v6  ;;  %v758_v6 = vld [vmem:[%s4676_s5 + $0x1190] sm:$0xff]  ;;  %v1783_v11 = vmul.f32 %v4683_v1, %v757_v2  ;;  %v2807_v16 = vadd.f32 %v4688_v5, %v1781_v4 }
 0x24f   : > { %3808 = vst [vmem:[%s4711_s25 + $0x10c0] sm:$0xff] %v2784_v9  ;;  %v759_v9 = vld [vmem:[%s4676_s5 + $0x1198] sm:$0xff]  ;;  %v1784_v14 = vmul.f32 %v4683_v1, %v758_v6  ;;  %v2808_v19 = vadd.f32 %v4688_v5, %v1782_v8 }
 0x250   : > { %3809 = vst [vmem:[%s4711_s25 + $0x10c8] sm:$0xff] %v2785_v12  ;;  %v760_v12 = vld [vmem:[%s4676_s5 + $0x11a0] sm:$0xff]  ;;  %v1785_v17 = vmul.f32 %v4683_v1, %v759_v9  ;;  %v2809_v22 = vadd.f32 %v4688_v5, %v1783_v11 }
 0x251   : > { %3810 = vst [vmem:[%s4711_s25 + $0x10d0] sm:$0xff] %v2786_v15  ;;  %v761_v15 = vld [vmem:[%s4676_s5 + $0x11a8] sm:$0xff]  ;;  %v1786_v20 = vmul.f32 %v4683_v1, %v760_v12  ;;  %v2810_v25 = vadd.f32 %v4688_v5, %v1784_v14 }
 0x252   : > { %3811 = vst [vmem:[%s4711_s25 + $0x10d8] sm:$0xff] %v2787_v18  ;;  %v762_v18 = vld [vmem:[%s4676_s5 + $0x11b0] sm:$0xff]  ;;  %v1787_v23 = vmul.f32 %v4683_v1, %v761_v15  ;;  %v2811_v28 = vadd.f32 %v4688_v5, %v1785_v17 }
 0x253   : > { %3812 = vst [vmem:[%s4711_s25 + $0x10e0] sm:$0xff] %v2788_v21  ;;  %v763_v21 = vld [vmem:[%s4676_s5 + $0x11b8] sm:$0xff]  ;;  %v1788_v26 = vmul.f32 %v4683_v1, %v762_v18  ;;  %v2812_v31 = vadd.f32 %v4688_v5, %v1786_v20 }
 0x254   : > { %3813 = vst [vmem:[%s4711_s25 + $0x10e8] sm:$0xff] %v2789_v24  ;;  %v764_v24 = vld [vmem:[%s4676_s5 + $0x11c0] sm:$0xff]  ;;  %v1789_v29 = vmul.f32 %v4683_v1, %v763_v21  ;;  %v2813_v34 = vadd.f32 %v4688_v5, %v1787_v23 }
 0x255   : > { %3814 = vst [vmem:[%s4711_s25 + $0x10f0] sm:$0xff] %v2790_v27  ;;  %v765_v27 = vld [vmem:[%s4676_s5 + $0x11c8] sm:$0xff]  ;;  %v1790_v32 = vmul.f32 %v4683_v1, %v764_v24  ;;  %v2814_v37 = vadd.f32 %v4688_v5, %v1788_v26 }
 0x256   : > { %3815 = vst [vmem:[%s4711_s25 + $0x10f8] sm:$0xff] %v2791_v30  ;;  %v766_v30 = vld [vmem:[%s4676_s5 + $0x11d0] sm:$0xff]  ;;  %v1791_v35 = vmul.f32 %v4683_v1, %v765_v27  ;;  %v2815_v40 = vadd.f32 %v4688_v5, %v1789_v29 }
 0x257   : > { %3816 = vst [vmem:[%s4711_s25 + $0x1100] sm:$0xff] %v2792_v33  ;;  %v767_v33 = vld [vmem:[%s4676_s5 + $0x11d8] sm:$0xff]  ;;  %v1792_v38 = vmul.f32 %v4683_v1, %v766_v30  ;;  %v2816_v43 = vadd.f32 %v4688_v5, %v1790_v32 }
 0x258   : > { %3817 = vst [vmem:[%s4711_s25 + $0x1108] sm:$0xff] %v2793_v36  ;;  %v768_v36 = vld [vmem:[%s4676_s5 + $0x11e0] sm:$0xff]  ;;  %v1793_v41 = vmul.f32 %v4683_v1, %v767_v33  ;;  %v2817_v46 = vadd.f32 %v4688_v5, %v1791_v35 }
 0x259   : > { %3818 = vst [vmem:[%s4711_s25 + $0x1110] sm:$0xff] %v2794_v39  ;;  %v769_v39 = vld [vmem:[%s4676_s5 + $0x11e8] sm:$0xff]  ;;  %v1794_v44 = vmul.f32 %v4683_v1, %v768_v36  ;;  %v2818_v49 = vadd.f32 %v4688_v5, %v1792_v38 }
 0x25a   : > { %3819 = vst [vmem:[%s4711_s25 + $0x1118] sm:$0xff] %v2795_v42  ;;  %v770_v42 = vld [vmem:[%s4676_s5 + $0x11f0] sm:$0xff]  ;;  %v1795_v47 = vmul.f32 %v4683_v1, %v769_v39  ;;  %v2819_v52 = vadd.f32 %v4688_v5, %v1793_v41 }
 0x25b   : > { %3820 = vst [vmem:[%s4711_s25 + $0x1120] sm:$0xff] %v2796_v45  ;;  %v771_v45 = vld [vmem:[%s4676_s5 + $0x11f8] sm:$0xff]  ;;  %v1796_v50 = vmul.f32 %v4683_v1, %v770_v42  ;;  %v2820_v55 = vadd.f32 %v4688_v5, %v1794_v44 }
 0x25c   : > { %3821 = vst [vmem:[%s4711_s25 + $0x1128] sm:$0xff] %v2797_v48  ;;  %v772_v48 = vld [vmem:[%s4676_s5 + $0x1200] sm:$0xff]  ;;  %v1797_v53 = vmul.f32 %v4683_v1, %v771_v45  ;;  %v2821_v58 = vadd.f32 %v4688_v5, %v1795_v47 }
 0x25d   : > { %3822 = vst [vmem:[%s4711_s25 + $0x1130] sm:$0xff] %v2798_v51  ;;  %v773_v51 = vld [vmem:[%s4676_s5 + $0x1208] sm:$0xff]  ;;  %v1798_v56 = vmul.f32 %v4683_v1, %v772_v48  ;;  %v2822_v61 = vadd.f32 %v4688_v5, %v1796_v50 }
 0x25e   : > { %3823 = vst [vmem:[%s4711_s25 + $0x1138] sm:$0xff] %v2799_v54  ;;  %v774_v54 = vld [vmem:[%s4676_s5 + $0x1210] sm:$0xff]  ;;  %v1799_v59 = vmul.f32 %v4683_v1, %v773_v51  ;;  %v2823_v0 = vadd.f32 %v4688_v5, %v1797_v53 }
 0x25f   : > { %3824 = vst [vmem:[%s4711_s25 + $0x1140] sm:$0xff] %v2800_v57  ;;  %v775_v57 = vld [vmem:[%s4676_s5 + $0x1218] sm:$0xff]  ;;  %v1800_v62 = vmul.f32 %v4683_v1, %v774_v54  ;;  %v2824_v4 = vadd.f32 %v4688_v5, %v1798_v56 }
 0x260   : > { %3825 = vst [vmem:[%s4711_s25 + $0x1148] sm:$0xff] %v2801_v60  ;;  %v776_v60 = vld [vmem:[%s4676_s5 + $0x1220] sm:$0xff]  ;;  %v1801_v2 = vmul.f32 %v4683_v1, %v775_v57  ;;  %v2825_v8 = vadd.f32 %v4688_v5, %v1799_v59 }
 0x261   : > { %3826 = vst [vmem:[%s4711_s25 + $0x1150] sm:$0xff] %v2802_v63  ;;  %v777_v63 = vld [vmem:[%s4676_s5 + $0x1228] sm:$0xff]  ;;  %v1802_v6 = vmul.f32 %v4683_v1, %v776_v60  ;;  %v2826_v11 = vadd.f32 %v4688_v5, %v1800_v62 }
 0x262   : > { %3827 = vst [vmem:[%s4711_s25 + $0x1158] sm:$0xff] %v2803_v3  ;;  %v778_v3 = vld [vmem:[%s4676_s5 + $0x1230] sm:$0xff]  ;;  %v1803_v9 = vmul.f32 %v4683_v1, %v777_v63  ;;  %v2827_v14 = vadd.f32 %v4688_v5, %v1801_v2 }
 0x263   : > { %3828 = vst [vmem:[%s4711_s25 + $0x1160] sm:$0xff] %v2804_v7  ;;  %v779_v7 = vld [vmem:[%s4676_s5 + $0x1238] sm:$0xff]  ;;  %v1804_v12 = vmul.f32 %v4683_v1, %v778_v3  ;;  %v2828_v17 = vadd.f32 %v4688_v5, %v1802_v6 }
 0x264   : > { %3829 = vst [vmem:[%s4711_s25 + $0x1168] sm:$0xff] %v2805_v10  ;;  %v780_v10 = vld [vmem:[%s4676_s5 + $0x1240] sm:$0xff]  ;;  %v1805_v15 = vmul.f32 %v4683_v1, %v779_v7  ;;  %v2829_v20 = vadd.f32 %v4688_v5, %v1803_v9 }
 0x265   : > { %3830 = vst [vmem:[%s4711_s25 + $0x1170] sm:$0xff] %v2806_v13  ;;  %v781_v13 = vld [vmem:[%s4676_s5 + $0x1248] sm:$0xff]  ;;  %v1806_v18 = vmul.f32 %v4683_v1, %v780_v10  ;;  %v2830_v23 = vadd.f32 %v4688_v5, %v1804_v12 }
 0x266   : > { %3831 = vst [vmem:[%s4711_s25 + $0x1178] sm:$0xff] %v2807_v16  ;;  %v782_v16 = vld [vmem:[%s4676_s5 + $0x1250] sm:$0xff]  ;;  %v1807_v21 = vmul.f32 %v4683_v1, %v781_v13  ;;  %v2831_v26 = vadd.f32 %v4688_v5, %v1805_v15 }
 0x267   : > { %3832 = vst [vmem:[%s4711_s25 + $0x1180] sm:$0xff] %v2808_v19  ;;  %v783_v19 = vld [vmem:[%s4676_s5 + $0x1258] sm:$0xff]  ;;  %v1808_v24 = vmul.f32 %v4683_v1, %v782_v16  ;;  %v2832_v29 = vadd.f32 %v4688_v5, %v1806_v18 }
 0x268   : > { %3833 = vst [vmem:[%s4711_s25 + $0x1188] sm:$0xff] %v2809_v22  ;;  %v784_v22 = vld [vmem:[%s4676_s5 + $0x1260] sm:$0xff]  ;;  %v1809_v27 = vmul.f32 %v4683_v1, %v783_v19  ;;  %v2833_v32 = vadd.f32 %v4688_v5, %v1807_v21 }
 0x269   : > { %3834 = vst [vmem:[%s4711_s25 + $0x1190] sm:$0xff] %v2810_v25  ;;  %v785_v25 = vld [vmem:[%s4676_s5 + $0x1268] sm:$0xff]  ;;  %v1810_v30 = vmul.f32 %v4683_v1, %v784_v22  ;;  %v2834_v35 = vadd.f32 %v4688_v5, %v1808_v24 }
 0x26a   : > { %3835 = vst [vmem:[%s4711_s25 + $0x1198] sm:$0xff] %v2811_v28  ;;  %v786_v28 = vld [vmem:[%s4676_s5 + $0x1270] sm:$0xff]  ;;  %v1811_v33 = vmul.f32 %v4683_v1, %v785_v25  ;;  %v2835_v38 = vadd.f32 %v4688_v5, %v1809_v27 }
 0x26b   : > { %3836 = vst [vmem:[%s4711_s25 + $0x11a0] sm:$0xff] %v2812_v31  ;;  %v787_v31 = vld [vmem:[%s4676_s5 + $0x1278] sm:$0xff]  ;;  %v1812_v36 = vmul.f32 %v4683_v1, %v786_v28  ;;  %v2836_v41 = vadd.f32 %v4688_v5, %v1810_v30 }
 0x26c   : > { %3837 = vst [vmem:[%s4711_s25 + $0x11a8] sm:$0xff] %v2813_v34  ;;  %v788_v34 = vld [vmem:[%s4676_s5 + $0x1280] sm:$0xff]  ;;  %v1813_v39 = vmul.f32 %v4683_v1, %v787_v31  ;;  %v2837_v44 = vadd.f32 %v4688_v5, %v1811_v33 }
 0x26d   : > { %3838 = vst [vmem:[%s4711_s25 + $0x11b0] sm:$0xff] %v2814_v37  ;;  %v789_v37 = vld [vmem:[%s4676_s5 + $0x1288] sm:$0xff]  ;;  %v1814_v42 = vmul.f32 %v4683_v1, %v788_v34  ;;  %v2838_v47 = vadd.f32 %v4688_v5, %v1812_v36 }
 0x26e   : > { %3839 = vst [vmem:[%s4711_s25 + $0x11b8] sm:$0xff] %v2815_v40  ;;  %v790_v40 = vld [vmem:[%s4676_s5 + $0x1290] sm:$0xff]  ;;  %v1815_v45 = vmul.f32 %v4683_v1, %v789_v37  ;;  %v2839_v50 = vadd.f32 %v4688_v5, %v1813_v39 }
 0x26f   : > { %3840 = vst [vmem:[%s4711_s25 + $0x11c0] sm:$0xff] %v2816_v43  ;;  %v791_v43 = vld [vmem:[%s4676_s5 + $0x1298] sm:$0xff]  ;;  %v1816_v48 = vmul.f32 %v4683_v1, %v790_v40  ;;  %v2840_v53 = vadd.f32 %v4688_v5, %v1814_v42 }
 0x270   : > { %3841 = vst [vmem:[%s4711_s25 + $0x11c8] sm:$0xff] %v2817_v46  ;;  %v792_v46 = vld [vmem:[%s4676_s5 + $0x12a0] sm:$0xff]  ;;  %v1817_v51 = vmul.f32 %v4683_v1, %v791_v43  ;;  %v2841_v56 = vadd.f32 %v4688_v5, %v1815_v45 }
 0x271   : > { %3842 = vst [vmem:[%s4711_s25 + $0x11d0] sm:$0xff] %v2818_v49  ;;  %v793_v49 = vld [vmem:[%s4676_s5 + $0x12a8] sm:$0xff]  ;;  %v1818_v54 = vmul.f32 %v4683_v1, %v792_v46  ;;  %v2842_v59 = vadd.f32 %v4688_v5, %v1816_v48 }
 0x272   : > { %3843 = vst [vmem:[%s4711_s25 + $0x11d8] sm:$0xff] %v2819_v52  ;;  %v794_v52 = vld [vmem:[%s4676_s5 + $0x12b0] sm:$0xff]  ;;  %v1819_v57 = vmul.f32 %v4683_v1, %v793_v49  ;;  %v2843_v62 = vadd.f32 %v4688_v5, %v1817_v51 }
 0x273   : > { %3844 = vst [vmem:[%s4711_s25 + $0x11e0] sm:$0xff] %v2820_v55  ;;  %v795_v55 = vld [vmem:[%s4676_s5 + $0x12b8] sm:$0xff]  ;;  %v1820_v60 = vmul.f32 %v4683_v1, %v794_v52  ;;  %v2844_v2 = vadd.f32 %v4688_v5, %v1818_v54 }
 0x274   : > { %3845 = vst [vmem:[%s4711_s25 + $0x11e8] sm:$0xff] %v2821_v58  ;;  %v796_v58 = vld [vmem:[%s4676_s5 + $0x12c0] sm:$0xff]  ;;  %v1821_v63 = vmul.f32 %v4683_v1, %v795_v55  ;;  %v2845_v6 = vadd.f32 %v4688_v5, %v1819_v57 }
 0x275   : > { %3846 = vst [vmem:[%s4711_s25 + $0x11f0] sm:$0xff] %v2822_v61  ;;  %v797_v61 = vld [vmem:[%s4676_s5 + $0x12c8] sm:$0xff]  ;;  %v1822_v3 = vmul.f32 %v4683_v1, %v796_v58  ;;  %v2846_v9 = vadd.f32 %v4688_v5, %v1820_v60 }
 0x276   : > { %3847 = vst [vmem:[%s4711_s25 + $0x11f8] sm:$0xff] %v2823_v0  ;;  %v798_v0 = vld [vmem:[%s4676_s5 + $0x12d0] sm:$0xff]  ;;  %v1823_v7 = vmul.f32 %v4683_v1, %v797_v61  ;;  %v2847_v12 = vadd.f32 %v4688_v5, %v1821_v63 }
 0x277   : > { %3848 = vst [vmem:[%s4711_s25 + $0x1200] sm:$0xff] %v2824_v4  ;;  %v799_v4 = vld [vmem:[%s4676_s5 + $0x12d8] sm:$0xff]  ;;  %v1824_v10 = vmul.f32 %v4683_v1, %v798_v0  ;;  %v2848_v15 = vadd.f32 %v4688_v5, %v1822_v3 }
 0x278   : > { %3849 = vst [vmem:[%s4711_s25 + $0x1208] sm:$0xff] %v2825_v8  ;;  %v800_v8 = vld [vmem:[%s4676_s5 + $0x12e0] sm:$0xff]  ;;  %v1825_v13 = vmul.f32 %v4683_v1, %v799_v4  ;;  %v2849_v18 = vadd.f32 %v4688_v5, %v1823_v7 }
 0x279   : > { %3850 = vst [vmem:[%s4711_s25 + $0x1210] sm:$0xff] %v2826_v11  ;;  %v801_v11 = vld [vmem:[%s4676_s5 + $0x12e8] sm:$0xff]  ;;  %v1826_v16 = vmul.f32 %v4683_v1, %v800_v8  ;;  %v2850_v21 = vadd.f32 %v4688_v5, %v1824_v10 }
 0x27a   : > { %3851 = vst [vmem:[%s4711_s25 + $0x1218] sm:$0xff] %v2827_v14  ;;  %v802_v14 = vld [vmem:[%s4676_s5 + $0x12f0] sm:$0xff]  ;;  %v1827_v19 = vmul.f32 %v4683_v1, %v801_v11  ;;  %v2851_v24 = vadd.f32 %v4688_v5, %v1825_v13 }
 0x27b   : > { %3852 = vst [vmem:[%s4711_s25 + $0x1220] sm:$0xff] %v2828_v17  ;;  %v803_v17 = vld [vmem:[%s4676_s5 + $0x12f8] sm:$0xff]  ;;  %v1828_v22 = vmul.f32 %v4683_v1, %v802_v14  ;;  %v2852_v27 = vadd.f32 %v4688_v5, %v1826_v16 }
 0x27c   : > { %3853 = vst [vmem:[%s4711_s25 + $0x1228] sm:$0xff] %v2829_v20  ;;  %v804_v20 = vld [vmem:[%s4676_s5 + $0x1300] sm:$0xff]  ;;  %v1829_v25 = vmul.f32 %v4683_v1, %v803_v17  ;;  %v2853_v30 = vadd.f32 %v4688_v5, %v1827_v19 }
 0x27d   : > { %3854 = vst [vmem:[%s4711_s25 + $0x1230] sm:$0xff] %v2830_v23  ;;  %v805_v23 = vld [vmem:[%s4676_s5 + $0x1308] sm:$0xff]  ;;  %v1830_v28 = vmul.f32 %v4683_v1, %v804_v20  ;;  %v2854_v33 = vadd.f32 %v4688_v5, %v1828_v22 }
 0x27e   : > { %3855 = vst [vmem:[%s4711_s25 + $0x1238] sm:$0xff] %v2831_v26  ;;  %v806_v26 = vld [vmem:[%s4676_s5 + $0x1310] sm:$0xff]  ;;  %v1831_v31 = vmul.f32 %v4683_v1, %v805_v23  ;;  %v2855_v36 = vadd.f32 %v4688_v5, %v1829_v25 }
 0x27f   : > { %3856 = vst [vmem:[%s4711_s25 + $0x1240] sm:$0xff] %v2832_v29  ;;  %v807_v29 = vld [vmem:[%s4676_s5 + $0x1318] sm:$0xff]  ;;  %v1832_v34 = vmul.f32 %v4683_v1, %v806_v26  ;;  %v2856_v39 = vadd.f32 %v4688_v5, %v1830_v28 }
 0x280   : > { %3857 = vst [vmem:[%s4711_s25 + $0x1248] sm:$0xff] %v2833_v32  ;;  %v808_v32 = vld [vmem:[%s4676_s5 + $0x1320] sm:$0xff]  ;;  %v1833_v37 = vmul.f32 %v4683_v1, %v807_v29  ;;  %v2857_v42 = vadd.f32 %v4688_v5, %v1831_v31 }
 0x281   : > { %3858 = vst [vmem:[%s4711_s25 + $0x1250] sm:$0xff] %v2834_v35  ;;  %v809_v35 = vld [vmem:[%s4676_s5 + $0x1328] sm:$0xff]  ;;  %v1834_v40 = vmul.f32 %v4683_v1, %v808_v32  ;;  %v2858_v45 = vadd.f32 %v4688_v5, %v1832_v34 }
 0x282   : > { %3859 = vst [vmem:[%s4711_s25 + $0x1258] sm:$0xff] %v2835_v38  ;;  %v810_v38 = vld [vmem:[%s4676_s5 + $0x1330] sm:$0xff]  ;;  %v1835_v43 = vmul.f32 %v4683_v1, %v809_v35  ;;  %v2859_v48 = vadd.f32 %v4688_v5, %v1833_v37 }
 0x283   : > { %3860 = vst [vmem:[%s4711_s25 + $0x1260] sm:$0xff] %v2836_v41  ;;  %v811_v41 = vld [vmem:[%s4676_s5 + $0x1338] sm:$0xff]  ;;  %v1836_v46 = vmul.f32 %v4683_v1, %v810_v38  ;;  %v2860_v51 = vadd.f32 %v4688_v5, %v1834_v40 }
 0x284   : > { %3861 = vst [vmem:[%s4711_s25 + $0x1268] sm:$0xff] %v2837_v44  ;;  %v812_v44 = vld [vmem:[%s4676_s5 + $0x1340] sm:$0xff]  ;;  %v1837_v49 = vmul.f32 %v4683_v1, %v811_v41  ;;  %v2861_v54 = vadd.f32 %v4688_v5, %v1835_v43 }
 0x285   : > { %3862 = vst [vmem:[%s4711_s25 + $0x1270] sm:$0xff] %v2838_v47  ;;  %v813_v47 = vld [vmem:[%s4676_s5 + $0x1348] sm:$0xff]  ;;  %v1838_v52 = vmul.f32 %v4683_v1, %v812_v44  ;;  %v2862_v57 = vadd.f32 %v4688_v5, %v1836_v46 }
 0x286   : > { %3863 = vst [vmem:[%s4711_s25 + $0x1278] sm:$0xff] %v2839_v50  ;;  %v814_v50 = vld [vmem:[%s4676_s5 + $0x1350] sm:$0xff]  ;;  %v1839_v55 = vmul.f32 %v4683_v1, %v813_v47  ;;  %v2863_v60 = vadd.f32 %v4688_v5, %v1837_v49 }
 0x287   : > { %3864 = vst [vmem:[%s4711_s25 + $0x1280] sm:$0xff] %v2840_v53  ;;  %v815_v53 = vld [vmem:[%s4676_s5 + $0x1358] sm:$0xff]  ;;  %v1840_v58 = vmul.f32 %v4683_v1, %v814_v50  ;;  %v2864_v63 = vadd.f32 %v4688_v5, %v1838_v52 }
 0x288   : > { %3865 = vst [vmem:[%s4711_s25 + $0x1288] sm:$0xff] %v2841_v56  ;;  %v816_v56 = vld [vmem:[%s4676_s5 + $0x1360] sm:$0xff]  ;;  %v1841_v61 = vmul.f32 %v4683_v1, %v815_v53  ;;  %v2865_v3 = vadd.f32 %v4688_v5, %v1839_v55 }
 0x289   : > { %3866 = vst [vmem:[%s4711_s25 + $0x1290] sm:$0xff] %v2842_v59  ;;  %v817_v59 = vld [vmem:[%s4676_s5 + $0x1368] sm:$0xff]  ;;  %v1842_v0 = vmul.f32 %v4683_v1, %v816_v56  ;;  %v2866_v7 = vadd.f32 %v4688_v5, %v1840_v58 }
 0x28a   : > { %3867 = vst [vmem:[%s4711_s25 + $0x1298] sm:$0xff] %v2843_v62  ;;  %v818_v62 = vld [vmem:[%s4676_s5 + $0x1370] sm:$0xff]  ;;  %v1843_v4 = vmul.f32 %v4683_v1, %v817_v59  ;;  %v2867_v10 = vadd.f32 %v4688_v5, %v1841_v61 }
 0x28b   : > { %3868 = vst [vmem:[%s4711_s25 + $0x12a0] sm:$0xff] %v2844_v2  ;;  %v819_v2 = vld [vmem:[%s4676_s5 + $0x1378] sm:$0xff]  ;;  %v1844_v8 = vmul.f32 %v4683_v1, %v818_v62  ;;  %v2868_v13 = vadd.f32 %v4688_v5, %v1842_v0 }
 0x28c   : > { %3869 = vst [vmem:[%s4711_s25 + $0x12a8] sm:$0xff] %v2845_v6  ;;  %v820_v6 = vld [vmem:[%s4676_s5 + $0x1380] sm:$0xff]  ;;  %v1845_v11 = vmul.f32 %v4683_v1, %v819_v2  ;;  %v2869_v16 = vadd.f32 %v4688_v5, %v1843_v4 }
 0x28d   : > { %3870 = vst [vmem:[%s4711_s25 + $0x12b0] sm:$0xff] %v2846_v9  ;;  %v821_v9 = vld [vmem:[%s4676_s5 + $0x1388] sm:$0xff]  ;;  %v1846_v14 = vmul.f32 %v4683_v1, %v820_v6  ;;  %v2870_v19 = vadd.f32 %v4688_v5, %v1844_v8 }
 0x28e   : > { %3871 = vst [vmem:[%s4711_s25 + $0x12b8] sm:$0xff] %v2847_v12  ;;  %v822_v12 = vld [vmem:[%s4676_s5 + $0x1390] sm:$0xff]  ;;  %v1847_v17 = vmul.f32 %v4683_v1, %v821_v9  ;;  %v2871_v22 = vadd.f32 %v4688_v5, %v1845_v11 }
 0x28f   : > { %3872 = vst [vmem:[%s4711_s25 + $0x12c0] sm:$0xff] %v2848_v15  ;;  %v823_v15 = vld [vmem:[%s4676_s5 + $0x1398] sm:$0xff]  ;;  %v1848_v20 = vmul.f32 %v4683_v1, %v822_v12  ;;  %v2872_v25 = vadd.f32 %v4688_v5, %v1846_v14 }
 0x290   : > { %3873 = vst [vmem:[%s4711_s25 + $0x12c8] sm:$0xff] %v2849_v18  ;;  %v824_v18 = vld [vmem:[%s4676_s5 + $0x13a0] sm:$0xff]  ;;  %v1849_v23 = vmul.f32 %v4683_v1, %v823_v15  ;;  %v2873_v28 = vadd.f32 %v4688_v5, %v1847_v17 }
 0x291   : > { %3874 = vst [vmem:[%s4711_s25 + $0x12d0] sm:$0xff] %v2850_v21  ;;  %v825_v21 = vld [vmem:[%s4676_s5 + $0x13a8] sm:$0xff]  ;;  %v1850_v26 = vmul.f32 %v4683_v1, %v824_v18  ;;  %v2874_v31 = vadd.f32 %v4688_v5, %v1848_v20 }
 0x292   : > { %3875 = vst [vmem:[%s4711_s25 + $0x12d8] sm:$0xff] %v2851_v24  ;;  %v826_v24 = vld [vmem:[%s4676_s5 + $0x13b0] sm:$0xff]  ;;  %v1851_v29 = vmul.f32 %v4683_v1, %v825_v21  ;;  %v2875_v34 = vadd.f32 %v4688_v5, %v1849_v23 }
 0x293   : > { %3876 = vst [vmem:[%s4711_s25 + $0x12e0] sm:$0xff] %v2852_v27  ;;  %v827_v27 = vld [vmem:[%s4676_s5 + $0x13b8] sm:$0xff]  ;;  %v1852_v32 = vmul.f32 %v4683_v1, %v826_v24  ;;  %v2876_v37 = vadd.f32 %v4688_v5, %v1850_v26 }
 0x294   : > { %3877 = vst [vmem:[%s4711_s25 + $0x12e8] sm:$0xff] %v2853_v30  ;;  %v828_v30 = vld [vmem:[%s4676_s5 + $0x13c0] sm:$0xff]  ;;  %v1853_v35 = vmul.f32 %v4683_v1, %v827_v27  ;;  %v2877_v40 = vadd.f32 %v4688_v5, %v1851_v29 }
 0x295   : > { %3878 = vst [vmem:[%s4711_s25 + $0x12f0] sm:$0xff] %v2854_v33  ;;  %v829_v33 = vld [vmem:[%s4676_s5 + $0x13c8] sm:$0xff]  ;;  %v1854_v38 = vmul.f32 %v4683_v1, %v828_v30  ;;  %v2878_v43 = vadd.f32 %v4688_v5, %v1852_v32 }
 0x296   : > { %3879 = vst [vmem:[%s4711_s25 + $0x12f8] sm:$0xff] %v2855_v36  ;;  %v830_v36 = vld [vmem:[%s4676_s5 + $0x13d0] sm:$0xff]  ;;  %v1855_v41 = vmul.f32 %v4683_v1, %v829_v33  ;;  %v2879_v46 = vadd.f32 %v4688_v5, %v1853_v35 }
 0x297   : > { %3880 = vst [vmem:[%s4711_s25 + $0x1300] sm:$0xff] %v2856_v39  ;;  %v831_v39 = vld [vmem:[%s4676_s5 + $0x13d8] sm:$0xff]  ;;  %v1856_v44 = vmul.f32 %v4683_v1, %v830_v36  ;;  %v2880_v49 = vadd.f32 %v4688_v5, %v1854_v38 }
 0x298   : > { %3881 = vst [vmem:[%s4711_s25 + $0x1308] sm:$0xff] %v2857_v42  ;;  %v832_v42 = vld [vmem:[%s4676_s5 + $0x13e0] sm:$0xff]  ;;  %v1857_v47 = vmul.f32 %v4683_v1, %v831_v39  ;;  %v2881_v52 = vadd.f32 %v4688_v5, %v1855_v41 }
 0x299   : > { %3882 = vst [vmem:[%s4711_s25 + $0x1310] sm:$0xff] %v2858_v45  ;;  %v833_v45 = vld [vmem:[%s4676_s5 + $0x13e8] sm:$0xff]  ;;  %v1858_v50 = vmul.f32 %v4683_v1, %v832_v42  ;;  %v2882_v55 = vadd.f32 %v4688_v5, %v1856_v44 }
 0x29a   : > { %3883 = vst [vmem:[%s4711_s25 + $0x1318] sm:$0xff] %v2859_v48  ;;  %v834_v48 = vld [vmem:[%s4676_s5 + $0x13f0] sm:$0xff]  ;;  %v1859_v53 = vmul.f32 %v4683_v1, %v833_v45  ;;  %v2883_v58 = vadd.f32 %v4688_v5, %v1857_v47 }
 0x29b   : > { %3884 = vst [vmem:[%s4711_s25 + $0x1320] sm:$0xff] %v2860_v51  ;;  %v835_v51 = vld [vmem:[%s4676_s5 + $0x13f8] sm:$0xff]  ;;  %v1860_v56 = vmul.f32 %v4683_v1, %v834_v48  ;;  %v2884_v61 = vadd.f32 %v4688_v5, %v1858_v50 }
 0x29c   : > { %3885 = vst [vmem:[%s4711_s25 + $0x1328] sm:$0xff] %v2861_v54  ;;  %v836_v54 = vld [vmem:[%s4676_s5 + $0x1400] sm:$0xff]  ;;  %v1861_v59 = vmul.f32 %v4683_v1, %v835_v51  ;;  %v2885_v0 = vadd.f32 %v4688_v5, %v1859_v53 }
 0x29d   : > { %3886 = vst [vmem:[%s4711_s25 + $0x1330] sm:$0xff] %v2862_v57  ;;  %v837_v57 = vld [vmem:[%s4676_s5 + $0x1408] sm:$0xff]  ;;  %v1862_v62 = vmul.f32 %v4683_v1, %v836_v54  ;;  %v2886_v4 = vadd.f32 %v4688_v5, %v1860_v56 }
 0x29e   : > { %3887 = vst [vmem:[%s4711_s25 + $0x1338] sm:$0xff] %v2863_v60  ;;  %v838_v60 = vld [vmem:[%s4676_s5 + $0x1410] sm:$0xff]  ;;  %v1863_v2 = vmul.f32 %v4683_v1, %v837_v57  ;;  %v2887_v8 = vadd.f32 %v4688_v5, %v1861_v59 }
 0x29f   : > { %3888 = vst [vmem:[%s4711_s25 + $0x1340] sm:$0xff] %v2864_v63  ;;  %v839_v63 = vld [vmem:[%s4676_s5 + $0x1418] sm:$0xff]  ;;  %v1864_v6 = vmul.f32 %v4683_v1, %v838_v60  ;;  %v2888_v11 = vadd.f32 %v4688_v5, %v1862_v62 }
 0x2a0   : > { %3889 = vst [vmem:[%s4711_s25 + $0x1348] sm:$0xff] %v2865_v3  ;;  %v840_v3 = vld [vmem:[%s4676_s5 + $0x1420] sm:$0xff]  ;;  %v1865_v9 = vmul.f32 %v4683_v1, %v839_v63  ;;  %v2889_v14 = vadd.f32 %v4688_v5, %v1863_v2 }
 0x2a1   : > { %3890 = vst [vmem:[%s4711_s25 + $0x1350] sm:$0xff] %v2866_v7  ;;  %v841_v7 = vld [vmem:[%s4676_s5 + $0x1428] sm:$0xff]  ;;  %v1866_v12 = vmul.f32 %v4683_v1, %v840_v3  ;;  %v2890_v17 = vadd.f32 %v4688_v5, %v1864_v6 }
 0x2a2   : > { %3891 = vst [vmem:[%s4711_s25 + $0x1358] sm:$0xff] %v2867_v10  ;;  %v842_v10 = vld [vmem:[%s4676_s5 + $0x1430] sm:$0xff]  ;;  %v1867_v15 = vmul.f32 %v4683_v1, %v841_v7  ;;  %v2891_v20 = vadd.f32 %v4688_v5, %v1865_v9 }
 0x2a3   : > { %3892 = vst [vmem:[%s4711_s25 + $0x1360] sm:$0xff] %v2868_v13  ;;  %v843_v13 = vld [vmem:[%s4676_s5 + $0x1438] sm:$0xff]  ;;  %v1868_v18 = vmul.f32 %v4683_v1, %v842_v10  ;;  %v2892_v23 = vadd.f32 %v4688_v5, %v1866_v12 }
 0x2a4   : > { %3893 = vst [vmem:[%s4711_s25 + $0x1368] sm:$0xff] %v2869_v16  ;;  %v844_v16 = vld [vmem:[%s4676_s5 + $0x1440] sm:$0xff]  ;;  %v1869_v21 = vmul.f32 %v4683_v1, %v843_v13  ;;  %v2893_v26 = vadd.f32 %v4688_v5, %v1867_v15 }
 0x2a5   : > { %3894 = vst [vmem:[%s4711_s25 + $0x1370] sm:$0xff] %v2870_v19  ;;  %v845_v19 = vld [vmem:[%s4676_s5 + $0x1448] sm:$0xff]  ;;  %v1870_v24 = vmul.f32 %v4683_v1, %v844_v16  ;;  %v2894_v29 = vadd.f32 %v4688_v5, %v1868_v18 }
 0x2a6   : > { %3895 = vst [vmem:[%s4711_s25 + $0x1378] sm:$0xff] %v2871_v22  ;;  %v846_v22 = vld [vmem:[%s4676_s5 + $0x1450] sm:$0xff]  ;;  %v1871_v27 = vmul.f32 %v4683_v1, %v845_v19  ;;  %v2895_v32 = vadd.f32 %v4688_v5, %v1869_v21 }
 0x2a7   : > { %3896 = vst [vmem:[%s4711_s25 + $0x1380] sm:$0xff] %v2872_v25  ;;  %v847_v25 = vld [vmem:[%s4676_s5 + $0x1458] sm:$0xff]  ;;  %v1872_v30 = vmul.f32 %v4683_v1, %v846_v22  ;;  %v2896_v35 = vadd.f32 %v4688_v5, %v1870_v24 }
 0x2a8   : > { %3897 = vst [vmem:[%s4711_s25 + $0x1388] sm:$0xff] %v2873_v28  ;;  %v848_v28 = vld [vmem:[%s4676_s5 + $0x1460] sm:$0xff]  ;;  %v1873_v33 = vmul.f32 %v4683_v1, %v847_v25  ;;  %v2897_v38 = vadd.f32 %v4688_v5, %v1871_v27 }
 0x2a9   : > { %3898 = vst [vmem:[%s4711_s25 + $0x1390] sm:$0xff] %v2874_v31  ;;  %v849_v31 = vld [vmem:[%s4676_s5 + $0x1468] sm:$0xff]  ;;  %v1874_v36 = vmul.f32 %v4683_v1, %v848_v28  ;;  %v2898_v41 = vadd.f32 %v4688_v5, %v1872_v30 }
 0x2aa   : > { %3899 = vst [vmem:[%s4711_s25 + $0x1398] sm:$0xff] %v2875_v34  ;;  %v850_v34 = vld [vmem:[%s4676_s5 + $0x1470] sm:$0xff]  ;;  %v1875_v39 = vmul.f32 %v4683_v1, %v849_v31  ;;  %v2899_v44 = vadd.f32 %v4688_v5, %v1873_v33 }
 0x2ab   : > { %3900 = vst [vmem:[%s4711_s25 + $0x13a0] sm:$0xff] %v2876_v37  ;;  %v851_v37 = vld [vmem:[%s4676_s5 + $0x1478] sm:$0xff]  ;;  %v1876_v42 = vmul.f32 %v4683_v1, %v850_v34  ;;  %v2900_v47 = vadd.f32 %v4688_v5, %v1874_v36 }
 0x2ac   : > { %3901 = vst [vmem:[%s4711_s25 + $0x13a8] sm:$0xff] %v2877_v40  ;;  %v852_v40 = vld [vmem:[%s4676_s5 + $0x1480] sm:$0xff]  ;;  %v1877_v45 = vmul.f32 %v4683_v1, %v851_v37  ;;  %v2901_v50 = vadd.f32 %v4688_v5, %v1875_v39 }
 0x2ad   : > { %3902 = vst [vmem:[%s4711_s25 + $0x13b0] sm:$0xff] %v2878_v43  ;;  %v853_v43 = vld [vmem:[%s4676_s5 + $0x1488] sm:$0xff]  ;;  %v1878_v48 = vmul.f32 %v4683_v1, %v852_v40  ;;  %v2902_v53 = vadd.f32 %v4688_v5, %v1876_v42 }
 0x2ae   : > { %3903 = vst [vmem:[%s4711_s25 + $0x13b8] sm:$0xff] %v2879_v46  ;;  %v854_v46 = vld [vmem:[%s4676_s5 + $0x1490] sm:$0xff]  ;;  %v1879_v51 = vmul.f32 %v4683_v1, %v853_v43  ;;  %v2903_v56 = vadd.f32 %v4688_v5, %v1877_v45 }
 0x2af   : > { %3904 = vst [vmem:[%s4711_s25 + $0x13c0] sm:$0xff] %v2880_v49  ;;  %v855_v49 = vld [vmem:[%s4676_s5 + $0x1498] sm:$0xff]  ;;  %v1880_v54 = vmul.f32 %v4683_v1, %v854_v46  ;;  %v2904_v59 = vadd.f32 %v4688_v5, %v1878_v48 }
 0x2b0   : > { %3905 = vst [vmem:[%s4711_s25 + $0x13c8] sm:$0xff] %v2881_v52  ;;  %v856_v52 = vld [vmem:[%s4676_s5 + $0x14a0] sm:$0xff]  ;;  %v1881_v57 = vmul.f32 %v4683_v1, %v855_v49  ;;  %v2905_v62 = vadd.f32 %v4688_v5, %v1879_v51 }
 0x2b1   : > { %3906 = vst [vmem:[%s4711_s25 + $0x13d0] sm:$0xff] %v2882_v55  ;;  %v857_v55 = vld [vmem:[%s4676_s5 + $0x14a8] sm:$0xff]  ;;  %v1882_v60 = vmul.f32 %v4683_v1, %v856_v52  ;;  %v2906_v2 = vadd.f32 %v4688_v5, %v1880_v54 }
 0x2b2   : > { %3907 = vst [vmem:[%s4711_s25 + $0x13d8] sm:$0xff] %v2883_v58  ;;  %v858_v58 = vld [vmem:[%s4676_s5 + $0x14b0] sm:$0xff]  ;;  %v1883_v63 = vmul.f32 %v4683_v1, %v857_v55  ;;  %v2907_v6 = vadd.f32 %v4688_v5, %v1881_v57 }
 0x2b3   : > { %3908 = vst [vmem:[%s4711_s25 + $0x13e0] sm:$0xff] %v2884_v61  ;;  %v859_v61 = vld [vmem:[%s4676_s5 + $0x14b8] sm:$0xff]  ;;  %v1884_v3 = vmul.f32 %v4683_v1, %v858_v58  ;;  %v2908_v9 = vadd.f32 %v4688_v5, %v1882_v60 }
 0x2b4   : > { %3909 = vst [vmem:[%s4711_s25 + $0x13e8] sm:$0xff] %v2885_v0  ;;  %v860_v0 = vld [vmem:[%s4676_s5 + $0x14c0] sm:$0xff]  ;;  %v1885_v7 = vmul.f32 %v4683_v1, %v859_v61  ;;  %v2909_v12 = vadd.f32 %v4688_v5, %v1883_v63 }
 0x2b5   : > { %3910 = vst [vmem:[%s4711_s25 + $0x13f0] sm:$0xff] %v2886_v4  ;;  %v861_v4 = vld [vmem:[%s4676_s5 + $0x14c8] sm:$0xff]  ;;  %v1886_v10 = vmul.f32 %v4683_v1, %v860_v0  ;;  %v2910_v15 = vadd.f32 %v4688_v5, %v1884_v3 }
 0x2b6   : > { %3911 = vst [vmem:[%s4711_s25 + $0x13f8] sm:$0xff] %v2887_v8  ;;  %v862_v8 = vld [vmem:[%s4676_s5 + $0x14d0] sm:$0xff]  ;;  %v1887_v13 = vmul.f32 %v4683_v1, %v861_v4  ;;  %v2911_v18 = vadd.f32 %v4688_v5, %v1885_v7 }
 0x2b7   : > { %3912 = vst [vmem:[%s4711_s25 + $0x1400] sm:$0xff] %v2888_v11  ;;  %v863_v11 = vld [vmem:[%s4676_s5 + $0x14d8] sm:$0xff]  ;;  %v1888_v16 = vmul.f32 %v4683_v1, %v862_v8  ;;  %v2912_v21 = vadd.f32 %v4688_v5, %v1886_v10 }
 0x2b8   : > { %3913 = vst [vmem:[%s4711_s25 + $0x1408] sm:$0xff] %v2889_v14  ;;  %v864_v14 = vld [vmem:[%s4676_s5 + $0x14e0] sm:$0xff]  ;;  %v1889_v19 = vmul.f32 %v4683_v1, %v863_v11  ;;  %v2913_v24 = vadd.f32 %v4688_v5, %v1887_v13 }
 0x2b9   : > { %3914 = vst [vmem:[%s4711_s25 + $0x1410] sm:$0xff] %v2890_v17  ;;  %v865_v17 = vld [vmem:[%s4676_s5 + $0x14e8] sm:$0xff]  ;;  %v1890_v22 = vmul.f32 %v4683_v1, %v864_v14  ;;  %v2914_v27 = vadd.f32 %v4688_v5, %v1888_v16 }
 0x2ba   : > { %3915 = vst [vmem:[%s4711_s25 + $0x1418] sm:$0xff] %v2891_v20  ;;  %v866_v20 = vld [vmem:[%s4676_s5 + $0x14f0] sm:$0xff]  ;;  %v1891_v25 = vmul.f32 %v4683_v1, %v865_v17  ;;  %v2915_v30 = vadd.f32 %v4688_v5, %v1889_v19 }
 0x2bb   : > { %3916 = vst [vmem:[%s4711_s25 + $0x1420] sm:$0xff] %v2892_v23  ;;  %v867_v23 = vld [vmem:[%s4676_s5 + $0x14f8] sm:$0xff]  ;;  %v1892_v28 = vmul.f32 %v4683_v1, %v866_v20  ;;  %v2916_v33 = vadd.f32 %v4688_v5, %v1890_v22 }
 0x2bc   : > { %3917 = vst [vmem:[%s4711_s25 + $0x1428] sm:$0xff] %v2893_v26  ;;  %v868_v26 = vld [vmem:[%s4676_s5 + $0x1500] sm:$0xff]  ;;  %v1893_v31 = vmul.f32 %v4683_v1, %v867_v23  ;;  %v2917_v36 = vadd.f32 %v4688_v5, %v1891_v25 }
 0x2bd   : > { %3918 = vst [vmem:[%s4711_s25 + $0x1430] sm:$0xff] %v2894_v29  ;;  %v869_v29 = vld [vmem:[%s4676_s5 + $0x1508] sm:$0xff]  ;;  %v1894_v34 = vmul.f32 %v4683_v1, %v868_v26  ;;  %v2918_v39 = vadd.f32 %v4688_v5, %v1892_v28 }
 0x2be   : > { %3919 = vst [vmem:[%s4711_s25 + $0x1438] sm:$0xff] %v2895_v32  ;;  %v870_v32 = vld [vmem:[%s4676_s5 + $0x1510] sm:$0xff]  ;;  %v1895_v37 = vmul.f32 %v4683_v1, %v869_v29  ;;  %v2919_v42 = vadd.f32 %v4688_v5, %v1893_v31 }
 0x2bf   : > { %3920 = vst [vmem:[%s4711_s25 + $0x1440] sm:$0xff] %v2896_v35  ;;  %v871_v35 = vld [vmem:[%s4676_s5 + $0x1518] sm:$0xff]  ;;  %v1896_v40 = vmul.f32 %v4683_v1, %v870_v32  ;;  %v2920_v45 = vadd.f32 %v4688_v5, %v1894_v34 }
 0x2c0   : > { %3921 = vst [vmem:[%s4711_s25 + $0x1448] sm:$0xff] %v2897_v38  ;;  %v872_v38 = vld [vmem:[%s4676_s5 + $0x1520] sm:$0xff]  ;;  %v1897_v43 = vmul.f32 %v4683_v1, %v871_v35  ;;  %v2921_v48 = vadd.f32 %v4688_v5, %v1895_v37 }
 0x2c1   : > { %3922 = vst [vmem:[%s4711_s25 + $0x1450] sm:$0xff] %v2898_v41  ;;  %v873_v41 = vld [vmem:[%s4676_s5 + $0x1528] sm:$0xff]  ;;  %v1898_v46 = vmul.f32 %v4683_v1, %v872_v38  ;;  %v2922_v51 = vadd.f32 %v4688_v5, %v1896_v40 }
 0x2c2   : > { %3923 = vst [vmem:[%s4711_s25 + $0x1458] sm:$0xff] %v2899_v44  ;;  %v874_v44 = vld [vmem:[%s4676_s5 + $0x1530] sm:$0xff]  ;;  %v1899_v49 = vmul.f32 %v4683_v1, %v873_v41  ;;  %v2923_v54 = vadd.f32 %v4688_v5, %v1897_v43 }
 0x2c3   : > { %3924 = vst [vmem:[%s4711_s25 + $0x1460] sm:$0xff] %v2900_v47  ;;  %v875_v47 = vld [vmem:[%s4676_s5 + $0x1538] sm:$0xff]  ;;  %v1900_v52 = vmul.f32 %v4683_v1, %v874_v44  ;;  %v2924_v57 = vadd.f32 %v4688_v5, %v1898_v46 }
 0x2c4   : > { %3925 = vst [vmem:[%s4711_s25 + $0x1468] sm:$0xff] %v2901_v50  ;;  %v876_v50 = vld [vmem:[%s4676_s5 + $0x1540] sm:$0xff]  ;;  %v1901_v55 = vmul.f32 %v4683_v1, %v875_v47  ;;  %v2925_v60 = vadd.f32 %v4688_v5, %v1899_v49 }
 0x2c5   : > { %3926 = vst [vmem:[%s4711_s25 + $0x1470] sm:$0xff] %v2902_v53  ;;  %v877_v53 = vld [vmem:[%s4676_s5 + $0x1548] sm:$0xff]  ;;  %v1902_v58 = vmul.f32 %v4683_v1, %v876_v50  ;;  %v2926_v63 = vadd.f32 %v4688_v5, %v1900_v52 }
 0x2c6   : > { %3927 = vst [vmem:[%s4711_s25 + $0x1478] sm:$0xff] %v2903_v56  ;;  %v878_v56 = vld [vmem:[%s4676_s5 + $0x1550] sm:$0xff]  ;;  %v1903_v61 = vmul.f32 %v4683_v1, %v877_v53  ;;  %v2927_v3 = vadd.f32 %v4688_v5, %v1901_v55 }
 0x2c7   : > { %3928 = vst [vmem:[%s4711_s25 + $0x1480] sm:$0xff] %v2904_v59  ;;  %v879_v59 = vld [vmem:[%s4676_s5 + $0x1558] sm:$0xff]  ;;  %v1904_v0 = vmul.f32 %v4683_v1, %v878_v56  ;;  %v2928_v7 = vadd.f32 %v4688_v5, %v1902_v58 }
 0x2c8   : > { %3929 = vst [vmem:[%s4711_s25 + $0x1488] sm:$0xff] %v2905_v62  ;;  %v880_v62 = vld [vmem:[%s4676_s5 + $0x1560] sm:$0xff]  ;;  %v1905_v4 = vmul.f32 %v4683_v1, %v879_v59  ;;  %v2929_v10 = vadd.f32 %v4688_v5, %v1903_v61 }
 0x2c9   : > { %3930 = vst [vmem:[%s4711_s25 + $0x1490] sm:$0xff] %v2906_v2  ;;  %v881_v2 = vld [vmem:[%s4676_s5 + $0x1568] sm:$0xff]  ;;  %v1906_v8 = vmul.f32 %v4683_v1, %v880_v62  ;;  %v2930_v13 = vadd.f32 %v4688_v5, %v1904_v0 }
 0x2ca   : > { %3931 = vst [vmem:[%s4711_s25 + $0x1498] sm:$0xff] %v2907_v6  ;;  %v882_v6 = vld [vmem:[%s4676_s5 + $0x1570] sm:$0xff]  ;;  %v1907_v11 = vmul.f32 %v4683_v1, %v881_v2  ;;  %v2931_v16 = vadd.f32 %v4688_v5, %v1905_v4 }
 0x2cb   : > { %3932 = vst [vmem:[%s4711_s25 + $0x14a0] sm:$0xff] %v2908_v9  ;;  %v883_v9 = vld [vmem:[%s4676_s5 + $0x1578] sm:$0xff]  ;;  %v1908_v14 = vmul.f32 %v4683_v1, %v882_v6  ;;  %v2932_v19 = vadd.f32 %v4688_v5, %v1906_v8 }
 0x2cc   : > { %3933 = vst [vmem:[%s4711_s25 + $0x14a8] sm:$0xff] %v2909_v12  ;;  %v884_v12 = vld [vmem:[%s4676_s5 + $0x1580] sm:$0xff]  ;;  %v1909_v17 = vmul.f32 %v4683_v1, %v883_v9  ;;  %v2933_v22 = vadd.f32 %v4688_v5, %v1907_v11 }
 0x2cd   : > { %3934 = vst [vmem:[%s4711_s25 + $0x14b0] sm:$0xff] %v2910_v15  ;;  %v885_v15 = vld [vmem:[%s4676_s5 + $0x1588] sm:$0xff]  ;;  %v1910_v20 = vmul.f32 %v4683_v1, %v884_v12  ;;  %v2934_v25 = vadd.f32 %v4688_v5, %v1908_v14 }
 0x2ce   : > { %3935 = vst [vmem:[%s4711_s25 + $0x14b8] sm:$0xff] %v2911_v18  ;;  %v886_v18 = vld [vmem:[%s4676_s5 + $0x1590] sm:$0xff]  ;;  %v1911_v23 = vmul.f32 %v4683_v1, %v885_v15  ;;  %v2935_v28 = vadd.f32 %v4688_v5, %v1909_v17 }
 0x2cf   : > { %3936 = vst [vmem:[%s4711_s25 + $0x14c0] sm:$0xff] %v2912_v21  ;;  %v887_v21 = vld [vmem:[%s4676_s5 + $0x1598] sm:$0xff]  ;;  %v1912_v26 = vmul.f32 %v4683_v1, %v886_v18  ;;  %v2936_v31 = vadd.f32 %v4688_v5, %v1910_v20 }
 0x2d0   : > { %3937 = vst [vmem:[%s4711_s25 + $0x14c8] sm:$0xff] %v2913_v24  ;;  %v888_v24 = vld [vmem:[%s4676_s5 + $0x15a0] sm:$0xff]  ;;  %v1913_v29 = vmul.f32 %v4683_v1, %v887_v21  ;;  %v2937_v34 = vadd.f32 %v4688_v5, %v1911_v23 }
 0x2d1   : > { %3938 = vst [vmem:[%s4711_s25 + $0x14d0] sm:$0xff] %v2914_v27  ;;  %v889_v27 = vld [vmem:[%s4676_s5 + $0x15a8] sm:$0xff]  ;;  %v1914_v32 = vmul.f32 %v4683_v1, %v888_v24  ;;  %v2938_v37 = vadd.f32 %v4688_v5, %v1912_v26 }
 0x2d2   : > { %3939 = vst [vmem:[%s4711_s25 + $0x14d8] sm:$0xff] %v2915_v30  ;;  %v890_v30 = vld [vmem:[%s4676_s5 + $0x15b0] sm:$0xff]  ;;  %v1915_v35 = vmul.f32 %v4683_v1, %v889_v27  ;;  %v2939_v40 = vadd.f32 %v4688_v5, %v1913_v29 }
 0x2d3   : > { %3940 = vst [vmem:[%s4711_s25 + $0x14e0] sm:$0xff] %v2916_v33  ;;  %v891_v33 = vld [vmem:[%s4676_s5 + $0x15b8] sm:$0xff]  ;;  %v1916_v38 = vmul.f32 %v4683_v1, %v890_v30  ;;  %v2940_v43 = vadd.f32 %v4688_v5, %v1914_v32 }
 0x2d4   : > { %3941 = vst [vmem:[%s4711_s25 + $0x14e8] sm:$0xff] %v2917_v36  ;;  %v892_v36 = vld [vmem:[%s4676_s5 + $0x15c0] sm:$0xff]  ;;  %v1917_v41 = vmul.f32 %v4683_v1, %v891_v33  ;;  %v2941_v46 = vadd.f32 %v4688_v5, %v1915_v35 }
 0x2d5   : > { %3942 = vst [vmem:[%s4711_s25 + $0x14f0] sm:$0xff] %v2918_v39  ;;  %v893_v39 = vld [vmem:[%s4676_s5 + $0x15c8] sm:$0xff]  ;;  %v1918_v44 = vmul.f32 %v4683_v1, %v892_v36  ;;  %v2942_v49 = vadd.f32 %v4688_v5, %v1916_v38 }
 0x2d6   : > { %3943 = vst [vmem:[%s4711_s25 + $0x14f8] sm:$0xff] %v2919_v42  ;;  %v894_v42 = vld [vmem:[%s4676_s5 + $0x15d0] sm:$0xff]  ;;  %v1919_v47 = vmul.f32 %v4683_v1, %v893_v39  ;;  %v2943_v52 = vadd.f32 %v4688_v5, %v1917_v41 }
 0x2d7   : > { %3944 = vst [vmem:[%s4711_s25 + $0x1500] sm:$0xff] %v2920_v45  ;;  %v895_v45 = vld [vmem:[%s4676_s5 + $0x15d8] sm:$0xff]  ;;  %v1920_v50 = vmul.f32 %v4683_v1, %v894_v42  ;;  %v2944_v55 = vadd.f32 %v4688_v5, %v1918_v44 }
 0x2d8   : > { %3945 = vst [vmem:[%s4711_s25 + $0x1508] sm:$0xff] %v2921_v48  ;;  %v896_v48 = vld [vmem:[%s4676_s5 + $0x15e0] sm:$0xff]  ;;  %v1921_v53 = vmul.f32 %v4683_v1, %v895_v45  ;;  %v2945_v58 = vadd.f32 %v4688_v5, %v1919_v47 }
 0x2d9   : > { %3946 = vst [vmem:[%s4711_s25 + $0x1510] sm:$0xff] %v2922_v51  ;;  %v897_v51 = vld [vmem:[%s4676_s5 + $0x15e8] sm:$0xff]  ;;  %v1922_v56 = vmul.f32 %v4683_v1, %v896_v48  ;;  %v2946_v61 = vadd.f32 %v4688_v5, %v1920_v50 }
 0x2da   : > { %3947 = vst [vmem:[%s4711_s25 + $0x1518] sm:$0xff] %v2923_v54  ;;  %v898_v54 = vld [vmem:[%s4676_s5 + $0x15f0] sm:$0xff]  ;;  %v1923_v59 = vmul.f32 %v4683_v1, %v897_v51  ;;  %v2947_v0 = vadd.f32 %v4688_v5, %v1921_v53 }
 0x2db   : > { %3948 = vst [vmem:[%s4711_s25 + $0x1520] sm:$0xff] %v2924_v57  ;;  %v899_v57 = vld [vmem:[%s4676_s5 + $0x15f8] sm:$0xff]  ;;  %v1924_v62 = vmul.f32 %v4683_v1, %v898_v54  ;;  %v2948_v4 = vadd.f32 %v4688_v5, %v1922_v56 }
 0x2dc   : > { %3949 = vst [vmem:[%s4711_s25 + $0x1528] sm:$0xff] %v2925_v60  ;;  %v900_v60 = vld [vmem:[%s4676_s5 + $0x1600] sm:$0xff]  ;;  %v1925_v2 = vmul.f32 %v4683_v1, %v899_v57  ;;  %v2949_v8 = vadd.f32 %v4688_v5, %v1923_v59 }
 0x2dd   : > { %3950 = vst [vmem:[%s4711_s25 + $0x1530] sm:$0xff] %v2926_v63  ;;  %v901_v63 = vld [vmem:[%s4676_s5 + $0x1608] sm:$0xff]  ;;  %v1926_v6 = vmul.f32 %v4683_v1, %v900_v60  ;;  %v2950_v11 = vadd.f32 %v4688_v5, %v1924_v62 }
 0x2de   : > { %3951 = vst [vmem:[%s4711_s25 + $0x1538] sm:$0xff] %v2927_v3  ;;  %v902_v3 = vld [vmem:[%s4676_s5 + $0x1610] sm:$0xff]  ;;  %v1927_v9 = vmul.f32 %v4683_v1, %v901_v63  ;;  %v2951_v14 = vadd.f32 %v4688_v5, %v1925_v2 }
 0x2df   : > { %3952 = vst [vmem:[%s4711_s25 + $0x1540] sm:$0xff] %v2928_v7  ;;  %v903_v7 = vld [vmem:[%s4676_s5 + $0x1618] sm:$0xff]  ;;  %v1928_v12 = vmul.f32 %v4683_v1, %v902_v3  ;;  %v2952_v17 = vadd.f32 %v4688_v5, %v1926_v6 }
 0x2e0   : > { %3953 = vst [vmem:[%s4711_s25 + $0x1548] sm:$0xff] %v2929_v10  ;;  %v904_v10 = vld [vmem:[%s4676_s5 + $0x1620] sm:$0xff]  ;;  %v1929_v15 = vmul.f32 %v4683_v1, %v903_v7  ;;  %v2953_v20 = vadd.f32 %v4688_v5, %v1927_v9 }
 0x2e1   : > { %3954 = vst [vmem:[%s4711_s25 + $0x1550] sm:$0xff] %v2930_v13  ;;  %v905_v13 = vld [vmem:[%s4676_s5 + $0x1628] sm:$0xff]  ;;  %v1930_v18 = vmul.f32 %v4683_v1, %v904_v10  ;;  %v2954_v23 = vadd.f32 %v4688_v5, %v1928_v12 }
 0x2e2   : > { %3955 = vst [vmem:[%s4711_s25 + $0x1558] sm:$0xff] %v2931_v16  ;;  %v906_v16 = vld [vmem:[%s4676_s5 + $0x1630] sm:$0xff]  ;;  %v1931_v21 = vmul.f32 %v4683_v1, %v905_v13  ;;  %v2955_v26 = vadd.f32 %v4688_v5, %v1929_v15 }
 0x2e3   : > { %3956 = vst [vmem:[%s4711_s25 + $0x1560] sm:$0xff] %v2932_v19  ;;  %v907_v19 = vld [vmem:[%s4676_s5 + $0x1638] sm:$0xff]  ;;  %v1932_v24 = vmul.f32 %v4683_v1, %v906_v16  ;;  %v2956_v29 = vadd.f32 %v4688_v5, %v1930_v18 }
 0x2e4   : > { %3957 = vst [vmem:[%s4711_s25 + $0x1568] sm:$0xff] %v2933_v22  ;;  %v908_v22 = vld [vmem:[%s4676_s5 + $0x1640] sm:$0xff]  ;;  %v1933_v27 = vmul.f32 %v4683_v1, %v907_v19  ;;  %v2957_v32 = vadd.f32 %v4688_v5, %v1931_v21 }
 0x2e5   : > { %3958 = vst [vmem:[%s4711_s25 + $0x1570] sm:$0xff] %v2934_v25  ;;  %v909_v25 = vld [vmem:[%s4676_s5 + $0x1648] sm:$0xff]  ;;  %v1934_v30 = vmul.f32 %v4683_v1, %v908_v22  ;;  %v2958_v35 = vadd.f32 %v4688_v5, %v1932_v24 }
 0x2e6   : > { %3959 = vst [vmem:[%s4711_s25 + $0x1578] sm:$0xff] %v2935_v28  ;;  %v910_v28 = vld [vmem:[%s4676_s5 + $0x1650] sm:$0xff]  ;;  %v1935_v33 = vmul.f32 %v4683_v1, %v909_v25  ;;  %v2959_v38 = vadd.f32 %v4688_v5, %v1933_v27 }
 0x2e7   : > { %3960 = vst [vmem:[%s4711_s25 + $0x1580] sm:$0xff] %v2936_v31  ;;  %v911_v31 = vld [vmem:[%s4676_s5 + $0x1658] sm:$0xff]  ;;  %v1936_v36 = vmul.f32 %v4683_v1, %v910_v28  ;;  %v2960_v41 = vadd.f32 %v4688_v5, %v1934_v30 }
 0x2e8   : > { %3961 = vst [vmem:[%s4711_s25 + $0x1588] sm:$0xff] %v2937_v34  ;;  %v912_v34 = vld [vmem:[%s4676_s5 + $0x1660] sm:$0xff]  ;;  %v1937_v39 = vmul.f32 %v4683_v1, %v911_v31  ;;  %v2961_v44 = vadd.f32 %v4688_v5, %v1935_v33 }
 0x2e9   : > { %3962 = vst [vmem:[%s4711_s25 + $0x1590] sm:$0xff] %v2938_v37  ;;  %v913_v37 = vld [vmem:[%s4676_s5 + $0x1668] sm:$0xff]  ;;  %v1938_v42 = vmul.f32 %v4683_v1, %v912_v34  ;;  %v2962_v47 = vadd.f32 %v4688_v5, %v1936_v36 }
 0x2ea   : > { %3963 = vst [vmem:[%s4711_s25 + $0x1598] sm:$0xff] %v2939_v40  ;;  %v914_v40 = vld [vmem:[%s4676_s5 + $0x1670] sm:$0xff]  ;;  %v1939_v45 = vmul.f32 %v4683_v1, %v913_v37  ;;  %v2963_v50 = vadd.f32 %v4688_v5, %v1937_v39 }
 0x2eb   : > { %3964 = vst [vmem:[%s4711_s25 + $0x15a0] sm:$0xff] %v2940_v43  ;;  %v915_v43 = vld [vmem:[%s4676_s5 + $0x1678] sm:$0xff]  ;;  %v1940_v48 = vmul.f32 %v4683_v1, %v914_v40  ;;  %v2964_v53 = vadd.f32 %v4688_v5, %v1938_v42 }
 0x2ec   : > { %3965 = vst [vmem:[%s4711_s25 + $0x15a8] sm:$0xff] %v2941_v46  ;;  %v916_v46 = vld [vmem:[%s4676_s5 + $0x1680] sm:$0xff]  ;;  %v1941_v51 = vmul.f32 %v4683_v1, %v915_v43  ;;  %v2965_v56 = vadd.f32 %v4688_v5, %v1939_v45 }
 0x2ed   : > { %3966 = vst [vmem:[%s4711_s25 + $0x15b0] sm:$0xff] %v2942_v49  ;;  %v917_v49 = vld [vmem:[%s4676_s5 + $0x1688] sm:$0xff]  ;;  %v1942_v54 = vmul.f32 %v4683_v1, %v916_v46  ;;  %v2966_v59 = vadd.f32 %v4688_v5, %v1940_v48 }
 0x2ee   : > { %3967 = vst [vmem:[%s4711_s25 + $0x15b8] sm:$0xff] %v2943_v52  ;;  %v918_v52 = vld [vmem:[%s4676_s5 + $0x1690] sm:$0xff]  ;;  %v1943_v57 = vmul.f32 %v4683_v1, %v917_v49  ;;  %v2967_v62 = vadd.f32 %v4688_v5, %v1941_v51 }
 0x2ef   : > { %3968 = vst [vmem:[%s4711_s25 + $0x15c0] sm:$0xff] %v2944_v55  ;;  %v919_v55 = vld [vmem:[%s4676_s5 + $0x1698] sm:$0xff]  ;;  %v1944_v60 = vmul.f32 %v4683_v1, %v918_v52  ;;  %v2968_v2 = vadd.f32 %v4688_v5, %v1942_v54 }
 0x2f0   : > { %3969 = vst [vmem:[%s4711_s25 + $0x15c8] sm:$0xff] %v2945_v58  ;;  %v920_v58 = vld [vmem:[%s4676_s5 + $0x16a0] sm:$0xff]  ;;  %v1945_v63 = vmul.f32 %v4683_v1, %v919_v55  ;;  %v2969_v6 = vadd.f32 %v4688_v5, %v1943_v57 }
 0x2f1   : > { %3970 = vst [vmem:[%s4711_s25 + $0x15d0] sm:$0xff] %v2946_v61  ;;  %v921_v61 = vld [vmem:[%s4676_s5 + $0x16a8] sm:$0xff]  ;;  %v1946_v3 = vmul.f32 %v4683_v1, %v920_v58  ;;  %v2970_v9 = vadd.f32 %v4688_v5, %v1944_v60 }
 0x2f2   : > { %3971 = vst [vmem:[%s4711_s25 + $0x15d8] sm:$0xff] %v2947_v0  ;;  %v922_v0 = vld [vmem:[%s4676_s5 + $0x16b0] sm:$0xff]  ;;  %v1947_v7 = vmul.f32 %v4683_v1, %v921_v61  ;;  %v2971_v12 = vadd.f32 %v4688_v5, %v1945_v63 }
 0x2f3   : > { %3972 = vst [vmem:[%s4711_s25 + $0x15e0] sm:$0xff] %v2948_v4  ;;  %v923_v4 = vld [vmem:[%s4676_s5 + $0x16b8] sm:$0xff]  ;;  %v1948_v10 = vmul.f32 %v4683_v1, %v922_v0  ;;  %v2972_v15 = vadd.f32 %v4688_v5, %v1946_v3 }
 0x2f4   : > { %3973 = vst [vmem:[%s4711_s25 + $0x15e8] sm:$0xff] %v2949_v8  ;;  %v924_v8 = vld [vmem:[%s4676_s5 + $0x16c0] sm:$0xff]  ;;  %v1949_v13 = vmul.f32 %v4683_v1, %v923_v4  ;;  %v2973_v18 = vadd.f32 %v4688_v5, %v1947_v7 }
 0x2f5   : > { %3974 = vst [vmem:[%s4711_s25 + $0x15f0] sm:$0xff] %v2950_v11  ;;  %v925_v11 = vld [vmem:[%s4676_s5 + $0x16c8] sm:$0xff]  ;;  %v1950_v16 = vmul.f32 %v4683_v1, %v924_v8  ;;  %v2974_v21 = vadd.f32 %v4688_v5, %v1948_v10 }
 0x2f6   : > { %3975 = vst [vmem:[%s4711_s25 + $0x15f8] sm:$0xff] %v2951_v14  ;;  %v926_v14 = vld [vmem:[%s4676_s5 + $0x16d0] sm:$0xff]  ;;  %v1951_v19 = vmul.f32 %v4683_v1, %v925_v11  ;;  %v2975_v24 = vadd.f32 %v4688_v5, %v1949_v13 }
 0x2f7   : > { %3976 = vst [vmem:[%s4711_s25 + $0x1600] sm:$0xff] %v2952_v17  ;;  %v927_v17 = vld [vmem:[%s4676_s5 + $0x16d8] sm:$0xff]  ;;  %v1952_v22 = vmul.f32 %v4683_v1, %v926_v14  ;;  %v2976_v27 = vadd.f32 %v4688_v5, %v1950_v16 }
 0x2f8   : > { %3977 = vst [vmem:[%s4711_s25 + $0x1608] sm:$0xff] %v2953_v20  ;;  %v928_v20 = vld [vmem:[%s4676_s5 + $0x16e0] sm:$0xff]  ;;  %v1953_v25 = vmul.f32 %v4683_v1, %v927_v17  ;;  %v2977_v30 = vadd.f32 %v4688_v5, %v1951_v19 }
 0x2f9   : > { %3978 = vst [vmem:[%s4711_s25 + $0x1610] sm:$0xff] %v2954_v23  ;;  %v929_v23 = vld [vmem:[%s4676_s5 + $0x16e8] sm:$0xff]  ;;  %v1954_v28 = vmul.f32 %v4683_v1, %v928_v20  ;;  %v2978_v33 = vadd.f32 %v4688_v5, %v1952_v22 }
 0x2fa   : > { %3979 = vst [vmem:[%s4711_s25 + $0x1618] sm:$0xff] %v2955_v26  ;;  %v930_v26 = vld [vmem:[%s4676_s5 + $0x16f0] sm:$0xff]  ;;  %v1955_v31 = vmul.f32 %v4683_v1, %v929_v23  ;;  %v2979_v36 = vadd.f32 %v4688_v5, %v1953_v25 }
 0x2fb   : > { %3980 = vst [vmem:[%s4711_s25 + $0x1620] sm:$0xff] %v2956_v29  ;;  %v931_v29 = vld [vmem:[%s4676_s5 + $0x16f8] sm:$0xff]  ;;  %v1956_v34 = vmul.f32 %v4683_v1, %v930_v26  ;;  %v2980_v39 = vadd.f32 %v4688_v5, %v1954_v28 }
 0x2fc   : > { %3981 = vst [vmem:[%s4711_s25 + $0x1628] sm:$0xff] %v2957_v32  ;;  %v932_v32 = vld [vmem:[%s4676_s5 + $0x1700] sm:$0xff]  ;;  %v1957_v37 = vmul.f32 %v4683_v1, %v931_v29  ;;  %v2981_v42 = vadd.f32 %v4688_v5, %v1955_v31 }
 0x2fd   : > { %3982 = vst [vmem:[%s4711_s25 + $0x1630] sm:$0xff] %v2958_v35  ;;  %v933_v35 = vld [vmem:[%s4676_s5 + $0x1708] sm:$0xff]  ;;  %v1958_v40 = vmul.f32 %v4683_v1, %v932_v32  ;;  %v2982_v45 = vadd.f32 %v4688_v5, %v1956_v34 }
 0x2fe   : > { %3983 = vst [vmem:[%s4711_s25 + $0x1638] sm:$0xff] %v2959_v38  ;;  %v934_v38 = vld [vmem:[%s4676_s5 + $0x1710] sm:$0xff]  ;;  %v1959_v43 = vmul.f32 %v4683_v1, %v933_v35  ;;  %v2983_v48 = vadd.f32 %v4688_v5, %v1957_v37 }
 0x2ff   : > { %3984 = vst [vmem:[%s4711_s25 + $0x1640] sm:$0xff] %v2960_v41  ;;  %v935_v41 = vld [vmem:[%s4676_s5 + $0x1718] sm:$0xff]  ;;  %v1960_v46 = vmul.f32 %v4683_v1, %v934_v38  ;;  %v2984_v51 = vadd.f32 %v4688_v5, %v1958_v40 }
 0x300   : > { %3985 = vst [vmem:[%s4711_s25 + $0x1648] sm:$0xff] %v2961_v44  ;;  %v936_v44 = vld [vmem:[%s4676_s5 + $0x1720] sm:$0xff]  ;;  %v1961_v49 = vmul.f32 %v4683_v1, %v935_v41  ;;  %v2985_v54 = vadd.f32 %v4688_v5, %v1959_v43 }
 0x301   : > { %3986 = vst [vmem:[%s4711_s25 + $0x1650] sm:$0xff] %v2962_v47  ;;  %v937_v47 = vld [vmem:[%s4676_s5 + $0x1728] sm:$0xff]  ;;  %v1962_v52 = vmul.f32 %v4683_v1, %v936_v44  ;;  %v2986_v57 = vadd.f32 %v4688_v5, %v1960_v46 }
 0x302   : > { %3987 = vst [vmem:[%s4711_s25 + $0x1658] sm:$0xff] %v2963_v50  ;;  %v938_v50 = vld [vmem:[%s4676_s5 + $0x1730] sm:$0xff]  ;;  %v1963_v55 = vmul.f32 %v4683_v1, %v937_v47  ;;  %v2987_v60 = vadd.f32 %v4688_v5, %v1961_v49 }
 0x303   : > { %3988 = vst [vmem:[%s4711_s25 + $0x1660] sm:$0xff] %v2964_v53  ;;  %v939_v53 = vld [vmem:[%s4676_s5 + $0x1738] sm:$0xff]  ;;  %v1964_v58 = vmul.f32 %v4683_v1, %v938_v50  ;;  %v2988_v63 = vadd.f32 %v4688_v5, %v1962_v52 }
 0x304   : > { %3989 = vst [vmem:[%s4711_s25 + $0x1668] sm:$0xff] %v2965_v56  ;;  %v940_v56 = vld [vmem:[%s4676_s5 + $0x1740] sm:$0xff]  ;;  %v1965_v61 = vmul.f32 %v4683_v1, %v939_v53  ;;  %v2989_v3 = vadd.f32 %v4688_v5, %v1963_v55 }
 0x305   : > { %3990 = vst [vmem:[%s4711_s25 + $0x1670] sm:$0xff] %v2966_v59  ;;  %v941_v59 = vld [vmem:[%s4676_s5 + $0x1748] sm:$0xff]  ;;  %v1966_v0 = vmul.f32 %v4683_v1, %v940_v56  ;;  %v2990_v7 = vadd.f32 %v4688_v5, %v1964_v58 }
 0x306   : > { %3991 = vst [vmem:[%s4711_s25 + $0x1678] sm:$0xff] %v2967_v62  ;;  %v942_v62 = vld [vmem:[%s4676_s5 + $0x1750] sm:$0xff]  ;;  %v1967_v4 = vmul.f32 %v4683_v1, %v941_v59  ;;  %v2991_v10 = vadd.f32 %v4688_v5, %v1965_v61 }
 0x307   : > { %3992 = vst [vmem:[%s4711_s25 + $0x1680] sm:$0xff] %v2968_v2  ;;  %v943_v2 = vld [vmem:[%s4676_s5 + $0x1758] sm:$0xff]  ;;  %v1968_v8 = vmul.f32 %v4683_v1, %v942_v62  ;;  %v2992_v13 = vadd.f32 %v4688_v5, %v1966_v0 }
 0x308   : > { %3993 = vst [vmem:[%s4711_s25 + $0x1688] sm:$0xff] %v2969_v6  ;;  %v944_v6 = vld [vmem:[%s4676_s5 + $0x1760] sm:$0xff]  ;;  %v1969_v11 = vmul.f32 %v4683_v1, %v943_v2  ;;  %v2993_v16 = vadd.f32 %v4688_v5, %v1967_v4 }
 0x309   : > { %3994 = vst [vmem:[%s4711_s25 + $0x1690] sm:$0xff] %v2970_v9  ;;  %v945_v9 = vld [vmem:[%s4676_s5 + $0x1768] sm:$0xff]  ;;  %v1970_v14 = vmul.f32 %v4683_v1, %v944_v6  ;;  %v2994_v19 = vadd.f32 %v4688_v5, %v1968_v8 }
 0x30a   : > { %3995 = vst [vmem:[%s4711_s25 + $0x1698] sm:$0xff] %v2971_v12  ;;  %v946_v12 = vld [vmem:[%s4676_s5 + $0x1770] sm:$0xff]  ;;  %v1971_v17 = vmul.f32 %v4683_v1, %v945_v9  ;;  %v2995_v22 = vadd.f32 %v4688_v5, %v1969_v11 }
 0x30b   : > { %3996 = vst [vmem:[%s4711_s25 + $0x16a0] sm:$0xff] %v2972_v15  ;;  %v947_v15 = vld [vmem:[%s4676_s5 + $0x1778] sm:$0xff]  ;;  %v1972_v20 = vmul.f32 %v4683_v1, %v946_v12  ;;  %v2996_v25 = vadd.f32 %v4688_v5, %v1970_v14 }
 0x30c   : > { %3997 = vst [vmem:[%s4711_s25 + $0x16a8] sm:$0xff] %v2973_v18  ;;  %v948_v18 = vld [vmem:[%s4676_s5 + $0x1780] sm:$0xff]  ;;  %v1973_v23 = vmul.f32 %v4683_v1, %v947_v15  ;;  %v2997_v28 = vadd.f32 %v4688_v5, %v1971_v17 }
 0x30d   : > { %3998 = vst [vmem:[%s4711_s25 + $0x16b0] sm:$0xff] %v2974_v21  ;;  %v949_v21 = vld [vmem:[%s4676_s5 + $0x1788] sm:$0xff]  ;;  %v1974_v26 = vmul.f32 %v4683_v1, %v948_v18  ;;  %v2998_v31 = vadd.f32 %v4688_v5, %v1972_v20 }
 0x30e   : > { %3999 = vst [vmem:[%s4711_s25 + $0x16b8] sm:$0xff] %v2975_v24  ;;  %v950_v24 = vld [vmem:[%s4676_s5 + $0x1790] sm:$0xff]  ;;  %v1975_v29 = vmul.f32 %v4683_v1, %v949_v21  ;;  %v2999_v34 = vadd.f32 %v4688_v5, %v1973_v23 }
 0x30f   : > { %4000 = vst [vmem:[%s4711_s25 + $0x16c0] sm:$0xff] %v2976_v27  ;;  %v951_v27 = vld [vmem:[%s4676_s5 + $0x1798] sm:$0xff]  ;;  %v1976_v32 = vmul.f32 %v4683_v1, %v950_v24  ;;  %v3000_v37 = vadd.f32 %v4688_v5, %v1974_v26 }
 0x310   : > { %4001 = vst [vmem:[%s4711_s25 + $0x16c8] sm:$0xff] %v2977_v30  ;;  %v952_v30 = vld [vmem:[%s4676_s5 + $0x17a0] sm:$0xff]  ;;  %v1977_v35 = vmul.f32 %v4683_v1, %v951_v27  ;;  %v3001_v40 = vadd.f32 %v4688_v5, %v1975_v29 }
 0x311   : > { %4002 = vst [vmem:[%s4711_s25 + $0x16d0] sm:$0xff] %v2978_v33  ;;  %v953_v33 = vld [vmem:[%s4676_s5 + $0x17a8] sm:$0xff]  ;;  %v1978_v38 = vmul.f32 %v4683_v1, %v952_v30  ;;  %v3002_v43 = vadd.f32 %v4688_v5, %v1976_v32 }
 0x312   : > { %4003 = vst [vmem:[%s4711_s25 + $0x16d8] sm:$0xff] %v2979_v36  ;;  %v954_v36 = vld [vmem:[%s4676_s5 + $0x17b0] sm:$0xff]  ;;  %v1979_v41 = vmul.f32 %v4683_v1, %v953_v33  ;;  %v3003_v46 = vadd.f32 %v4688_v5, %v1977_v35 }
 0x313   : > { %4004 = vst [vmem:[%s4711_s25 + $0x16e0] sm:$0xff] %v2980_v39  ;;  %v955_v39 = vld [vmem:[%s4676_s5 + $0x17b8] sm:$0xff]  ;;  %v1980_v44 = vmul.f32 %v4683_v1, %v954_v36  ;;  %v3004_v49 = vadd.f32 %v4688_v5, %v1978_v38 }
 0x314   : > { %4005 = vst [vmem:[%s4711_s25 + $0x16e8] sm:$0xff] %v2981_v42  ;;  %v956_v42 = vld [vmem:[%s4676_s5 + $0x17c0] sm:$0xff]  ;;  %v1981_v47 = vmul.f32 %v4683_v1, %v955_v39  ;;  %v3005_v52 = vadd.f32 %v4688_v5, %v1979_v41 }
 0x315   : > { %4006 = vst [vmem:[%s4711_s25 + $0x16f0] sm:$0xff] %v2982_v45  ;;  %v957_v45 = vld [vmem:[%s4676_s5 + $0x17c8] sm:$0xff]  ;;  %v1982_v50 = vmul.f32 %v4683_v1, %v956_v42  ;;  %v3006_v55 = vadd.f32 %v4688_v5, %v1980_v44 }
 0x316   : > { %4007 = vst [vmem:[%s4711_s25 + $0x16f8] sm:$0xff] %v2983_v48  ;;  %v958_v48 = vld [vmem:[%s4676_s5 + $0x17d0] sm:$0xff]  ;;  %v1983_v53 = vmul.f32 %v4683_v1, %v957_v45  ;;  %v3007_v58 = vadd.f32 %v4688_v5, %v1981_v47 }
 0x317   : > { %4008 = vst [vmem:[%s4711_s25 + $0x1700] sm:$0xff] %v2984_v51  ;;  %v959_v51 = vld [vmem:[%s4676_s5 + $0x17d8] sm:$0xff]  ;;  %v1984_v56 = vmul.f32 %v4683_v1, %v958_v48  ;;  %v3008_v61 = vadd.f32 %v4688_v5, %v1982_v50 }
 0x318   : > { %4009 = vst [vmem:[%s4711_s25 + $0x1708] sm:$0xff] %v2985_v54  ;;  %v960_v54 = vld [vmem:[%s4676_s5 + $0x17e0] sm:$0xff]  ;;  %v1985_v59 = vmul.f32 %v4683_v1, %v959_v51  ;;  %v3009_v0 = vadd.f32 %v4688_v5, %v1983_v53 }
 0x319   : > { %4010 = vst [vmem:[%s4711_s25 + $0x1710] sm:$0xff] %v2986_v57  ;;  %v961_v57 = vld [vmem:[%s4676_s5 + $0x17e8] sm:$0xff]  ;;  %v1986_v62 = vmul.f32 %v4683_v1, %v960_v54  ;;  %v3010_v4 = vadd.f32 %v4688_v5, %v1984_v56 }
 0x31a   : > { %4011 = vst [vmem:[%s4711_s25 + $0x1718] sm:$0xff] %v2987_v60  ;;  %v962_v60 = vld [vmem:[%s4676_s5 + $0x17f0] sm:$0xff]  ;;  %v1987_v2 = vmul.f32 %v4683_v1, %v961_v57  ;;  %v3011_v8 = vadd.f32 %v4688_v5, %v1985_v59 }
 0x31b   : > { %4012 = vst [vmem:[%s4711_s25 + $0x1720] sm:$0xff] %v2988_v63  ;;  %v963_v63 = vld [vmem:[%s4676_s5 + $0x17f8] sm:$0xff]  ;;  %v1988_v6 = vmul.f32 %v4683_v1, %v962_v60  ;;  %v3012_v11 = vadd.f32 %v4688_v5, %v1986_v62 }
 0x31c   : > { %4013 = vst [vmem:[%s4711_s25 + $0x1728] sm:$0xff] %v2989_v3  ;;  %v964_v3 = vld [vmem:[%s4676_s5 + $0x1800] sm:$0xff]  ;;  %v1989_v9 = vmul.f32 %v4683_v1, %v963_v63  ;;  %v3013_v14 = vadd.f32 %v4688_v5, %v1987_v2 }
 0x31d   : > { %4014 = vst [vmem:[%s4711_s25 + $0x1730] sm:$0xff] %v2990_v7  ;;  %v965_v7 = vld [vmem:[%s4676_s5 + $0x1808] sm:$0xff]  ;;  %v1990_v12 = vmul.f32 %v4683_v1, %v964_v3  ;;  %v3014_v17 = vadd.f32 %v4688_v5, %v1988_v6 }
 0x31e   : > { %4015 = vst [vmem:[%s4711_s25 + $0x1738] sm:$0xff] %v2991_v10  ;;  %v966_v10 = vld [vmem:[%s4676_s5 + $0x1810] sm:$0xff]  ;;  %v1991_v15 = vmul.f32 %v4683_v1, %v965_v7  ;;  %v3015_v20 = vadd.f32 %v4688_v5, %v1989_v9 }
 0x31f   : > { %4016 = vst [vmem:[%s4711_s25 + $0x1740] sm:$0xff] %v2992_v13  ;;  %v967_v13 = vld [vmem:[%s4676_s5 + $0x1818] sm:$0xff]  ;;  %v1992_v18 = vmul.f32 %v4683_v1, %v966_v10  ;;  %v3016_v23 = vadd.f32 %v4688_v5, %v1990_v12 }
 0x320   : > { %4017 = vst [vmem:[%s4711_s25 + $0x1748] sm:$0xff] %v2993_v16  ;;  %v968_v16 = vld [vmem:[%s4676_s5 + $0x1820] sm:$0xff]  ;;  %v1993_v21 = vmul.f32 %v4683_v1, %v967_v13  ;;  %v3017_v26 = vadd.f32 %v4688_v5, %v1991_v15 }
 0x321   : > { %4018 = vst [vmem:[%s4711_s25 + $0x1750] sm:$0xff] %v2994_v19  ;;  %v969_v19 = vld [vmem:[%s4676_s5 + $0x1828] sm:$0xff]  ;;  %v1994_v24 = vmul.f32 %v4683_v1, %v968_v16  ;;  %v3018_v29 = vadd.f32 %v4688_v5, %v1992_v18 }
 0x322   : > { %4019 = vst [vmem:[%s4711_s25 + $0x1758] sm:$0xff] %v2995_v22  ;;  %v970_v22 = vld [vmem:[%s4676_s5 + $0x1830] sm:$0xff]  ;;  %v1995_v27 = vmul.f32 %v4683_v1, %v969_v19  ;;  %v3019_v32 = vadd.f32 %v4688_v5, %v1993_v21 }
 0x323   : > { %4020 = vst [vmem:[%s4711_s25 + $0x1760] sm:$0xff] %v2996_v25  ;;  %v971_v25 = vld [vmem:[%s4676_s5 + $0x1838] sm:$0xff]  ;;  %v1996_v30 = vmul.f32 %v4683_v1, %v970_v22  ;;  %v3020_v35 = vadd.f32 %v4688_v5, %v1994_v24 }
 0x324   : > { %4021 = vst [vmem:[%s4711_s25 + $0x1768] sm:$0xff] %v2997_v28  ;;  %v972_v28 = vld [vmem:[%s4676_s5 + $0x1840] sm:$0xff]  ;;  %v1997_v33 = vmul.f32 %v4683_v1, %v971_v25  ;;  %v3021_v38 = vadd.f32 %v4688_v5, %v1995_v27 }
 0x325   : > { %4022 = vst [vmem:[%s4711_s25 + $0x1770] sm:$0xff] %v2998_v31  ;;  %v973_v31 = vld [vmem:[%s4676_s5 + $0x1848] sm:$0xff]  ;;  %v1998_v36 = vmul.f32 %v4683_v1, %v972_v28  ;;  %v3022_v41 = vadd.f32 %v4688_v5, %v1996_v30 }
 0x326   : > { %4023 = vst [vmem:[%s4711_s25 + $0x1778] sm:$0xff] %v2999_v34  ;;  %v974_v34 = vld [vmem:[%s4676_s5 + $0x1850] sm:$0xff]  ;;  %v1999_v39 = vmul.f32 %v4683_v1, %v973_v31  ;;  %v3023_v44 = vadd.f32 %v4688_v5, %v1997_v33 }
 0x327   : > { %4024 = vst [vmem:[%s4711_s25 + $0x1780] sm:$0xff] %v3000_v37  ;;  %v975_v37 = vld [vmem:[%s4676_s5 + $0x1858] sm:$0xff]  ;;  %v2000_v42 = vmul.f32 %v4683_v1, %v974_v34  ;;  %v3024_v47 = vadd.f32 %v4688_v5, %v1998_v36 }
 0x328   : > { %4025 = vst [vmem:[%s4711_s25 + $0x1788] sm:$0xff] %v3001_v40  ;;  %v976_v40 = vld [vmem:[%s4676_s5 + $0x1860] sm:$0xff]  ;;  %v2001_v45 = vmul.f32 %v4683_v1, %v975_v37  ;;  %v3025_v50 = vadd.f32 %v4688_v5, %v1999_v39 }
 0x329   : > { %4026 = vst [vmem:[%s4711_s25 + $0x1790] sm:$0xff] %v3002_v43  ;;  %v977_v43 = vld [vmem:[%s4676_s5 + $0x1868] sm:$0xff]  ;;  %v2002_v48 = vmul.f32 %v4683_v1, %v976_v40  ;;  %v3026_v53 = vadd.f32 %v4688_v5, %v2000_v42 }
 0x32a   : > { %4027 = vst [vmem:[%s4711_s25 + $0x1798] sm:$0xff] %v3003_v46  ;;  %v978_v46 = vld [vmem:[%s4676_s5 + $0x1870] sm:$0xff]  ;;  %v2003_v51 = vmul.f32 %v4683_v1, %v977_v43  ;;  %v3027_v56 = vadd.f32 %v4688_v5, %v2001_v45 }
 0x32b   : > { %4028 = vst [vmem:[%s4711_s25 + $0x17a0] sm:$0xff] %v3004_v49  ;;  %v979_v49 = vld [vmem:[%s4676_s5 + $0x1878] sm:$0xff]  ;;  %v2004_v54 = vmul.f32 %v4683_v1, %v978_v46  ;;  %v3028_v59 = vadd.f32 %v4688_v5, %v2002_v48 }
 0x32c   : > { %4029 = vst [vmem:[%s4711_s25 + $0x17a8] sm:$0xff] %v3005_v52  ;;  %v980_v52 = vld [vmem:[%s4676_s5 + $0x1880] sm:$0xff]  ;;  %v2005_v57 = vmul.f32 %v4683_v1, %v979_v49  ;;  %v3029_v62 = vadd.f32 %v4688_v5, %v2003_v51 }
 0x32d   : > { %4030 = vst [vmem:[%s4711_s25 + $0x17b0] sm:$0xff] %v3006_v55  ;;  %v981_v55 = vld [vmem:[%s4676_s5 + $0x1888] sm:$0xff]  ;;  %v2006_v60 = vmul.f32 %v4683_v1, %v980_v52  ;;  %v3030_v2 = vadd.f32 %v4688_v5, %v2004_v54 }
 0x32e   : > { %4031 = vst [vmem:[%s4711_s25 + $0x17b8] sm:$0xff] %v3007_v58  ;;  %v982_v58 = vld [vmem:[%s4676_s5 + $0x1890] sm:$0xff]  ;;  %v2007_v63 = vmul.f32 %v4683_v1, %v981_v55  ;;  %v3031_v6 = vadd.f32 %v4688_v5, %v2005_v57 }
 0x32f   : > { %4032 = vst [vmem:[%s4711_s25 + $0x17c0] sm:$0xff] %v3008_v61  ;;  %v983_v61 = vld [vmem:[%s4676_s5 + $0x1898] sm:$0xff]  ;;  %v2008_v3 = vmul.f32 %v4683_v1, %v982_v58  ;;  %v3032_v9 = vadd.f32 %v4688_v5, %v2006_v60 }
 0x330   : > { %4033 = vst [vmem:[%s4711_s25 + $0x17c8] sm:$0xff] %v3009_v0  ;;  %v984_v0 = vld [vmem:[%s4676_s5 + $0x18a0] sm:$0xff]  ;;  %v2009_v7 = vmul.f32 %v4683_v1, %v983_v61  ;;  %v3033_v12 = vadd.f32 %v4688_v5, %v2007_v63 }
 0x331   : > { %4034 = vst [vmem:[%s4711_s25 + $0x17d0] sm:$0xff] %v3010_v4  ;;  %v985_v4 = vld [vmem:[%s4676_s5 + $0x18a8] sm:$0xff]  ;;  %v2010_v10 = vmul.f32 %v4683_v1, %v984_v0  ;;  %v3034_v15 = vadd.f32 %v4688_v5, %v2008_v3 }
 0x332   : > { %4035 = vst [vmem:[%s4711_s25 + $0x17d8] sm:$0xff] %v3011_v8  ;;  %v986_v8 = vld [vmem:[%s4676_s5 + $0x18b0] sm:$0xff]  ;;  %v2011_v13 = vmul.f32 %v4683_v1, %v985_v4  ;;  %v3035_v18 = vadd.f32 %v4688_v5, %v2009_v7 }
 0x333   : > { %4036 = vst [vmem:[%s4711_s25 + $0x17e0] sm:$0xff] %v3012_v11  ;;  %v987_v11 = vld [vmem:[%s4676_s5 + $0x18b8] sm:$0xff]  ;;  %v2012_v16 = vmul.f32 %v4683_v1, %v986_v8  ;;  %v3036_v21 = vadd.f32 %v4688_v5, %v2010_v10 }
 0x334   : > { %4037 = vst [vmem:[%s4711_s25 + $0x17e8] sm:$0xff] %v3013_v14  ;;  %v988_v14 = vld [vmem:[%s4676_s5 + $0x18c0] sm:$0xff]  ;;  %v2013_v19 = vmul.f32 %v4683_v1, %v987_v11  ;;  %v3037_v24 = vadd.f32 %v4688_v5, %v2011_v13 }
 0x335   : > { %4038 = vst [vmem:[%s4711_s25 + $0x17f0] sm:$0xff] %v3014_v17  ;;  %v989_v17 = vld [vmem:[%s4676_s5 + $0x18c8] sm:$0xff]  ;;  %v2014_v22 = vmul.f32 %v4683_v1, %v988_v14  ;;  %v3038_v27 = vadd.f32 %v4688_v5, %v2012_v16 }
 0x336   : > { %4039 = vst [vmem:[%s4711_s25 + $0x17f8] sm:$0xff] %v3015_v20  ;;  %v990_v20 = vld [vmem:[%s4676_s5 + $0x18d0] sm:$0xff]  ;;  %v2015_v25 = vmul.f32 %v4683_v1, %v989_v17  ;;  %v3039_v30 = vadd.f32 %v4688_v5, %v2013_v19 }
 0x337   : > { %4040 = vst [vmem:[%s4711_s25 + $0x1800] sm:$0xff] %v3016_v23  ;;  %v991_v23 = vld [vmem:[%s4676_s5 + $0x18d8] sm:$0xff]  ;;  %v2016_v28 = vmul.f32 %v4683_v1, %v990_v20  ;;  %v3040_v33 = vadd.f32 %v4688_v5, %v2014_v22 }
 0x338   : > { %4041 = vst [vmem:[%s4711_s25 + $0x1808] sm:$0xff] %v3017_v26  ;;  %v992_v26 = vld [vmem:[%s4676_s5 + $0x18e0] sm:$0xff]  ;;  %v2017_v31 = vmul.f32 %v4683_v1, %v991_v23  ;;  %v3041_v36 = vadd.f32 %v4688_v5, %v2015_v25 }
 0x339   : > { %4042 = vst [vmem:[%s4711_s25 + $0x1810] sm:$0xff] %v3018_v29  ;;  %v993_v29 = vld [vmem:[%s4676_s5 + $0x18e8] sm:$0xff]  ;;  %v2018_v34 = vmul.f32 %v4683_v1, %v992_v26  ;;  %v3042_v39 = vadd.f32 %v4688_v5, %v2016_v28 }
 0x33a   : > { %4043 = vst [vmem:[%s4711_s25 + $0x1818] sm:$0xff] %v3019_v32  ;;  %v994_v32 = vld [vmem:[%s4676_s5 + $0x18f0] sm:$0xff]  ;;  %v2019_v37 = vmul.f32 %v4683_v1, %v993_v29  ;;  %v3043_v42 = vadd.f32 %v4688_v5, %v2017_v31 }
 0x33b   : > { %4044 = vst [vmem:[%s4711_s25 + $0x1820] sm:$0xff] %v3020_v35  ;;  %v995_v35 = vld [vmem:[%s4676_s5 + $0x18f8] sm:$0xff]  ;;  %v2020_v40 = vmul.f32 %v4683_v1, %v994_v32  ;;  %v3044_v45 = vadd.f32 %v4688_v5, %v2018_v34 }
 0x33c   : > { %4045 = vst [vmem:[%s4711_s25 + $0x1828] sm:$0xff] %v3021_v38  ;;  %v996_v38 = vld [vmem:[%s4676_s5 + $0x1900] sm:$0xff]  ;;  %v2021_v43 = vmul.f32 %v4683_v1, %v995_v35  ;;  %v3045_v48 = vadd.f32 %v4688_v5, %v2019_v37 }
 0x33d   : > { %4046 = vst [vmem:[%s4711_s25 + $0x1830] sm:$0xff] %v3022_v41  ;;  %v997_v41 = vld [vmem:[%s4676_s5 + $0x1908] sm:$0xff]  ;;  %v2022_v46 = vmul.f32 %v4683_v1, %v996_v38  ;;  %v3046_v51 = vadd.f32 %v4688_v5, %v2020_v40 }
 0x33e   : > { %4047 = vst [vmem:[%s4711_s25 + $0x1838] sm:$0xff] %v3023_v44  ;;  %v998_v44 = vld [vmem:[%s4676_s5 + $0x1910] sm:$0xff]  ;;  %v2023_v49 = vmul.f32 %v4683_v1, %v997_v41  ;;  %v3047_v54 = vadd.f32 %v4688_v5, %v2021_v43 }
 0x33f   : > { %4048 = vst [vmem:[%s4711_s25 + $0x1840] sm:$0xff] %v3024_v47  ;;  %v999_v47 = vld [vmem:[%s4676_s5 + $0x1918] sm:$0xff]  ;;  %v2024_v52 = vmul.f32 %v4683_v1, %v998_v44  ;;  %v3048_v57 = vadd.f32 %v4688_v5, %v2022_v46 }
 0x340   : > { %4049 = vst [vmem:[%s4711_s25 + $0x1848] sm:$0xff] %v3025_v50  ;;  %v1000_v50 = vld [vmem:[%s4676_s5 + $0x1920] sm:$0xff]  ;;  %v2025_v55 = vmul.f32 %v4683_v1, %v999_v47  ;;  %v3049_v60 = vadd.f32 %v4688_v5, %v2023_v49 }
 0x341   : > { %4050 = vst [vmem:[%s4711_s25 + $0x1850] sm:$0xff] %v3026_v53  ;;  %v1001_v53 = vld [vmem:[%s4676_s5 + $0x1928] sm:$0xff]  ;;  %v2026_v58 = vmul.f32 %v4683_v1, %v1000_v50  ;;  %v3050_v63 = vadd.f32 %v4688_v5, %v2024_v52 }
 0x342   : > { %4051 = vst [vmem:[%s4711_s25 + $0x1858] sm:$0xff] %v3027_v56  ;;  %v1002_v56 = vld [vmem:[%s4676_s5 + $0x1930] sm:$0xff]  ;;  %v2027_v61 = vmul.f32 %v4683_v1, %v1001_v53  ;;  %v3051_v3 = vadd.f32 %v4688_v5, %v2025_v55 }
 0x343   : > { %4052 = vst [vmem:[%s4711_s25 + $0x1860] sm:$0xff] %v3028_v59  ;;  %v1003_v59 = vld [vmem:[%s4676_s5 + $0x1938] sm:$0xff]  ;;  %v2028_v0 = vmul.f32 %v4683_v1, %v1002_v56  ;;  %v3052_v7 = vadd.f32 %v4688_v5, %v2026_v58 }
 0x344   : > { %4053 = vst [vmem:[%s4711_s25 + $0x1868] sm:$0xff] %v3029_v62  ;;  %v1004_v62 = vld [vmem:[%s4676_s5 + $0x1940] sm:$0xff]  ;;  %v2029_v4 = vmul.f32 %v4683_v1, %v1003_v59  ;;  %v3053_v10 = vadd.f32 %v4688_v5, %v2027_v61 }
 0x345   : > { %4054 = vst [vmem:[%s4711_s25 + $0x1870] sm:$0xff] %v3030_v2  ;;  %v1005_v2 = vld [vmem:[%s4676_s5 + $0x1948] sm:$0xff]  ;;  %v2030_v8 = vmul.f32 %v4683_v1, %v1004_v62  ;;  %v3054_v13 = vadd.f32 %v4688_v5, %v2028_v0 }
 0x346   : > { %4055 = vst [vmem:[%s4711_s25 + $0x1878] sm:$0xff] %v3031_v6  ;;  %v1006_v6 = vld [vmem:[%s4676_s5 + $0x1950] sm:$0xff]  ;;  %v2031_v11 = vmul.f32 %v4683_v1, %v1005_v2  ;;  %v3055_v16 = vadd.f32 %v4688_v5, %v2029_v4 }
 0x347   : > { %4056 = vst [vmem:[%s4711_s25 + $0x1880] sm:$0xff] %v3032_v9  ;;  %v1007_v9 = vld [vmem:[%s4676_s5 + $0x1958] sm:$0xff]  ;;  %v2032_v14 = vmul.f32 %v4683_v1, %v1006_v6  ;;  %v3056_v19 = vadd.f32 %v4688_v5, %v2030_v8 }
 0x348   : > { %4057 = vst [vmem:[%s4711_s25 + $0x1888] sm:$0xff] %v3033_v12  ;;  %v1008_v12 = vld [vmem:[%s4676_s5 + $0x1960] sm:$0xff]  ;;  %v2033_v17 = vmul.f32 %v4683_v1, %v1007_v9  ;;  %v3057_v22 = vadd.f32 %v4688_v5, %v2031_v11 }
 0x349   : > { %4058 = vst [vmem:[%s4711_s25 + $0x1890] sm:$0xff] %v3034_v15  ;;  %v1009_v15 = vld [vmem:[%s4676_s5 + $0x1968] sm:$0xff]  ;;  %v2034_v20 = vmul.f32 %v4683_v1, %v1008_v12  ;;  %v3058_v25 = vadd.f32 %v4688_v5, %v2032_v14 }
 0x34a   : > { %4059 = vst [vmem:[%s4711_s25 + $0x1898] sm:$0xff] %v3035_v18  ;;  %v1010_v18 = vld [vmem:[%s4676_s5 + $0x1970] sm:$0xff]  ;;  %v2035_v23 = vmul.f32 %v4683_v1, %v1009_v15  ;;  %v3059_v28 = vadd.f32 %v4688_v5, %v2033_v17 }
 0x34b   : > { %4060 = vst [vmem:[%s4711_s25 + $0x18a0] sm:$0xff] %v3036_v21  ;;  %v1011_v21 = vld [vmem:[%s4676_s5 + $0x1978] sm:$0xff]  ;;  %v2036_v26 = vmul.f32 %v4683_v1, %v1010_v18  ;;  %v3060_v31 = vadd.f32 %v4688_v5, %v2034_v20 }
 0x34c   : > { %4061 = vst [vmem:[%s4711_s25 + $0x18a8] sm:$0xff] %v3037_v24  ;;  %v1012_v24 = vld [vmem:[%s4676_s5 + $0x1980] sm:$0xff]  ;;  %v2037_v29 = vmul.f32 %v4683_v1, %v1011_v21  ;;  %v3061_v34 = vadd.f32 %v4688_v5, %v2035_v23 }
 0x34d   : > { %4062 = vst [vmem:[%s4711_s25 + $0x18b0] sm:$0xff] %v3038_v27  ;;  %v1013_v27 = vld [vmem:[%s4676_s5 + $0x1988] sm:$0xff]  ;;  %v2038_v32 = vmul.f32 %v4683_v1, %v1012_v24  ;;  %v3062_v37 = vadd.f32 %v4688_v5, %v2036_v26 }
 0x34e   : > { %4063 = vst [vmem:[%s4711_s25 + $0x18b8] sm:$0xff] %v3039_v30  ;;  %v1014_v30 = vld [vmem:[%s4676_s5 + $0x1990] sm:$0xff]  ;;  %v2039_v35 = vmul.f32 %v4683_v1, %v1013_v27  ;;  %v3063_v40 = vadd.f32 %v4688_v5, %v2037_v29 }
 0x34f   : > { %4064 = vst [vmem:[%s4711_s25 + $0x18c0] sm:$0xff] %v3040_v33  ;;  %v1015_v33 = vld [vmem:[%s4676_s5 + $0x1998] sm:$0xff]  ;;  %v2040_v38 = vmul.f32 %v4683_v1, %v1014_v30  ;;  %v3064_v43 = vadd.f32 %v4688_v5, %v2038_v32 }
 0x350   : > { %4065 = vst [vmem:[%s4711_s25 + $0x18c8] sm:$0xff] %v3041_v36  ;;  %v1016_v36 = vld [vmem:[%s4676_s5 + $0x19a0] sm:$0xff]  ;;  %v2041_v41 = vmul.f32 %v4683_v1, %v1015_v33  ;;  %v3065_v46 = vadd.f32 %v4688_v5, %v2039_v35 }
 0x351   : > { %4066 = vst [vmem:[%s4711_s25 + $0x18d0] sm:$0xff] %v3042_v39  ;;  %v1017_v39 = vld [vmem:[%s4676_s5 + $0x19a8] sm:$0xff]  ;;  %v2042_v44 = vmul.f32 %v4683_v1, %v1016_v36  ;;  %v3066_v49 = vadd.f32 %v4688_v5, %v2040_v38 }
 0x352   : > { %4067 = vst [vmem:[%s4711_s25 + $0x18d8] sm:$0xff] %v3043_v42  ;;  %v1018_v42 = vld [vmem:[%s4676_s5 + $0x19b0] sm:$0xff]  ;;  %v2043_v47 = vmul.f32 %v4683_v1, %v1017_v39  ;;  %v3067_v52 = vadd.f32 %v4688_v5, %v2041_v41 }
 0x353   : > { %4068 = vst [vmem:[%s4711_s25 + $0x18e0] sm:$0xff] %v3044_v45  ;;  %v1019_v45 = vld [vmem:[%s4676_s5 + $0x19b8] sm:$0xff]  ;;  %v2044_v50 = vmul.f32 %v4683_v1, %v1018_v42  ;;  %v3068_v55 = vadd.f32 %v4688_v5, %v2042_v44 }
 0x354   : > { %4069 = vst [vmem:[%s4711_s25 + $0x18e8] sm:$0xff] %v3045_v48  ;;  %v1020_v48 = vld [vmem:[%s4676_s5 + $0x19c0] sm:$0xff]  ;;  %v2045_v53 = vmul.f32 %v4683_v1, %v1019_v45  ;;  %v3069_v58 = vadd.f32 %v4688_v5, %v2043_v47 }
 0x355   : > { %4070 = vst [vmem:[%s4711_s25 + $0x18f0] sm:$0xff] %v3046_v51  ;;  %v1021_v51 = vld [vmem:[%s4676_s5 + $0x19c8] sm:$0xff]  ;;  %v2046_v56 = vmul.f32 %v4683_v1, %v1020_v48  ;;  %v3070_v61 = vadd.f32 %v4688_v5, %v2044_v50 }
 0x356   : > { %4071 = vst [vmem:[%s4711_s25 + $0x18f8] sm:$0xff] %v3047_v54  ;;  %v1022_v54 = vld [vmem:[%s4676_s5 + $0x19d0] sm:$0xff]  ;;  %v2047_v59 = vmul.f32 %v4683_v1, %v1021_v51  ;;  %v3071_v0 = vadd.f32 %v4688_v5, %v2045_v53 }
 0x357   : > { %4072 = vst [vmem:[%s4711_s25 + $0x1900] sm:$0xff] %v3048_v57  ;;  %v1023_v57 = vld [vmem:[%s4676_s5 + $0x19d8] sm:$0xff]  ;;  %v2048_v62 = vmul.f32 %v4683_v1, %v1022_v54  ;;  %v3072_v4 = vadd.f32 %v4688_v5, %v2046_v56 }
 0x358   : > { %4073 = vst [vmem:[%s4711_s25 + $0x1908] sm:$0xff] %v3049_v60  ;;  %v1024_v60 = vld [vmem:[%s4676_s5 + $0x19e0] sm:$0xff]  ;;  %v2049_v2 = vmul.f32 %v4683_v1, %v1023_v57  ;;  %v3073_v8 = vadd.f32 %v4688_v5, %v2047_v59 }
 0x359   : > { %4074 = vst [vmem:[%s4711_s25 + $0x1910] sm:$0xff] %v3050_v63  ;;  %v1025_v63 = vld [vmem:[%s4676_s5 + $0x19e8] sm:$0xff]  ;;  %v2050_v6 = vmul.f32 %v4683_v1, %v1024_v60  ;;  %v3074_v11 = vadd.f32 %v4688_v5, %v2048_v62 }
 0x35a   : > { %4075 = vst [vmem:[%s4711_s25 + $0x1918] sm:$0xff] %v3051_v3  ;;  %v1026_v3 = vld [vmem:[%s4676_s5 + $0x19f0] sm:$0xff]  ;;  %v2051_v9 = vmul.f32 %v4683_v1, %v1025_v63  ;;  %v3075_v14 = vadd.f32 %v4688_v5, %v2049_v2 }
 0x35b   : > { %4076 = vst [vmem:[%s4711_s25 + $0x1920] sm:$0xff] %v3052_v7  ;;  %v1027_v7 = vld [vmem:[%s4676_s5 + $0x19f8] sm:$0xff]  ;;  %v2052_v12 = vmul.f32 %v4683_v1, %v1026_v3  ;;  %v3076_v17 = vadd.f32 %v4688_v5, %v2050_v6 }
 0x35c   : > { %4077 = vst [vmem:[%s4711_s25 + $0x1928] sm:$0xff] %v3053_v10  ;;  %v1028_v10 = vld [vmem:[%s4676_s5 + $0x1a00] sm:$0xff]  ;;  %v2053_v15 = vmul.f32 %v4683_v1, %v1027_v7  ;;  %v3077_v20 = vadd.f32 %v4688_v5, %v2051_v9 }
 0x35d   : > { %4078 = vst [vmem:[%s4711_s25 + $0x1930] sm:$0xff] %v3054_v13  ;;  %v1029_v13 = vld [vmem:[%s4676_s5 + $0x1a08] sm:$0xff]  ;;  %v2054_v18 = vmul.f32 %v4683_v1, %v1028_v10  ;;  %v3078_v23 = vadd.f32 %v4688_v5, %v2052_v12 }
 0x35e   : > { %4079 = vst [vmem:[%s4711_s25 + $0x1938] sm:$0xff] %v3055_v16  ;;  %v1030_v16 = vld [vmem:[%s4676_s5 + $0x1a10] sm:$0xff]  ;;  %v2055_v21 = vmul.f32 %v4683_v1, %v1029_v13  ;;  %v3079_v26 = vadd.f32 %v4688_v5, %v2053_v15 }
 0x35f   : > { %4080 = vst [vmem:[%s4711_s25 + $0x1940] sm:$0xff] %v3056_v19  ;;  %v1031_v19 = vld [vmem:[%s4676_s5 + $0x1a18] sm:$0xff]  ;;  %v2056_v24 = vmul.f32 %v4683_v1, %v1030_v16  ;;  %v3080_v29 = vadd.f32 %v4688_v5, %v2054_v18 }
 0x360   : > { %4081 = vst [vmem:[%s4711_s25 + $0x1948] sm:$0xff] %v3057_v22  ;;  %v1032_v22 = vld [vmem:[%s4676_s5 + $0x1a20] sm:$0xff]  ;;  %v2057_v27 = vmul.f32 %v4683_v1, %v1031_v19  ;;  %v3081_v32 = vadd.f32 %v4688_v5, %v2055_v21 }
 0x361   : > { %4082 = vst [vmem:[%s4711_s25 + $0x1950] sm:$0xff] %v3058_v25  ;;  %v1033_v25 = vld [vmem:[%s4676_s5 + $0x1a28] sm:$0xff]  ;;  %v2058_v30 = vmul.f32 %v4683_v1, %v1032_v22  ;;  %v3082_v35 = vadd.f32 %v4688_v5, %v2056_v24 }
 0x362   : > { %4083 = vst [vmem:[%s4711_s25 + $0x1958] sm:$0xff] %v3059_v28  ;;  %v1034_v28 = vld [vmem:[%s4676_s5 + $0x1a30] sm:$0xff]  ;;  %v2059_v33 = vmul.f32 %v4683_v1, %v1033_v25  ;;  %v3083_v38 = vadd.f32 %v4688_v5, %v2057_v27 }
 0x363   : > { %4084 = vst [vmem:[%s4711_s25 + $0x1960] sm:$0xff] %v3060_v31  ;;  %v1035_v31 = vld [vmem:[%s4676_s5 + $0x1a38] sm:$0xff]  ;;  %v2060_v36 = vmul.f32 %v4683_v1, %v1034_v28  ;;  %v3084_v41 = vadd.f32 %v4688_v5, %v2058_v30 }
 0x364   : > { %4085 = vst [vmem:[%s4711_s25 + $0x1968] sm:$0xff] %v3061_v34  ;;  %v1036_v34 = vld [vmem:[%s4676_s5 + $0x1a40] sm:$0xff]  ;;  %v2061_v39 = vmul.f32 %v4683_v1, %v1035_v31  ;;  %v3085_v44 = vadd.f32 %v4688_v5, %v2059_v33 }
 0x365   : > { %4086 = vst [vmem:[%s4711_s25 + $0x1970] sm:$0xff] %v3062_v37  ;;  %v1037_v37 = vld [vmem:[%s4676_s5 + $0x1a48] sm:$0xff]  ;;  %v2062_v42 = vmul.f32 %v4683_v1, %v1036_v34  ;;  %v3086_v47 = vadd.f32 %v4688_v5, %v2060_v36 }
 0x366   : > { %4087 = vst [vmem:[%s4711_s25 + $0x1978] sm:$0xff] %v3063_v40  ;;  %v1038_v40 = vld [vmem:[%s4676_s5 + $0x1a50] sm:$0xff]  ;;  %v2063_v45 = vmul.f32 %v4683_v1, %v1037_v37  ;;  %v3087_v50 = vadd.f32 %v4688_v5, %v2061_v39 }
 0x367   : > { %4088 = vst [vmem:[%s4711_s25 + $0x1980] sm:$0xff] %v3064_v43  ;;  %v1039_v43 = vld [vmem:[%s4676_s5 + $0x1a58] sm:$0xff]  ;;  %v2064_v48 = vmul.f32 %v4683_v1, %v1038_v40  ;;  %v3088_v53 = vadd.f32 %v4688_v5, %v2062_v42 }
 0x368   : > { %4089 = vst [vmem:[%s4711_s25 + $0x1988] sm:$0xff] %v3065_v46  ;;  %v1040_v46 = vld [vmem:[%s4676_s5 + $0x1a60] sm:$0xff]  ;;  %v2065_v51 = vmul.f32 %v4683_v1, %v1039_v43  ;;  %v3089_v56 = vadd.f32 %v4688_v5, %v2063_v45 }
 0x369   : > { %4090 = vst [vmem:[%s4711_s25 + $0x1990] sm:$0xff] %v3066_v49  ;;  %v1041_v49 = vld [vmem:[%s4676_s5 + $0x1a68] sm:$0xff]  ;;  %v2066_v54 = vmul.f32 %v4683_v1, %v1040_v46  ;;  %v3090_v59 = vadd.f32 %v4688_v5, %v2064_v48 }
 0x36a   : > { %4091 = vst [vmem:[%s4711_s25 + $0x1998] sm:$0xff] %v3067_v52  ;;  %v1042_v52 = vld [vmem:[%s4676_s5 + $0x1a70] sm:$0xff]  ;;  %v2067_v57 = vmul.f32 %v4683_v1, %v1041_v49  ;;  %v3091_v62 = vadd.f32 %v4688_v5, %v2065_v51 }
 0x36b   : > { %4092 = vst [vmem:[%s4711_s25 + $0x19a0] sm:$0xff] %v3068_v55  ;;  %v1043_v55 = vld [vmem:[%s4676_s5 + $0x1a78] sm:$0xff]  ;;  %v2068_v60 = vmul.f32 %v4683_v1, %v1042_v52  ;;  %v3092_v2 = vadd.f32 %v4688_v5, %v2066_v54 }
 0x36c   : > { %4093 = vst [vmem:[%s4711_s25 + $0x19a8] sm:$0xff] %v3069_v58  ;;  %v1044_v58 = vld [vmem:[%s4676_s5 + $0x1a80] sm:$0xff]  ;;  %v2069_v63 = vmul.f32 %v4683_v1, %v1043_v55  ;;  %v3093_v6 = vadd.f32 %v4688_v5, %v2067_v57 }
 0x36d   : > { %4094 = vst [vmem:[%s4711_s25 + $0x19b0] sm:$0xff] %v3070_v61  ;;  %v1045_v61 = vld [vmem:[%s4676_s5 + $0x1a88] sm:$0xff]  ;;  %v2070_v3 = vmul.f32 %v4683_v1, %v1044_v58  ;;  %v3094_v9 = vadd.f32 %v4688_v5, %v2068_v60 }
 0x36e   : > { %4095 = vst [vmem:[%s4711_s25 + $0x19b8] sm:$0xff] %v3071_v0  ;;  %v1046_v0 = vld [vmem:[%s4676_s5 + $0x1a90] sm:$0xff]  ;;  %v2071_v7 = vmul.f32 %v4683_v1, %v1045_v61  ;;  %v3095_v12 = vadd.f32 %v4688_v5, %v2069_v63 }
 0x36f   : > { %4096 = vst [vmem:[%s4711_s25 + $0x19c0] sm:$0xff] %v3072_v4  ;;  %v1047_v4 = vld [vmem:[%s4676_s5 + $0x1a98] sm:$0xff]  ;;  %v2072_v10 = vmul.f32 %v4683_v1, %v1046_v0  ;;  %v3096_v15 = vadd.f32 %v4688_v5, %v2070_v3 }
 0x370   : > { %4097 = vst [vmem:[%s4711_s25 + $0x19c8] sm:$0xff] %v3073_v8  ;;  %v1048_v8 = vld [vmem:[%s4676_s5 + $0x1aa0] sm:$0xff]  ;;  %v2073_v13 = vmul.f32 %v4683_v1, %v1047_v4  ;;  %v3097_v18 = vadd.f32 %v4688_v5, %v2071_v7 }
 0x371   : > { %4098 = vst [vmem:[%s4711_s25 + $0x19d0] sm:$0xff] %v3074_v11  ;;  %v1049_v11 = vld [vmem:[%s4676_s5 + $0x1aa8] sm:$0xff]  ;;  %v2074_v16 = vmul.f32 %v4683_v1, %v1048_v8  ;;  %v3098_v21 = vadd.f32 %v4688_v5, %v2072_v10 }
 0x372   : > { %4099 = vst [vmem:[%s4711_s25 + $0x19d8] sm:$0xff] %v3075_v14  ;;  %v1050_v14 = vld [vmem:[%s4676_s5 + $0x1ab0] sm:$0xff]  ;;  %v2075_v19 = vmul.f32 %v4683_v1, %v1049_v11  ;;  %v3099_v24 = vadd.f32 %v4688_v5, %v2073_v13 }
 0x373   : > { %4100 = vst [vmem:[%s4711_s25 + $0x19e0] sm:$0xff] %v3076_v17  ;;  %v1051_v17 = vld [vmem:[%s4676_s5 + $0x1ab8] sm:$0xff]  ;;  %v2076_v22 = vmul.f32 %v4683_v1, %v1050_v14  ;;  %v3100_v27 = vadd.f32 %v4688_v5, %v2074_v16 }
 0x374   : > { %4101 = vst [vmem:[%s4711_s25 + $0x19e8] sm:$0xff] %v3077_v20  ;;  %v1052_v20 = vld [vmem:[%s4676_s5 + $0x1ac0] sm:$0xff]  ;;  %v2077_v25 = vmul.f32 %v4683_v1, %v1051_v17  ;;  %v3101_v30 = vadd.f32 %v4688_v5, %v2075_v19 }
 0x375   : > { %4102 = vst [vmem:[%s4711_s25 + $0x19f0] sm:$0xff] %v3078_v23  ;;  %v1053_v23 = vld [vmem:[%s4676_s5 + $0x1ac8] sm:$0xff]  ;;  %v2078_v28 = vmul.f32 %v4683_v1, %v1052_v20  ;;  %v3102_v33 = vadd.f32 %v4688_v5, %v2076_v22 }
 0x376   : > { %4103 = vst [vmem:[%s4711_s25 + $0x19f8] sm:$0xff] %v3079_v26  ;;  %v1054_v26 = vld [vmem:[%s4676_s5 + $0x1ad0] sm:$0xff]  ;;  %v2079_v31 = vmul.f32 %v4683_v1, %v1053_v23  ;;  %v3103_v36 = vadd.f32 %v4688_v5, %v2077_v25 }
 0x377   : > { %4104 = vst [vmem:[%s4711_s25 + $0x1a00] sm:$0xff] %v3080_v29  ;;  %v1055_v29 = vld [vmem:[%s4676_s5 + $0x1ad8] sm:$0xff]  ;;  %v2080_v34 = vmul.f32 %v4683_v1, %v1054_v26  ;;  %v3104_v39 = vadd.f32 %v4688_v5, %v2078_v28 }
 0x378   : > { %4105 = vst [vmem:[%s4711_s25 + $0x1a08] sm:$0xff] %v3081_v32  ;;  %v1056_v32 = vld [vmem:[%s4676_s5 + $0x1ae0] sm:$0xff]  ;;  %v2081_v37 = vmul.f32 %v4683_v1, %v1055_v29  ;;  %v3105_v42 = vadd.f32 %v4688_v5, %v2079_v31 }
 0x379   : > { %4106 = vst [vmem:[%s4711_s25 + $0x1a10] sm:$0xff] %v3082_v35  ;;  %v1057_v35 = vld [vmem:[%s4676_s5 + $0x1ae8] sm:$0xff]  ;;  %v2082_v40 = vmul.f32 %v4683_v1, %v1056_v32  ;;  %v3106_v45 = vadd.f32 %v4688_v5, %v2080_v34 }
 0x37a   : > { %4107 = vst [vmem:[%s4711_s25 + $0x1a18] sm:$0xff] %v3083_v38  ;;  %v1058_v38 = vld [vmem:[%s4676_s5 + $0x1af0] sm:$0xff]  ;;  %v2083_v43 = vmul.f32 %v4683_v1, %v1057_v35  ;;  %v3107_v48 = vadd.f32 %v4688_v5, %v2081_v37 }
 0x37b   : > { %4108 = vst [vmem:[%s4711_s25 + $0x1a20] sm:$0xff] %v3084_v41  ;;  %v1059_v41 = vld [vmem:[%s4676_s5 + $0x1af8] sm:$0xff]  ;;  %v2084_v46 = vmul.f32 %v4683_v1, %v1058_v38  ;;  %v3108_v51 = vadd.f32 %v4688_v5, %v2082_v40 }
 0x37c   : > { %4109 = vst [vmem:[%s4711_s25 + $0x1a28] sm:$0xff] %v3085_v44  ;;  %v1060_v44 = vld [vmem:[%s4676_s5 + $0x1b00] sm:$0xff]  ;;  %v2085_v49 = vmul.f32 %v4683_v1, %v1059_v41  ;;  %v3109_v54 = vadd.f32 %v4688_v5, %v2083_v43 }
 0x37d   : > { %4110 = vst [vmem:[%s4711_s25 + $0x1a30] sm:$0xff] %v3086_v47  ;;  %v1061_v47 = vld [vmem:[%s4676_s5 + $0x1b08] sm:$0xff]  ;;  %v2086_v52 = vmul.f32 %v4683_v1, %v1060_v44  ;;  %v3110_v57 = vadd.f32 %v4688_v5, %v2084_v46 }
 0x37e   : > { %4111 = vst [vmem:[%s4711_s25 + $0x1a38] sm:$0xff] %v3087_v50  ;;  %v1062_v50 = vld [vmem:[%s4676_s5 + $0x1b10] sm:$0xff]  ;;  %v2087_v55 = vmul.f32 %v4683_v1, %v1061_v47  ;;  %v3111_v60 = vadd.f32 %v4688_v5, %v2085_v49 }
 0x37f   : > { %4112 = vst [vmem:[%s4711_s25 + $0x1a40] sm:$0xff] %v3088_v53  ;;  %v1063_v53 = vld [vmem:[%s4676_s5 + $0x1b18] sm:$0xff]  ;;  %v2088_v58 = vmul.f32 %v4683_v1, %v1062_v50  ;;  %v3112_v63 = vadd.f32 %v4688_v5, %v2086_v52 }
 0x380   : > { %4113 = vst [vmem:[%s4711_s25 + $0x1a48] sm:$0xff] %v3089_v56  ;;  %v1064_v56 = vld [vmem:[%s4676_s5 + $0x1b20] sm:$0xff]  ;;  %v2089_v61 = vmul.f32 %v4683_v1, %v1063_v53  ;;  %v3113_v3 = vadd.f32 %v4688_v5, %v2087_v55 }
 0x381   : > { %4114 = vst [vmem:[%s4711_s25 + $0x1a50] sm:$0xff] %v3090_v59  ;;  %v1065_v59 = vld [vmem:[%s4676_s5 + $0x1b28] sm:$0xff]  ;;  %v2090_v0 = vmul.f32 %v4683_v1, %v1064_v56  ;;  %v3114_v7 = vadd.f32 %v4688_v5, %v2088_v58 }
 0x382   : > { %4115 = vst [vmem:[%s4711_s25 + $0x1a58] sm:$0xff] %v3091_v62  ;;  %v1066_v62 = vld [vmem:[%s4676_s5 + $0x1b30] sm:$0xff]  ;;  %v2091_v4 = vmul.f32 %v4683_v1, %v1065_v59  ;;  %v3115_v10 = vadd.f32 %v4688_v5, %v2089_v61 }
 0x383   : > { %4116 = vst [vmem:[%s4711_s25 + $0x1a60] sm:$0xff] %v3092_v2  ;;  %v1067_v2 = vld [vmem:[%s4676_s5 + $0x1b38] sm:$0xff]  ;;  %v2092_v8 = vmul.f32 %v4683_v1, %v1066_v62  ;;  %v3116_v13 = vadd.f32 %v4688_v5, %v2090_v0 }
 0x384   : > { %4117 = vst [vmem:[%s4711_s25 + $0x1a68] sm:$0xff] %v3093_v6  ;;  %v1068_v6 = vld [vmem:[%s4676_s5 + $0x1b40] sm:$0xff]  ;;  %v2093_v11 = vmul.f32 %v4683_v1, %v1067_v2  ;;  %v3117_v16 = vadd.f32 %v4688_v5, %v2091_v4 }
 0x385   : > { %4118 = vst [vmem:[%s4711_s25 + $0x1a70] sm:$0xff] %v3094_v9  ;;  %v1069_v9 = vld [vmem:[%s4676_s5 + $0x1b48] sm:$0xff]  ;;  %v2094_v14 = vmul.f32 %v4683_v1, %v1068_v6  ;;  %v3118_v19 = vadd.f32 %v4688_v5, %v2092_v8 }
 0x386   : > { %4119 = vst [vmem:[%s4711_s25 + $0x1a78] sm:$0xff] %v3095_v12  ;;  %v1070_v12 = vld [vmem:[%s4676_s5 + $0x1b50] sm:$0xff]  ;;  %v2095_v17 = vmul.f32 %v4683_v1, %v1069_v9  ;;  %v3119_v22 = vadd.f32 %v4688_v5, %v2093_v11 }
 0x387   : > { %4120 = vst [vmem:[%s4711_s25 + $0x1a80] sm:$0xff] %v3096_v15  ;;  %v1071_v15 = vld [vmem:[%s4676_s5 + $0x1b58] sm:$0xff]  ;;  %v2096_v20 = vmul.f32 %v4683_v1, %v1070_v12  ;;  %v3120_v25 = vadd.f32 %v4688_v5, %v2094_v14 }
 0x388   : > { %4121 = vst [vmem:[%s4711_s25 + $0x1a88] sm:$0xff] %v3097_v18  ;;  %v1072_v18 = vld [vmem:[%s4676_s5 + $0x1b60] sm:$0xff]  ;;  %v2097_v23 = vmul.f32 %v4683_v1, %v1071_v15  ;;  %v3121_v28 = vadd.f32 %v4688_v5, %v2095_v17 }
 0x389   : > { %4122 = vst [vmem:[%s4711_s25 + $0x1a90] sm:$0xff] %v3098_v21  ;;  %v1073_v21 = vld [vmem:[%s4676_s5 + $0x1b68] sm:$0xff]  ;;  %v2098_v26 = vmul.f32 %v4683_v1, %v1072_v18  ;;  %v3122_v31 = vadd.f32 %v4688_v5, %v2096_v20 }
 0x38a   : > { %4123 = vst [vmem:[%s4711_s25 + $0x1a98] sm:$0xff] %v3099_v24  ;;  %v1074_v24 = vld [vmem:[%s4676_s5 + $0x1b70] sm:$0xff]  ;;  %v2099_v29 = vmul.f32 %v4683_v1, %v1073_v21  ;;  %v3123_v34 = vadd.f32 %v4688_v5, %v2097_v23 }
 0x38b   : > { %4124 = vst [vmem:[%s4711_s25 + $0x1aa0] sm:$0xff] %v3100_v27  ;;  %v1075_v27 = vld [vmem:[%s4676_s5 + $0x1b78] sm:$0xff]  ;;  %v2100_v32 = vmul.f32 %v4683_v1, %v1074_v24  ;;  %v3124_v37 = vadd.f32 %v4688_v5, %v2098_v26 }
 0x38c   : > { %4125 = vst [vmem:[%s4711_s25 + $0x1aa8] sm:$0xff] %v3101_v30  ;;  %v1076_v30 = vld [vmem:[%s4676_s5 + $0x1b80] sm:$0xff]  ;;  %v2101_v35 = vmul.f32 %v4683_v1, %v1075_v27  ;;  %v3125_v40 = vadd.f32 %v4688_v5, %v2099_v29 }
 0x38d   : > { %4126 = vst [vmem:[%s4711_s25 + $0x1ab0] sm:$0xff] %v3102_v33  ;;  %v1077_v33 = vld [vmem:[%s4676_s5 + $0x1b88] sm:$0xff]  ;;  %v2102_v38 = vmul.f32 %v4683_v1, %v1076_v30  ;;  %v3126_v43 = vadd.f32 %v4688_v5, %v2100_v32 }
 0x38e   : > { %4127 = vst [vmem:[%s4711_s25 + $0x1ab8] sm:$0xff] %v3103_v36  ;;  %v1078_v36 = vld [vmem:[%s4676_s5 + $0x1b90] sm:$0xff]  ;;  %v2103_v41 = vmul.f32 %v4683_v1, %v1077_v33  ;;  %v3127_v46 = vadd.f32 %v4688_v5, %v2101_v35 }
 0x38f   : > { %4128 = vst [vmem:[%s4711_s25 + $0x1ac0] sm:$0xff] %v3104_v39  ;;  %v1079_v39 = vld [vmem:[%s4676_s5 + $0x1b98] sm:$0xff]  ;;  %v2104_v44 = vmul.f32 %v4683_v1, %v1078_v36  ;;  %v3128_v49 = vadd.f32 %v4688_v5, %v2102_v38 }
 0x390   : > { %4129 = vst [vmem:[%s4711_s25 + $0x1ac8] sm:$0xff] %v3105_v42  ;;  %v1080_v42 = vld [vmem:[%s4676_s5 + $0x1ba0] sm:$0xff]  ;;  %v2105_v47 = vmul.f32 %v4683_v1, %v1079_v39  ;;  %v3129_v52 = vadd.f32 %v4688_v5, %v2103_v41 }
 0x391   : > { %4130 = vst [vmem:[%s4711_s25 + $0x1ad0] sm:$0xff] %v3106_v45  ;;  %v1081_v45 = vld [vmem:[%s4676_s5 + $0x1ba8] sm:$0xff]  ;;  %v2106_v50 = vmul.f32 %v4683_v1, %v1080_v42  ;;  %v3130_v55 = vadd.f32 %v4688_v5, %v2104_v44 }
 0x392   : > { %4131 = vst [vmem:[%s4711_s25 + $0x1ad8] sm:$0xff] %v3107_v48  ;;  %v1082_v48 = vld [vmem:[%s4676_s5 + $0x1bb0] sm:$0xff]  ;;  %v2107_v53 = vmul.f32 %v4683_v1, %v1081_v45  ;;  %v3131_v58 = vadd.f32 %v4688_v5, %v2105_v47 }
 0x393   : > { %4132 = vst [vmem:[%s4711_s25 + $0x1ae0] sm:$0xff] %v3108_v51  ;;  %v1083_v51 = vld [vmem:[%s4676_s5 + $0x1bb8] sm:$0xff]  ;;  %v2108_v56 = vmul.f32 %v4683_v1, %v1082_v48  ;;  %v3132_v61 = vadd.f32 %v4688_v5, %v2106_v50 }
 0x394   : > { %4133 = vst [vmem:[%s4711_s25 + $0x1ae8] sm:$0xff] %v3109_v54  ;;  %v1084_v54 = vld [vmem:[%s4676_s5 + $0x1bc0] sm:$0xff]  ;;  %v2109_v59 = vmul.f32 %v4683_v1, %v1083_v51  ;;  %v3133_v0 = vadd.f32 %v4688_v5, %v2107_v53 }
 0x395   : > { %4134 = vst [vmem:[%s4711_s25 + $0x1af0] sm:$0xff] %v3110_v57  ;;  %v1085_v57 = vld [vmem:[%s4676_s5 + $0x1bc8] sm:$0xff]  ;;  %v2110_v62 = vmul.f32 %v4683_v1, %v1084_v54  ;;  %v3134_v4 = vadd.f32 %v4688_v5, %v2108_v56 }
 0x396   : > { %4135 = vst [vmem:[%s4711_s25 + $0x1af8] sm:$0xff] %v3111_v60  ;;  %v1086_v60 = vld [vmem:[%s4676_s5 + $0x1bd0] sm:$0xff]  ;;  %v2111_v2 = vmul.f32 %v4683_v1, %v1085_v57  ;;  %v3135_v8 = vadd.f32 %v4688_v5, %v2109_v59 }
 0x397   : > { %4136 = vst [vmem:[%s4711_s25 + $0x1b00] sm:$0xff] %v3112_v63  ;;  %v1087_v63 = vld [vmem:[%s4676_s5 + $0x1bd8] sm:$0xff]  ;;  %v2112_v6 = vmul.f32 %v4683_v1, %v1086_v60  ;;  %v3136_v11 = vadd.f32 %v4688_v5, %v2110_v62 }
 0x398   : > { %4137 = vst [vmem:[%s4711_s25 + $0x1b08] sm:$0xff] %v3113_v3  ;;  %v1088_v3 = vld [vmem:[%s4676_s5 + $0x1be0] sm:$0xff]  ;;  %v2113_v9 = vmul.f32 %v4683_v1, %v1087_v63  ;;  %v3137_v14 = vadd.f32 %v4688_v5, %v2111_v2 }
 0x399   : > { %4138 = vst [vmem:[%s4711_s25 + $0x1b10] sm:$0xff] %v3114_v7  ;;  %v1089_v7 = vld [vmem:[%s4676_s5 + $0x1be8] sm:$0xff]  ;;  %v2114_v12 = vmul.f32 %v4683_v1, %v1088_v3  ;;  %v3138_v17 = vadd.f32 %v4688_v5, %v2112_v6 }
 0x39a   : > { %4139 = vst [vmem:[%s4711_s25 + $0x1b18] sm:$0xff] %v3115_v10  ;;  %v1090_v10 = vld [vmem:[%s4676_s5 + $0x1bf0] sm:$0xff]  ;;  %v2115_v15 = vmul.f32 %v4683_v1, %v1089_v7  ;;  %v3139_v20 = vadd.f32 %v4688_v5, %v2113_v9 }
 0x39b   : > { %4140 = vst [vmem:[%s4711_s25 + $0x1b20] sm:$0xff] %v3116_v13  ;;  %v1091_v13 = vld [vmem:[%s4676_s5 + $0x1bf8] sm:$0xff]  ;;  %v2116_v18 = vmul.f32 %v4683_v1, %v1090_v10  ;;  %v3140_v23 = vadd.f32 %v4688_v5, %v2114_v12 }
 0x39c   : > { %4141 = vst [vmem:[%s4711_s25 + $0x1b28] sm:$0xff] %v3117_v16  ;;  %v1092_v16 = vld [vmem:[%s4676_s5 + $0x1c00] sm:$0xff]  ;;  %v2117_v21 = vmul.f32 %v4683_v1, %v1091_v13  ;;  %v3141_v26 = vadd.f32 %v4688_v5, %v2115_v15 }
 0x39d   : > { %4142 = vst [vmem:[%s4711_s25 + $0x1b30] sm:$0xff] %v3118_v19  ;;  %v1093_v19 = vld [vmem:[%s4676_s5 + $0x1c08] sm:$0xff]  ;;  %v2118_v24 = vmul.f32 %v4683_v1, %v1092_v16  ;;  %v3142_v29 = vadd.f32 %v4688_v5, %v2116_v18 }
 0x39e   : > { %4143 = vst [vmem:[%s4711_s25 + $0x1b38] sm:$0xff] %v3119_v22  ;;  %v1094_v22 = vld [vmem:[%s4676_s5 + $0x1c10] sm:$0xff]  ;;  %v2119_v27 = vmul.f32 %v4683_v1, %v1093_v19  ;;  %v3143_v32 = vadd.f32 %v4688_v5, %v2117_v21 }
 0x39f   : > { %4144 = vst [vmem:[%s4711_s25 + $0x1b40] sm:$0xff] %v3120_v25  ;;  %v1095_v25 = vld [vmem:[%s4676_s5 + $0x1c18] sm:$0xff]  ;;  %v2120_v30 = vmul.f32 %v4683_v1, %v1094_v22  ;;  %v3144_v35 = vadd.f32 %v4688_v5, %v2118_v24 }
 0x3a0   : > { %4145 = vst [vmem:[%s4711_s25 + $0x1b48] sm:$0xff] %v3121_v28  ;;  %v1096_v28 = vld [vmem:[%s4676_s5 + $0x1c20] sm:$0xff]  ;;  %v2121_v33 = vmul.f32 %v4683_v1, %v1095_v25  ;;  %v3145_v38 = vadd.f32 %v4688_v5, %v2119_v27 }
 0x3a1   : > { %4146 = vst [vmem:[%s4711_s25 + $0x1b50] sm:$0xff] %v3122_v31  ;;  %v1097_v31 = vld [vmem:[%s4676_s5 + $0x1c28] sm:$0xff]  ;;  %v2122_v36 = vmul.f32 %v4683_v1, %v1096_v28  ;;  %v3146_v41 = vadd.f32 %v4688_v5, %v2120_v30 }
 0x3a2   : > { %4147 = vst [vmem:[%s4711_s25 + $0x1b58] sm:$0xff] %v3123_v34  ;;  %v1098_v34 = vld [vmem:[%s4676_s5 + $0x1c30] sm:$0xff]  ;;  %v2123_v39 = vmul.f32 %v4683_v1, %v1097_v31  ;;  %v3147_v44 = vadd.f32 %v4688_v5, %v2121_v33 }
 0x3a3   : > { %4148 = vst [vmem:[%s4711_s25 + $0x1b60] sm:$0xff] %v3124_v37  ;;  %v1099_v37 = vld [vmem:[%s4676_s5 + $0x1c38] sm:$0xff]  ;;  %v2124_v42 = vmul.f32 %v4683_v1, %v1098_v34  ;;  %v3148_v47 = vadd.f32 %v4688_v5, %v2122_v36 }
 0x3a4   : > { %4149 = vst [vmem:[%s4711_s25 + $0x1b68] sm:$0xff] %v3125_v40  ;;  %v1100_v40 = vld [vmem:[%s4676_s5 + $0x1c40] sm:$0xff]  ;;  %v2125_v45 = vmul.f32 %v4683_v1, %v1099_v37  ;;  %v3149_v50 = vadd.f32 %v4688_v5, %v2123_v39 }
 0x3a5   : > { %4150 = vst [vmem:[%s4711_s25 + $0x1b70] sm:$0xff] %v3126_v43  ;;  %v1101_v43 = vld [vmem:[%s4676_s5 + $0x1c48] sm:$0xff]  ;;  %v2126_v48 = vmul.f32 %v4683_v1, %v1100_v40  ;;  %v3150_v53 = vadd.f32 %v4688_v5, %v2124_v42 }
 0x3a6   : > { %4151 = vst [vmem:[%s4711_s25 + $0x1b78] sm:$0xff] %v3127_v46  ;;  %v1102_v46 = vld [vmem:[%s4676_s5 + $0x1c50] sm:$0xff]  ;;  %v2127_v51 = vmul.f32 %v4683_v1, %v1101_v43  ;;  %v3151_v56 = vadd.f32 %v4688_v5, %v2125_v45 }
 0x3a7   : > { %4152 = vst [vmem:[%s4711_s25 + $0x1b80] sm:$0xff] %v3128_v49  ;;  %v1103_v49 = vld [vmem:[%s4676_s5 + $0x1c58] sm:$0xff]  ;;  %v2128_v54 = vmul.f32 %v4683_v1, %v1102_v46  ;;  %v3152_v59 = vadd.f32 %v4688_v5, %v2126_v48 }
 0x3a8   : > { %4153 = vst [vmem:[%s4711_s25 + $0x1b88] sm:$0xff] %v3129_v52  ;;  %v1104_v52 = vld [vmem:[%s4676_s5 + $0x1c60] sm:$0xff]  ;;  %v2129_v57 = vmul.f32 %v4683_v1, %v1103_v49  ;;  %v3153_v62 = vadd.f32 %v4688_v5, %v2127_v51 }
 0x3a9   : > { %4154 = vst [vmem:[%s4711_s25 + $0x1b90] sm:$0xff] %v3130_v55  ;;  %v1105_v55 = vld [vmem:[%s4676_s5 + $0x1c68] sm:$0xff]  ;;  %v2130_v60 = vmul.f32 %v4683_v1, %v1104_v52  ;;  %v3154_v2 = vadd.f32 %v4688_v5, %v2128_v54 }
 0x3aa   : > { %4155 = vst [vmem:[%s4711_s25 + $0x1b98] sm:$0xff] %v3131_v58  ;;  %v1106_v58 = vld [vmem:[%s4676_s5 + $0x1c70] sm:$0xff]  ;;  %v2131_v63 = vmul.f32 %v4683_v1, %v1105_v55  ;;  %v3155_v6 = vadd.f32 %v4688_v5, %v2129_v57 }
 0x3ab   : > { %4156 = vst [vmem:[%s4711_s25 + $0x1ba0] sm:$0xff] %v3132_v61  ;;  %v1107_v61 = vld [vmem:[%s4676_s5 + $0x1c78] sm:$0xff]  ;;  %v2132_v3 = vmul.f32 %v4683_v1, %v1106_v58  ;;  %v3156_v9 = vadd.f32 %v4688_v5, %v2130_v60 }
 0x3ac   : > { %4157 = vst [vmem:[%s4711_s25 + $0x1ba8] sm:$0xff] %v3133_v0  ;;  %v1108_v0 = vld [vmem:[%s4676_s5 + $0x1c80] sm:$0xff]  ;;  %v2133_v7 = vmul.f32 %v4683_v1, %v1107_v61  ;;  %v3157_v12 = vadd.f32 %v4688_v5, %v2131_v63 }
 0x3ad   : > { %4158 = vst [vmem:[%s4711_s25 + $0x1bb0] sm:$0xff] %v3134_v4  ;;  %v1109_v4 = vld [vmem:[%s4676_s5 + $0x1c88] sm:$0xff]  ;;  %v2134_v10 = vmul.f32 %v4683_v1, %v1108_v0  ;;  %v3158_v15 = vadd.f32 %v4688_v5, %v2132_v3 }
 0x3ae   : > { %4159 = vst [vmem:[%s4711_s25 + $0x1bb8] sm:$0xff] %v3135_v8  ;;  %v1110_v8 = vld [vmem:[%s4676_s5 + $0x1c90] sm:$0xff]  ;;  %v2135_v13 = vmul.f32 %v4683_v1, %v1109_v4  ;;  %v3159_v18 = vadd.f32 %v4688_v5, %v2133_v7 }
 0x3af   : > { %4160 = vst [vmem:[%s4711_s25 + $0x1bc0] sm:$0xff] %v3136_v11  ;;  %v1111_v11 = vld [vmem:[%s4676_s5 + $0x1c98] sm:$0xff]  ;;  %v2136_v16 = vmul.f32 %v4683_v1, %v1110_v8  ;;  %v3160_v21 = vadd.f32 %v4688_v5, %v2134_v10 }
 0x3b0   : > { %4161 = vst [vmem:[%s4711_s25 + $0x1bc8] sm:$0xff] %v3137_v14  ;;  %v1112_v14 = vld [vmem:[%s4676_s5 + $0x1ca0] sm:$0xff]  ;;  %v2137_v19 = vmul.f32 %v4683_v1, %v1111_v11  ;;  %v3161_v24 = vadd.f32 %v4688_v5, %v2135_v13 }
 0x3b1   : > { %4162 = vst [vmem:[%s4711_s25 + $0x1bd0] sm:$0xff] %v3138_v17  ;;  %v1113_v17 = vld [vmem:[%s4676_s5 + $0x1ca8] sm:$0xff]  ;;  %v2138_v22 = vmul.f32 %v4683_v1, %v1112_v14  ;;  %v3162_v27 = vadd.f32 %v4688_v5, %v2136_v16 }
 0x3b2   : > { %4163 = vst [vmem:[%s4711_s25 + $0x1bd8] sm:$0xff] %v3139_v20  ;;  %v1114_v20 = vld [vmem:[%s4676_s5 + $0x1cb0] sm:$0xff]  ;;  %v2139_v25 = vmul.f32 %v4683_v1, %v1113_v17  ;;  %v3163_v30 = vadd.f32 %v4688_v5, %v2137_v19 }
 0x3b3   : > { %4164 = vst [vmem:[%s4711_s25 + $0x1be0] sm:$0xff] %v3140_v23  ;;  %v1115_v23 = vld [vmem:[%s4676_s5 + $0x1cb8] sm:$0xff]  ;;  %v2140_v28 = vmul.f32 %v4683_v1, %v1114_v20  ;;  %v3164_v33 = vadd.f32 %v4688_v5, %v2138_v22 }
 0x3b4   : > { %4165 = vst [vmem:[%s4711_s25 + $0x1be8] sm:$0xff] %v3141_v26  ;;  %v1116_v26 = vld [vmem:[%s4676_s5 + $0x1cc0] sm:$0xff]  ;;  %v2141_v31 = vmul.f32 %v4683_v1, %v1115_v23  ;;  %v3165_v36 = vadd.f32 %v4688_v5, %v2139_v25 }
 0x3b5   : > { %4166 = vst [vmem:[%s4711_s25 + $0x1bf0] sm:$0xff] %v3142_v29  ;;  %v1117_v29 = vld [vmem:[%s4676_s5 + $0x1cc8] sm:$0xff]  ;;  %v2142_v34 = vmul.f32 %v4683_v1, %v1116_v26  ;;  %v3166_v39 = vadd.f32 %v4688_v5, %v2140_v28 }
 0x3b6   : > { %4167 = vst [vmem:[%s4711_s25 + $0x1bf8] sm:$0xff] %v3143_v32  ;;  %v1118_v32 = vld [vmem:[%s4676_s5 + $0x1cd0] sm:$0xff]  ;;  %v2143_v37 = vmul.f32 %v4683_v1, %v1117_v29  ;;  %v3167_v42 = vadd.f32 %v4688_v5, %v2141_v31 }
 0x3b7   : > { %4168 = vst [vmem:[%s4711_s25 + $0x1c00] sm:$0xff] %v3144_v35  ;;  %v1119_v35 = vld [vmem:[%s4676_s5 + $0x1cd8] sm:$0xff]  ;;  %v2144_v40 = vmul.f32 %v4683_v1, %v1118_v32  ;;  %v3168_v45 = vadd.f32 %v4688_v5, %v2142_v34 }
 0x3b8   : > { %4169 = vst [vmem:[%s4711_s25 + $0x1c08] sm:$0xff] %v3145_v38  ;;  %v1120_v38 = vld [vmem:[%s4676_s5 + $0x1ce0] sm:$0xff]  ;;  %v2145_v43 = vmul.f32 %v4683_v1, %v1119_v35  ;;  %v3169_v48 = vadd.f32 %v4688_v5, %v2143_v37 }
 0x3b9   : > { %4170 = vst [vmem:[%s4711_s25 + $0x1c10] sm:$0xff] %v3146_v41  ;;  %v1121_v41 = vld [vmem:[%s4676_s5 + $0x1ce8] sm:$0xff]  ;;  %v2146_v46 = vmul.f32 %v4683_v1, %v1120_v38  ;;  %v3170_v51 = vadd.f32 %v4688_v5, %v2144_v40 }
 0x3ba   : > { %4171 = vst [vmem:[%s4711_s25 + $0x1c18] sm:$0xff] %v3147_v44  ;;  %v1122_v44 = vld [vmem:[%s4676_s5 + $0x1cf0] sm:$0xff]  ;;  %v2147_v49 = vmul.f32 %v4683_v1, %v1121_v41  ;;  %v3171_v54 = vadd.f32 %v4688_v5, %v2145_v43 }
 0x3bb   : > { %4172 = vst [vmem:[%s4711_s25 + $0x1c20] sm:$0xff] %v3148_v47  ;;  %v1123_v47 = vld [vmem:[%s4676_s5 + $0x1cf8] sm:$0xff]  ;;  %v2148_v52 = vmul.f32 %v4683_v1, %v1122_v44  ;;  %v3172_v57 = vadd.f32 %v4688_v5, %v2146_v46 }
 0x3bc   : > { %4173 = vst [vmem:[%s4711_s25 + $0x1c28] sm:$0xff] %v3149_v50  ;;  %v1124_v50 = vld [vmem:[%s4676_s5 + $0x1d00] sm:$0xff]  ;;  %v2149_v55 = vmul.f32 %v4683_v1, %v1123_v47  ;;  %v3173_v60 = vadd.f32 %v4688_v5, %v2147_v49 }
 0x3bd   : > { %4174 = vst [vmem:[%s4711_s25 + $0x1c30] sm:$0xff] %v3150_v53  ;;  %v1125_v53 = vld [vmem:[%s4676_s5 + $0x1d08] sm:$0xff]  ;;  %v2150_v58 = vmul.f32 %v4683_v1, %v1124_v50  ;;  %v3174_v63 = vadd.f32 %v4688_v5, %v2148_v52 }
 0x3be   : > { %4175 = vst [vmem:[%s4711_s25 + $0x1c38] sm:$0xff] %v3151_v56  ;;  %v1126_v56 = vld [vmem:[%s4676_s5 + $0x1d10] sm:$0xff]  ;;  %v2151_v61 = vmul.f32 %v4683_v1, %v1125_v53  ;;  %v3175_v3 = vadd.f32 %v4688_v5, %v2149_v55 }
 0x3bf   : > { %4176 = vst [vmem:[%s4711_s25 + $0x1c40] sm:$0xff] %v3152_v59  ;;  %v1127_v59 = vld [vmem:[%s4676_s5 + $0x1d18] sm:$0xff]  ;;  %v2152_v0 = vmul.f32 %v4683_v1, %v1126_v56  ;;  %v3176_v7 = vadd.f32 %v4688_v5, %v2150_v58 }
 0x3c0   : > { %4177 = vst [vmem:[%s4711_s25 + $0x1c48] sm:$0xff] %v3153_v62  ;;  %v1128_v62 = vld [vmem:[%s4676_s5 + $0x1d20] sm:$0xff]  ;;  %v2153_v4 = vmul.f32 %v4683_v1, %v1127_v59  ;;  %v3177_v10 = vadd.f32 %v4688_v5, %v2151_v61 }
 0x3c1   : > { %4178 = vst [vmem:[%s4711_s25 + $0x1c50] sm:$0xff] %v3154_v2  ;;  %v1129_v2 = vld [vmem:[%s4676_s5 + $0x1d28] sm:$0xff]  ;;  %v2154_v8 = vmul.f32 %v4683_v1, %v1128_v62  ;;  %v3178_v13 = vadd.f32 %v4688_v5, %v2152_v0 }
 0x3c2   : > { %4179 = vst [vmem:[%s4711_s25 + $0x1c58] sm:$0xff] %v3155_v6  ;;  %v1130_v6 = vld [vmem:[%s4676_s5 + $0x1d30] sm:$0xff]  ;;  %v2155_v11 = vmul.f32 %v4683_v1, %v1129_v2  ;;  %v3179_v16 = vadd.f32 %v4688_v5, %v2153_v4 }
 0x3c3   : > { %4180 = vst [vmem:[%s4711_s25 + $0x1c60] sm:$0xff] %v3156_v9  ;;  %v1131_v9 = vld [vmem:[%s4676_s5 + $0x1d38] sm:$0xff]  ;;  %v2156_v14 = vmul.f32 %v4683_v1, %v1130_v6  ;;  %v3180_v19 = vadd.f32 %v4688_v5, %v2154_v8 }
 0x3c4   : > { %4181 = vst [vmem:[%s4711_s25 + $0x1c68] sm:$0xff] %v3157_v12  ;;  %v1132_v12 = vld [vmem:[%s4676_s5 + $0x1d40] sm:$0xff]  ;;  %v2157_v17 = vmul.f32 %v4683_v1, %v1131_v9  ;;  %v3181_v22 = vadd.f32 %v4688_v5, %v2155_v11 }
 0x3c5   : > { %4182 = vst [vmem:[%s4711_s25 + $0x1c70] sm:$0xff] %v3158_v15  ;;  %v1133_v15 = vld [vmem:[%s4676_s5 + $0x1d48] sm:$0xff]  ;;  %v2158_v20 = vmul.f32 %v4683_v1, %v1132_v12  ;;  %v3182_v25 = vadd.f32 %v4688_v5, %v2156_v14 }
 0x3c6   : > { %4183 = vst [vmem:[%s4711_s25 + $0x1c78] sm:$0xff] %v3159_v18  ;;  %v1134_v18 = vld [vmem:[%s4676_s5 + $0x1d50] sm:$0xff]  ;;  %v2159_v23 = vmul.f32 %v4683_v1, %v1133_v15  ;;  %v3183_v28 = vadd.f32 %v4688_v5, %v2157_v17 }
 0x3c7   : > { %4184 = vst [vmem:[%s4711_s25 + $0x1c80] sm:$0xff] %v3160_v21  ;;  %v1135_v21 = vld [vmem:[%s4676_s5 + $0x1d58] sm:$0xff]  ;;  %v2160_v26 = vmul.f32 %v4683_v1, %v1134_v18  ;;  %v3184_v31 = vadd.f32 %v4688_v5, %v2158_v20 }
 0x3c8   : > { %4185 = vst [vmem:[%s4711_s25 + $0x1c88] sm:$0xff] %v3161_v24  ;;  %v1136_v24 = vld [vmem:[%s4676_s5 + $0x1d60] sm:$0xff]  ;;  %v2161_v29 = vmul.f32 %v4683_v1, %v1135_v21  ;;  %v3185_v34 = vadd.f32 %v4688_v5, %v2159_v23 }
 0x3c9   : > { %4186 = vst [vmem:[%s4711_s25 + $0x1c90] sm:$0xff] %v3162_v27  ;;  %v1137_v27 = vld [vmem:[%s4676_s5 + $0x1d68] sm:$0xff]  ;;  %v2162_v32 = vmul.f32 %v4683_v1, %v1136_v24  ;;  %v3186_v37 = vadd.f32 %v4688_v5, %v2160_v26 }
 0x3ca   : > { %4187 = vst [vmem:[%s4711_s25 + $0x1c98] sm:$0xff] %v3163_v30  ;;  %v1138_v30 = vld [vmem:[%s4676_s5 + $0x1d70] sm:$0xff]  ;;  %v2163_v35 = vmul.f32 %v4683_v1, %v1137_v27  ;;  %v3187_v40 = vadd.f32 %v4688_v5, %v2161_v29 }
 0x3cb   : > { %4188 = vst [vmem:[%s4711_s25 + $0x1ca0] sm:$0xff] %v3164_v33  ;;  %v1139_v33 = vld [vmem:[%s4676_s5 + $0x1d78] sm:$0xff]  ;;  %v2164_v38 = vmul.f32 %v4683_v1, %v1138_v30  ;;  %v3188_v43 = vadd.f32 %v4688_v5, %v2162_v32 }
 0x3cc   : > { %4189 = vst [vmem:[%s4711_s25 + $0x1ca8] sm:$0xff] %v3165_v36  ;;  %v1140_v36 = vld [vmem:[%s4676_s5 + $0x1d80] sm:$0xff]  ;;  %v2165_v41 = vmul.f32 %v4683_v1, %v1139_v33  ;;  %v3189_v46 = vadd.f32 %v4688_v5, %v2163_v35 }
 0x3cd   : > { %4190 = vst [vmem:[%s4711_s25 + $0x1cb0] sm:$0xff] %v3166_v39  ;;  %v1141_v39 = vld [vmem:[%s4676_s5 + $0x1d88] sm:$0xff]  ;;  %v2166_v44 = vmul.f32 %v4683_v1, %v1140_v36  ;;  %v3190_v49 = vadd.f32 %v4688_v5, %v2164_v38 }
 0x3ce   : > { %4191 = vst [vmem:[%s4711_s25 + $0x1cb8] sm:$0xff] %v3167_v42  ;;  %v1142_v42 = vld [vmem:[%s4676_s5 + $0x1d90] sm:$0xff]  ;;  %v2167_v47 = vmul.f32 %v4683_v1, %v1141_v39  ;;  %v3191_v52 = vadd.f32 %v4688_v5, %v2165_v41 }
 0x3cf   : > { %4192 = vst [vmem:[%s4711_s25 + $0x1cc0] sm:$0xff] %v3168_v45  ;;  %v1143_v45 = vld [vmem:[%s4676_s5 + $0x1d98] sm:$0xff]  ;;  %v2168_v50 = vmul.f32 %v4683_v1, %v1142_v42  ;;  %v3192_v55 = vadd.f32 %v4688_v5, %v2166_v44 }
 0x3d0   : > { %4193 = vst [vmem:[%s4711_s25 + $0x1cc8] sm:$0xff] %v3169_v48  ;;  %v1144_v48 = vld [vmem:[%s4676_s5 + $0x1da0] sm:$0xff]  ;;  %v2169_v53 = vmul.f32 %v4683_v1, %v1143_v45  ;;  %v3193_v58 = vadd.f32 %v4688_v5, %v2167_v47 }
 0x3d1   : > { %4194 = vst [vmem:[%s4711_s25 + $0x1cd0] sm:$0xff] %v3170_v51  ;;  %v1145_v51 = vld [vmem:[%s4676_s5 + $0x1da8] sm:$0xff]  ;;  %v2170_v56 = vmul.f32 %v4683_v1, %v1144_v48  ;;  %v3194_v61 = vadd.f32 %v4688_v5, %v2168_v50 }
 0x3d2   : > { %4195 = vst [vmem:[%s4711_s25 + $0x1cd8] sm:$0xff] %v3171_v54  ;;  %v1146_v54 = vld [vmem:[%s4676_s5 + $0x1db0] sm:$0xff]  ;;  %v2171_v59 = vmul.f32 %v4683_v1, %v1145_v51  ;;  %v3195_v0 = vadd.f32 %v4688_v5, %v2169_v53 }
 0x3d3   : > { %4196 = vst [vmem:[%s4711_s25 + $0x1ce0] sm:$0xff] %v3172_v57  ;;  %v1147_v57 = vld [vmem:[%s4676_s5 + $0x1db8] sm:$0xff]  ;;  %v2172_v62 = vmul.f32 %v4683_v1, %v1146_v54  ;;  %v3196_v4 = vadd.f32 %v4688_v5, %v2170_v56 }
 0x3d4   : > { %4197 = vst [vmem:[%s4711_s25 + $0x1ce8] sm:$0xff] %v3173_v60  ;;  %v1148_v60 = vld [vmem:[%s4676_s5 + $0x1dc0] sm:$0xff]  ;;  %v2173_v2 = vmul.f32 %v4683_v1, %v1147_v57  ;;  %v3197_v8 = vadd.f32 %v4688_v5, %v2171_v59 }
 0x3d5   : > { %4198 = vst [vmem:[%s4711_s25 + $0x1cf0] sm:$0xff] %v3174_v63  ;;  %v1149_v63 = vld [vmem:[%s4676_s5 + $0x1dc8] sm:$0xff]  ;;  %v2174_v6 = vmul.f32 %v4683_v1, %v1148_v60  ;;  %v3198_v11 = vadd.f32 %v4688_v5, %v2172_v62 }
 0x3d6   : > { %4199 = vst [vmem:[%s4711_s25 + $0x1cf8] sm:$0xff] %v3175_v3  ;;  %v1150_v3 = vld [vmem:[%s4676_s5 + $0x1dd0] sm:$0xff]  ;;  %v2175_v9 = vmul.f32 %v4683_v1, %v1149_v63  ;;  %v3199_v14 = vadd.f32 %v4688_v5, %v2173_v2 }
 0x3d7   : > { %4200 = vst [vmem:[%s4711_s25 + $0x1d00] sm:$0xff] %v3176_v7  ;;  %v1151_v7 = vld [vmem:[%s4676_s5 + $0x1dd8] sm:$0xff]  ;;  %v2176_v12 = vmul.f32 %v4683_v1, %v1150_v3  ;;  %v3200_v17 = vadd.f32 %v4688_v5, %v2174_v6 }
 0x3d8   : > { %4201 = vst [vmem:[%s4711_s25 + $0x1d08] sm:$0xff] %v3177_v10  ;;  %v1152_v10 = vld [vmem:[%s4676_s5 + $0x1de0] sm:$0xff]  ;;  %v2177_v15 = vmul.f32 %v4683_v1, %v1151_v7  ;;  %v3201_v20 = vadd.f32 %v4688_v5, %v2175_v9 }
 0x3d9   : > { %4202 = vst [vmem:[%s4711_s25 + $0x1d10] sm:$0xff] %v3178_v13  ;;  %v1153_v13 = vld [vmem:[%s4676_s5 + $0x1de8] sm:$0xff]  ;;  %v2178_v18 = vmul.f32 %v4683_v1, %v1152_v10  ;;  %v3202_v23 = vadd.f32 %v4688_v5, %v2176_v12 }
 0x3da   : > { %4203 = vst [vmem:[%s4711_s25 + $0x1d18] sm:$0xff] %v3179_v16  ;;  %v1154_v16 = vld [vmem:[%s4676_s5 + $0x1df0] sm:$0xff]  ;;  %v2179_v21 = vmul.f32 %v4683_v1, %v1153_v13  ;;  %v3203_v26 = vadd.f32 %v4688_v5, %v2177_v15 }
 0x3db   : > { %4204 = vst [vmem:[%s4711_s25 + $0x1d20] sm:$0xff] %v3180_v19  ;;  %v1155_v19 = vld [vmem:[%s4676_s5 + $0x1df8] sm:$0xff]  ;;  %v2180_v24 = vmul.f32 %v4683_v1, %v1154_v16  ;;  %v3204_v29 = vadd.f32 %v4688_v5, %v2178_v18 }
 0x3dc   : > { %4205 = vst [vmem:[%s4711_s25 + $0x1d28] sm:$0xff] %v3181_v22  ;;  %v1156_v22 = vld [vmem:[%s4676_s5 + $0x1e00] sm:$0xff]  ;;  %v2181_v27 = vmul.f32 %v4683_v1, %v1155_v19  ;;  %v3205_v32 = vadd.f32 %v4688_v5, %v2179_v21 }
 0x3dd   : > { %4206 = vst [vmem:[%s4711_s25 + $0x1d30] sm:$0xff] %v3182_v25  ;;  %v1157_v25 = vld [vmem:[%s4676_s5 + $0x1e08] sm:$0xff]  ;;  %v2182_v30 = vmul.f32 %v4683_v1, %v1156_v22  ;;  %v3206_v35 = vadd.f32 %v4688_v5, %v2180_v24 }
 0x3de   : > { %4207 = vst [vmem:[%s4711_s25 + $0x1d38] sm:$0xff] %v3183_v28  ;;  %v1158_v28 = vld [vmem:[%s4676_s5 + $0x1e10] sm:$0xff]  ;;  %v2183_v33 = vmul.f32 %v4683_v1, %v1157_v25  ;;  %v3207_v38 = vadd.f32 %v4688_v5, %v2181_v27 }
 0x3df   : > { %4208 = vst [vmem:[%s4711_s25 + $0x1d40] sm:$0xff] %v3184_v31  ;;  %v1159_v31 = vld [vmem:[%s4676_s5 + $0x1e18] sm:$0xff]  ;;  %v2184_v36 = vmul.f32 %v4683_v1, %v1158_v28  ;;  %v3208_v41 = vadd.f32 %v4688_v5, %v2182_v30 }
 0x3e0   : > { %4209 = vst [vmem:[%s4711_s25 + $0x1d48] sm:$0xff] %v3185_v34  ;;  %v1160_v34 = vld [vmem:[%s4676_s5 + $0x1e20] sm:$0xff]  ;;  %v2185_v39 = vmul.f32 %v4683_v1, %v1159_v31  ;;  %v3209_v44 = vadd.f32 %v4688_v5, %v2183_v33 }
 0x3e1   : > { %4210 = vst [vmem:[%s4711_s25 + $0x1d50] sm:$0xff] %v3186_v37  ;;  %v1161_v37 = vld [vmem:[%s4676_s5 + $0x1e28] sm:$0xff]  ;;  %v2186_v42 = vmul.f32 %v4683_v1, %v1160_v34  ;;  %v3210_v47 = vadd.f32 %v4688_v5, %v2184_v36 }
 0x3e2   : > { %4211 = vst [vmem:[%s4711_s25 + $0x1d58] sm:$0xff] %v3187_v40  ;;  %v1162_v40 = vld [vmem:[%s4676_s5 + $0x1e30] sm:$0xff]  ;;  %v2187_v45 = vmul.f32 %v4683_v1, %v1161_v37  ;;  %v3211_v50 = vadd.f32 %v4688_v5, %v2185_v39 }
 0x3e3   : > { %4212 = vst [vmem:[%s4711_s25 + $0x1d60] sm:$0xff] %v3188_v43  ;;  %v1163_v43 = vld [vmem:[%s4676_s5 + $0x1e38] sm:$0xff]  ;;  %v2188_v48 = vmul.f32 %v4683_v1, %v1162_v40  ;;  %v3212_v53 = vadd.f32 %v4688_v5, %v2186_v42 }
 0x3e4   : > { %4213 = vst [vmem:[%s4711_s25 + $0x1d68] sm:$0xff] %v3189_v46  ;;  %v1164_v46 = vld [vmem:[%s4676_s5 + $0x1e40] sm:$0xff]  ;;  %v2189_v51 = vmul.f32 %v4683_v1, %v1163_v43  ;;  %v3213_v56 = vadd.f32 %v4688_v5, %v2187_v45 }
 0x3e5   : > { %4214 = vst [vmem:[%s4711_s25 + $0x1d70] sm:$0xff] %v3190_v49  ;;  %v1165_v49 = vld [vmem:[%s4676_s5 + $0x1e48] sm:$0xff]  ;;  %v2190_v54 = vmul.f32 %v4683_v1, %v1164_v46  ;;  %v3214_v59 = vadd.f32 %v4688_v5, %v2188_v48 }
 0x3e6   : > { %4215 = vst [vmem:[%s4711_s25 + $0x1d78] sm:$0xff] %v3191_v52  ;;  %v1166_v52 = vld [vmem:[%s4676_s5 + $0x1e50] sm:$0xff]  ;;  %v2191_v57 = vmul.f32 %v4683_v1, %v1165_v49  ;;  %v3215_v62 = vadd.f32 %v4688_v5, %v2189_v51 }
 0x3e7   : > { %4216 = vst [vmem:[%s4711_s25 + $0x1d80] sm:$0xff] %v3192_v55  ;;  %v1167_v55 = vld [vmem:[%s4676_s5 + $0x1e58] sm:$0xff]  ;;  %v2192_v60 = vmul.f32 %v4683_v1, %v1166_v52  ;;  %v3216_v2 = vadd.f32 %v4688_v5, %v2190_v54 }
 0x3e8   : > { %4217 = vst [vmem:[%s4711_s25 + $0x1d88] sm:$0xff] %v3193_v58  ;;  %v1168_v58 = vld [vmem:[%s4676_s5 + $0x1e60] sm:$0xff]  ;;  %v2193_v63 = vmul.f32 %v4683_v1, %v1167_v55  ;;  %v3217_v6 = vadd.f32 %v4688_v5, %v2191_v57 }
 0x3e9   : > { %4218 = vst [vmem:[%s4711_s25 + $0x1d90] sm:$0xff] %v3194_v61  ;;  %v1169_v61 = vld [vmem:[%s4676_s5 + $0x1e68] sm:$0xff]  ;;  %v2194_v3 = vmul.f32 %v4683_v1, %v1168_v58  ;;  %v3218_v9 = vadd.f32 %v4688_v5, %v2192_v60 }
 0x3ea   : > { %4219 = vst [vmem:[%s4711_s25 + $0x1d98] sm:$0xff] %v3195_v0  ;;  %v1170_v0 = vld [vmem:[%s4676_s5 + $0x1e70] sm:$0xff]  ;;  %v2195_v7 = vmul.f32 %v4683_v1, %v1169_v61  ;;  %v3219_v12 = vadd.f32 %v4688_v5, %v2193_v63 }
 0x3eb   : > { %4220 = vst [vmem:[%s4711_s25 + $0x1da0] sm:$0xff] %v3196_v4  ;;  %v1171_v4 = vld [vmem:[%s4676_s5 + $0x1e78] sm:$0xff]  ;;  %v2196_v10 = vmul.f32 %v4683_v1, %v1170_v0  ;;  %v3220_v15 = vadd.f32 %v4688_v5, %v2194_v3 }
 0x3ec   : > { %4221 = vst [vmem:[%s4711_s25 + $0x1da8] sm:$0xff] %v3197_v8  ;;  %v1172_v8 = vld [vmem:[%s4676_s5 + $0x1e80] sm:$0xff]  ;;  %v2197_v13 = vmul.f32 %v4683_v1, %v1171_v4  ;;  %v3221_v18 = vadd.f32 %v4688_v5, %v2195_v7 }
 0x3ed   : > { %4222 = vst [vmem:[%s4711_s25 + $0x1db0] sm:$0xff] %v3198_v11  ;;  %v1173_v11 = vld [vmem:[%s4676_s5 + $0x1e88] sm:$0xff]  ;;  %v2198_v16 = vmul.f32 %v4683_v1, %v1172_v8  ;;  %v3222_v21 = vadd.f32 %v4688_v5, %v2196_v10 }
 0x3ee   : > { %4223 = vst [vmem:[%s4711_s25 + $0x1db8] sm:$0xff] %v3199_v14  ;;  %v1174_v14 = vld [vmem:[%s4676_s5 + $0x1e90] sm:$0xff]  ;;  %v2199_v19 = vmul.f32 %v4683_v1, %v1173_v11  ;;  %v3223_v24 = vadd.f32 %v4688_v5, %v2197_v13 }
 0x3ef   : > { %4224 = vst [vmem:[%s4711_s25 + $0x1dc0] sm:$0xff] %v3200_v17  ;;  %v1175_v17 = vld [vmem:[%s4676_s5 + $0x1e98] sm:$0xff]  ;;  %v2200_v22 = vmul.f32 %v4683_v1, %v1174_v14  ;;  %v3224_v27 = vadd.f32 %v4688_v5, %v2198_v16 }
 0x3f0   : > { %4225 = vst [vmem:[%s4711_s25 + $0x1dc8] sm:$0xff] %v3201_v20  ;;  %v1176_v20 = vld [vmem:[%s4676_s5 + $0x1ea0] sm:$0xff]  ;;  %v2201_v25 = vmul.f32 %v4683_v1, %v1175_v17  ;;  %v3225_v30 = vadd.f32 %v4688_v5, %v2199_v19 }
 0x3f1   : > { %4226 = vst [vmem:[%s4711_s25 + $0x1dd0] sm:$0xff] %v3202_v23  ;;  %v1177_v23 = vld [vmem:[%s4676_s5 + $0x1ea8] sm:$0xff]  ;;  %v2202_v28 = vmul.f32 %v4683_v1, %v1176_v20  ;;  %v3226_v33 = vadd.f32 %v4688_v5, %v2200_v22 }
 0x3f2   : > { %4227 = vst [vmem:[%s4711_s25 + $0x1dd8] sm:$0xff] %v3203_v26  ;;  %v1178_v26 = vld [vmem:[%s4676_s5 + $0x1eb0] sm:$0xff]  ;;  %v2203_v31 = vmul.f32 %v4683_v1, %v1177_v23  ;;  %v3227_v36 = vadd.f32 %v4688_v5, %v2201_v25 }
 0x3f3   : > { %4228 = vst [vmem:[%s4711_s25 + $0x1de0] sm:$0xff] %v3204_v29  ;;  %v1179_v29 = vld [vmem:[%s4676_s5 + $0x1eb8] sm:$0xff]  ;;  %v2204_v34 = vmul.f32 %v4683_v1, %v1178_v26  ;;  %v3228_v39 = vadd.f32 %v4688_v5, %v2202_v28 }
 0x3f4   : > { %4229 = vst [vmem:[%s4711_s25 + $0x1de8] sm:$0xff] %v3205_v32  ;;  %v1180_v32 = vld [vmem:[%s4676_s5 + $0x1ec0] sm:$0xff]  ;;  %v2205_v37 = vmul.f32 %v4683_v1, %v1179_v29  ;;  %v3229_v42 = vadd.f32 %v4688_v5, %v2203_v31 }
 0x3f5   : > { %4230 = vst [vmem:[%s4711_s25 + $0x1df0] sm:$0xff] %v3206_v35  ;;  %v1181_v35 = vld [vmem:[%s4676_s5 + $0x1ec8] sm:$0xff]  ;;  %v2206_v40 = vmul.f32 %v4683_v1, %v1180_v32  ;;  %v3230_v45 = vadd.f32 %v4688_v5, %v2204_v34 }
 0x3f6   : > { %4231 = vst [vmem:[%s4711_s25 + $0x1df8] sm:$0xff] %v3207_v38  ;;  %v1182_v38 = vld [vmem:[%s4676_s5 + $0x1ed0] sm:$0xff]  ;;  %v2207_v43 = vmul.f32 %v4683_v1, %v1181_v35  ;;  %v3231_v48 = vadd.f32 %v4688_v5, %v2205_v37 }
 0x3f7   : > { %4232 = vst [vmem:[%s4711_s25 + $0x1e00] sm:$0xff] %v3208_v41  ;;  %v1183_v41 = vld [vmem:[%s4676_s5 + $0x1ed8] sm:$0xff]  ;;  %v2208_v46 = vmul.f32 %v4683_v1, %v1182_v38  ;;  %v3232_v51 = vadd.f32 %v4688_v5, %v2206_v40 }
 0x3f8   : > { %4233 = vst [vmem:[%s4711_s25 + $0x1e08] sm:$0xff] %v3209_v44  ;;  %v1184_v44 = vld [vmem:[%s4676_s5 + $0x1ee0] sm:$0xff]  ;;  %v2209_v49 = vmul.f32 %v4683_v1, %v1183_v41  ;;  %v3233_v54 = vadd.f32 %v4688_v5, %v2207_v43 }
 0x3f9   : > { %4234 = vst [vmem:[%s4711_s25 + $0x1e10] sm:$0xff] %v3210_v47  ;;  %v1185_v47 = vld [vmem:[%s4676_s5 + $0x1ee8] sm:$0xff]  ;;  %v2210_v52 = vmul.f32 %v4683_v1, %v1184_v44  ;;  %v3234_v57 = vadd.f32 %v4688_v5, %v2208_v46 }
 0x3fa   : > { %4235 = vst [vmem:[%s4711_s25 + $0x1e18] sm:$0xff] %v3211_v50  ;;  %v1186_v50 = vld [vmem:[%s4676_s5 + $0x1ef0] sm:$0xff]  ;;  %v2211_v55 = vmul.f32 %v4683_v1, %v1185_v47  ;;  %v3235_v60 = vadd.f32 %v4688_v5, %v2209_v49 }
 0x3fb   : > { %4236 = vst [vmem:[%s4711_s25 + $0x1e20] sm:$0xff] %v3212_v53  ;;  %v1187_v53 = vld [vmem:[%s4676_s5 + $0x1ef8] sm:$0xff]  ;;  %v2212_v58 = vmul.f32 %v4683_v1, %v1186_v50  ;;  %v3236_v63 = vadd.f32 %v4688_v5, %v2210_v52 }
 0x3fc   : > { %4237 = vst [vmem:[%s4711_s25 + $0x1e28] sm:$0xff] %v3213_v56  ;;  %v1188_v56 = vld [vmem:[%s4676_s5 + $0x1f00] sm:$0xff]  ;;  %v2213_v61 = vmul.f32 %v4683_v1, %v1187_v53  ;;  %v3237_v3 = vadd.f32 %v4688_v5, %v2211_v55 }
 0x3fd   : > { %4238 = vst [vmem:[%s4711_s25 + $0x1e30] sm:$0xff] %v3214_v59  ;;  %v1189_v59 = vld [vmem:[%s4676_s5 + $0x1f08] sm:$0xff]  ;;  %v2214_v0 = vmul.f32 %v4683_v1, %v1188_v56  ;;  %v3238_v7 = vadd.f32 %v4688_v5, %v2212_v58 }
 0x3fe   : > { %4239 = vst [vmem:[%s4711_s25 + $0x1e38] sm:$0xff] %v3215_v62  ;;  %v1190_v62 = vld [vmem:[%s4676_s5 + $0x1f10] sm:$0xff]  ;;  %v2215_v4 = vmul.f32 %v4683_v1, %v1189_v59  ;;  %v3239_v10 = vadd.f32 %v4688_v5, %v2213_v61 }
 0x3ff   : > { %4240 = vst [vmem:[%s4711_s25 + $0x1e40] sm:$0xff] %v3216_v2  ;;  %v1191_v2 = vld [vmem:[%s4676_s5 + $0x1f18] sm:$0xff]  ;;  %v2216_v8 = vmul.f32 %v4683_v1, %v1190_v62  ;;  %v3240_v13 = vadd.f32 %v4688_v5, %v2214_v0 }
 0x400   : > { %4241 = vst [vmem:[%s4711_s25 + $0x1e48] sm:$0xff] %v3217_v6  ;;  %v1192_v6 = vld [vmem:[%s4676_s5 + $0x1f20] sm:$0xff]  ;;  %v2217_v11 = vmul.f32 %v4683_v1, %v1191_v2  ;;  %v3241_v16 = vadd.f32 %v4688_v5, %v2215_v4 }
 0x401   : > { %4242 = vst [vmem:[%s4711_s25 + $0x1e50] sm:$0xff] %v3218_v9  ;;  %v1193_v9 = vld [vmem:[%s4676_s5 + $0x1f28] sm:$0xff]  ;;  %v2218_v14 = vmul.f32 %v4683_v1, %v1192_v6  ;;  %v3242_v19 = vadd.f32 %v4688_v5, %v2216_v8 }
 0x402   : > { %4243 = vst [vmem:[%s4711_s25 + $0x1e58] sm:$0xff] %v3219_v12  ;;  %v1194_v12 = vld [vmem:[%s4676_s5 + $0x1f30] sm:$0xff]  ;;  %v2219_v17 = vmul.f32 %v4683_v1, %v1193_v9  ;;  %v3243_v22 = vadd.f32 %v4688_v5, %v2217_v11 }
 0x403   : > { %4244 = vst [vmem:[%s4711_s25 + $0x1e60] sm:$0xff] %v3220_v15  ;;  %v1195_v15 = vld [vmem:[%s4676_s5 + $0x1f38] sm:$0xff]  ;;  %v2220_v20 = vmul.f32 %v4683_v1, %v1194_v12  ;;  %v3244_v25 = vadd.f32 %v4688_v5, %v2218_v14 }
 0x404   : > { %4245 = vst [vmem:[%s4711_s25 + $0x1e68] sm:$0xff] %v3221_v18  ;;  %v1196_v18 = vld [vmem:[%s4676_s5 + $0x1f40] sm:$0xff]  ;;  %v2221_v23 = vmul.f32 %v4683_v1, %v1195_v15  ;;  %v3245_v28 = vadd.f32 %v4688_v5, %v2219_v17 }
 0x405   : > { %4246 = vst [vmem:[%s4711_s25 + $0x1e70] sm:$0xff] %v3222_v21  ;;  %v1197_v21 = vld [vmem:[%s4676_s5 + $0x1f48] sm:$0xff]  ;;  %v2222_v26 = vmul.f32 %v4683_v1, %v1196_v18  ;;  %v3246_v31 = vadd.f32 %v4688_v5, %v2220_v20 }
 0x406   : > { %4247 = vst [vmem:[%s4711_s25 + $0x1e78] sm:$0xff] %v3223_v24  ;;  %v1198_v24 = vld [vmem:[%s4676_s5 + $0x1f50] sm:$0xff]  ;;  %v2223_v29 = vmul.f32 %v4683_v1, %v1197_v21  ;;  %v3247_v34 = vadd.f32 %v4688_v5, %v2221_v23 }
 0x407   : > { %4248 = vst [vmem:[%s4711_s25 + $0x1e80] sm:$0xff] %v3224_v27  ;;  %v1199_v27 = vld [vmem:[%s4676_s5 + $0x1f58] sm:$0xff]  ;;  %v2224_v32 = vmul.f32 %v4683_v1, %v1198_v24  ;;  %v3248_v37 = vadd.f32 %v4688_v5, %v2222_v26 }
 0x408   : > { %4249 = vst [vmem:[%s4711_s25 + $0x1e88] sm:$0xff] %v3225_v30  ;;  %v1200_v30 = vld [vmem:[%s4676_s5 + $0x1f60] sm:$0xff]  ;;  %v2225_v35 = vmul.f32 %v4683_v1, %v1199_v27  ;;  %v3249_v40 = vadd.f32 %v4688_v5, %v2223_v29 }
 0x409   : > { %4250 = vst [vmem:[%s4711_s25 + $0x1e90] sm:$0xff] %v3226_v33  ;;  %v1201_v33 = vld [vmem:[%s4676_s5 + $0x1f68] sm:$0xff]  ;;  %v2226_v38 = vmul.f32 %v4683_v1, %v1200_v30  ;;  %v3250_v43 = vadd.f32 %v4688_v5, %v2224_v32 }
 0x40a   : > { %4251 = vst [vmem:[%s4711_s25 + $0x1e98] sm:$0xff] %v3227_v36  ;;  %v1202_v36 = vld [vmem:[%s4676_s5 + $0x1f70] sm:$0xff]  ;;  %v2227_v41 = vmul.f32 %v4683_v1, %v1201_v33  ;;  %v3251_v46 = vadd.f32 %v4688_v5, %v2225_v35 }
 0x40b   : > { %4252 = vst [vmem:[%s4711_s25 + $0x1ea0] sm:$0xff] %v3228_v39  ;;  %v1203_v39 = vld [vmem:[%s4676_s5 + $0x1f78] sm:$0xff]  ;;  %v2228_v44 = vmul.f32 %v4683_v1, %v1202_v36  ;;  %v3252_v49 = vadd.f32 %v4688_v5, %v2226_v38 }
 0x40c   : > { %4253 = vst [vmem:[%s4711_s25 + $0x1ea8] sm:$0xff] %v3229_v42  ;;  %v1204_v42 = vld [vmem:[%s4676_s5 + $0x1f80] sm:$0xff]  ;;  %v2229_v47 = vmul.f32 %v4683_v1, %v1203_v39  ;;  %v3253_v52 = vadd.f32 %v4688_v5, %v2227_v41 }
 0x40d   : > { %4254 = vst [vmem:[%s4711_s25 + $0x1eb0] sm:$0xff] %v3230_v45  ;;  %v1205_v45 = vld [vmem:[%s4676_s5 + $0x1f88] sm:$0xff]  ;;  %v2230_v50 = vmul.f32 %v4683_v1, %v1204_v42  ;;  %v3254_v55 = vadd.f32 %v4688_v5, %v2228_v44 }
 0x40e   : > { %4255 = vst [vmem:[%s4711_s25 + $0x1eb8] sm:$0xff] %v3231_v48  ;;  %v1206_v48 = vld [vmem:[%s4676_s5 + $0x1f90] sm:$0xff]  ;;  %v2231_v53 = vmul.f32 %v4683_v1, %v1205_v45  ;;  %v3255_v58 = vadd.f32 %v4688_v5, %v2229_v47 }
 0x40f   : > { %4256 = vst [vmem:[%s4711_s25 + $0x1ec0] sm:$0xff] %v3232_v51  ;;  %v1207_v51 = vld [vmem:[%s4676_s5 + $0x1f98] sm:$0xff]  ;;  %v2232_v56 = vmul.f32 %v4683_v1, %v1206_v48  ;;  %v3256_v61 = vadd.f32 %v4688_v5, %v2230_v50 }
 0x410   : > { %4257 = vst [vmem:[%s4711_s25 + $0x1ec8] sm:$0xff] %v3233_v54  ;;  %v1208_v54 = vld [vmem:[%s4676_s5 + $0x1fa0] sm:$0xff]  ;;  %v2233_v59 = vmul.f32 %v4683_v1, %v1207_v51  ;;  %v3257_v0 = vadd.f32 %v4688_v5, %v2231_v53 }
 0x411   : > { %4258 = vst [vmem:[%s4711_s25 + $0x1ed0] sm:$0xff] %v3234_v57  ;;  %v1209_v57 = vld [vmem:[%s4676_s5 + $0x1fa8] sm:$0xff]  ;;  %v2234_v62 = vmul.f32 %v4683_v1, %v1208_v54  ;;  %v3258_v4 = vadd.f32 %v4688_v5, %v2232_v56 }
 0x412   : > { %4259 = vst [vmem:[%s4711_s25 + $0x1ed8] sm:$0xff] %v3235_v60  ;;  %v1210_v60 = vld [vmem:[%s4676_s5 + $0x1fb0] sm:$0xff]  ;;  %v2235_v2 = vmul.f32 %v4683_v1, %v1209_v57  ;;  %v3259_v8 = vadd.f32 %v4688_v5, %v2233_v59 }
 0x413   : > { %4260 = vst [vmem:[%s4711_s25 + $0x1ee0] sm:$0xff] %v3236_v63  ;;  %v1211_v63 = vld [vmem:[%s4676_s5 + $0x1fb8] sm:$0xff]  ;;  %v2236_v6 = vmul.f32 %v4683_v1, %v1210_v60  ;;  %v3260_v11 = vadd.f32 %v4688_v5, %v2234_v62 }
 0x414   : > { %4261 = vst [vmem:[%s4711_s25 + $0x1ee8] sm:$0xff] %v3237_v3  ;;  %v1212_v3 = vld [vmem:[%s4676_s5 + $0x1fc0] sm:$0xff]  ;;  %v2237_v9 = vmul.f32 %v4683_v1, %v1211_v63  ;;  %v3261_v14 = vadd.f32 %v4688_v5, %v2235_v2 }
 0x415   : > { %4262 = vst [vmem:[%s4711_s25 + $0x1ef0] sm:$0xff] %v3238_v7  ;;  %v1213_v7 = vld [vmem:[%s4676_s5 + $0x1fc8] sm:$0xff]  ;;  %v2238_v12 = vmul.f32 %v4683_v1, %v1212_v3  ;;  %v3262_v17 = vadd.f32 %v4688_v5, %v2236_v6 }
 0x416   : > { %4263 = vst [vmem:[%s4711_s25 + $0x1ef8] sm:$0xff] %v3239_v10  ;;  %v1214_v10 = vld [vmem:[%s4676_s5 + $0x1fd0] sm:$0xff]  ;;  %v2239_v15 = vmul.f32 %v4683_v1, %v1213_v7  ;;  %v3263_v20 = vadd.f32 %v4688_v5, %v2237_v9 }
 0x417   : > { %4264 = vst [vmem:[%s4711_s25 + $0x1f00] sm:$0xff] %v3240_v13  ;;  %v1215_v13 = vld [vmem:[%s4676_s5 + $0x1fd8] sm:$0xff]  ;;  %v2240_v18 = vmul.f32 %v4683_v1, %v1214_v10  ;;  %v3264_v23 = vadd.f32 %v4688_v5, %v2238_v12 }
 0x418   : > { %4265 = vst [vmem:[%s4711_s25 + $0x1f08] sm:$0xff] %v3241_v16  ;;  %v1216_v16 = vld [vmem:[%s4676_s5 + $0x1fe0] sm:$0xff]  ;;  %v2241_v21 = vmul.f32 %v4683_v1, %v1215_v13  ;;  %v3265_v26 = vadd.f32 %v4688_v5, %v2239_v15 }
 0x419   : > { %4266 = vst [vmem:[%s4711_s25 + $0x1f10] sm:$0xff] %v3242_v19  ;;  %v1217_v19 = vld [vmem:[%s4676_s5 + $0x1fe8] sm:$0xff]  ;;  %v2242_v24 = vmul.f32 %v4683_v1, %v1216_v16 }
 0x41a   : > { %4267 = vst [vmem:[%s4711_s25 + $0x1f18] sm:$0xff] %v3243_v22  ;;  %v1218_v22 = vld [vmem:[%s4676_s5 + $0x1ff0] sm:$0xff]  ;;  %v2243_v27 = vmul.f32 %v4683_v1, %v1217_v19  ;;  %v3267_v30 = vadd.f32 %v4688_v5, %v2241_v21 }
 0x41b   : > { %4268 = vst [vmem:[%s4711_s25 + $0x1f20] sm:$0xff] %v3244_v25  ;;  %v1219_v25 = vld [vmem:[%s4676_s5 + $0x1ff8] sm:$0xff]  ;;  %v2244_v29 = vmul.f32 %v4683_v1, %v1218_v22  ;;  %v3268_v32 = vadd.f32 %v4688_v5, %v2242_v24 }
 0x41c   : > { %4269 = vst [vmem:[%s4711_s25 + $0x1f28] sm:$0xff] %v3245_v28  ;;  %v3266_v28 = vadd.f32 %v4688_v5, %v2240_v18  ;;  %v3269_v33 = vadd.f32 %v4688_v5, %v2243_v27 }
 0x41d   : > { %4270 = vst [vmem:[%s4711_s25 + $0x1f30] sm:$0xff] %v3246_v31  ;;  %v2245_v31 = vmul.f32 %v4683_v1, %v1219_v25 }
 0x41e   : > { %4271 = vst [vmem:[%s4711_s25 + $0x1f38] sm:$0xff] %v3247_v34  ;;  %v3270_v34 = vadd.f32 %v4688_v5, %v2244_v29 }
 0x41f   : > { %4272 = vst [vmem:[%s4711_s25 + $0x1f40] sm:$0xff] %v3248_v37  ;;  %v3271_v35 = vadd.f32 %v4688_v5, %v2245_v31 }
 0x420   : > { %4273 = vst [vmem:[%s4711_s25 + $0x1f48] sm:$0xff] %v3249_v40 }
 0x421   : > { %4274 = vst [vmem:[%s4711_s25 + $0x1f50] sm:$0xff] %v3250_v43 }
 0x422   : > { %4275 = vst [vmem:[%s4711_s25 + $0x1f58] sm:$0xff] %v3251_v46 }
 0x423   : > { %4276 = vst [vmem:[%s4711_s25 + $0x1f60] sm:$0xff] %v3252_v49 }
 0x424   : > { %4277 = vst [vmem:[%s4711_s25 + $0x1f68] sm:$0xff] %v3253_v52 }
 0x425   : > { %4278 = vst [vmem:[%s4711_s25 + $0x1f70] sm:$0xff] %v3254_v55 }
 0x426   : > { %4279 = vst [vmem:[%s4711_s25 + $0x1f78] sm:$0xff] %v3255_v58 }
 0x427   : > { %4280 = vst [vmem:[%s4711_s25 + $0x1f80] sm:$0xff] %v3256_v61 }
 0x428   : > { %4281 = vst [vmem:[%s4711_s25 + $0x1f88] sm:$0xff] %v3257_v0 }
 0x429   : > { %4282 = vst [vmem:[%s4711_s25 + $0x1f90] sm:$0xff] %v3258_v4 }
 0x42a   : > { %4283 = vst [vmem:[%s4711_s25 + $0x1f98] sm:$0xff] %v3259_v8 }
 0x42b   : > { %4284 = vst [vmem:[%s4711_s25 + $0x1fa0] sm:$0xff] %v3260_v11 }
 0x42c   : > { %4285 = vst [vmem:[%s4711_s25 + $0x1fa8] sm:$0xff] %v3261_v14 }
 0x42d   : > { %4286 = vst [vmem:[%s4711_s25 + $0x1fb0] sm:$0xff] %v3262_v17 }
 0x42e   : > { %4287 = vst [vmem:[%s4711_s25 + $0x1fb8] sm:$0xff] %v3263_v20 }
 0x42f   : > { %4288 = vst [vmem:[%s4711_s25 + $0x1fc0] sm:$0xff] %v3264_v23 }
 0x430   : > { %4289 = vst [vmem:[%s4711_s25 + $0x1fc8] sm:$0xff] %v3265_v26 }
 0x431   : > { %4290 = vst [vmem:[%s4711_s25 + $0x1fd0] sm:$0xff] %v3266_v28 }
 0x432   : > { %4291 = vst [vmem:[%s4711_s25 + $0x1fd8] sm:$0xff] %v3267_v30 }
 0x433   : > { %4292 = vst [vmem:[%s4711_s25 + $0x1fe0] sm:$0xff] %v3268_v32 }
 0x434   : > { %4293 = vst [vmem:[%s4711_s25 + $0x1fe8] sm:$0xff] %v3269_v33 }
 0x435   : > { %4294 = vst [vmem:[%s4711_s25 + $0x1ff0] sm:$0xff] %v3270_v34 }
 0x436   : > { %4295 = vst [vmem:[%s4711_s25 + $0x1ff8] sm:$0xff] %v3271_v35 }
 0x437   : > { %4513 = shalt.err (!%p4510_p4)
}
 0x438   : > { %s4556_s29 = smov 1024   ;;  %s4557_s30 = smov 64  }
 0x439   : > { %4408 = dma.vmem_to_hbm [thread:$0]  (%p4634_p11), %s4311_s11, 131072, %s4313_s12, %s4297_s13, %s4556_s29, %s4556_s29, %s4557_s30  }
 0x43a PF: > { %s4327_s4 = sand.u32 1, %s4540_s16   ;;  %p8829_p7 = scmp.ge.s32.totalorder %s4552_s19, 2 }
 0x43b   : > { %s4328_s5 = scalar_lea.sflag [#allocation6], %s4327_s4 }
 0x43c   : > { %p4415_p5 = pnand %p8829_p7, %p4638_p12 }
 0x43e   : > { %p4416_p8 = pneg %p4415_p5 }
 0x440   : > { %4535 = dma.done.wait (%p4416_p8), %s4328_s5, 131072  }
 0x441   : > { %4537 = vsyncadd (%p4416_p8), %s4328_s5, 4294836224  ;;  %p18_p10 = scmp.ge.s32.totalorder %s4609_s20, 4   ;;  %s8830_s16 = smov %s4544_s17 }
 0x442   : > { %s8831_s17 = smov %s4548_s18  ;;  %s8832_s18 = smov %s4621_s23 }
 0x443   : > { %s8833_s19 = smov %s4609_s20  ;;  %20 = sbr.rel (!%p18_p10) target bundleno = 8 (0x8), region = 77 }
 0x448   :  { %4334 = vsyncpa [#allocation5], 1 }
 0x449   :  { %4336 = vsyncpa [#allocation5 + $0x1], 1 }
 0x44a   :  { %4337 = vsyncpa [#allocation6], 1 }
 0x44b   :  { %4339 = vsyncpa [#allocation6 + $0x1], 1 }

</bundles_post_ra>
